<compile_context>
chip_gen: v7x
topology: tpu7x:2x2x1
jax: 0.10.0
libtpu: 0.0.40
codegen_flags: <defaults>
</compile_context>

<pallas_src>
import functools

import jax
import jax.numpy as jnp
from jax.experimental import pallas as pl
from jax.experimental.pallas import tpu as pltpu


# ---------------------------------------------------------------------------
# Kernel A: 1x1x1 conv + folded BN + ReLU  (flat-row matmul)
# ---------------------------------------------------------------------------
def _conv1_kernel(x_ref, w_ref, t_ref, o_ref):
    y = jnp.dot(x_ref[...], w_ref[...], preferred_element_type=jnp.float32)
    o_ref[...] = jnp.maximum(y + t_ref[...], 0.0).astype(jnp.bfloat16)


def _pad_rows(a, m_pad):
    m = a.shape[0]
    return a if m_pad == m else jnp.pad(a, ((0, m_pad - m), (0, 0)))


def _pick_row_tile(m_pad, min_steps=4):
    # biggest tile that still gives >= min_steps grid steps (v7x dual-TC)
    for t in (1024, 512, 256, 128):
        if m_pad % t == 0 and m_pad // t >= min_steps:
            return t
    for t in (1024, 512, 256, 128):
        if m_pad % t == 0:
            return t
    return m_pad


def conv1_bn_relu(x_flat, w, t):
    """relu(x @ w + t); bf16 operands, f32 MXU accumulation, bf16 output."""
    M, K = x_flat.shape
    C = w.shape[1]
    m_pad = pl.cdiv(M, 128) * 128
    TM = _pick_row_tile(m_pad)
    out = pl.pallas_call(
        _conv1_kernel,
        out_shape=jax.ShapeDtypeStruct((m_pad, C), jnp.bfloat16),
        grid=(m_pad // TM,),
        in_specs=[
            pl.BlockSpec((TM, K), lambda i: (i, 0)),
            pl.BlockSpec((K, C), lambda i: (0, 0)),
            pl.BlockSpec((1, C), lambda i: (0, 0)),
        ],
        out_specs=pl.BlockSpec((TM, C), lambda i: (i, 0)),
        compiler_params=pltpu.CompilerParams(dimension_semantics=("parallel",)),
    )(_pad_rows(x_flat, m_pad), w, t)
    return out[:M]


# ---------------------------------------------------------------------------
# Kernel B: conv2 (3x3x3 grouped, via 27 in-kernel tap matmuls) + BN2 + ReLU,
#           conv3 + BN3, shortcut (+BN), dual-path combine, final ReLU.
# ---------------------------------------------------------------------------
def _make_tail_kernel(*, BD, Ho, Wo, stride, C_in, has_shortcut, sc_pad):
    taps = [(kd, kh, kw) for kd in range(3) for kh in range(3) for kw in range(3)]
    rows = BD * Ho * Wo

    def _sp(start, size):
        # static-start spatial slice (strided only when stride > 1)
        if stride == 1:
            return slice(start, start + size)
        return pl.ds(start, size, stride=stride)

    def kernel(h1p_ref, xs_ref, w2_ref, t2_ref, w3_ref, t3_ref, *rest):
        if has_shortcut:
            wsc_ref, tsc_ref, o_ref = rest
        else:
            (o_ref,) = rest

        dz0 = pl.program_id(1) * (BD * stride)

        # conv2: accumulate 27 taps directly from the resident padded-h1 volume
        acc = None
        for t, (kd, kh, kw) in enumerate(taps):
            if stride == 1:
                dsl = pl.ds(dz0 + kd, BD)
            else:
                dsl = pl.ds(dz0 + kd, BD, stride=stride)
            patch = h1p_ref[0, dsl, _sp(kh, Ho), _sp(kw, Wo), :]
            part = jnp.dot(patch.reshape(rows, C_in), w2_ref[t],
                           preferred_element_type=jnp.float32)
            acc = part if acc is None else acc + part

        h2 = jnp.maximum(acc + t2_ref[...], 0.0).astype(jnp.bfloat16)
        # conv3 + BN3, columns pre-scattered into the padded dual-path layout
        h3 = jnp.dot(h2, w3_ref[...], preferred_element_type=jnp.float32) + t3_ref[...]

        xs = xs_ref[...].reshape(rows, xs_ref.shape[-1])
        if has_shortcut:
            sc = (jnp.dot(xs, wsc_ref[...], preferred_element_type=jnp.float32)
                  + tsc_ref[...])
        else:
            sc = xs.astype(jnp.float32)          # f32 residual (identity path)
            if sc_pad:
                sc = jnp.concatenate(
                    [sc, jnp.zeros((rows, sc_pad), jnp.float32)], axis=-1)

        out = jnp.maximum(h3 + sc, 0.0).astype(jnp.bfloat16)
        o_ref[...] = out.reshape(o_ref.shape)

    return kernel


def _pick_depth_block(n_batch, d_out, min_steps=4):
    # biggest depth block (divisor of Do) that still yields >= min_steps steps
    for b in [b for b in range(d_out, 0, -1) if d_out % b == 0]:
        if n_batch * (d_out // b) >= min_steps:
            return b
    return d_out


def dpn_tail(h1p, xs, params, *, Do, Ho, Wo, stride, first_layer):
    N, Dp, Hp, Wp, C_in = h1p.shape
    C_xs = xs.shape[-1]
    C_out_pad = params["w3"].shape[1]          # padded to a multiple of 128
    BD = _pick_depth_block(N, Do)
    sc_pad = 0 if first_layer else C_out_pad - C_xs

    kernel = _make_tail_kernel(BD=BD, Ho=Ho, Wo=Wo, stride=stride, C_in=C_in,
                               has_shortcut=first_layer, sc_pad=sc_pad)

    in_specs = [
        # padded h1 volume, resident per batch item (constant along db axis)
        pl.BlockSpec((1, Dp, Hp, Wp, C_in), lambda n, db: (n, 0, 0, 0, 0)),
        # shortcut rows, tiled with the output
        pl.BlockSpec((1, BD, Ho, Wo, C_xs), lambda n, db: (n, db, 0, 0, 0)),
        pl.BlockSpec((27, C_in, C_in), lambda n, db: (0, 0, 0)),
        pl.BlockSpec((1, C_in), lambda n, db: (0, 0)),
        pl.BlockSpec((C_in, C_out_pad), lambda n, db: (0, 0)),
        pl.BlockSpec((1, C_out_pad), lambda n, db: (0, 0)),
    ]
    args = [h1p, xs, params["w2"], params["t2"], params["w3"], params["t3"]]
    if first_layer:
        in_specs += [
            pl.BlockSpec((C_xs, C_out_pad), lambda n, db: (0, 0)),
            pl.BlockSpec((1, C_out_pad), lambda n, db: (0, 0)),
        ]
        args += [params["wsc"], params["tsc"]]

    return pl.pallas_call(
        kernel,
        out_shape=jax.ShapeDtypeStruct((N, Do, Ho, Wo, C_out_pad), jnp.bfloat16),
        grid=(N, Do // BD),
        in_specs=in_specs,
        out_specs=pl.BlockSpec((1, BD, Ho, Wo, C_out_pad),
                               lambda n, db: (n, db, 0, 0, 0)),
        compiler_params=pltpu.CompilerParams(
            dimension_semantics=("parallel", "parallel")),
    )(*args)


# ---------------------------------------------------------------------------
# Parameter construction (deterministic synthetic weights, inference-mode BN
# folded into the weights; shift kept as an additive epilogue term)
# ---------------------------------------------------------------------------
def _bn_fold(key, cout):
    kg, kb, km, kv = jax.random.split(key, 4)
    gamma = 1.0 + 0.1 * jax.random.normal(kg, (cout,), jnp.float32)
    beta = 0.1 * jax.random.normal(kb, (cout,), jnp.float32)
    mean = 0.05 * jax.random.normal(km, (cout,), jnp.float32)
    var = 1.0 + 0.1 * jnp.abs(jax.random.normal(kv, (cout,), jnp.float32))
    scale = gamma * jax.lax.rsqrt(var + 1e-5)
    shift = beta - mean * scale
    return scale, shift


def _conv1x1_weight(key, cin, cout):
    return jax.random.normal(key, (cin, cout), jnp.float32) * (2.0 / cin) ** 0.5


def _grouped_conv2_weight(key, c, groups):
    """Per-tap dense (27, c_in, c_out) weights for Conv3d(c, c, 3, groups=g);
    block-diagonal across groups; tap index = kd*9 + kh*3 + kw."""
    cpg = c // groups
    fan_in = cpg * 27
    w = jax.random.normal(key, (groups, cpg, cpg, 27), jnp.float32) * \
        (2.0 / fan_in) ** 0.5                                # (g, o, i, tap)
    eye = jnp.eye(groups, dtype=jnp.float32)
    dense = jnp.einsum('goit,gh->gohit', w, eye)             # (g,o,h,i,tap)
    dense = dense.reshape(c, c, 27)                          # (cout, cin, tap)
    return jnp.transpose(dense, (2, 1, 0))                   # (tap, cin, cout)


def _place_main(a, d, dd, c_pad):
    """conv3/bn3 columns (..., d+dd) -> padded final dual-path layout."""
    z1 = jnp.zeros(a.shape[:-1] + (dd,), a.dtype)
    z2 = jnp.zeros(a.shape[:-1] + (c_pad - d - 2 * dd,), a.dtype)
    return jnp.concatenate([a[..., :d], z1, a[..., d:], z2], axis=-1)


def _place_shortcut(a, d, dd, c_pad):
    z = jnp.zeros(a.shape[:-1] + (c_pad - d - dd,), a.dtype)
    return jnp.concatenate([a, z], axis=-1)


def build_dpn_params(key, last_planes, in_planes, out_planes, dense_depth,
                     first_layer, groups=32):
    d, dd = out_planes, dense_depth
    c_od = d + dd
    c_pad = pl.cdiv(d + 2 * dd, 128) * 128       # lane-dense output width
    k1, k2, k3, k4, kb1, kb2, kb3, kbs = jax.random.split(key, 8)

    s1, t1 = _bn_fold(kb1, in_planes)
    w1f = _conv1x1_weight(k1, last_planes, in_planes) * s1[None, :]

    s2, t2 = _bn_fold(kb2, in_planes)
    w2f = _grouped_conv2_weight(k2, in_planes, groups) * s2[None, None, :]

    s3, t3 = _bn_fold(kb3, c_od)
    w3f = _conv1x1_weight(k3, in_planes, c_od) * s3[None, :]

    raw = {"w1": w1f, "t1": t1, "w2": w2f, "t2": t2, "w3": w3f, "t3": t3}
    params = {
        "w1": w1f.astype(jnp.bfloat16), "t1": t1.reshape(1, in_planes),
        "w2": w2f.astype(jnp.bfloat16), "t2": t2.reshape(1, in_planes),
        "w3": _place_main(w3f, d, dd, c_pad).astype(jnp.bfloat16),
        "t3": _place_main(t3.reshape(1, c_od), d, dd, c_pad),
    }
    if first_layer:
        ss, ts = _bn_fold(kbs, c_od)
        wscf = _conv1x1_weight(k4, last_planes, c_od) * ss[None, :]
        raw["wsc"], raw["tsc"] = wscf, ts
        params["wsc"] = _place_shortcut(wscf, d, dd, c_pad).astype(jnp.bfloat16)
        params["tsc"] = _place_shortcut(ts.reshape(1, c_od), d, dd, c_pad)
    return params, raw


# ---------------------------------------------------------------------------
# Forward pass
# ---------------------------------------------------------------------------
def dpn_bottleneck_forward(x_ncdhw, params, *, out_planes, dense_depth,
                           stride, first_layer):
    d, dd = out_planes, dense_depth
    N, C_last, D, H, W = x_ncdhw.shape
    # Single NCDHW -> NDHWC transpose with the bf16 cast fused in; reused for
    # both the conv1 input and the shortcut rows.
    x_bf = jnp.transpose(x_ncdhw, (0, 2, 3, 4, 1)).astype(jnp.bfloat16)

    # stage 1: 1x1 conv1 + bn1 + relu
    h1 = conv1_bn_relu(x_bf.reshape(N * D * H * W, C_last),
                       params["w1"], params["t1"])
    C_in = h1.shape[1]
    # zero halo for conv2 padding=1 (bf16, ~1x h1 traffic; no 27x im2col)
    h1p = jnp.pad(h1.reshape(N, D, H, W, C_in),
                  ((0, 0), (1, 1), (1, 1), (1, 1), (0, 0)))

    Do = (D - 1) // stride + 1
    Ho = (H - 1) // stride + 1
    Wo = (W - 1) // stride + 1

    if first_layer:
        xs = x_bf[:, ::stride, ::stride, ::stride, :]        # (N,Do,Ho,Wo,C_last)
    else:
        if stride != 1:
            raise ValueError("identity shortcut requires stride == 1")
        if C_last != d + dd:
            raise ValueError("identity shortcut requires "
                             "last_planes == out_planes + dense_depth")
        # keep the residual add in f32 for bit-closeness of the identity path
        xs = jnp.transpose(x_ncdhw, (0, 2, 3, 4, 1)).astype(jnp.float32)

    out = dpn_tail(h1p, xs, params, Do=Do, Ho=Ho, Wo=Wo, stride=stride,
                   first_layer=first_layer)
    out = out[..., : d + 2 * dd].astype(jnp.float32)
    return jnp.transpose(out, (0, 4, 1, 2, 3))               # back to NCDHW


# ---------------------------------------------------------------------------
# Pure-JAX f32 reference (same folded-BN inference semantics)
# ---------------------------------------------------------------------------
def reference_forward(x_ncdhw, raw, *, out_planes, dense_depth, stride,
                      first_layer):
    d = out_planes
    x = jnp.transpose(x_ncdhw, (0, 2, 3, 4, 1)).astype(jnp.float32)
    N, D, H, W, _ = x.shape
    h1 = jnp.maximum(x @ raw["w1"] + raw["t1"], 0.0)
    h1p = jnp.pad(h1, ((0, 0), (1, 1), (1, 1), (1, 1), (0, 0)))
    Do = (D - 1) // stride + 1
    Ho = (H - 1) // stride + 1
    Wo = (W - 1) // stride + 1
    acc, t = 0.0, 0
    for kd in range(3):
        for kh in range(3):
            for kw in range(3):
                patch = h1p[:, kd:kd + stride * (Do - 1) + 1:stride,
                            kh:kh + stride * (Ho - 1) + 1:stride,
                            kw:kw + stride * (Wo - 1) + 1:stride, :]
                acc = acc + patch @ raw["w2"][t]
                t += 1
    h2 = jnp.maximum(acc + raw["t2"], 0.0)
    h3 = h2 @ raw["w3"] + raw["t3"]
    xs = x[:, ::stride, ::stride, ::stride, :]
    sc = xs @ raw["wsc"] + raw["tsc"] if first_layer else xs
    out = jnp.concatenate([sc[..., :d] + h3[..., :d], sc[..., d:], h3[..., d:]],
                          axis=-1)
    out = jnp.maximum(out, 0.0)
    return jnp.transpose(out, (0, 4, 1, 2, 3))


# ---------------------------------------------------------------------------
if __name__ == "__main__":
    key = jax.random.PRNGKey(0)
    kx, kp = jax.random.split(key)

    # DPNBottleneck(last_planes=64, in_planes=64, out_planes=64,
    #               dense_depth=16, stride=1, first_layer=True)
    last_planes, in_planes, out_planes, dense_depth = 64, 64, 64, 16
    stride, first_layer = 1, True

    x = jax.random.normal(kx, (2, last_planes, 8, 8, 8), jnp.float32)
    params, raw = build_dpn_params(kp, last_planes, in_planes, out_planes,
                                   dense_depth, first_layer)

    fwd = jax.jit(functools.partial(
        dpn_bottleneck_forward, out_planes=out_planes, dense_depth=dense_depth,
        stride=stride, first_layer=first_layer))
    out = jax.block_until_ready(fwd(x, params))

    assert out.shape == (2, out_planes + 2 * dense_depth, 8, 8, 8), out.shape
    assert bool(jnp.all(jnp.isfinite(out)))

    ref = reference_forward(x, raw, out_planes=out_planes,
                            dense_depth=dense_depth, stride=stride,
                            first_layer=first_layer)
    err = float(jnp.max(jnp.abs(out - ref)) / (jnp.max(jnp.abs(ref)) + 1e-6))
    assert err < 5e-2, f"max relative error vs f32 reference: {err:.3e}"
    print("KERNEL_OK")
</pallas_src>

<mosaic_0001>
module attributes {stable_mosaic.version = 11 : i64} {
  func.func @_conv1_kernel(%arg0: i32, %arg1: memref<256x64xbf16, #tpu.memory_space<vmem>>, %arg2: memref<64x64xbf16, #tpu.memory_space<vmem>>, %arg3: memref<1x64xf32, #tpu.memory_space<vmem>>, %arg4: memref<256x64xbf16, #tpu.memory_space<vmem>>) attributes {dimension_semantics = [#tpu.dimension_semantics<parallel>], iteration_bounds = array<i64: 4>, scalar_prefetch = 0 : i64, scratch_operands = 0 : i64, tpu.core_type = #tpu.core_type<tc>, window_params = [{transform_indices = @transform_0, window_bounds = array<i64: 256, 64>}, {pipeline_mode = #tpu.pipeline_mode<synchronous>, transform_indices = @transform_1, window_bounds = array<i64: 64, 64>}, {pipeline_mode = #tpu.pipeline_mode<synchronous>, transform_indices = @transform_2, window_bounds = array<i64: 1, 64>}, {transform_indices = @transform_3, window_bounds = array<i64: 256, 64>}]} {
    %c0 = arith.constant 0 : index
    %c0_0 = arith.constant 0 : index
    %0 = vector.load %arg1[%c0, %c0_0] : memref<256x64xbf16, #tpu.memory_space<vmem>>, vector<256x64xbf16>
    %c0_1 = arith.constant 0 : index
    %c0_2 = arith.constant 0 : index
    %1 = vector.load %arg2[%c0_1, %c0_2] : memref<64x64xbf16, #tpu.memory_space<vmem>>, vector<64x64xbf16>
    %cst = arith.constant dense<0.000000e+00> : vector<256x64xf32>
    %2 = tpu.matmul %0, %1, %cst {dimension_numbers = #tpu.dot_dimension_numbers<[1], [0], [0], [1], [0, 0, 1, 1], [], []>} : vector<256x64xbf16>, vector<64x64xbf16>, vector<256x64xf32> -> vector<256x64xf32>
    %c0_3 = arith.constant 0 : index
    %c0_4 = arith.constant 0 : index
    %3 = vector.load %arg3[%c0_3, %c0_4] : memref<1x64xf32, #tpu.memory_space<vmem>>, vector<1x64xf32>
    %4 = vector.broadcast %3 : vector<1x64xf32> to vector<256x64xf32>
    %5 = arith.addf %2, %4 : vector<256x64xf32>
    %cst_5 = arith.constant 0.000000e+00 : f32
    %6 = vector.broadcast %cst_5 : f32 to vector<256x64xf32>
    %7 = arith.maximumf %5, %6 : vector<256x64xf32>
    %8 = arith.truncf %7 : vector<256x64xf32> to vector<256x64xbf16>
    %c0_6 = arith.constant 0 : index
    %c0_7 = arith.constant 0 : index
    %9 = vector.load %arg4[%c0_6, %c0_7] : memref<256x64xbf16, #tpu.memory_space<vmem>>, vector<256x64xbf16>
    tpu.vector_store %arg4[%c0_6, %c0_7], %8 {strides = array<i32>} : memref<256x64xbf16, #tpu.memory_space<vmem>>, vector<256x64xbf16>,
    return
  }
  func.func @transform_0(%arg0: i32) -> (i32, i32) {
    %c0_i32 = arith.constant 0 : i32
    %c0_i32_0 = arith.constant 0 : i32
    return %arg0, %c0_i32 : i32, i32
  }
  func.func @transform_1(%arg0: i32) -> (i32, i32) {
    %c0_i32 = arith.constant 0 : i32
    %c0_i32_0 = arith.constant 0 : i32
    %c0_i32_1 = arith.constant 0 : i32
    return %c0_i32, %c0_i32_0 : i32, i32
  }
  func.func @transform_2(%arg0: i32) -> (i32, i32) {
    %c0_i32 = arith.constant 0 : i32
    %c0_i32_0 = arith.constant 0 : i32
    %c0_i32_1 = arith.constant 0 : i32
    return %c0_i32, %c0_i32_0 : i32, i32
  }
  func.func @transform_3(%arg0: i32) -> (i32, i32) {
    %c0_i32 = arith.constant 0 : i32
    %c0_i32_0 = arith.constant 0 : i32
    return %arg0, %c0_i32 : i32, i32
  }
}

module attributes {stable_mosaic.version = 11 : i64} {
  func.func @kernel(%arg0: i32, %arg1: i32, %arg2: memref<1x10x10x10x64xbf16, #tpu.memory_space<vmem>>, %arg3: memref<1x4x8x8x64xbf16, #tpu.memory_space<vmem>>, %arg4: memref<27x64x64xbf16, #tpu.memory_space<vmem>>, %arg5: memref<1x64xf32, #tpu.memory_space<vmem>>, %arg6: memref<64x128xbf16, #tpu.memory_space<vmem>>, %arg7: memref<1x128xf32, #tpu.memory_space<vmem>>, %arg8: memref<64x128xbf16, #tpu.memory_space<vmem>>, %arg9: memref<1x128xf32, #tpu.memory_space<vmem>>, %arg10: memref<1x4x8x8x128xbf16, #tpu.memory_space<vmem>>) attributes {dimension_semantics = [#tpu.dimension_semantics<parallel>, #tpu.dimension_semantics<parallel>], iteration_bounds = array<i64: 2, 2>, scalar_prefetch = 0 : i64, scratch_operands = 0 : i64, tpu.core_type = #tpu.core_type<tc>, window_params = [{transform_indices = @transform_0, window_bounds = array<i64: 1, 10, 10, 10, 64>}, {transform_indices = @transform_1, window_bounds = array<i64: 1, 4, 8, 8, 64>}, {pipeline_mode = #tpu.pipeline_mode<synchronous>, transform_indices = @transform_2, window_bounds = array<i64: 27, 64, 64>}, {pipeline_mode = #tpu.pipeline_mode<synchronous>, transform_indices = @transform_3, window_bounds = array<i64: 1, 64>}, {pipeline_mode = #tpu.pipeline_mode<synchronous>, transform_indices = @transform_4, window_bounds = array<i64: 64, 128>}, {pipeline_mode = #tpu.pipeline_mode<synchronous>, transform_indices = @transform_5, window_bounds = array<i64: 1, 128>}, {pipeline_mode = #tpu.pipeline_mode<synchronous>, transform_indices = @transform_6, window_bounds = array<i64: 64, 128>}, {pipeline_mode = #tpu.pipeline_mode<synchronous>, transform_indices = @transform_7, window_bounds = array<i64: 1, 128>}, {transform_indices = @transform_8, window_bounds = array<i64: 1, 4, 8, 8, 128>}]} {
    %c4_i32 = arith.constant 4 : i32
    %0 = arith.muli %arg1, %c4_i32 : i32
    %c0_i32 = arith.constant 0 : i32
    %1 = arith.addi %0, %c0_i32 : i32
    %c0 = arith.constant 0 : index
    %2 = arith.index_cast %1 : i32 to index
    %c0_0 = arith.constant 0 : index
    %c0_1 = arith.constant 0 : index
    %c0_2 = arith.constant 0 : index
    %3 = vector.load %arg2[%c0, %2, %c0_0, %c0_1, %c0_2] : memref<1x10x10x10x64xbf16, #tpu.memory_space<vmem>>, vector<1x4x8x8x64xbf16>
    %4 = vector.shape_cast %3 : vector<1x4x8x8x64xbf16> to vector<4x8x8x64xbf16>
    %5 = vector.shape_cast %4 : vector<4x8x8x64xbf16> to vector<256x64xbf16>
    %c0_3 = arith.constant 0 : index
    %c0_4 = arith.constant 0 : index
    %c0_5 = arith.constant 0 : index
    %6 = vector.load %arg4[%c0_3, %c0_4, %c0_5] : memref<27x64x64xbf16, #tpu.memory_space<vmem>>, vector<1x64x64xbf16>
    %7 = vector.shape_cast %6 : vector<1x64x64xbf16> to vector<64x64xbf16>
    %cst = arith.constant dense<0.000000e+00> : vector<256x64xf32>
    %8 = tpu.matmul %5, %7, %cst {dimension_numbers = #tpu.dot_dimension_numbers<[1], [0], [0], [1], [0, 0, 1, 1], [], []>} : vector<256x64xbf16>, vector<64x64xbf16>, vector<256x64xf32> -> vector<256x64xf32>
    %c0_i32_6 = arith.constant 0 : i32
    %9 = arith.addi %0, %c0_i32_6 : i32
    %c0_7 = arith.constant 0 : index
    %10 = arith.index_cast %9 : i32 to index
    %c0_8 = arith.constant 0 : index
    %c1 = arith.constant 1 : index
    %c0_9 = arith.constant 0 : index
    %11 = vector.load %arg2[%c0_7, %10, %c0_8, %c1, %c0_9] : memref<1x10x10x10x64xbf16, #tpu.memory_space<vmem>>, vector<1x4x8x8x64xbf16>
    %12 = vector.shape_cast %11 : vector<1x4x8x8x64xbf16> to vector<4x8x8x64xbf16>
    %13 = vector.shape_cast %12 : vector<4x8x8x64xbf16> to vector<256x64xbf16>
    %c1_10 = arith.constant 1 : index
    %c0_11 = arith.constant 0 : index
    %c0_12 = arith.constant 0 : index
    %14 = vector.load %arg4[%c1_10, %c0_11, %c0_12] : memref<27x64x64xbf16, #tpu.memory_space<vmem>>, vector<1x64x64xbf16>
    %15 = vector.shape_cast %14 : vector<1x64x64xbf16> to vector<64x64xbf16>
    %cst_13 = arith.constant dense<0.000000e+00> : vector<256x64xf32>
    %16 = tpu.matmul %13, %15, %cst_13 {dimension_numbers = #tpu.dot_dimension_numbers<[1], [0], [0], [1], [0, 0, 1, 1], [], []>} : vector<256x64xbf16>, vector<64x64xbf16>, vector<256x64xf32> -> vector<256x64xf32>
    %17 = arith.addf %8, %16 : vector<256x64xf32>
    %c0_i32_14 = arith.constant 0 : i32
    %18 = arith.addi %0, %c0_i32_14 : i32
    %c0_15 = arith.constant 0 : index
    %19 = arith.index_cast %18 : i32 to index
    %c0_16 = arith.constant 0 : index
    %c2 = arith.constant 2 : index
    %c0_17 = arith.constant 0 : index
    %20 = vector.load %arg2[%c0_15, %19, %c0_16, %c2, %c0_17] : memref<1x10x10x10x64xbf16, #tpu.memory_space<vmem>>, vector<1x4x8x8x64xbf16>
    %21 = vector.shape_cast %20 : vector<1x4x8x8x64xbf16> to vector<4x8x8x64xbf16>
    %22 = vector.shape_cast %21 : vector<4x8x8x64xbf16> to vector<256x64xbf16>
    %c2_18 = arith.constant 2 : index
    %c0_19 = arith.constant 0 : index
    %c0_20 = arith.constant 0 : index
    %23 = vector.load %arg4[%c2_18, %c0_19, %c0_20] : memref<27x64x64xbf16, #tpu.memory_space<vmem>>, vector<1x64x64xbf16>
    %24 = vector.shape_cast %23 : vector<1x64x64xbf16> to vector<64x64xbf16>
    %cst_21 = arith.constant dense<0.000000e+00> : vector<256x64xf32>
    %25 = tpu.matmul %22, %24, %cst_21 {dimension_numbers = #tpu.dot_dimension_numbers<[1], [0], [0], [1], [0, 0, 1, 1], [], []>} : vector<256x64xbf16>, vector<64x64xbf16>, vector<256x64xf32> -> vector<256x64xf32>
    %26 = arith.addf %17, %25 : vector<256x64xf32>
    %c0_i32_22 = arith.constant 0 : i32
    %27 = arith.addi %0, %c0_i32_22 : i32
    %c0_23 = arith.constant 0 : index
    %28 = arith.index_cast %27 : i32 to index
    %c1_24 = arith.constant 1 : index
    %c0_25 = arith.constant 0 : index
    %c0_26 = arith.constant 0 : index
    %29 = vector.load %arg2[%c0_23, %28, %c1_24, %c0_25, %c0_26] : memref<1x10x10x10x64xbf16, #tpu.memory_space<vmem>>, vector<1x4x8x8x64xbf16>
    %30 = vector.shape_cast %29 : vector<1x4x8x8x64xbf16> to vector<4x8x8x64xbf16>
    %31 = vector.shape_cast %30 : vector<4x8x8x64xbf16> to vector<256x64xbf16>
    %c3 = arith.constant 3 : index
    %c0_27 = arith.constant 0 : index
    %c0_28 = arith.constant 0 : index
    %32 = vector.load %arg4[%c3, %c0_27, %c0_28] : memref<27x64x64xbf16, #tpu.memory_space<vmem>>, vector<1x64x64xbf16>
    %33 = vector.shape_cast %32 : vector<1x64x64xbf16> to vector<64x64xbf16>
    %cst_29 = arith.constant dense<0.000000e+00> : vector<256x64xf32>
    %34 = tpu.matmul %31, %33, %cst_29 {dimension_numbers = #tpu.dot_dimension_numbers<[1], [0], [0], [1], [0, 0, 1, 1], [], []>} : vector<256x64xbf16>, vector<64x64xbf16>, vector<256x64xf32> -> vector<256x64xf32>
    %35 = arith.addf %26, %34 : vector<256x64xf32>
    %c0_i32_30 = arith.constant 0 : i32
    %36 = arith.addi %0, %c0_i32_30 : i32
    %c0_31 = arith.constant 0 : index
    %37 = arith.index_cast %36 : i32 to index
    %c1_32 = arith.constant 1 : index
    %c1_33 = arith.constant 1 : index
    %c0_34 = arith.constant 0 : index
    %38 = vector.load %arg2[%c0_31, %37, %c1_32, %c1_33, %c0_34] : memref<1x10x10x10x64xbf16, #tpu.memory_space<vmem>>, vector<1x4x8x8x64xbf16>
    %39 = vector.shape_cast %38 : vector<1x4x8x8x64xbf16> to vector<4x8x8x64xbf16>
    %40 = vector.shape_cast %39 : vector<4x8x8x64xbf16> to vector<256x64xbf16>
    %c4 = arith.constant 4 : index
    %c0_35 = arith.constant 0 : index
    %c0_36 = arith.constant 0 : index
    %41 = vector.load %arg4[%c4, %c0_35, %c0_36] : memref<27x64x64xbf16, #tpu.memory_space<vmem>>, vector<1x64x64xbf16>
    %42 = vector.shape_cast %41 : vector<1x64x64xbf16> to vector<64x64xbf16>
    %cst_37 = arith.constant dense<0.000000e+00> : vector<256x64xf32>
    %43 = tpu.matmul %40, %42, %cst_37 {dimension_numbers = #tpu.dot_dimension_numbers<[1], [0], [0], [1], [0, 0, 1, 1], [], []>} : vector<256x64xbf16>, vector<64x64xbf16>, vector<256x64xf32> -> vector<256x64xf32>
    %44 = arith.addf %35, %43 : vector<256x64xf32>
    %c0_i32_38 = arith.constant 0 : i32
    %45 = arith.addi %0, %c0_i32_38 : i32
    %c0_39 = arith.constant 0 : index
    %46 = arith.index_cast %45 : i32 to index
    %c1_40 = arith.constant 1 : index
    %c2_41 = arith.constant 2 : index
    %c0_42 = arith.constant 0 : index
    %47 = vector.load %arg2[%c0_39, %46, %c1_40, %c2_41, %c0_42] : memref<1x10x10x10x64xbf16, #tpu.memory_space<vmem>>, vector<1x4x8x8x64xbf16>
    %48 = vector.shape_cast %47 : vector<1x4x8x8x64xbf16> to vector<4x8x8x64xbf16>
    %49 = vector.shape_cast %48 : vector<4x8x8x64xbf16> to vector<256x64xbf16>
    %c5 = arith.constant 5 : index
    %c0_43 = arith.constant 0 : index
    %c0_44 = arith.constant 0 : index
    %50 = vector.load %arg4[%c5, %c0_43, %c0_44] : memref<27x64x64xbf16, #tpu.memory_space<vmem>>, vector<1x64x64xbf16>
    %51 = vector.shape_cast %50 : vector<1x64x64xbf16> to vector<64x64xbf16>
    %cst_45 = arith.constant dense<0.000000e+00> : vector<256x64xf32>
    %52 = tpu.matmul %49, %51, %cst_45 {dimension_numbers = #tpu.dot_dimension_numbers<[1], [0], [0], [1], [0, 0, 1, 1], [], []>} : vector<256x64xbf16>, vector<64x64xbf16>, vector<256x64xf32> -> vector<256x64xf32>
    %53 = arith.addf %44, %52 : vector<256x64xf32>
    %c0_i32_46 = arith.constant 0 : i32
    %54 = arith.addi %0, %c0_i32_46 : i32
    %c0_47 = arith.constant 0 : index
    %55 = arith.index_cast %54 : i32 to index
    %c2_48 = arith.constant 2 : index
    %c0_49 = arith.constant 0 : index
    %c0_50 = arith.constant 0 : index
    %56 = vector.load %arg2[%c0_47, %55, %c2_48, %c0_49, %c0_50] : memref<1x10x10x10x64xbf16, #tpu.memory_space<vmem>>, vector<1x4x8x8x64xbf16>
    %57 = vector.shape_cast %56 : vector<1x4x8x8x64xbf16> to vector<4x8x8x64xbf16>
    %58 = vector.shape_cast %57 : vector<4x8x8x64xbf16> to vector<256x64xbf16>
    %c6 = arith.constant 6 : index
    %c0_51 = arith.constant 0 : index
    %c0_52 = arith.constant 0 : index
    %59 = vector.load %arg4[%c6, %c0_51, %c0_52] : memref<27x64x64xbf16, #tpu.memory_space<vmem>>, vector<1x64x64xbf16>
    %60 = vector.shape_cast %59 : vector<1x64x64xbf16> to vector<64x64xbf16>
    %cst_53 = arith.constant dense<0.000000e+00> : vector<256x64xf32>
    %61 = tpu.matmul %58, %60, %cst_53 {dimension_numbers = #tpu.dot_dimension_numbers<[1], [0], [0], [1], [0, 0, 1, 1], [], []>} : vector<256x64xbf16>, vector<64x64xbf16>, vector<256x64xf32> -> vector<256x64xf32>
    %62 = arith.addf %53, %61 : vector<256x64xf32>
    %c0_i32_54 = arith.constant 0 : i32
    %63 = arith.addi %0, %c0_i32_54 : i32
    %c0_55 = arith.constant 0 : index
    %64 = arith.index_cast %63 : i32 to index
    %c2_56 = arith.constant 2 : index
    %c1_57 = arith.constant 1 : index
    %c0_58 = arith.constant 0 : index
    %65 = vector.load %arg2[%c0_55, %64, %c2_56, %c1_57, %c0_58] : memref<1x10x10x10x64xbf16, #tpu.memory_space<vmem>>, vector<1x4x8x8x64xbf16>
    %66 = vector.shape_cast %65 : vector<1x4x8x8x64xbf16> to vector<4x8x8x64xbf16>
    %67 = vector.shape_cast %66 : vector<4x8x8x64xbf16> to vector<256x64xbf16>
    %c7 = arith.constant 7 : index
    %c0_59 = arith.constant 0 : index
    %c0_60 = arith.constant 0 : index
    %68 = vector.load %arg4[%c7, %c0_59, %c0_60] : memref<27x64x64xbf16, #tpu.memory_space<vmem>>, vector<1x64x64xbf16>
    %69 = vector.shape_cast %68 : vector<1x64x64xbf16> to vector<64x64xbf16>
    %cst_61 = arith.constant dense<0.000000e+00> : vector<256x64xf32>
    %70 = tpu.matmul %67, %69, %cst_61 {dimension_numbers = #tpu.dot_dimension_numbers<[1], [0], [0], [1], [0, 0, 1, 1], [], []>} : vector<256x64xbf16>, vector<64x64xbf16>, vector<256x64xf32> -> vector<256x64xf32>
    %71 = arith.addf %62, %70 : vector<256x64xf32>
    %c0_i32_62 = arith.constant 0 : i32
    %72 = arith.addi %0, %c0_i32_62 : i32
    %c0_63 = arith.constant 0 : index
    %73 = arith.index_cast %72 : i32 to index
    %c2_64 = arith.constant 2 : index
    %c2_65 = arith.constant 2 : index
    %c0_66 = arith.constant 0 : index
    %74 = vector.load %arg2[%c0_63, %73, %c2_64, %c2_65, %c0_66] : memref<1x10x10x10x64xbf16, #tpu.memory_space<vmem>>, vector<1x4x8x8x64xbf16>
    %75 = vector.shape_cast %74 : vector<1x4x8x8x64xbf16> to vector<4x8x8x64xbf16>
    %76 = vector.shape_cast %75 : vector<4x8x8x64xbf16> to vector<256x64xbf16>
    %c8 = arith.constant 8 : index
    %c0_67 = arith.constant 0 : index
    %c0_68 = arith.constant 0 : index
    %77 = vector.load %arg4[%c8, %c0_67, %c0_68] : memref<27x64x64xbf16, #tpu.memory_space<vmem>>, vector<1x64x64xbf16>
    %78 = vector.shape_cast %77 : vector<1x64x64xbf16> to vector<64x64xbf16>
    %cst_69 = arith.constant dense<0.000000e+00> : vector<256x64xf32>
    %79 = tpu.matmul %76, %78, %cst_69 {dimension_numbers = #tpu.dot_dimension_numbers<[1], [0], [0], [1], [0, 0, 1, 1], [], []>} : vector<256x64xbf16>, vector<64x64xbf16>, vector<256x64xf32> -> vector<256x64xf32>
    %80 = arith.addf %71, %79 : vector<256x64xf32>
    %c1_i32 = arith.constant 1 : i32
    %81 = arith.addi %0, %c1_i32 : i32
    %c0_70 = arith.constant 0 : index
    %82 = arith.index_cast %81 : i32 to index
    %c0_71 = arith.constant 0 : index
    %c0_72 = arith.constant 0 : index
    %c0_73 = arith.constant 0 : index
    %83 = vector.load %arg2[%c0_70, %82, %c0_71, %c0_72, %c0_73] : memref<1x10x10x10x64xbf16, #tpu.memory_space<vmem>>, vector<1x4x8x8x64xbf16>
    %84 = vector.shape_cast %83 : vector<1x4x8x8x64xbf16> to vector<4x8x8x64xbf16>
    %85 = vector.shape_cast %84 : vector<4x8x8x64xbf16> to vector<256x64xbf16>
    %c9 = arith.constant 9 : index
    %c0_74 = arith.constant 0 : index
    %c0_75 = arith.constant 0 : index
    %86 = vector.load %arg4[%c9, %c0_74, %c0_75] : memref<27x64x64xbf16, #tpu.memory_space<vmem>>, vector<1x64x64xbf16>
    %87 = vector.shape_cast %86 : vector<1x64x64xbf16> to vector<64x64xbf16>
    %cst_76 = arith.constant dense<0.000000e+00> : vector<256x64xf32>
    %88 = tpu.matmul %85, %87, %cst_76 {dimension_numbers = #tpu.dot_dimension_numbers<[1], [0], [0], [1], [0, 0, 1, 1], [], []>} : vector<256x64xbf16>, vector<64x64xbf16>, vector<256x64xf32> -> vector<256x64xf32>
    %89 = arith.addf %80, %88 : vector<256x64xf32>
    %c1_i32_77 = arith.constant 1 : i32
    %90 = arith.addi %0, %c1_i32_77 : i32
    %c0_78 = arith.constant 0 : index
    %91 = arith.index_cast %90 : i32 to index
    %c0_79 = arith.constant 0 : index
    %c1_80 = arith.constant 1 : index
    %c0_81 = arith.constant 0 : index
    %92 = vector.load %arg2[%c0_78, %91, %c0_79, %c1_80, %c0_81] : memref<1x10x10x10x64xbf16, #tpu.memory_space<vmem>>, vector<1x4x8x8x64xbf16>
    %93 = vector.shape_cast %92 : vector<1x4x8x8x64xbf16> to vector<4x8x8x64xbf16>
    %94 = vector.shape_cast %93 : vector<4x8x8x64xbf16> to vector<256x64xbf16>
    %c10 = arith.constant 10 : index
    %c0_82 = arith.constant 0 : index
    %c0_83 = arith.constant 0 : index
    %95 = vector.load %arg4[%c10, %c0_82, %c0_83] : memref<27x64x64xbf16, #tpu.memory_space<vmem>>, vector<1x64x64xbf16>
    %96 = vector.shape_cast %95 : vector<1x64x64xbf16> to vector<64x64xbf16>
    %cst_84 = arith.constant dense<0.000000e+00> : vector<256x64xf32>
    %97 = tpu.matmul %94, %96, %cst_84 {dimension_numbers = #tpu.dot_dimension_numbers<[1], [0], [0], [1], [0, 0, 1, 1], [], []>} : vector<256x64xbf16>, vector<64x64xbf16>, vector<256x64xf32> -> vector<256x64xf32>
    %98 = arith.addf %89, %97 : vector<256x64xf32>
    %c1_i32_85 = arith.constant 1 : i32
    %99 = arith.addi %0, %c1_i32_85 : i32
    %c0_86 = arith.constant 0 : index
    %100 = arith.index_cast %99 : i32 to index
    %c0_87 = arith.constant 0 : index
    %c2_88 = arith.constant 2 : index
    %c0_89 = arith.constant 0 : index
    %101 = vector.load %arg2[%c0_86, %100, %c0_87, %c2_88, %c0_89] : memref<1x10x10x10x64xbf16, #tpu.memory_space<vmem>>, vector<1x4x8x8x64xbf16>
    %102 = vector.shape_cast %101 : vector<1x4x8x8x64xbf16> to vector<4x8x8x64xbf16>
    %103 = vector.shape_cast %102 : vector<4x8x8x64xbf16> to vector<256x64xbf16>
    %c11 = arith.constant 11 : index
    %c0_90 = arith.constant 0 : index
    %c0_91 = arith.constant 0 : index
    %104 = vector.load %arg4[%c11, %c0_90, %c0_91] : memref<27x64x64xbf16, #tpu.memory_space<vmem>>, vector<1x64x64xbf16>
    %105 = vector.shape_cast %104 : vector<1x64x64xbf16> to vector<64x64xbf16>
    %cst_92 = arith.constant dense<0.000000e+00> : vector<256x64xf32>
    %106 = tpu.matmul %103, %105, %cst_92 {dimension_numbers = #tpu.dot_dimension_numbers<[1], [0], [0], [1], [0, 0, 1, 1], [], []>} : vector<256x64xbf16>, vector<64x64xbf16>, vector<256x64xf32> -> vector<256x64xf32>
    %107 = arith.addf %98, %106 : vector<256x64xf32>
    %c1_i32_93 = arith.constant 1 : i32
    %108 = arith.addi %0, %c1_i32_93 : i32
    %c0_94 = arith.constant 0 : index
    %109 = arith.index_cast %108 : i32 to index
    %c1_95 = arith.constant 1 : index
    %c0_96 = arith.constant 0 : index
    %c0_97 = arith.constant 0 : index
    %110 = vector.load %arg2[%c0_94, %109, %c1_95, %c0_96, %c0_97] : memref<1x10x10x10x64xbf16, #tpu.memory_space<vmem>>, vector<1x4x8x8x64xbf16>
    %111 = vector.shape_cast %110 : vector<1x4x8x8x64xbf16> to vector<4x8x8x64xbf16>
    %112 = vector.shape_cast %111 : vector<4x8x8x64xbf16> to vector<256x64xbf16>
    %c12 = arith.constant 12 : index
    %c0_98 = arith.constant 0 : index
    %c0_99 = arith.constant 0 : index
    %113 = vector.load %arg4[%c12, %c0_98, %c0_99] : memref<27x64x64xbf16, #tpu.memory_space<vmem>>, vector<1x64x64xbf16>
    %114 = vector.shape_cast %113 : vector<1x64x64xbf16> to vector<64x64xbf16>
    %cst_100 = arith.constant dense<0.000000e+00> : vector<256x64xf32>
    %115 = tpu.matmul %112, %114, %cst_100 {dimension_numbers = #tpu.dot_dimension_numbers<[1], [0], [0], [1], [0, 0, 1, 1], [], []>} : vector<256x64xbf16>, vector<64x64xbf16>, vector<256x64xf32> -> vector<256x64xf32>
    %116 = arith.addf %107, %115 : vector<256x64xf32>
    %c1_i32_101 = arith.constant 1 : i32
    %117 = arith.addi %0, %c1_i32_101 : i32
    %c0_102 = arith.constant 0 : index
    %118 = arith.index_cast %117 : i32 to index
    %c1_103 = arith.constant 1 : index
    %c1_104 = arith.constant 1 : index
    %c0_105 = arith.constant 0 : index
    %119 = vector.load %arg2[%c0_102, %118, %c1_103, %c1_104, %c0_105] : memref<1x10x10x10x64xbf16, #tpu.memory_space<vmem>>, vector<1x4x8x8x64xbf16>
    %120 = vector.shape_cast %119 : vector<1x4x8x8x64xbf16> to vector<4x8x8x64xbf16>
    %121 = vector.shape_cast %120 : vector<4x8x8x64xbf16> to vector<256x64xbf16>
    %c13 = arith.constant 13 : index
    %c0_106 = arith.constant 0 : index
    %c0_107 = arith.constant 0 : index
    %122 = vector.load %arg4[%c13, %c0_106, %c0_107] : memref<27x64x64xbf16, #tpu.memory_space<vmem>>, vector<1x64x64xbf16>
    %123 = vector.shape_cast %122 : vector<1x64x64xbf16> to vector<64x64xbf16>
    %cst_108 = arith.constant dense<0.000000e+00> : vector<256x64xf32>
    %124 = tpu.matmul %121, %123, %cst_108 {dimension_numbers = #tpu.dot_dimension_numbers<[1], [0], [0], [1], [0, 0, 1, 1], [], []>} : vector<256x64xbf16>, vector<64x64xbf16>, vector<256x64xf32> -> vector<256x64xf32>
    %125 = arith.addf %116, %124 : vector<256x64xf32>
    %c1_i32_109 = arith.constant 1 : i32
    %126 = arith.addi %0, %c1_i32_109 : i32
    %c0_110 = arith.constant 0 : index
    %127 = arith.index_cast %126 : i32 to index
    %c1_111 = arith.constant 1 : index
    %c2_112 = arith.constant 2 : index
    %c0_113 = arith.constant 0 : index
    %128 = vector.load %arg2[%c0_110, %127, %c1_111, %c2_112, %c0_113] : memref<1x10x10x10x64xbf16, #tpu.memory_space<vmem>>, vector<1x4x8x8x64xbf16>
    %129 = vector.shape_cast %128 : vector<1x4x8x8x64xbf16> to vector<4x8x8x64xbf16>
    %130 = vector.shape_cast %129 : vector<4x8x8x64xbf16> to vector<256x64xbf16>
    %c14 = arith.constant 14 : index
    %c0_114 = arith.constant 0 : index
    %c0_115 = arith.constant 0 : index
    %131 = vector.load %arg4[%c14, %c0_114, %c0_115] : memref<27x64x64xbf16, #tpu.memory_space<vmem>>, vector<1x64x64xbf16>
    %132 = vector.shape_cast %131 : vector<1x64x64xbf16> to vector<64x64xbf16>
    %cst_116 = arith.constant dense<0.000000e+00> : vector<256x64xf32>
    %133 = tpu.matmul %130, %132, %cst_116 {dimension_numbers = #tpu.dot_dimension_numbers<[1], [0], [0], [1], [0, 0, 1, 1], [], []>} : vector<256x64xbf16>, vector<64x64xbf16>, vector<256x64xf32> -> vector<256x64xf32>
    %134 = arith.addf %125, %133 : vector<256x64xf32>
    %c1_i32_117 = arith.constant 1 : i32
    %135 = arith.addi %0, %c1_i32_117 : i32
    %c0_118 = arith.constant 0 : index
    %136 = arith.index_cast %135 : i32 to index
    %c2_119 = arith.constant 2 : index
    %c0_120 = arith.constant 0 : index
    %c0_121 = arith.constant 0 : index
    %137 = vector.load %arg2[%c0_118, %136, %c2_119, %c0_120, %c0_121] : memref<1x10x10x10x64xbf16, #tpu.memory_space<vmem>>, vector<1x4x8x8x64xbf16>
    %138 = vector.shape_cast %137 : vector<1x4x8x8x64xbf16> to vector<4x8x8x64xbf16>
    %139 = vector.shape_cast %138 : vector<4x8x8x64xbf16> to vector<256x64xbf16>
    %c15 = arith.constant 15 : index
    %c0_122 = arith.constant 0 : index
    %c0_123 = arith.constant 0 : index
    %140 = vector.load %arg4[%c15, %c0_122, %c0_123] : memref<27x64x64xbf16, #tpu.memory_space<vmem>>, vector<1x64x64xbf16>
    %141 = vector.shape_cast %140 : vector<1x64x64xbf16> to vector<64x64xbf16>
    %cst_124 = arith.constant dense<0.000000e+00> : vector<256x64xf32>
    %142 = tpu.matmul %139, %141, %cst_124 {dimension_numbers = #tpu.dot_dimension_numbers<[1], [0], [0], [1], [0, 0, 1, 1], [], []>} : vector<256x64xbf16>, vector<64x64xbf16>, vector<256x64xf32> -> vector<256x64xf32>
    %143 = arith.addf %134, %142 : vector<256x64xf32>
    %c1_i32_125 = arith.constant 1 : i32
    %144 = arith.addi %0, %c1_i32_125 : i32
    %c0_126 = arith.constant 0 : index
    %145 = arith.index_cast %144 : i32 to index
    %c2_127 = arith.constant 2 : index
    %c1_128 = arith.constant 1 : index
    %c0_129 = arith.constant 0 : index
    %146 = vector.load %arg2[%c0_126, %145, %c2_127, %c1_128, %c0_129] : memref<1x10x10x10x64xbf16, #tpu.memory_space<vmem>>, vector<1x4x8x8x64xbf16>
    %147 = vector.shape_cast %146 : vector<1x4x8x8x64xbf16> to vector<4x8x8x64xbf16>
    %148 = vector.shape_cast %147 : vector<4x8x8x64xbf16> to vector<256x64xbf16>
    %c16 = arith.constant 16 : index
    %c0_130 = arith.constant 0 : index
    %c0_131 = arith.constant 0 : index
    %149 = vector.load %arg4[%c16, %c0_130, %c0_131] : memref<27x64x64xbf16, #tpu.memory_space<vmem>>, vector<1x64x64xbf16>
    %150 = vector.shape_cast %149 : vector<1x64x64xbf16> to vector<64x64xbf16>
    %cst_132 = arith.constant dense<0.000000e+00> : vector<256x64xf32>
    %151 = tpu.matmul %148, %150, %cst_132 {dimension_numbers = #tpu.dot_dimension_numbers<[1], [0], [0], [1], [0, 0, 1, 1], [], []>} : vector<256x64xbf16>, vector<64x64xbf16>, vector<256x64xf32> -> vector<256x64xf32>
    %152 = arith.addf %143, %151 : vector<256x64xf32>
    %c1_i32_133 = arith.constant 1 : i32
    %153 = arith.addi %0, %c1_i32_133 : i32
    %c0_134 = arith.constant 0 : index
    %154 = arith.index_cast %153 : i32 to index
    %c2_135 = arith.constant 2 : index
    %c2_136 = arith.constant 2 : index
    %c0_137 = arith.constant 0 : index
    %155 = vector.load %arg2[%c0_134, %154, %c2_135, %c2_136, %c0_137] : memref<1x10x10x10x64xbf16, #tpu.memory_space<vmem>>, vector<1x4x8x8x64xbf16>
    %156 = vector.shape_cast %155 : vector<1x4x8x8x64xbf16> to vector<4x8x8x64xbf16>
    %157 = vector.shape_cast %156 : vector<4x8x8x64xbf16> to vector<256x64xbf16>
    %c17 = arith.constant 17 : index
    %c0_138 = arith.constant 0 : index
    %c0_139 = arith.constant 0 : index
    %158 = vector.load %arg4[%c17, %c0_138, %c0_139] : memref<27x64x64xbf16, #tpu.memory_space<vmem>>, vector<1x64x64xbf16>
    %159 = vector.shape_cast %158 : vector<1x64x64xbf16> to vector<64x64xbf16>
    %cst_140 = arith.constant dense<0.000000e+00> : vector<256x64xf32>
    %160 = tpu.matmul %157, %159, %cst_140 {dimension_numbers = #tpu.dot_dimension_numbers<[1], [0], [0], [1], [0, 0, 1, 1], [], []>} : vector<256x64xbf16>, vector<64x64xbf16>, vector<256x64xf32> -> vector<256x64xf32>
    %161 = arith.addf %152, %160 : vector<256x64xf32>
    %c2_i32 = arith.constant 2 : i32
    %162 = arith.addi %0, %c2_i32 : i32
    %c0_141 = arith.constant 0 : index
    %163 = arith.index_cast %162 : i32 to index
    %c0_142 = arith.constant 0 : index
    %c0_143 = arith.constant 0 : index
    %c0_144 = arith.constant 0 : index
    %164 = vector.load %arg2[%c0_141, %163, %c0_142, %c0_143, %c0_144] : memref<1x10x10x10x64xbf16, #tpu.memory_space<vmem>>, vector<1x4x8x8x64xbf16>
    %165 = vector.shape_cast %164 : vector<1x4x8x8x64xbf16> to vector<4x8x8x64xbf16>
    %166 = vector.shape_cast %165 : vector<4x8x8x64xbf16> to vector<256x64xbf16>
    %c18 = arith.constant 18 : index
    %c0_145 = arith.constant 0 : index
    %c0_146 = arith.constant 0 : index
    %167 = vector.load %arg4[%c18, %c0_145, %c0_146] : memref<27x64x64xbf16, #tpu.memory_space<vmem>>, vector<1x64x64xbf16>
    %168 = vector.shape_cast %167 : vector<1x64x64xbf16> to vector<64x64xbf16>
    %cst_147 = arith.constant dense<0.000000e+00> : vector<256x64xf32>
    %169 = tpu.matmul %166, %168, %cst_147 {dimension_numbers = #tpu.dot_dimension_numbers<[1], [0], [0], [1], [0, 0, 1, 1], [], []>} : vector<256x64xbf16>, vector<64x64xbf16>, vector<256x64xf32> -> vector<256x64xf32>
    %170 = arith.addf %161, %169 : vector<256x64xf32>
    %c2_i32_148 = arith.constant 2 : i32
    %171 = arith.addi %0, %c2_i32_148 : i32
    %c0_149 = arith.constant 0 : index
    %172 = arith.index_cast %171 : i32 to index
    %c0_150 = arith.constant 0 : index
    %c1_151 = arith.constant 1 : index
    %c0_152 = arith.constant 0 : index
    %173 = vector.load %arg2[%c0_149, %172, %c0_150, %c1_151, %c0_152] : memref<1x10x10x10x64xbf16, #tpu.memory_space<vmem>>, vector<1x4x8x8x64xbf16>
    %174 = vector.shape_cast %173 : vector<1x4x8x8x64xbf16> to vector<4x8x8x64xbf16>
    %175 = vector.shape_cast %174 : vector<4x8x8x64xbf16> to vector<256x64xbf16>
    %c19 = arith.constant 19 : index
    %c0_153 = arith.constant 0 : index
    %c0_154 = arith.constant 0 : index
    %176 = vector.load %arg4[%c19, %c0_153, %c0_154] : memref<27x64x64xbf16, #tpu.memory_space<vmem>>, vector<1x64x64xbf16>
    %177 = vector.shape_cast %176 : vector<1x64x64xbf16> to vector<64x64xbf16>
    %cst_155 = arith.constant dense<0.000000e+00> : vector<256x64xf32>
    %178 = tpu.matmul %175, %177, %cst_155 {dimension_numbers = #tpu.dot_dimension_numbers<[1], [0], [0], [1], [0, 0, 1, 1], [], []>} : vector<256x64xbf16>, vector<64x64xbf16>, vector<256x64xf32> -> vector<256x64xf32>
    %179 = arith.addf %170, %178 : vector<256x64xf32>
    %c2_i32_156 = arith.constant 2 : i32
    %180 = arith.addi %0, %c2_i32_156 : i32
    %c0_157 = arith.constant 0 : index
    %181 = arith.index_cast %180 : i32 to index
    %c0_158 = arith.constant 0 : index
    %c2_159 = arith.constant 2 : index
    %c0_160 = arith.constant 0 : index
    %182 = vector.load %arg2[%c0_157, %181, %c0_158, %c2_159, %c0_160] : memref<1x10x10x10x64xbf16, #tpu.memory_space<vmem>>, vector<1x4x8x8x64xbf16>
    %183 = vector.shape_cast %182 : vector<1x4x8x8x64xbf16> to vector<4x8x8x64xbf16>
    %184 = vector.shape_cast %183 : vector<4x8x8x64xbf16> to vector<256x64xbf16>
    %c20 = arith.constant 20 : index
    %c0_161 = arith.constant 0 : index
    %c0_162 = arith.constant 0 : index
    %185 = vector.load %arg4[%c20, %c0_161, %c0_162] : memref<27x64x64xbf16, #tpu.memory_space<vmem>>, vector<1x64x64xbf16>
    %186 = vector.shape_cast %185 : vector<1x64x64xbf16> to vector<64x64xbf16>
    %cst_163 = arith.constant dense<0.000000e+00> : vector<256x64xf32>
    %187 = tpu.matmul %184, %186, %cst_163 {dimension_numbers = #tpu.dot_dimension_numbers<[1], [0], [0], [1], [0, 0, 1, 1], [], []>} : vector<256x64xbf16>, vector<64x64xbf16>, vector<256x64xf32> -> vector<256x64xf32>
    %188 = arith.addf %179, %187 : vector<256x64xf32>
    %c2_i32_164 = arith.constant 2 : i32
    %189 = arith.addi %0, %c2_i32_164 : i32
    %c0_165 = arith.constant 0 : index
    %190 = arith.index_cast %189 : i32 to index
    %c1_166 = arith.constant 1 : index
    %c0_167 = arith.constant 0 : index
    %c0_168 = arith.constant 0 : index
    %191 = vector.load %arg2[%c0_165, %190, %c1_166, %c0_167, %c0_168] : memref<1x10x10x10x64xbf16, #tpu.memory_space<vmem>>, vector<1x4x8x8x64xbf16>
    %192 = vector.shape_cast %191 : vector<1x4x8x8x64xbf16> to vector<4x8x8x64xbf16>
    %193 = vector.shape_cast %192 : vector<4x8x8x64xbf16> to vector<256x64xbf16>
    %c21 = arith.constant 21 : index
    %c0_169 = arith.constant 0 : index
    %c0_170 = arith.constant 0 : index
    %194 = vector.load %arg4[%c21, %c0_169, %c0_170] : memref<27x64x64xbf16, #tpu.memory_space<vmem>>, vector<1x64x64xbf16>
    %195 = vector.shape_cast %194 : vector<1x64x64xbf16> to vector<64x64xbf16>
    %cst_171 = arith.constant dense<0.000000e+00> : vector<256x64xf32>
    %196 = tpu.matmul %193, %195, %cst_171 {dimension_numbers = #tpu.dot_dimension_numbers<[1], [0], [0], [1], [0, 0, 1, 1], [], []>} : vector<256x64xbf16>, vector<64x64xbf16>, vector<256x64xf32> -> vector<256x64xf32>
    %197 = arith.addf %188, %196 : vector<256x64xf32>
    %c2_i32_172 = arith.constant 2 : i32
    %198 = arith.addi %0, %c2_i32_172 : i32
    %c0_173 = arith.constant 0 : index
    %199 = arith.index_cast %198 : i32 to index
    %c1_174 = arith.constant 1 : index
    %c1_175 = arith.constant 1 : index
    %c0_176 = arith.constant 0 : index
    %200 = vector.load %arg2[%c0_173, %199, %c1_174, %c1_175, %c0_176] : memref<1x10x10x10x64xbf16, #tpu.memory_space<vmem>>, vector<1x4x8x8x64xbf16>
    %201 = vector.shape_cast %200 : vector<1x4x8x8x64xbf16> to vector<4x8x8x64xbf16>
    %202 = vector.shape_cast %201 : vector<4x8x8x64xbf16> to vector<256x64xbf16>
    %c22 = arith.constant 22 : index
    %c0_177 = arith.constant 0 : index
    %c0_178 = arith.constant 0 : index
    %203 = vector.load %arg4[%c22, %c0_177, %c0_178] : memref<27x64x64xbf16, #tpu.memory_space<vmem>>, vector<1x64x64xbf16>
    %204 = vector.shape_cast %203 : vector<1x64x64xbf16> to vector<64x64xbf16>
    %cst_179 = arith.constant dense<0.000000e+00> : vector<256x64xf32>
    %205 = tpu.matmul %202, %204, %cst_179 {dimension_numbers = #tpu.dot_dimension_numbers<[1], [0], [0], [1], [0, 0, 1, 1], [], []>} : vector<256x64xbf16>, vector<64x64xbf16>, vector<256x64xf32> -> vector<256x64xf32>
    %206 = arith.addf %197, %205 : vector<256x64xf32>
    %c2_i32_180 = arith.constant 2 : i32
    %207 = arith.addi %0, %c2_i32_180 : i32
    %c0_181 = arith.constant 0 : index
    %208 = arith.index_cast %207 : i32 to index
    %c1_182 = arith.constant 1 : index
    %c2_183 = arith.constant 2 : index
    %c0_184 = arith.constant 0 : index
    %209 = vector.load %arg2[%c0_181, %208, %c1_182, %c2_183, %c0_184] : memref<1x10x10x10x64xbf16, #tpu.memory_space<vmem>>, vector<1x4x8x8x64xbf16>
    %210 = vector.shape_cast %209 : vector<1x4x8x8x64xbf16> to vector<4x8x8x64xbf16>
    %211 = vector.shape_cast %210 : vector<4x8x8x64xbf16> to vector<256x64xbf16>
    %c23 = arith.constant 23 : index
    %c0_185 = arith.constant 0 : index
    %c0_186 = arith.constant 0 : index
    %212 = vector.load %arg4[%c23, %c0_185, %c0_186] : memref<27x64x64xbf16, #tpu.memory_space<vmem>>, vector<1x64x64xbf16>
    %213 = vector.shape_cast %212 : vector<1x64x64xbf16> to vector<64x64xbf16>
    %cst_187 = arith.constant dense<0.000000e+00> : vector<256x64xf32>
    %214 = tpu.matmul %211, %213, %cst_187 {dimension_numbers = #tpu.dot_dimension_numbers<[1], [0], [0], [1], [0, 0, 1, 1], [], []>} : vector<256x64xbf16>, vector<64x64xbf16>, vector<256x64xf32> -> vector<256x64xf32>
    %215 = arith.addf %206, %214 : vector<256x64xf32>
    %c2_i32_188 = arith.constant 2 : i32
    %216 = arith.addi %0, %c2_i32_188 : i32
    %c0_189 = arith.constant 0 : index
    %217 = arith.index_cast %216 : i32 to index
    %c2_190 = arith.constant 2 : index
    %c0_191 = arith.constant 0 : index
    %c0_192 = arith.constant 0 : index
    %218 = vector.load %arg2[%c0_189, %217, %c2_190, %c0_191, %c0_192] : memref<1x10x10x10x64xbf16, #tpu.memory_space<vmem>>, vector<1x4x8x8x64xbf16>
    %219 = vector.shape_cast %218 : vector<1x4x8x8x64xbf16> to vector<4x8x8x64xbf16>
    %220 = vector.shape_cast %219 : vector<4x8x8x64xbf16> to vector<256x64xbf16>
    %c24 = arith.constant 24 : index
    %c0_193 = arith.constant 0 : index
    %c0_194 = arith.constant 0 : index
    %221 = vector.load %arg4[%c24, %c0_193, %c0_194] : memref<27x64x64xbf16, #tpu.memory_space<vmem>>, vector<1x64x64xbf16>
    %222 = vector.shape_cast %221 : vector<1x64x64xbf16> to vector<64x64xbf16>
    %cst_195 = arith.constant dense<0.000000e+00> : vector<256x64xf32>
    %223 = tpu.matmul %220, %222, %cst_195 {dimension_numbers = #tpu.dot_dimension_numbers<[1], [0], [0], [1], [0, 0, 1, 1], [], []>} : vector<256x64xbf16>, vector<64x64xbf16>, vector<256x64xf32> -> vector<256x64xf32>
    %224 = arith.addf %215, %223 : vector<256x64xf32>
    %c2_i32_196 = arith.constant 2 : i32
    %225 = arith.addi %0, %c2_i32_196 : i32
    %c0_197 = arith.constant 0 : index
    %226 = arith.index_cast %225 : i32 to index
    %c2_198 = arith.constant 2 : index
    %c1_199 = arith.constant 1 : index
    %c0_200 = arith.constant 0 : index
    %227 = vector.load %arg2[%c0_197, %226, %c2_198, %c1_199, %c0_200] : memref<1x10x10x10x64xbf16, #tpu.memory_space<vmem>>, vector<1x4x8x8x64xbf16>
    %228 = vector.shape_cast %227 : vector<1x4x8x8x64xbf16> to vector<4x8x8x64xbf16>
    %229 = vector.shape_cast %228 : vector<4x8x8x64xbf16> to vector<256x64xbf16>
    %c25 = arith.constant 25 : index
    %c0_201 = arith.constant 0 : index
    %c0_202 = arith.constant 0 : index
    %230 = vector.load %arg4[%c25, %c0_201, %c0_202] : memref<27x64x64xbf16, #tpu.memory_space<vmem>>, vector<1x64x64xbf16>
    %231 = vector.shape_cast %230 : vector<1x64x64xbf16> to vector<64x64xbf16>
    %cst_203 = arith.constant dense<0.000000e+00> : vector<256x64xf32>
    %232 = tpu.matmul %229, %231, %cst_203 {dimension_numbers = #tpu.dot_dimension_numbers<[1], [0], [0], [1], [0, 0, 1, 1], [], []>} : vector<256x64xbf16>, vector<64x64xbf16>, vector<256x64xf32> -> vector<256x64xf32>
    %233 = arith.addf %224, %232 : vector<256x64xf32>
    %c2_i32_204 = arith.constant 2 : i32
    %234 = arith.addi %0, %c2_i32_204 : i32
    %c0_205 = arith.constant 0 : index
    %235 = arith.index_cast %234 : i32 to index
    %c2_206 = arith.constant 2 : index
    %c2_207 = arith.constant 2 : index
    %c0_208 = arith.constant 0 : index
    %236 = vector.load %arg2[%c0_205, %235, %c2_206, %c2_207, %c0_208] : memref<1x10x10x10x64xbf16, #tpu.memory_space<vmem>>, vector<1x4x8x8x64xbf16>
    %237 = vector.shape_cast %236 : vector<1x4x8x8x64xbf16> to vector<4x8x8x64xbf16>
    %238 = vector.shape_cast %237 : vector<4x8x8x64xbf16> to vector<256x64xbf16>
    %c26 = arith.constant 26 : index
    %c0_209 = arith.constant 0 : index
    %c0_210 = arith.constant 0 : index
    %239 = vector.load %arg4[%c26, %c0_209, %c0_210] : memref<27x64x64xbf16, #tpu.memory_space<vmem>>, vector<1x64x64xbf16>
    %240 = vector.shape_cast %239 : vector<1x64x64xbf16> to vector<64x64xbf16>
    %cst_211 = arith.constant dense<0.000000e+00> : vector<256x64xf32>
    %241 = tpu.matmul %238, %240, %cst_211 {dimension_numbers = #tpu.dot_dimension_numbers<[1], [0], [0], [1], [0, 0, 1, 1], [], []>} : vector<256x64xbf16>, vector<64x64xbf16>, vector<256x64xf32> -> vector<256x64xf32>
    %242 = arith.addf %233, %241 : vector<256x64xf32>
    %c0_212 = arith.constant 0 : index
    %c0_213 = arith.constant 0 : index
    %243 = vector.load %arg5[%c0_212, %c0_213] : memref<1x64xf32, #tpu.memory_space<vmem>>, vector<1x64xf32>
    %244 = vector.broadcast %243 : vector<1x64xf32> to vector<256x64xf32>
    %245 = arith.addf %242, %244 : vector<256x64xf32>
    %cst_214 = arith.constant 0.000000e+00 : f32
    %246 = vector.broadcast %cst_214 : f32 to vector<256x64xf32>
    %247 = arith.maximumf %245, %246 : vector<256x64xf32>
    %248 = arith.truncf %247 : vector<256x64xf32> to vector<256x64xbf16>
    %c0_215 = arith.constant 0 : index
    %c0_216 = arith.constant 0 : index
    %249 = vector.load %arg6[%c0_215, %c0_216] : memref<64x128xbf16, #tpu.memory_space<vmem>>, vector<64x128xbf16>
    %cst_217 = arith.constant dense<0.000000e+00> : vector<256x128xf32>
    %250 = tpu.matmul %248, %249, %cst_217 {dimension_numbers = #tpu.dot_dimension_numbers<[1], [0], [0], [1], [0, 0, 1, 1], [], []>} : vector<256x64xbf16>, vector<64x128xbf16>, vector<256x128xf32> -> vector<256x128xf32>
    %c0_218 = arith.constant 0 : index
    %c0_219 = arith.constant 0 : index
    %251 = vector.load %arg7[%c0_218, %c0_219] : memref<1x128xf32, #tpu.memory_space<vmem>>, vector<1x128xf32>
    %252 = vector.broadcast %251 : vector<1x128xf32> to vector<256x128xf32>
    %253 = arith.addf %250, %252 : vector<256x128xf32>
    %c0_220 = arith.constant 0 : index
    %c0_221 = arith.constant 0 : index
    %c0_222 = arith.constant 0 : index
    %c0_223 = arith.constant 0 : index
    %c0_224 = arith.constant 0 : index
    %254 = vector.load %arg3[%c0_220, %c0_221, %c0_222, %c0_223, %c0_224] : memref<1x4x8x8x64xbf16, #tpu.memory_space<vmem>>, vector<1x4x8x8x64xbf16>
    %255 = vector.shape_cast %254 : vector<1x4x8x8x64xbf16> to vector<256x64xbf16>
    %c0_225 = arith.constant 0 : index
    %c0_226 = arith.constant 0 : index
    %256 = vector.load %arg8[%c0_225, %c0_226] : memref<64x128xbf16, #tpu.memory_space<vmem>>, vector<64x128xbf16>
    %cst_227 = arith.constant dense<0.000000e+00> : vector<256x128xf32>
    %257 = tpu.matmul %255, %256, %cst_227 {dimension_numbers = #tpu.dot_dimension_numbers<[1], [0], [0], [1], [0, 0, 1, 1], [], []>} : vector<256x64xbf16>, vector<64x128xbf16>, vector<256x128xf32> -> vector<256x128xf32>
    %c0_228 = arith.constant 0 : index
    %c0_229 = arith.constant 0 : index
    %258 = vector.load %arg9[%c0_228, %c0_229] : memref<1x128xf32, #tpu.memory_space<vmem>>, vector<1x128xf32>
    %259 = vector.broadcast %258 : vector<1x128xf32> to vector<256x128xf32>
    %260 = arith.addf %257, %259 : vector<256x128xf32>
    %261 = arith.addf %253, %260 : vector<256x128xf32>
    %cst_230 = arith.constant 0.000000e+00 : f32
    %262 = vector.broadcast %cst_230 : f32 to vector<256x128xf32>
    %263 = arith.maximumf %261, %262 : vector<256x128xf32>
    %264 = arith.truncf %263 : vector<256x128xf32> to vector<256x128xbf16>
    %265 = vector.shape_cast %264 : vector<256x128xbf16> to vector<1x4x8x8x128xbf16>
    %c0_231 = arith.constant 0 : index
    %c0_232 = arith.constant 0 : index
    %c0_233 = arith.constant 0 : index
    %c0_234 = arith.constant 0 : index
    %c0_235 = arith.constant 0 : index
    %266 = vector.load %arg10[%c0_231, %c0_232, %c0_233, %c0_234, %c0_235] : memref<1x4x8x8x128xbf16, #tpu.memory_space<vmem>>, vector<1x4x8x8x128xbf16>
    tpu.vector_store %arg10[%c0_231, %c0_232, %c0_233, %c0_234, %c0_235], %265 {strides = array<i32>} : memref<1x4x8x8x128xbf16, #tpu.memory_space<vmem>>, vector<1x4x8x8x128xbf16>,
    return
  }
  func.func @transform_0(%arg0: i32, %arg1: i32) -> (i32, i32, i32, i32, i32) {
    %c0_i32 = arith.constant 0 : i32
    %c0_i32_0 = arith.constant 0 : i32
    %c0_i32_1 = arith.constant 0 : i32
    %c0_i32_2 = arith.constant 0 : i32
    %c0_i32_3 = arith.constant 0 : i32
    return %arg0, %c0_i32, %c0_i32_0, %c0_i32_1, %c0_i32_2 : i32, i32, i32, i32, i32
  }
  func.func @transform_1(%arg0: i32, %arg1: i32) -> (i32, i32, i32, i32, i32) {
    %c0_i32 = arith.constant 0 : i32
    %c0_i32_0 = arith.constant 0 : i32
    %c0_i32_1 = arith.constant 0 : i32
    %c0_i32_2 = arith.constant 0 : i32
    return %arg0, %arg1, %c0_i32, %c0_i32_0, %c0_i32_1 : i32, i32, i32, i32, i32
  }
  func.func @transform_2(%arg0: i32, %arg1: i32) -> (i32, i32, i32) {
    %c0_i32 = arith.constant 0 : i32
    %c0_i32_0 = arith.constant 0 : i32
    %c0_i32_1 = arith.constant 0 : i32
    %c0_i32_2 = arith.constant 0 : i32
    return %c0_i32, %c0_i32_0, %c0_i32_1 : i32, i32, i32
  }
  func.func @transform_3(%arg0: i32, %arg1: i32) -> (i32, i32) {
    %c0_i32 = arith.constant 0 : i32
    %c0_i32_0 = arith.constant 0 : i32
    %c0_i32_1 = arith.constant 0 : i32
    return %c0_i32, %c0_i32_0 : i32, i32
  }
  func.func @transform_4(%arg0: i32, %arg1: i32) -> (i32, i32) {
    %c0_i32 = arith.constant 0 : i32
    %c0_i32_0 = arith.constant 0 : i32
    %c0_i32_1 = arith.constant 0 : i32
    return %c0_i32, %c0_i32_0 : i32, i32
  }
  func.func @transform_5(%arg0: i32, %arg1: i32) -> (i32, i32) {
    %c0_i32 = arith.constant 0 : i32
    %c0_i32_0 = arith.constant 0 : i32
    %c0_i32_1 = arith.constant 0 : i32
    return %c0_i32, %c0_i32_0 : i32, i32
  }
  func.func @transform_6(%arg0: i32, %arg1: i32) -> (i32, i32) {
    %c0_i32 = arith.constant 0 : i32
    %c0_i32_0 = arith.constant 0 : i32
    %c0_i32_1 = arith.constant 0 : i32
    return %c0_i32, %c0_i32_0 : i32, i32
  }
  func.func @transform_7(%arg0: i32, %arg1: i32) -> (i32, i32) {
    %c0_i32 = arith.constant 0 : i32
    %c0_i32_0 = arith.constant 0 : i32
    %c0_i32_1 = arith.constant 0 : i32
    return %c0_i32, %c0_i32_0 : i32, i32
  }
  func.func @transform_8(%arg0: i32, %arg1: i32) -> (i32, i32, i32, i32, i32) {
    %c0_i32 = arith.constant 0 : i32
    %c0_i32_0 = arith.constant 0 : i32
    %c0_i32_1 = arith.constant 0 : i32
    %c0_i32_2 = arith.constant 0 : i32
    return %arg0, %arg1, %c0_i32, %c0_i32_0, %c0_i32_1 : i32, i32, i32, i32, i32
  }
}

</mosaic_0001>

<bundles_post_ra>
// kernel: dpn_bottleneck_forward.2
= control target key start
LH: loop header
LB: loop body
LE: loop exit
PB: predicated region body
PF: predicated region fallthrough
CT: control target
= control target key end

     0   :  { %s1021_s12 = smov 0   ;;  %s1194_s0 = inlined_call_operand.vmem [shape: bf16[1024,64], index: 0, kind: input, shape index: {}]   ;;  %s1195_s1 = inlined_call_operand.vmem [shape: bf16[64,64], index: 1, kind: input, shape index: {}]   ;;  %s1196_s2 = inlined_call_operand.vmem [shape: f32[1,64], index: 2, kind: input, shape index: {}]   ;;  %s1197_s3 = inlined_call_operand.vmem [shape: bf16[1024,64], index: 3, kind: output, shape index: {}]  }
   0x1 LB: > { %s785_s13 = sadd.s32 4294967295, %s999_s12   ;;  %p789_p0 = scmp.ge.s32.totalorder %s999_s12, 1  ;;  %s999_s12 = sphi %s1021_s12, %s13_s12  }
   0x2   : > { %p138_p1 = scmp.lt.s32.totalorder %s999_s12, 5 }
   0x4   : > { %p139_p2 = pnand %p789_p0, %p138_p1 }
   0x5   : > { %v973_v0 = vld [vmem:[%s1195_s1] sm:$0xff] (!%p139_p2)   ;;  %s790_s16 = sshll.u32 (!%p139_p2), %s785_s13, 5  ;;  %v974_v1 = vld [vmem:[%s1195_s1 + $0x8] sm:$0xff] (!%p139_p2)   ;;  %v975_v2 = vld [vmem:[%s1195_s1 + $0x10] sm:$0xff] (!%p139_p2)   ;;  %vm326_vm0 = vcmask (!%p139_p2), 523264   ;;  %vm696_vm1 = vcmask (!%p139_p2), 519168  }
   0x6   : > { %142 = sbr.rel (%p139_p2) target bundleno = 268 (0x10c), region = 32  ;;  %p163_p3 = scmp.lt.s32.totalorder (!%p139_p2), %s790_s16, 127  ;;  %917 = vmatprep.subr.bf16.mxu0 (!%p139_p2), %v973_v0  ;;  %957 = vmatprep.subr.bf16.mxu1 (!%p139_p2), %v973_v0  ;;  %v976_v3 = vld [vmem:[%s1195_s1 + $0x18] sm:$0xff] (!%p139_p2)   ;;  %v1086_v20 = vld [vmem:[%s1196_s2] ss:$0 sm:$0xff] (!%p139_p2) }
   0x7   : > { %918 = vmatpush3.bf16.msra.mxu0 (!%p139_p2), %v973_v0  ;;  %961 = vmatpush3.bf16.msra.mxu1 (!%p139_p2), %v973_v0 }
   0x8   : > { %919 = vmatprep.subr.bf16.mxu0 (!%p139_p2), %v974_v1  ;;  %958 = vmatprep.subr.bf16.mxu1 (!%p139_p2), %v974_v1 }
   0xb   : > { %920 = vmatpush3.bf16.msra.mxu0 (!%p139_p2), %v974_v1  ;;  %962 = vmatpush3.bf16.msra.mxu1 (!%p139_p2), %v974_v1 }
   0xc   : > { %921 = vmatprep.subr.bf16.mxu0 (!%p139_p2), %v975_v2  ;;  %959 = vmatprep.subr.bf16.mxu1 (!%p139_p2), %v975_v2 }
   0xd   : > { %s1199_s16 = smov (!%p163_p3, %s790_s16), 127 }
   0xe   : > { %s791_s21 = sshll.u32 %s1199_s16, 2 }
   0xf   : > { %s1049_s26 = scalar_lea.vmem %s1194_s0, %s791_s21  ;;  %922 = vmatpush3.bf16.msra.mxu0 %v975_v2  ;;  %963 = vmatpush3.bf16.msra.mxu1 %v975_v2  ;;  %s1099_s4 = scalar_lea.vmem %s1197_s3, %s791_s21 }
  0x10   : > { %v977_v4 = vld [vmem:[%s1049_s26] sm:$0xff]   ;;  %923 = vmatprep.subr.bf16.mxu0 %v976_v3  ;;  %960 = vmatprep.subr.bf16.mxu1 %v976_v3  ;;  %v979_v6 = vld [vmem:[%s1049_s26 + $0x8] sm:$0xff]   ;;  %v981_v8 = vld [vmem:[%s1049_s26 + $0x10] sm:$0xff]  }
  0x11   : > { %v978_v5 = vld [vmem:[%s1049_s26 + $0x40] sm:$0xff]   ;;  %925 = vmatprep.mubr.msk.bf16.mxu0 %vm326_vm0, %v977_v4  ;;  %v980_v7 = vld [vmem:[%s1049_s26 + $0x48] sm:$0xff]   ;;  %v982_v9 = vld [vmem:[%s1049_s26 + $0x50] sm:$0xff]  }
  0x12   : > { %941 = vmatprep.mubr.msk.bf16.mxu1 %vm326_vm0, %v978_v5  ;;  %v983_v10 = vld [vmem:[%s1049_s26 + $0x18] sm:$0xff]   ;;  %v985_v12 = vld [vmem:[%s1049_s26 + $0x20] sm:$0xff]   ;;  %v987_v14 = vld [vmem:[%s1049_s26 + $0x28] sm:$0xff]  }
  0x13   : > { %924 = vmatpush3.bf16.msra.mxu0 %v976_v3  ;;  %964 = vmatpush3.bf16.msra.mxu1 %v976_v3  ;;  %v984_v11 = vld [vmem:[%s1049_s26 + $0x58] sm:$0xff]   ;;  %v986_v13 = vld [vmem:[%s1049_s26 + $0x60] sm:$0xff]   ;;  %v988_v15 = vld [vmem:[%s1049_s26 + $0x68] sm:$0xff]  }
  0x14   : > { %v989_v16 = vld [vmem:[%s1049_s26 + $0x30] sm:$0xff]   ;;  %v991_v18 = vld [vmem:[%s1049_s26 + $0x38] sm:$0xff]  }
  0x15   : > { %v990_v17 = vld [vmem:[%s1049_s26 + $0x70] sm:$0xff]   ;;  %v992_v19 = vld [vmem:[%s1049_s26 + $0x78] sm:$0xff]  }
  0x16   : > { %926 = vmatmul.mubr.msk.bf16.vlgmr.msra.gmra.mrb[0].mxu0 %vm326_vm0, %v979_v6  ;;  %942 = vmatmul.mubr.msk.bf16.vlgmr.msra.gmra.mrb[0].mxu1 %vm326_vm0, %v980_v7 }
  0x17   : > { %929 = vmatprep.mubr.msk.bf16.mxu0 %vm326_vm0, %v981_v8  ;;  %945 = vmatprep.mubr.msk.bf16.mxu1 %vm326_vm0, %v982_v9 }
  0x1e   : > { %930 = vmatmul.mubr.msk.bf16.gmra.mrb[4].mxu0 %vm326_vm0, %v983_v10  ;;  %946 = vmatmul.mubr.msk.bf16.gmra.mrb[4].mxu1 %vm326_vm0, %v984_v11 }
  0x1f   : > { %933 = vmatprep.mubr.msk.bf16.mxu0 %vm326_vm0, %v985_v12  ;;  %949 = vmatprep.mubr.msk.bf16.mxu1 %vm326_vm0, %v986_v13 }
  0x26   : > { %934 = vmatmul.mubr.msk.bf16.gmra.mrb[8].mxu0 %vm326_vm0, %v987_v14  ;;  %950 = vmatmul.mubr.msk.bf16.gmra.mrb[8].mxu1 %vm326_vm0, %v988_v15 }
  0x27   : > { %937 = vmatprep.mubr.msk.bf16.mxu0 %vm326_vm0, %v989_v16  ;;  %953 = vmatprep.mubr.msk.bf16.mxu1 %vm326_vm0, %v990_v17 }
  0x2e   : > { %938 = vmatmul.mubr.msk.bf16.gmra.mrb[12].mxu0 %vm326_vm0, %v991_v18  ;;  %954 = vmatmul.mubr.msk.bf16.gmra.mrb[12].mxu1 %vm326_vm0, %v992_v19 }
  0xe9   : > { %v927_v21 = vpop.f32.mrb[0].mxu0  ;;  %v943_v22 = vpop.f32.mrb[0].mxu1 }
  0xea   : > { %v418_v23 = vadd.f32 %v927_v21, %v1086_v20  ;;  %v482_v24 = vadd.f32 %v943_v22, %v1086_v20  ;;  %v409_v25 = vpop.f32.mrb[1].mxu0  ;;  %v473_v26 = vpop.f32.mrb[1].mxu1 }
  0xeb   : > { %v410_v27 = vadd.f32 %v1086_v20, %v409_v25  ;;  %v474_v28 = vadd.f32 %v1086_v20, %v473_v26  ;;  %v928_v29 = vpop.f32.mrb[2].mxu0  ;;  %v944_v30 = vpop.f32.mrb[2].mxu1 }
  0xec   : > { %v538_v31 = vmax.f32 %v418_v23, 0.0  ;;  %v554_v32 = vmax.f32 %v482_v24, 0.0  ;;  %v421_v33 = vadd.f32 %v928_v29, %v1086_v20  ;;  %v485_v34 = vadd.f32 %v944_v30, %v1086_v20  ;;  %v412_v35 = vpop.f32.mrb[3].mxu0  ;;  %v476_v36 = vpop.f32.mrb[3].mxu1 }
  0xed   : > { %v536_v37 = vmax.f32 %v410_v27, 0.0  ;;  %v552_v38 = vmax.f32 %v474_v28, 0.0  ;;  %v413_v39 = vadd.f32 %v1086_v20, %v412_v35  ;;  %v477_v40 = vadd.f32 %v1086_v20, %v476_v36 }
  0xee   : > { %v867_v41 = vpack.c.bf16 %v538_v31, %v538_v31  ;;  %v883_v42 = vpack.c.bf16 %v554_v32, %v554_v32  ;;  %v539_v43 = vmax.f32 %v421_v33, 0.0  ;;  %v555_v44 = vmax.f32 %v485_v34, 0.0 }
  0xef   : > { %v865_v45 = vpack.c.bf16 %v536_v37, %v536_v37  ;;  %v881_v46 = vpack.c.bf16 %v552_v38, %v552_v38  ;;  %v537_v47 = vmax.f32 %v413_v39, 0.0  ;;  %v553_v48 = vmax.f32 %v477_v40, 0.0 }
  0xf0   : > { %699 = vst.msk [vmem:[%s1099_s4 + $0x8] sm:$0xf] %vm696_vm1, %v867_v41  ;;  %715 = vst.msk [vmem:[%s1099_s4 + $0x48] sm:$0xf] %vm696_vm1, %v883_v42  ;;  %v868_v49 = vpack.c.bf16 %v539_v43, %v539_v43  ;;  %v884_v50 = vpack.c.bf16 %v555_v44, %v555_v44 }
  0xf1   : > { %697 = vst.msk [vmem:[%s1099_s4] sm:$0xf] %vm696_vm1, %v865_v45  ;;  %713 = vst.msk [vmem:[%s1099_s4 + $0x40] sm:$0xf] %vm696_vm1, %v881_v46  ;;  %v866_v51 = vpack.c.bf16 %v537_v47, %v537_v47  ;;  %v882_v52 = vpack.c.bf16 %v553_v48, %v553_v48  ;;  %v931_v53 = vpop.f32.mrb[4].mxu0  ;;  %v947_v54 = vpop.f32.mrb[4].mxu1 }
  0xf2   : > { %700 = vst.msk [vmem:[%s1099_s4 + $0xc] sm:$0xf] %vm696_vm1, %v868_v49  ;;  %716 = vst.msk [vmem:[%s1099_s4 + $0x4c] sm:$0xf] %vm696_vm1, %v884_v50  ;;  %v434_v55 = vadd.f32 %v931_v53, %v1086_v20  ;;  %v498_v56 = vadd.f32 %v947_v54, %v1086_v20  ;;  %v425_v57 = vpop.f32.mrb[5].mxu0  ;;  %v489_v58 = vpop.f32.mrb[5].mxu1 }
  0xf3   : > { %698 = vst.msk [vmem:[%s1099_s4 + $0x4] sm:$0xf] %vm696_vm1, %v866_v51  ;;  %714 = vst.msk [vmem:[%s1099_s4 + $0x44] sm:$0xf] %vm696_vm1, %v882_v52  ;;  %v426_v59 = vadd.f32 %v1086_v20, %v425_v57  ;;  %v490_v60 = vadd.f32 %v1086_v20, %v489_v58  ;;  %v932_v61 = vpop.f32.mrb[6].mxu0  ;;  %v948_v62 = vpop.f32.mrb[6].mxu1 }
  0xf4   : > { %v542_v63 = vmax.f32 %v434_v55, 0.0  ;;  %v558_v0 = vmax.f32 %v498_v56, 0.0  ;;  %v437_v1 = vadd.f32 %v932_v61, %v1086_v20  ;;  %v501_v2 = vadd.f32 %v948_v62, %v1086_v20  ;;  %v428_v3 = vpop.f32.mrb[7].mxu0  ;;  %v492_v4 = vpop.f32.mrb[7].mxu1 }
  0xf5   : > { %v540_v5 = vmax.f32 %v426_v59, 0.0  ;;  %v556_v6 = vmax.f32 %v490_v60, 0.0  ;;  %v429_v7 = vadd.f32 %v1086_v20, %v428_v3  ;;  %v493_v8 = vadd.f32 %v1086_v20, %v492_v4 }
  0xf6   : > { %v871_v9 = vpack.c.bf16 %v542_v63, %v542_v63  ;;  %v887_v10 = vpack.c.bf16 %v558_v0, %v558_v0  ;;  %v543_v11 = vmax.f32 %v437_v1, 0.0  ;;  %v559_v12 = vmax.f32 %v501_v2, 0.0 }
  0xf7   : > { %v869_v13 = vpack.c.bf16 %v540_v5, %v540_v5  ;;  %v885_v14 = vpack.c.bf16 %v556_v6, %v556_v6  ;;  %v541_v15 = vmax.f32 %v429_v7, 0.0  ;;  %v557_v16 = vmax.f32 %v493_v8, 0.0 }
  0xf8   : > { %703 = vst.msk [vmem:[%s1099_s4 + $0x18] sm:$0xf] %vm696_vm1, %v871_v9  ;;  %719 = vst.msk [vmem:[%s1099_s4 + $0x58] sm:$0xf] %vm696_vm1, %v887_v10  ;;  %v872_v17 = vpack.c.bf16 %v543_v11, %v543_v11  ;;  %v888_v18 = vpack.c.bf16 %v559_v12, %v559_v12 }
  0xf9   : > { %701 = vst.msk [vmem:[%s1099_s4 + $0x10] sm:$0xf] %vm696_vm1, %v869_v13  ;;  %717 = vst.msk [vmem:[%s1099_s4 + $0x50] sm:$0xf] %vm696_vm1, %v885_v14  ;;  %v870_v19 = vpack.c.bf16 %v541_v15, %v541_v15  ;;  %v886_v21 = vpack.c.bf16 %v557_v16, %v557_v16  ;;  %v935_v22 = vpop.f32.mrb[8].mxu0  ;;  %v951_v23 = vpop.f32.mrb[8].mxu1 }
  0xfa   : > { %704 = vst.msk [vmem:[%s1099_s4 + $0x1c] sm:$0xf] %vm696_vm1, %v872_v17  ;;  %720 = vst.msk [vmem:[%s1099_s4 + $0x5c] sm:$0xf] %vm696_vm1, %v888_v18  ;;  %v450_v24 = vadd.f32 %v935_v22, %v1086_v20  ;;  %v514_v25 = vadd.f32 %v951_v23, %v1086_v20  ;;  %v441_v26 = vpop.f32.mrb[9].mxu0  ;;  %v505_v27 = vpop.f32.mrb[9].mxu1 }
  0xfb   : > { %702 = vst.msk [vmem:[%s1099_s4 + $0x14] sm:$0xf] %vm696_vm1, %v870_v19  ;;  %718 = vst.msk [vmem:[%s1099_s4 + $0x54] sm:$0xf] %vm696_vm1, %v886_v21  ;;  %v442_v28 = vadd.f32 %v1086_v20, %v441_v26  ;;  %v506_v29 = vadd.f32 %v1086_v20, %v505_v27  ;;  %v936_v30 = vpop.f32.mrb[10].mxu0  ;;  %v952_v31 = vpop.f32.mrb[10].mxu1 }
  0xfc   : > { %v546_v32 = vmax.f32 %v450_v24, 0.0  ;;  %v562_v33 = vmax.f32 %v514_v25, 0.0  ;;  %v453_v34 = vadd.f32 %v936_v30, %v1086_v20  ;;  %v517_v35 = vadd.f32 %v952_v31, %v1086_v20  ;;  %v444_v36 = vpop.f32.mrb[11].mxu0  ;;  %v508_v37 = vpop.f32.mrb[11].mxu1 }
  0xfd   : > { %v544_v38 = vmax.f32 %v442_v28, 0.0  ;;  %v560_v39 = vmax.f32 %v506_v29, 0.0  ;;  %v445_v40 = vadd.f32 %v1086_v20, %v444_v36  ;;  %v509_v41 = vadd.f32 %v1086_v20, %v508_v37 }
  0xfe   : > { %v875_v42 = vpack.c.bf16 %v546_v32, %v546_v32  ;;  %v891_v43 = vpack.c.bf16 %v562_v33, %v562_v33  ;;  %v547_v44 = vmax.f32 %v453_v34, 0.0  ;;  %v563_v45 = vmax.f32 %v517_v35, 0.0 }
  0xff   : > { %v873_v46 = vpack.c.bf16 %v544_v38, %v544_v38  ;;  %v889_v47 = vpack.c.bf16 %v560_v39, %v560_v39  ;;  %v545_v48 = vmax.f32 %v445_v40, 0.0  ;;  %v561_v49 = vmax.f32 %v509_v41, 0.0 }
 0x100   : > { %707 = vst.msk [vmem:[%s1099_s4 + $0x28] sm:$0xf] %vm696_vm1, %v875_v42  ;;  %723 = vst.msk [vmem:[%s1099_s4 + $0x68] sm:$0xf] %vm696_vm1, %v891_v43  ;;  %v876_v50 = vpack.c.bf16 %v547_v44, %v547_v44  ;;  %v892_v51 = vpack.c.bf16 %v563_v45, %v563_v45 }
 0x101   : > { %705 = vst.msk [vmem:[%s1099_s4 + $0x20] sm:$0xf] %vm696_vm1, %v873_v46  ;;  %721 = vst.msk [vmem:[%s1099_s4 + $0x60] sm:$0xf] %vm696_vm1, %v889_v47  ;;  %v874_v52 = vpack.c.bf16 %v545_v48, %v545_v48  ;;  %v890_v53 = vpack.c.bf16 %v561_v49, %v561_v49  ;;  %v939_v54 = vpop.f32.mrb[12].mxu0  ;;  %v955_v55 = vpop.f32.mrb[12].mxu1 }
 0x102   : > { %708 = vst.msk [vmem:[%s1099_s4 + $0x2c] sm:$0xf] %vm696_vm1, %v876_v50  ;;  %724 = vst.msk [vmem:[%s1099_s4 + $0x6c] sm:$0xf] %vm696_vm1, %v892_v51  ;;  %v466_v56 = vadd.f32 %v939_v54, %v1086_v20  ;;  %v530_v57 = vadd.f32 %v955_v55, %v1086_v20  ;;  %v457_v58 = vpop.f32.mrb[13].mxu0  ;;  %v521_v59 = vpop.f32.mrb[13].mxu1 }
 0x103   : > { %706 = vst.msk [vmem:[%s1099_s4 + $0x24] sm:$0xf] %vm696_vm1, %v874_v52  ;;  %722 = vst.msk [vmem:[%s1099_s4 + $0x64] sm:$0xf] %vm696_vm1, %v890_v53  ;;  %v458_v60 = vadd.f32 %v1086_v20, %v457_v58  ;;  %v522_v61 = vadd.f32 %v1086_v20, %v521_v59  ;;  %v940_v62 = vpop.f32.mrb[14].mxu0  ;;  %v956_v63 = vpop.f32.mrb[14].mxu1 }
 0x104   : > { %v550_v0 = vmax.f32 %v466_v56, 0.0  ;;  %v566_v1 = vmax.f32 %v530_v57, 0.0  ;;  %v469_v2 = vadd.f32 %v940_v62, %v1086_v20  ;;  %v533_v3 = vadd.f32 %v956_v63, %v1086_v20  ;;  %v460_v4 = vpop.f32.mrb[15].mxu0  ;;  %v524_v5 = vpop.f32.mrb[15].mxu1 }
 0x105   : > { %v548_v6 = vmax.f32 %v458_v60, 0.0  ;;  %v564_v7 = vmax.f32 %v522_v61, 0.0  ;;  %v461_v8 = vadd.f32 %v1086_v20, %v460_v4  ;;  %v525_v9 = vadd.f32 %v1086_v20, %v524_v5 }
 0x106   : > { %v879_v10 = vpack.c.bf16 %v550_v0, %v550_v0  ;;  %v895_v11 = vpack.c.bf16 %v566_v1, %v566_v1  ;;  %v551_v12 = vmax.f32 %v469_v2, 0.0  ;;  %v567_v13 = vmax.f32 %v533_v3, 0.0 }
 0x107   : > { %v877_v14 = vpack.c.bf16 %v548_v6, %v548_v6  ;;  %v893_v15 = vpack.c.bf16 %v564_v7, %v564_v7  ;;  %v549_v16 = vmax.f32 %v461_v8, 0.0  ;;  %v565_v17 = vmax.f32 %v525_v9, 0.0 }
 0x108   : > { %711 = vst.msk [vmem:[%s1099_s4 + $0x38] sm:$0xf] %vm696_vm1, %v879_v10  ;;  %727 = vst.msk [vmem:[%s1099_s4 + $0x78] sm:$0xf] %vm696_vm1, %v895_v11  ;;  %v880_v18 = vpack.c.bf16 %v551_v12, %v551_v12  ;;  %v896_v19 = vpack.c.bf16 %v567_v13, %v567_v13 }
 0x109   : > { %709 = vst.msk [vmem:[%s1099_s4 + $0x30] sm:$0xf] %vm696_vm1, %v877_v14  ;;  %725 = vst.msk [vmem:[%s1099_s4 + $0x70] sm:$0xf] %vm696_vm1, %v893_v15  ;;  %v878_v20 = vpack.c.bf16 %v549_v16, %v549_v16  ;;  %v894_v21 = vpack.c.bf16 %v565_v17, %v565_v17 }
 0x10a   : > { %712 = vst.msk [vmem:[%s1099_s4 + $0x3c] sm:$0xf] %vm696_vm1, %v880_v18  ;;  %728 = vst.msk [vmem:[%s1099_s4 + $0x7c] sm:$0xf] %vm696_vm1, %v896_v19 }
 0x10b   : > { %710 = vst.msk [vmem:[%s1099_s4 + $0x34] sm:$0xf] %vm696_vm1, %v878_v20  ;;  %726 = vst.msk [vmem:[%s1099_s4 + $0x74] sm:$0xf] %vm696_vm1, %v894_v21 }
 0x10c PF: > { %s13_s12 = sadd.s32 1, %s999_s12  }
 0x10d   : > { %p10_p4 = scmp.ge.s32.totalorder %s13_s12, 6  }
 0x10f   :  { %12 = sbr.rel (!%p10_p4) target bundleno = 1 (0x1), region = 62 }

// kernel: dpn_bottleneck_forward.3
= control target key start
LH: loop header
LB: loop body
LE: loop exit
PB: predicated region body
PF: predicated region fallthrough
CT: control target
= control target key end

     0   :  { %s23288_s27 = smov 0   ;;  %s23290_s28 = smov 0   ;;  %s28367_s0 = inlined_call_operand.vmem [shape: bf16[2,10,10,10,64], index: 0, kind: input, shape index: {}]   ;;  %s28368_s1 = inlined_call_operand.vmem [shape: bf16[2,8,8,8,64], index: 1, kind: input, shape index: {}]   ;;  %s28369_s2 = inlined_call_operand.vmem [shape: bf16[27,64,64], index: 2, kind: input, shape index: {}]   ;;  %s28370_s3 = inlined_call_operand.vmem [shape: f32[1,64], index: 3, kind: input, shape index: {}]   ;;  %s28371_s4 = inlined_call_operand.vmem [shape: bf16[64,128], index: 4, kind: input, shape index: {}]   ;;  %s28372_s5 = inlined_call_operand.vmem [shape: f32[1,128], index: 5, kind: input, shape index: {}]   ;;  %s28373_s6 = inlined_call_operand.vmem [shape: bf16[64,128], index: 6, kind: input, shape index: {}]   ;;  %s28374_s7 = inlined_call_operand.vmem [shape: f32[1,128], index: 7, kind: input, shape index: {}]   ;;  %s28375_s8 = inlined_call_operand.vmem [shape: bf16[2,8,8,8,128], index: 8, kind: output, shape index: {}]  }
   0x1   :  { %s23292_s29 = smov 0   ;;  %s23294_s30 = smov 0  }
   0x2   :  { %s23296_s9 = smov 0  }
   0x3 LB: > { %s27_s10 = sadd.s32 1, %s23233_s29  ;;  %s30_s11 = sadd.s32 1, %s23237_s30  ;;  %s23241_s9 = sphi %s23296_s9, %s18_s9   ;;  %s23237_s30 = sphi %s23294_s30, %s28423_s30   ;;  %s23233_s29 = sphi %s23292_s29, %s28422_s29   ;;  %s23229_s28 = sphi %s23290_s28, %s28421_s28   ;;  %s23225_s27 = sphi %s23288_s27, %s28420_s27  }
   0x4   : > { %p28_p0 = scmp.ge.s32.totalorder %s27_s10, 2  ;;  %p17277_p1 = scmp.ge.s32.totalorder %s23241_s9, 1 }
   0x5   : > { %p294_p2 = scmp.lt.s32.totalorder %s23241_s9, 5 }
   0x6   : > { %s28425_s10 = smov (%p28_p0, %s27_s10), 0  ;;  %s28427_s11 = smov (!%p28_p0, %s30_s11), %s23237_s30 }
   0x7   : > { %p295_p3 = pnand %p17277_p1, %p294_p2  ;;  %p32_p4 = scmp.ge.s32.totalorder %s28427_s11, 2 }
   0x9   : > { %s28429_s11 = smov (%p32_p4, %s28427_s11), 0  ;;  %298 = sbr.rel (%p295_p3) target bundleno = 1586 (0x632), region = 52 }
  0x10   : > { %v22738_v0 = vld [vmem:[%s28369_s2 + $0x180] sm:$0xff]   ;;  %p343_p5 = scmp.lt.s32.totalorder %s23229_s28, 1  ;;  %v22740_v2 = vld [vmem:[%s28369_s2 + $0x188] sm:$0xff]   ;;  %s19893_s20 = smul.u32 320, %s23225_s27  ;;  %v22742_v4 = vld [vmem:[%s28369_s2 + $0x190] sm:$0xff]   ;;  %vm979_vm0 = vcmask 523264  }
  0x11   : > { %v22739_v1 = vld [vmem:[%s28369_s2 + $0x20] sm:$0xff]   ;;  %21081 = vmatprep.subr.bf16.mxu0 %v22738_v0  ;;  %v22741_v3 = vld [vmem:[%s28369_s2 + $0x28] sm:$0xff]   ;;  %v22743_v5 = vld [vmem:[%s28369_s2 + $0x30] sm:$0xff]   ;;  %vm447_vm1 = vsmask.f32 3328  ;;  %vm1598_vm4 = vcmask 1042432  }
  0x12   : > { %s28431_s28 = smov (!%p343_p5, %s23229_s28), 1  ;;  %21082 = vmatpush3.bf16.msra.mxu0 %v22738_v0  ;;  %20601 = vmatprep.subr.bf16.mxu1 %v22739_v1  ;;  %v22744_v6 = vld [vmem:[%s28369_s2 + $0x198] sm:$0xff]   ;;  %v22748_v13 = vld [vmem:[%s28369_s2 + $0x1a0] sm:$0xff]   ;;  %vm448_vm2 = vsmask.f32 7440  ;;  %v22751_v37 = vld [vmem:[%s28369_s2 + $0x1a8] sm:$0xff]  }
  0x13   : > { %20602 = vmatpush3.bf16.msra.mxu1 %v22739_v1  ;;  %21083 = vmatprep.subr.bf16.mxu0 %v22740_v2  ;;  %s22697_s23 = smul.u32 800, %s28431_s28  ;;  %v22745_v8 = vld [vmem:[%s28369_s2 + $0x38] sm:$0xff]   ;;  %vm23392_vm3 = vmor %vm447_vm1, %vm448_vm2  ;;  %v22754_v50 = vld [vmem:[%s28369_s2 + $0x1b0] sm:$0xff]   ;;  %vm1599_vm5 = vcmask 1046532   ;;  %s17281_s14 = sshll.u32 %s28431_s28, 6 }
  0x14   : > { %20603 = vmatprep.subr.bf16.mxu1 %v22741_v3  ;;  %v22757_v57 = vld [vmem:[%s28369_s2 + $0x1b8] sm:$0xff]   ;;  %v22760_v0 = vld [vmem:[%s28369_s2] sm:$0xff]   ;;  %vm23924_vm6 = vmor %vm1598_vm4, %vm1599_vm5 }
  0x15   : > { %s347_s13 = scalar_lea.vmem %s28367_s0, %s22697_s23 }
  0x16   : > { %21084 = vmatpush3.bf16.msra.mxu0 %v22740_v2  ;;  %s23348_s16 = scalar_lea.vmem %s347_s13, %s19893_s20  ;;  %s17279_s13 = sshll.u32 %s23225_s27, 2 }
  0x17   : > { %20604 = vmatpush3.bf16.msra.mxu1 %v22741_v3  ;;  %21085 = vmatprep.subr.bf16.mxu0 %v22742_v4  ;;  %v22746_v7 = vld [vmem:[%s23348_s16 + $0x58] ss:$8 sps:$4 sm:$0xff]   ;;  %v23359_v10 = vld [vmem:[%s23348_s16 + $0x8] sm:$0xf]  ;;  %v23362_v11 = vld [vmem:[%s23348_s16 + $0x4] sm:$0x1] }
  0x18   : > { %20605 = vmatprep.subr.bf16.mxu1 %v22743_v5  ;;  %21089 = vmatprep.mubr.msk.bf16.mxu0 %vm979_vm0, %v22746_v7  ;;  %v23356_v9 = vld [vmem:[%s23348_s16] sm:$0xf]  ;;  %v22747_v12 = vld [vmem:[%s23348_s16 + $0x68] ss:$8 sps:$4 sm:$0xff]   ;;  %v416_v14 = vld [vmem:[%s23348_s16 + $0xc] sm:$0x1] }
  0x19   : > { %v451_v15 = vshrl.u32 %v23356_v9, 16  ;;  %v454_v16 = vshll.u32 %v23356_v9, 16  ;;  %v460_v17 = vshll.u32 %v23362_v11, 16  ;;  %v465_v18 = vshrl.u32 %v23359_v10, 16  ;;  %v23374_v19 = vld [vmem:[%s23348_s16 + $0x10] sm:$0xf] }
  0x1a   : > { %21086 = vmatpush3.bf16.msra.mxu0 %v22742_v4  ;;  %v468_v20 = vshll.u32 %v23359_v10, 16  ;;  %v474_v21 = vshll.u32 %v416_v14, 16  ;;  %v23378_v22 = vld [vmem:[%s23348_s16 + $0x18] sm:$0xf]  ;;  %v417_v27 = vld [vmem:[%s23348_s16 + $0x14] sm:$0x1] }
  0x1b   : > { %20606 = vmatpush3.bf16.msra.mxu1 %v22743_v5  ;;  %21087 = vmatprep.subr.bf16.mxu0 %v22744_v6  ;;  %v453_v23 = vrot.slane %v451_v15, 4  ;;  %v456_v24 = vrot.slane %v454_v16, 5  ;;  %v462_v25 = vrot.slane %v460_v17, 5  ;;  %v467_v26 = vrot.slane %v465_v18, 4  ;;  %v418_v30 = vld [vmem:[%s23348_s16 + $0x1c] sm:$0x1] }
  0x1c   : > { %20607 = vmatprep.subr.bf16.mxu1 %v22745_v8  ;;  %v470_v28 = vrot.slane %v468_v20, 5  ;;  %v476_v29 = vrot.slane %v474_v21, 5  ;;  %v479_v31 = vshrl.u32 %v23374_v19, 16  ;;  %v482_v32 = vshll.u32 %v23374_v19, 16  ;;  %v22749_v46 = vld [vmem:[%s23348_s16 + $0x78] ss:$8 sps:$4 sm:$0xff]  }
  0x1d   : > { %v457_v33 = vor.u32 %v456_v24, %v453_v23  ;;  %v488_v34 = vshll.u32 %v417_v27, 16  ;;  %v493_v35 = vshrl.u32 %v23378_v22, 16  ;;  %v496_v36 = vshll.u32 %v23378_v22, 16  ;;  %v22750_v54 = vld [vmem:[%s23348_s16 + $0x88] ss:$8 sps:$4 sm:$0xff]   ;;  %p351_p6 = scmp.lt.s32.totalorder %s17279_s13, 7 }
  0x1e   : > { %21088 = vmatpush3.bf16.msra.mxu0 %v22744_v6  ;;  %v471_v39 = vor.u32 %v470_v28, %v467_v26  ;;  %v481_v40 = vrot.slane %v479_v31, 4  ;;  %v484_v41 = vrot.slane %v482_v32, 5  ;;  %v502_v42 = vshll.u32 %v418_v30, 16  ;;  %v23414_v62 = vld [vmem:[%s23348_s16 + $0x20] sm:$0xf]  ;;  %v22761_v20 = vld [vmem:[%s28369_s2 + $0x8] sm:$0xff]  }
  0x1f   : > { %20608 = vmatpush3.bf16.msra.mxu1 %v22745_v8  ;;  %21121 = vmatprep.subr.bf16.mxu0 %v22748_v13  ;;  %v458_v43 = vrot.slane %v457_v33, 4  ;;  %v495_v44 = vrot.slane %v493_v35, 4  ;;  %v498_v45 = vrot.slane %v496_v36, 5  ;;  %v490_v49 = vrot.slane %v488_v34, 5  ;;  %v23417_v63 = vld [vmem:[%s23348_s16 + $0x28] sm:$0xf] }
  0x20   : > { %v472_v47 = vrot.slane %v471_v39, 4  ;;  %v485_v48 = vor.u32 %v484_v41, %v481_v40  ;;  %v504_v53 = vrot.slane %v502_v42, 5  ;;  %v419_v2 = vld [vmem:[%s23348_s16 + $0x24] sm:$0x1]  ;;  %v420_v3 = vld [vmem:[%s23348_s16 + $0x2c] sm:$0x1]  ;;  %20641 = vmatprep.subr.bf16.mxu1 %v22760_v0 }
  0x21   : > { %21090 = vmatmul.mubr.msk.bf16.vlgmr.msra.gmra.mrb[0].mxu0 %vm979_vm0, %v22747_v12  ;;  %v463_v51 = vsel %vm23392_vm3, %v458_v43, %v462_v25  ;;  %v499_v52 = vor.u32 %v498_v45, %v495_v44  ;;  %v507_v4 = vshrl.u32 %v23414_v62, 16  ;;  %v510_v5 = vshll.u32 %v23414_v62, 16  ;;  %v23438_v18 = vld [vmem:[%s23348_s16 + $0x38] sm:$0xf]  ;;  %v421_v25 = vld [vmem:[%s23348_s16 + $0x34] sm:$0x1] }
  0x22   : > { %21122 = vmatpush3.bf16.msra.mxu0 %v22748_v13  ;;  %21093 = vmatprep.mubr.msk.bf16.mxu0 %vm979_vm0, %v22749_v46  ;;  %v477_v55 = vsel %vm23392_vm3, %v472_v47, %v476_v29  ;;  %v486_v56 = vrot.slane %v485_v48, 4  ;;  %v516_v7 = vshll.u32 %v419_v2, 16  ;;  %v521_v8 = vshrl.u32 %v23417_v63, 16  ;;  %v23434_v13 = vld [vmem:[%s23348_s16 + $0x30] sm:$0xf]  ;;  %v23451_v32 = vld [vmem:[%s28369_s2 + $0x1c0] sm:$0xff]  }
  0x23   : > { %21123 = vmatprep.subr.bf16.mxu0 %v22751_v37  ;;  %v17298_v60 = vcombine.low %v463_v51, %v477_v55  ;;  %v500_v61 = vrot.slane %v499_v52, 4  ;;  %v524_v12 = vshll.u32 %v23417_v63, 16  ;;  %v509_v15 = vrot.slane %v507_v4, 4  ;;  %v422_v29 = vld [vmem:[%s23348_s16 + $0x3c] sm:$0x1]  ;;  %s28433_s13 = smov (!%p351_p6, %s17279_s13), 7 }
  0x24   : > { %v491_v1 = vsel %vm23392_vm3, %v486_v56, %v490_v49  ;;  %v512_v16 = vrot.slane %v510_v5, 5  ;;  %v530_v17 = vshll.u32 %v420_v3, 16  ;;  %v518_v21 = vrot.slane %v516_v7, 5  ;;  %v22752_v46 = vld [vmem:[%s23348_s16 + $0xa8] ss:$8 sps:$4 sm:$0xff]   ;;  %s17280_s15 = sshll.u32 %s28433_s13, 3 }
  0x25   : > { %20609 = vmatprep.mubr.msk.bf16.mxu1 %vm979_vm0, %v17298_v60  ;;  %v505_v6 = vsel %vm23392_vm3, %v500_v61, %v504_v53  ;;  %v523_v23 = vrot.slane %v521_v8, 4  ;;  %v526_v24 = vrot.slane %v524_v12, 5  ;;  %v535_v26 = vshrl.u32 %v23434_v13, 16  ;;  %v23474_v60 = vld [vmem:[%s23348_s16 + $0x58] sm:$0xf]  ;;  %s28161_s17 = sadd.s32 %s17281_s14, %s17280_s15 }
  0x26   : > { %21124 = vmatpush3.bf16.msra.mxu0 %v22751_v37  ;;  %v17299_v14 = vcombine.low %v491_v1, %v505_v6  ;;  %v513_v27 = vor.u32 %v512_v16, %v509_v15  ;;  %v532_v28 = vrot.slane %v530_v17, 5  ;;  %v538_v30 = vshll.u32 %v23434_v13, 16  ;;  %v22762_v37 = vld [vmem:[%s28369_s2 + $0x10] sm:$0xff]   ;;  %v22763_v61 = vld [vmem:[%s28369_s2 + $0x18] sm:$0xff]   ;;  %v23489_v8 = vld [vmem:[%s23348_s16 + $0x60] sm:$0xf] }
  0x27   : > { %21125 = vmatprep.subr.bf16.mxu0 %v22754_v50  ;;  %v544_v31 = vshll.u32 %v421_v25, 16  ;;  %v527_v33 = vor.u32 %v526_v24, %v523_v23  ;;  %v537_v34 = vrot.slane %v535_v26, 4  ;;  %v549_v35 = vshrl.u32 %v23438_v18, 16  ;;  %v423_v1 = vld [vmem:[%s23348_s16 + $0x54] sm:$0x1]  ;;  %s17282_s18 = sshll.u32 %s28161_s17, 2 }
  0x28   : > { %20610 = vmatmul.mubr.msk.bf16.vlgmr.msra.gmra.mrb[0].mxu1 %vm979_vm0, %v17299_v14  ;;  %v552_v36 = vshll.u32 %v23438_v18, 16  ;;  %v514_v39 = vrot.slane %v513_v27, 4  ;;  %v540_v40 = vrot.slane %v538_v30, 5  ;;  %v558_v42 = vshll.u32 %v422_v29, 16  ;;  %v424_v2 = vld [vmem:[%s23348_s16 + $0x5c] sm:$0x1]  ;;  %s28169_s20 = scalar_lea.vmem %s28368_s1, %s17282_s18 }
  0x29   : > { %21094 = vmatmul.mubr.msk.bf16.gmra.mrb[4].mxu0 %vm979_vm0, %v22750_v54  ;;  %20642 = vmatpush3.bf16.msra.mxu1 %v22760_v0  ;;  %v546_v41 = vrot.slane %v544_v31, 5  ;;  %v528_v43 = vrot.slane %v527_v33, 4  ;;  %v551_v44 = vrot.slane %v549_v35, 4  ;;  %v22753_v54 = vld [vmem:[%s23348_s16 + $0xb8] ss:$8 sps:$4 sm:$0xff]   ;;  %v572_v6 = vshll.u32 %v423_v1, 16 }
  0x2a   : > { %21126 = vmatpush3.bf16.msra.mxu0 %v22754_v50  ;;  %20643 = vmatprep.subr.bf16.mxu1 %v22761_v20  ;;  %v554_v45 = vrot.slane %v552_v36, 5  ;;  %v519_v48 = vsel %vm23392_vm3, %v514_v39, %v518_v21  ;;  %v541_v49 = vor.u32 %v540_v40, %v537_v34  ;;  %v560_v50 = vrot.slane %v558_v42, 5  ;;  %v23495_v17 = vld [vmem:[%s23348_s16 + $0x68] sm:$0xf]  ;;  %v425_v25 = vld [vmem:[%s23348_s16 + $0x64] sm:$0x1] }
  0x2b   : > { %21127 = vmatprep.subr.bf16.mxu0 %v22757_v57  ;;  %v533_v52 = vsel %vm23392_vm3, %v528_v43, %v532_v28  ;;  %21097 = vmatprep.mubr.msk.bf16.mxu0 %vm979_vm0, %v22752_v46  ;;  %v577_v7 = vshrl.u32 %v23474_v60, 16  ;;  %v580_v15 = vshll.u32 %v23474_v60, 16  ;;  %v586_v16 = vshll.u32 %v424_v2, 16  ;;  %v426_v28 = vld [vmem:[%s23348_s16 + $0x6c] sm:$0x1] }
  0x2c   : > { %v555_v53 = vor.u32 %v554_v45, %v551_v44  ;;  %v17300_v55 = vcombine.low %v519_v48, %v533_v52  ;;  %v542_v56 = vrot.slane %v541_v49, 4  ;;  %v574_v23 = vrot.slane %v572_v6, 5  ;;  %v22755_v45 = vld [vmem:[%s23348_s16 + $0xc8] ss:$8 sps:$4 sm:$0xff]   ;;  %v388_v2 = vld [vmem:[%s23348_s16 + $0x78] sm:$0xf] }
  0x2d   : > { %20644 = vmatpush3.bf16.msra.mxu1 %v22761_v20  ;;  %v579_v24 = vrot.slane %v577_v7, 4  ;;  %v582_v26 = vrot.slane %v580_v15, 5  ;;  %v588_v27 = vrot.slane %v586_v16, 5  ;;  %v591_v29 = vshrl.u32 %v23489_v8, 16  ;;  %v387_v1 = vld [vmem:[%s23348_s16 + $0x70] sm:$0xf] }
  0x2e   : > { %21128 = vmatpush3.bf16.msra.mxu0 %v22757_v57  ;;  %v23471_v57 = vld [vmem:[%s23348_s16 + $0x50] sm:$0xf]  ;;  %20645 = vmatprep.subr.bf16.mxu1 %v22762_v37  ;;  %v556_v0 = vrot.slane %v555_v53, 4  ;;  %v547_v4 = vsel %vm23392_vm3, %v542_v56, %v546_v41  ;;  %v594_v30 = vshll.u32 %v23489_v8, 16  ;;  %v600_v33 = vshll.u32 %v425_v25, 16 }
  0x2f   : > { %21161 = vmatprep.subr.bf16.mxu0 %v23451_v32  ;;  %v563_v3 = vshrl.u32 %v23471_v57, 16  ;;  %20613 = vmatprep.mubr.msk.bf16.mxu1 %vm979_vm0, %v17300_v55  ;;  %v566_v5 = vshll.u32 %v23471_v57, 16  ;;  %v605_v34 = vshrl.u32 %v23495_v17, 16  ;;  %v608_v35 = vshll.u32 %v23495_v17, 16  ;;  %v428_v6 = vld [vmem:[%s23348_s16 + $0x7c] sm:$0x1] }
  0x30   : > { %v561_v12 = vsel %vm23392_vm3, %v556_v0, %v560_v50  ;;  %v583_v36 = vor.u32 %v582_v26, %v579_v24  ;;  %v596_v39 = vrot.slane %v594_v30, 5  ;;  %v614_v40 = vshll.u32 %v426_v28, 16  ;;  %v390_v26 = vld [vmem:[%s23348_s16 + $0x88] sm:$0xf]  ;;  %v23772_v47 = vld [vmem:[%s23348_s16 + $0x114] sm:$0x1] }
  0x31   : > { %21098 = vmatmul.mubr.msk.bf16.gmra.mrb[8].mxu0 %vm979_vm0, %v22753_v54  ;;  %v565_v14 = vrot.slane %v563_v3, 4  ;;  %20646 = vmatpush3.bf16.msra.mxu1 %v22762_v37  ;;  %v17301_v20 = vcombine.low %v547_v4, %v561_v12  ;;  %v568_v21 = vrot.slane %v566_v5, 5  ;;  %v593_v37 = vrot.slane %v591_v29, 4  ;;  %v22756_v54 = vld [vmem:[%s23348_s16 + $0xd8] ss:$8 sps:$4 sm:$0xff]  }
  0x32   : > { %20647 = vmatprep.subr.bf16.mxu1 %v22763_v61  ;;  %v602_v42 = vrot.slane %v600_v33, 5  ;;  %v607_v43 = vrot.slane %v605_v34, 4  ;;  %v610_v44 = vrot.slane %v608_v35, 5  ;;  %v584_v46 = vrot.slane %v583_v36, 4  ;;  %21101 = vmatprep.mubr.msk.bf16.mxu0 %vm979_vm0, %v22755_v45  ;;  %v427_v5 = vld [vmem:[%s23348_s16 + $0x74] sm:$0x1] }
  0x33   : > { %20614 = vmatmul.mubr.msk.bf16.gmra.mrb[4].mxu1 %vm979_vm0, %v17301_v20  ;;  %v569_v31 = vor.u32 %v568_v21, %v565_v14  ;;  %v597_v48 = vor.u32 %v596_v39, %v593_v37  ;;  %v616_v49 = vrot.slane %v614_v40, 5  ;;  %v619_v7 = vshrl.u32 %v387_v1, 16  ;;  %v389_v20 = vld [vmem:[%s23348_s16 + $0x80] sm:$0xf]  ;;  %v430_v35 = vld [vmem:[%s23348_s16 + $0x8c] sm:$0x1] }
  0x34   : > { %v611_v53 = vor.u32 %v610_v44, %v607_v43  ;;  %v622_v14 = vshll.u32 %v387_v1, 16  ;;  %v628_v15 = vshll.u32 %v427_v5, 16  ;;  %v633_v16 = vshrl.u32 %v388_v2, 16  ;;  %v18405_v43 = vld [vmem:[%s23348_s16 + $0x58] sm:$0xf] }
  0x35   : > { %20648 = vmatpush3.bf16.msra.mxu1 %v22763_v61  ;;  %v570_v41 = vrot.slane %v569_v31, 4  ;;  %v589_v61 = vsel %vm23392_vm3, %v584_v46, %v588_v27  ;;  %v598_v0 = vrot.slane %v597_v48, 4  ;;  %v636_v24 = vshll.u32 %v388_v2, 16  ;;  %v429_v31 = vld [vmem:[%s23348_s16 + $0x84] sm:$0x1] }
  0x36   : > { %v612_v4 = vrot.slane %v611_v53, 4  ;;  %v642_v25 = vshll.u32 %v428_v6, 16  ;;  %v624_v28 = vrot.slane %v622_v14, 5  ;;  %v630_v29 = vrot.slane %v628_v15, 5  ;;  %v18409_v15 = vld [vmem:[%s23348_s16 + $0x68] sm:$0xf] }
  0x37   : > { %v575_v52 = vsel %vm23392_vm3, %v570_v41, %v574_v23  ;;  %v603_v12 = vsel %vm23392_vm3, %v598_v0, %v602_v42  ;;  %v621_v23 = vrot.slane %v619_v7, 4  ;;  %v635_v30 = vrot.slane %v633_v16, 4  ;;  %v18407_v0 = vld [vmem:[%s23348_s16 + $0x60] sm:$0xf]  ;;  %v18408_v7 = vld [vmem:[%s23348_s16 + $0x64] sm:$0x1] }
  0x38   : > { %v17302_v3 = vcombine.low %v575_v52, %v589_v61  ;;  %v617_v21 = vsel %vm23392_vm3, %v612_v4, %v616_v49  ;;  %v638_v33 = vrot.slane %v636_v24, 5  ;;  %v644_v34 = vrot.slane %v642_v25, 5  ;;  %v18406_v49 = vld [vmem:[%s23348_s16 + $0x5c] sm:$0x1]  ;;  %v18410_v24 = vld [vmem:[%s23348_s16 + $0x6c] sm:$0x1] }
  0x39   : > { %21102 = vmatmul.mubr.msk.bf16.gmra.mrb[12].mxu0 %vm979_vm0, %v22756_v54  ;;  %v17303_v27 = vcombine.low %v603_v12, %v617_v21  ;;  %v647_v36 = vshrl.u32 %v389_v20, 16  ;;  %v650_v37 = vshll.u32 %v389_v20, 16  ;;  %v625_v39 = vor.u32 %v624_v28, %v621_v23  ;;  %v23787_v59 = vld [vmem:[%s23348_s16 + $0x124] sm:$0x1] }
  0x3a   : > { %20617 = vmatprep.mubr.msk.bf16.mxu1 %vm979_vm0, %v17302_v3  ;;  %v656_v40 = vshll.u32 %v429_v31, 16  ;;  %v661_v41 = vshrl.u32 %v390_v26, 16  ;;  %v664_v42 = vshll.u32 %v390_v26, 16  ;;  %v639_v44 = vor.u32 %v638_v33, %v635_v30  ;;  %v18411_v30 = vld [vmem:[%s23348_s16 + $0x70] sm:$0xf] }
  0x3b   : > { %20618 = vmatmul.mubr.msk.bf16.gmra.mrb[8].mxu1 %vm979_vm0, %v17303_v27  ;;  %v649_v45 = vrot.slane %v647_v36, 4  ;;  %v652_v46 = vrot.slane %v650_v37, 5  ;;  %v670_v48 = vshll.u32 %v430_v35, 16  ;;  %v626_v52 = vrot.slane %v625_v39, 4  ;;  %v18412_v37 = vld [vmem:[%s23348_s16 + $0x74] sm:$0x1] }
  0x3c   : > { %v658_v53 = vrot.slane %v656_v40, 5  ;;  %v663_v54 = vrot.slane %v661_v41, 4  ;;  %v666_v61 = vrot.slane %v664_v42, 5  ;;  %v640_v1 = vrot.slane %v639_v44, 4 }
  0x3d   : > { %v653_v2 = vor.u32 %v652_v46, %v649_v45  ;;  %v672_v3 = vrot.slane %v670_v48, 5  ;;  %v7813_v4 = vshrl.u32 %v18405_v43, 16  ;;  %v631_v5 = vsel %vm23392_vm3, %v626_v52, %v630_v29  ;;  %v391_v45 = vld [vmem:[%s23348_s16 + $0xa0] sm:$0xf] }
  0x3e   : > { %v667_v6 = vor.u32 %v666_v61, %v663_v54  ;;  %v7816_v12 = vshll.u32 %v18405_v43, 16  ;;  %v7822_v14 = vshll.u32 %v18406_v49, 16  ;;  %v645_v16 = vsel %vm23392_vm3, %v640_v1, %v644_v34 }
  0x3f   : > { %v654_v20 = vrot.slane %v653_v2, 4  ;;  %v7815_v21 = vrot.slane %v7813_v4, 4  ;;  %v7827_v23 = vshrl.u32 %v18407_v0, 16  ;;  %v17304_v25 = vcombine.low %v631_v5, %v645_v16  ;;  %v431_v2 = vld [vmem:[%s23348_s16 + $0xa4] sm:$0x1] }
  0x40   : > { %v668_v26 = vrot.slane %v667_v6, 4  ;;  %v7818_v27 = vrot.slane %v7816_v12, 5  ;;  %v7824_v28 = vrot.slane %v7822_v14, 5  ;;  %v7830_v33 = vshll.u32 %v18407_v0, 16 }
  0x41   : > { %v659_v29 = vsel %vm23392_vm3, %v654_v20, %v658_v53  ;;  %v7829_v31 = vrot.slane %v7827_v23, 4  ;;  %v7836_v35 = vshll.u32 %v18408_v7, 16  ;;  %20621 = vmatprep.mubr.msk.bf16.mxu1 %vm979_vm0, %v17304_v25  ;;  %v7841_v39 = vshrl.u32 %v18409_v15, 16  ;;  %v392_v53 = vld [vmem:[%s23348_s16 + $0xa8] sm:$0xf] }
  0x42   : > { %v673_v34 = vsel %vm23392_vm3, %v668_v26, %v672_v3  ;;  %v7819_v36 = vor.u32 %v7818_v27, %v7815_v21  ;;  %v7844_v40 = vshll.u32 %v18409_v15, 16  ;;  %v7832_v42 = vrot.slane %v7830_v33, 5  ;;  %v432_v15 = vld [vmem:[%s23348_s16 + $0xac] sm:$0x1]  ;;  %v393_v25 = vld [vmem:[%s23348_s16 + $0xb0] sm:$0xf] }
  0x43   : > { %v17305_v41 = vcombine.low %v659_v29, %v673_v34  ;;  %v7838_v43 = vrot.slane %v7836_v35, 5  ;;  %v7850_v44 = vshll.u32 %v18410_v24, 16  ;;  %v7843_v48 = vrot.slane %v7841_v39, 4  ;;  %v394_v29 = vld [vmem:[%s23348_s16 + $0xb8] sm:$0xf] }
  0x44   : > { %v7820_v46 = vrot.slane %v7819_v36, 4  ;;  %v7846_v49 = vrot.slane %v7844_v40, 5  ;;  %v7855_v52 = vshrl.u32 %v18411_v30, 16  ;;  %v7833_v54 = vor.u32 %v7832_v42, %v7829_v31  ;;  %v433_v31 = vld [vmem:[%s23348_s16 + $0xb4] sm:$0x1] }
  0x45   : > { %20622 = vmatmul.mubr.msk.bf16.gmra.mrb[12].mxu1 %vm979_vm0, %v17305_v41  ;;  %v7852_v61 = vrot.slane %v7850_v44, 5  ;;  %v7858_v0 = vshll.u32 %v18411_v30, 16  ;;  %v7864_v1 = vshll.u32 %v18412_v37, 16  ;;  %v675_v6 = vshrl.u32 %v391_v45, 16  ;;  %v434_v42 = vld [vmem:[%s23348_s16 + $0xbc] sm:$0x1] }
  0x46   : > { %v7825_v3 = vsel %vm23392_vm3, %v7820_v46, %v7824_v28  ;;  %v7847_v4 = vor.u32 %v7846_v49, %v7843_v48  ;;  %v7857_v5 = vrot.slane %v7855_v52, 4  ;;  %v7834_v7 = vrot.slane %v7833_v54, 4  ;;  %v18413_v54 = vld [vmem:[%s23348_s16 + $0x78] sm:$0xf] }
  0x47   : > { %v7860_v12 = vrot.slane %v7858_v0, 5  ;;  %v7866_v14 = vrot.slane %v7864_v1, 5  ;;  %v678_v16 = vshll.u32 %v391_v45, 16  ;;  %v677_v21 = vrot.slane %v675_v6, 4 }
  0x48   : > { %v7848_v20 = vrot.slane %v7847_v4, 4  ;;  %v684_v23 = vshll.u32 %v431_v2, 16  ;;  %v689_v24 = vshrl.u32 %v392_v53, 16  ;;  %v7839_v26 = vsel %vm23392_vm3, %v7834_v7, %v7838_v43  ;;  %v18415_v4 = vld [vmem:[%s23348_s16 + $0x80] sm:$0xf] }
  0x49   : > { %v7861_v27 = vor.u32 %v7860_v12, %v7857_v5  ;;  %v680_v28 = vrot.slane %v678_v16, 5  ;;  %v692_v30 = vshll.u32 %v392_v53, 16  ;;  %v18477_v33 = vcombine.low %v7825_v3, %v7839_v26  ;;  %v22759_v5 = vld [vmem:[%s28369_s2 + $0x1c8] sm:$0xff]  }
  0x4a   : > { %v7853_v35 = vsel %vm23392_vm3, %v7848_v20, %v7852_v61  ;;  %v686_v34 = vrot.slane %v684_v23, 5  ;;  %v691_v36 = vrot.slane %v689_v24, 4  ;;  %v698_v41 = vshll.u32 %v432_v15, 16  ;;  %v18414_v61 = vld [vmem:[%s23348_s16 + $0x7c] sm:$0x1] }
  0x4b   : > { %v7862_v37 = vrot.slane %v7861_v27, 4  ;;  %v681_v39 = vor.u32 %v680_v28, %v677_v21  ;;  %v694_v40 = vrot.slane %v692_v30, 5  ;;  %21129 = vmatprep.mubr.msk.bf16.mxu0 %vm979_vm0, %v18477_v33  ;;  %v703_v43 = vshrl.u32 %v393_v25, 16  ;;  %v18416_v20 = vld [vmem:[%s23348_s16 + $0x84] sm:$0x1]  ;;  %v22764_v30 = vld [vmem:[%s28369_s2 + $0x1d0] sm:$0xff]  }
  0x4c   : > { %v706_v44 = vshll.u32 %v393_v25, 16  ;;  %v712_v45 = vshll.u32 %v433_v31, 16  ;;  %v717_v46 = vshrl.u32 %v394_v29, 16  ;;  %v700_v53 = vrot.slane %v698_v41, 5  ;;  %v18417_v28 = vld [vmem:[%s23348_s16 + $0x88] sm:$0xf] }
  0x4d   : > { %v7867_v48 = vsel %vm23392_vm3, %v7862_v37, %v7866_v14  ;;  %v682_v49 = vrot.slane %v681_v39, 4  ;;  %v695_v52 = vor.u32 %v694_v40, %v691_v36  ;;  %v705_v1 = vrot.slane %v703_v43, 4  ;;  %v18419_v41 = vld [vmem:[%s23348_s16 + $0x90] sm:$0xf] }
  0x4e   : > { %v18478_v0 = vcombine.low %v7853_v35, %v7867_v48  ;;  %v708_v2 = vrot.slane %v706_v44, 5  ;;  %v714_v3 = vrot.slane %v712_v45, 5  ;;  %v719_v12 = vrot.slane %v717_v46, 4 }
  0x4f   : > { %v687_v6 = vsel %vm23392_vm3, %v682_v49, %v686_v34  ;;  %v696_v7 = vrot.slane %v695_v52, 4  ;;  %v720_v14 = vshll.u32 %v394_v29, 16  ;;  %v726_v16 = vshll.u32 %v434_v42, 16  ;;  %v18418_v34 = vld [vmem:[%s23348_s16 + $0x8c] sm:$0x1] }
  0x50   : > { %21130 = vmatmul.mubr.msk.bf16.vlgmr.msra.gmra.mrb[0].mxu0 %vm979_vm0, %v18478_v0  ;;  %v709_v15 = vor.u32 %v708_v2, %v705_v1  ;;  %v7869_v21 = vshrl.u32 %v18413_v54, 16  ;;  %v7872_v23 = vshll.u32 %v18413_v54, 16  ;;  %v7878_v26 = vshll.u32 %v18414_v61, 16  ;;  %v18420_v49 = vld [vmem:[%s23348_s16 + $0x94] sm:$0x1]  ;;  %v22769_v54 = vld [vmem:[%s28369_s2 + $0x1d8] sm:$0xff]  }
  0x51   : > { %v701_v24 = vsel %vm23392_vm3, %v696_v7, %v700_v53  ;;  %21162 = vmatpush3.bf16.msra.mxu0 %v23451_v32  ;;  %v722_v25 = vrot.slane %v720_v14, 5  ;;  %v7883_v27 = vshrl.u32 %v18415_v4, 16  ;;  %v728_v33 = vrot.slane %v726_v16, 5  ;;  %v23587_v32 = vld [vmem:[%s28369_s2 + $0x40] sm:$0xff]  }
  0x52   : > { %v17306_v29 = vcombine.low %v687_v6, %v701_v24  ;;  %v710_v31 = vrot.slane %v709_v15, 4  ;;  %v7871_v35 = vrot.slane %v7869_v21, 4  ;;  %21163 = vmatprep.subr.bf16.mxu0 %v22759_v5  ;;  %v7874_v37 = vrot.slane %v7872_v23, 5  ;;  %20681 = vmatprep.subr.bf16.mxu1 %v23587_v32  ;;  %v396_v21 = vld [vmem:[%s23348_s16 + $0xc8] sm:$0xf]  ;;  %v22774_v23 = vld [vmem:[%s28369_s2 + $0x1e0] sm:$0xff]  }
  0x53   : > { %v723_v36 = vor.u32 %v722_v25, %v719_v12  ;;  %v7880_v39 = vrot.slane %v7878_v26, 5  ;;  %v7885_v40 = vrot.slane %v7883_v27, 4  ;;  %v7886_v43 = vshll.u32 %v18415_v4, 16  ;;  %v436_v27 = vld [vmem:[%s23348_s16 + $0xcc] sm:$0x1] }
  0x54   : > { %20625 = vmatprep.mubr.msk.bf16.mxu1 %vm979_vm0, %v17306_v29  ;;  %v715_v42 = vsel %vm23392_vm3, %v710_v31, %v714_v3  ;;  %v7892_v44 = vshll.u32 %v18416_v20, 16  ;;  %v7897_v45 = vshrl.u32 %v18417_v28, 16  ;;  %v7875_v48 = vor.u32 %v7874_v37, %v7871_v35  ;;  %v395_v3 = vld [vmem:[%s23348_s16 + $0xc0] sm:$0xf]  ;;  %v397_v29 = vld [vmem:[%s23348_s16 + $0xd0] sm:$0xf] }
  0x55   : > { %v724_v46 = vrot.slane %v723_v36, 4  ;;  %v7900_v52 = vshll.u32 %v18417_v28, 16  ;;  %v7906_v53 = vshll.u32 %v18418_v34, 16  ;;  %21164 = vmatpush3.bf16.msra.mxu0 %v22759_v5  ;;  %v7888_v61 = vrot.slane %v7886_v43, 5  ;;  %v435_v5 = vld [vmem:[%s23348_s16 + $0xc4] sm:$0x1] }
  0x56   : > { %v7894_v0 = vrot.slane %v7892_v44, 5  ;;  %v7899_v1 = vrot.slane %v7897_v45, 4  ;;  %v7911_v2 = vshrl.u32 %v18419_v41, 16  ;;  %21165 = vmatprep.subr.bf16.mxu0 %v22764_v30  ;;  %v7876_v6 = vrot.slane %v7875_v48, 4  ;;  %v398_v36 = vld [vmem:[%s23348_s16 + $0xd8] sm:$0xf] }
  0x57   : > { %v729_v4 = vsel %vm23392_vm3, %v724_v46, %v728_v33  ;;  %v7902_v7 = vrot.slane %v7900_v52, 5  ;;  %v7908_v12 = vrot.slane %v7906_v53, 5  ;;  %v7889_v15 = vor.u32 %v7888_v61, %v7885_v40 }
  0x58   : > { %v17307_v14 = vcombine.low %v715_v42, %v729_v4  ;;  %v7913_v16 = vrot.slane %v7911_v2, 4  ;;  %v7914_v20 = vshll.u32 %v18419_v41, 16  ;;  %v7881_v24 = vsel %vm23392_vm3, %v7876_v6, %v7880_v39  ;;  %v437_v39 = vld [vmem:[%s23348_s16 + $0xd4] sm:$0x1] }
  0x59   : > { %v7903_v25 = vor.u32 %v7902_v7, %v7899_v1  ;;  %v7920_v26 = vshll.u32 %v18420_v49, 16  ;;  %v731_v28 = vshrl.u32 %v395_v3, 16  ;;  %21166 = vmatpush3.bf16.msra.mxu0 %v22764_v30  ;;  %v7890_v31 = vrot.slane %v7889_v15, 4  ;;  %v18421_v15 = vld [vmem:[%s23348_s16 + $0xa8] sm:$0xf] }
  0x5a   : > { %20626 = vmatmul.mubr.msk.bf16.gmra.mrb[16].mxu1 %vm979_vm0, %v17307_v14  ;;  %v7916_v33 = vrot.slane %v7914_v20, 5  ;;  %v734_v35 = vshll.u32 %v395_v3, 16  ;;  %v740_v34 = vshll.u32 %v435_v5, 16  ;;  %21167 = vmatprep.subr.bf16.mxu0 %v22769_v54  ;;  %v745_v42 = vshrl.u32 %v396_v21, 16  ;;  %v438_v3 = vld [vmem:[%s23348_s16 + $0xdc] sm:$0x1] }
  0x5b   : > { %v7904_v37 = vrot.slane %v7903_v25, 4  ;;  %v7922_v40 = vrot.slane %v7920_v26, 5  ;;  %v733_v41 = vrot.slane %v731_v28, 4  ;;  %v7895_v43 = vsel %vm23392_vm3, %v7890_v31, %v7894_v0  ;;  %v18423_v25 = vld [vmem:[%s23348_s16 + $0xb0] sm:$0xf] }
  0x5c   : > { %v7917_v44 = vor.u32 %v7916_v33, %v7913_v16  ;;  %v736_v45 = vrot.slane %v734_v35, 5  ;;  %v742_v30 = vrot.slane %v740_v34, 5  ;;  %v18479_v46 = vcombine.low %v7881_v24, %v7895_v43  ;;  %v23623_v24 = vld [vmem:[%s23348_s16 + $0xac] sm:$0x1]  ;;  %v23629_v31 = vld [vmem:[%s23348_s16 + $0xb4] sm:$0x1] }
  0x5d   : > { %v7909_v48 = vsel %vm23392_vm3, %v7904_v37, %v7908_v12  ;;  %v747_v49 = vrot.slane %v745_v42, 4  ;;  %v748_v52 = vshll.u32 %v396_v21, 16  ;;  %21168 = vmatpush3.bf16.msra.mxu0 %v22769_v54  ;;  %v754_v1 = vshll.u32 %v436_v27, 16 }
  0x5e   : > { %v7918_v53 = vrot.slane %v7917_v44, 4  ;;  %v737_v61 = vor.u32 %v736_v45, %v733_v41  ;;  %v759_v2 = vshrl.u32 %v397_v29, 16  ;;  %21201 = vmatprep.subr.bf16.mxu0 %v22774_v23  ;;  %21133 = vmatprep.mubr.msk.bf16.mxu0 %vm979_vm0, %v18479_v46  ;;  %v762_v4 = vshll.u32 %v397_v29, 16  ;;  %v23634_v41 = vld [vmem:[%s23348_s16 + $0xbc] sm:$0x1] }
  0x5f   : > { %v750_v0 = vrot.slane %v748_v52, 5  ;;  %v768_v6 = vshll.u32 %v437_v39, 16  ;;  %v773_v7 = vshrl.u32 %v398_v36, 16  ;;  %v756_v5 = vrot.slane %v754_v1, 5 }
  0x60   : > { %v7923_v12 = vsel %vm23392_vm3, %v7918_v53, %v7922_v40  ;;  %v738_v54 = vrot.slane %v737_v61, 4  ;;  %v761_v14 = vrot.slane %v759_v2, 4  ;;  %v764_v21 = vrot.slane %v762_v4, 5  ;;  %v18425_v40 = vld [vmem:[%s23348_s16 + $0xb8] sm:$0xf] }
  0x61   : > { %v18480_v16 = vcombine.low %v7909_v48, %v7923_v12  ;;  %v751_v20 = vor.u32 %v750_v0, %v747_v49  ;;  %v770_v23 = vrot.slane %v768_v6, 5  ;;  %v775_v27 = vrot.slane %v773_v7, 4  ;;  %v18427_v61 = vld [vmem:[%s23348_s16 + $0xc0] sm:$0xf]  ;;  %v23644_v4 = vld [vmem:[%s23348_s16 + $0xc4] sm:$0x1] }
  0x62   : > { %v743_v26 = vsel %vm23392_vm3, %v738_v54, %v742_v30  ;;  %v776_v28 = vshll.u32 %v398_v36, 16  ;;  %v782_v29 = vshll.u32 %v438_v3, 16  ;;  %v765_v35 = vor.u32 %v764_v21, %v761_v14  ;;  %v23652_v21 = vld [vmem:[%s23348_s16 + $0xf8] sm:$0xf] }
  0x63   : > { %21134 = vmatmul.mubr.msk.bf16.gmra.mrb[4].mxu0 %vm979_vm0, %v18480_v16  ;;  %v752_v33 = vrot.slane %v751_v20, 4  ;;  %v7925_v34 = vshrl.u32 %v18421_v15, 16  ;;  %v7928_v37 = vshll.u32 %v18421_v15, 16  ;;  %v7934_v43 = vshll.u32 %v23623_v24, 16 }
  0x64   : > { %v778_v42 = vrot.slane %v776_v28, 5  ;;  %v784_v39 = vrot.slane %v782_v29, 5  ;;  %v7939_v44 = vshrl.u32 %v18423_v25, 16  ;;  %v766_v45 = vrot.slane %v765_v35, 4  ;;  %v439_v28 = vld [vmem:[%s23348_s16 + $0xf4] sm:$0x1] }
  0x65   : > { %v757_v36 = vsel %vm23392_vm3, %v752_v33, %v756_v5  ;;  %v7927_v30 = vrot.slane %v7925_v34, 4  ;;  %v7930_v46 = vrot.slane %v7928_v37, 5  ;;  %v7936_v52 = vrot.slane %v7934_v43, 5  ;;  %v23649_v5 = vld [vmem:[%s23348_s16 + $0xf0] sm:$0xf] }
  0x66   : > { %v17308_v48 = vcombine.low %v743_v26, %v757_v36  ;;  %v779_v49 = vor.u32 %v778_v42, %v775_v27  ;;  %v7941_v53 = vrot.slane %v7939_v44, 4  ;;  %v771_v1 = vsel %vm23392_vm3, %v766_v45, %v770_v23  ;;  %v440_v43 = vld [vmem:[%s23348_s16 + $0xfc] sm:$0x1] }
  0x67   : > { %v7931_v2 = vor.u32 %v7930_v46, %v7927_v30  ;;  %v7942_v0 = vshll.u32 %v18423_v25, 16  ;;  %v7948_v3 = vshll.u32 %v23629_v31, 16  ;;  %v7953_v7 = vshrl.u32 %v18425_v40, 16  ;;  %v23666_v46 = vld [vmem:[%s23348_s16 + $0x100] sm:$0xf] }
  0x68   : > { %20629 = vmatprep.mubr.msk.bf16.mxu1 %vm979_vm0, %v17308_v48  ;;  %v780_v6 = vrot.slane %v779_v49, 4  ;;  %v7956_v12 = vshll.u32 %v18425_v40, 16  ;;  %v7962_v54 = vshll.u32 %v23634_v41, 16  ;;  %v7967_v20 = vshrl.u32 %v18427_v61, 16 }
  0x69   : > { %v7932_v14 = vrot.slane %v7931_v2, 4  ;;  %v7944_v15 = vrot.slane %v7942_v0, 5  ;;  %v7950_v16 = vrot.slane %v7948_v3, 5  ;;  %v7955_v25 = vrot.slane %v7953_v7, 4 }
  0x6a   : > { %v785_v23 = vsel %vm23392_vm3, %v780_v6, %v784_v39  ;;  %v7958_v26 = vrot.slane %v7956_v12, 5  ;;  %v7964_v27 = vrot.slane %v7962_v54, 5  ;;  %v7969_v34 = vrot.slane %v7967_v20, 4  ;;  %v441_v6 = vld [vmem:[%s23348_s16 + $0x104] sm:$0x1] }
  0x6b   : > { %v17309_v29 = vcombine.low %v771_v1, %v785_v23  ;;  %v7937_v33 = vsel %vm23392_vm3, %v7932_v14, %v7936_v52  ;;  %v7945_v35 = vor.u32 %v7944_v15, %v7941_v53  ;;  %v7970_v40 = vshll.u32 %v18427_v61, 16  ;;  %v23669_v61 = vld [vmem:[%s23348_s16 + $0x108] sm:$0xf]  ;;  %v442_v23 = vld [vmem:[%s23348_s16 + $0x10c] sm:$0x1] }
  0x6c   : > { %v7959_v37 = vor.u32 %v7958_v26, %v7955_v25  ;;  %v7976_v42 = vshll.u32 %v23644_v4, 16  ;;  %v787_v44 = vshrl.u32 %v23649_v5, 16  ;;  %v790_v36 = vshll.u32 %v23649_v5, 16  ;;  %v18429_v26 = vld [vmem:[%s23348_s16 + $0xc8] sm:$0xf] }
  0x6d   : > { %20630 = vmatmul.mubr.msk.bf16.gmra.mrb[20].mxu1 %vm979_vm0, %v17309_v29  ;;  %v7946_v39 = vrot.slane %v7945_v35, 4  ;;  %v796_v45 = vshll.u32 %v439_v28, 16  ;;  %v801_v30 = vshrl.u32 %v23652_v21, 16  ;;  %v7972_v49 = vrot.slane %v7970_v40, 5 }
  0x6e   : > { %v7960_v48 = vrot.slane %v7959_v37, 4  ;;  %v7978_v52 = vrot.slane %v7976_v42, 5  ;;  %v789_v53 = vrot.slane %v787_v44, 4  ;;  %v792_v2 = vrot.slane %v790_v36, 5  ;;  %v23684_v37 = vld [vmem:[%s23348_s16 + $0xcc] sm:$0x1] }
  0x6f   : > { %v7951_v1 = vsel %vm23392_vm3, %v7946_v39, %v7950_v16  ;;  %v798_v0 = vrot.slane %v796_v45, 5  ;;  %v803_v3 = vrot.slane %v801_v30, 4  ;;  %v7973_v54 = vor.u32 %v7972_v49, %v7969_v34 }
  0x70   : > { %v18481_v7 = vcombine.low %v7937_v33, %v7951_v1  ;;  %v7965_v12 = vsel %vm23392_vm3, %v7960_v48, %v7964_v27  ;;  %v804_v14 = vshll.u32 %v23652_v21, 16  ;;  %v793_v15 = vor.u32 %v792_v2, %v789_v53  ;;  %v18431_v27 = vld [vmem:[%s23348_s16 + $0xd0] sm:$0xf] }
  0x71   : > { %v810_v20 = vshll.u32 %v440_v43, 16  ;;  %v815_v25 = vshrl.u32 %v23666_v46, 16  ;;  %v818_v16 = vshll.u32 %v23666_v46, 16  ;;  %v7974_v28 = vrot.slane %v7973_v54, 4 }
  0x72   : > { %21137 = vmatprep.mubr.msk.bf16.mxu0 %vm979_vm0, %v18481_v7  ;;  %v806_v29 = vrot.slane %v804_v14, 5  ;;  %v824_v33 = vshll.u32 %v441_v6, 16  ;;  %v829_v35 = vshrl.u32 %v23669_v61, 16  ;;  %v794_v34 = vrot.slane %v793_v15, 4  ;;  %v23693_v6 = vld [vmem:[%s23348_s16 + $0xd4] sm:$0x1] }
  0x73   : > { %v812_v40 = vrot.slane %v810_v20, 5  ;;  %v817_v42 = vrot.slane %v815_v25, 4  ;;  %v820_v43 = vrot.slane %v818_v16, 5  ;;  %v7979_v44 = vsel %vm23392_vm3, %v7974_v28, %v7978_v52  ;;  %v23701_v16 = vld [vmem:[%s23348_s16 + $0xdc] sm:$0x1] }
  0x74   : > { %v807_v39 = vor.u32 %v806_v29, %v803_v3  ;;  %v826_v36 = vrot.slane %v824_v33, 5  ;;  %v831_v45 = vrot.slane %v829_v35, 4  ;;  %v18482_v30 = vcombine.low %v7965_v12, %v7979_v44  ;;  %v18435_v35 = vld [vmem:[%s23348_s16 + $0xe0] sm:$0xf] }
  0x75   : > { %v799_v48 = vsel %vm23392_vm3, %v794_v34, %v798_v0  ;;  %v821_v49 = vor.u32 %v820_v43, %v817_v42  ;;  %v832_v53 = vshll.u32 %v23669_v61, 16  ;;  %v838_v2 = vshll.u32 %v442_v23, 16  ;;  %v18433_v0 = vld [vmem:[%s23348_s16 + $0xd8] sm:$0xf] }
  0x76   : > { %v808_v1 = vrot.slane %v807_v39, 4  ;;  %v7981_v7 = vshrl.u32 %v18429_v26, 16  ;;  %v7984_v54 = vshll.u32 %v18429_v26, 16  ;;  %21138 = vmatmul.mubr.msk.bf16.gmra.mrb[8].mxu0 %vm979_vm0, %v18482_v30  ;;  %v7990_v12 = vshll.u32 %v23684_v37, 16  ;;  %v23711_v39 = vld [vmem:[%s23348_s16 + $0x110] sm:$0xf] }
  0x77   : > { %v822_v52 = vrot.slane %v821_v49, 4  ;;  %v834_v3 = vrot.slane %v832_v53, 5  ;;  %v7995_v14 = vshrl.u32 %v18431_v27, 16  ;;  %v840_v20 = vrot.slane %v838_v2, 5  ;;  %v23716_v53 = vld [vmem:[%s23348_s16 + $0x118] sm:$0xf] }
  0x78   : > { %v813_v15 = vsel %vm23392_vm3, %v808_v1, %v812_v40  ;;  %v7983_v23 = vrot.slane %v7981_v7, 4  ;;  %v7986_v25 = vrot.slane %v7984_v54, 5  ;;  %v7992_v33 = vrot.slane %v7990_v12, 5  ;;  %v23708_v40 = vld [vmem:[%s23348_s16 + $0xe4] sm:$0x1] }
  0x79   : > { %v17310_v26 = vcombine.low %v799_v48, %v813_v15  ;;  %v827_v28 = vsel %vm23392_vm3, %v822_v52, %v826_v36  ;;  %v835_v29 = vor.u32 %v834_v3, %v831_v45  ;;  %v7997_v42 = vrot.slane %v7995_v14, 4  ;;  %28388 = vst [vmem:[#allocation2_spill] sm:$0xff] %v23708_v40  ;;  %v443_v45 = vld [vmem:[%s23348_s16 + $0x114] sm:$0x1] }
  0x7a   : > { %v7987_v34 = vor.u32 %v7986_v25, %v7983_v23  ;;  %v7998_v43 = vshll.u32 %v18431_v27, 16  ;;  %v8004_v44 = vshll.u32 %v23693_v6, 16  ;;  %v8009_v48 = vshrl.u32 %v18433_v0, 16 }
  0x7b   : > { %20633 = vmatprep.mubr.msk.bf16.mxu1 %vm979_vm0, %v17310_v26  ;;  %v836_v30 = vrot.slane %v835_v29, 4  ;;  %v8012_v49 = vshll.u32 %v18433_v0, 16  ;;  %v8018_v36 = vshll.u32 %v23701_v16, 16  ;;  %v8023_v7 = vshrl.u32 %v18435_v35, 16 }
  0x7c   : > { %v7988_v1 = vrot.slane %v7987_v34, 4  ;;  %v8000_v2 = vrot.slane %v7998_v43, 5  ;;  %v8006_v27 = vrot.slane %v8004_v44, 5  ;;  %v8011_v52 = vrot.slane %v8009_v48, 4  ;;  %v444_v34 = vld [vmem:[%s23348_s16 + $0x11c] sm:$0x1] }
  0x7d   : > { %v841_v54 = vsel %vm23392_vm3, %v836_v30, %v840_v20  ;;  %v8014_v3 = vrot.slane %v8012_v49, 5  ;;  %v8020_v12 = vrot.slane %v8018_v36, 5  ;;  %v8025_v23 = vrot.slane %v8023_v7, 4  ;;  %v23733_v36 = vld [vmem:[%s23348_s16 + $0x128] sm:$0xf] }
  0x7e   : > { %v17311_v14 = vcombine.low %v827_v28, %v841_v54  ;;  %v7993_v0 = vsel %vm23392_vm3, %v7988_v1, %v7992_v33  ;;  %v8001_v15 = vor.u32 %v8000_v2, %v7997_v42  ;;  %v8026_v26 = vshll.u32 %v18435_v35, 16  ;;  %v23730_v33 = vld [vmem:[%s23348_s16 + $0x120] sm:$0xf] }
  0x7f   : > { %v8015_v25 = vor.u32 %v8014_v3, %v8011_v52  ;;  %v8032_v29 = vshll.u32 %v23708_v40, 16  ;;  %v843_v43 = vshrl.u32 %v23711_v39, 16  ;;  %v846_v44 = vshll.u32 %v23711_v39, 16  ;;  %v445_v52 = vld [vmem:[%s23348_s16 + $0x124] sm:$0x1] }
  0x80   : > { %20634 = vmatmul.mubr.msk.bf16.gmra.mrb[24].mxu1 %vm979_vm0, %v17311_v14  ;;  %v8002_v20 = vrot.slane %v8001_v15, 4  ;;  %v852_v28 = vshll.u32 %v443_v45, 16  ;;  %v857_v30 = vshrl.u32 %v23716_v53, 16  ;;  %v8028_v48 = vrot.slane %v8026_v26, 5  ;;  %v18461_v40 = vld [vmem:[%s23348_s16 + $0x168] sm:$0xf] }
  0x81   : > { %v8016_v42 = vrot.slane %v8015_v25, 4  ;;  %v8034_v49 = vrot.slane %v8032_v29, 5  ;;  %v845_v35 = vrot.slane %v843_v43, 4  ;;  %v848_v2 = vrot.slane %v846_v44, 5 }
  0x82   : > { %v8007_v1 = vsel %vm23392_vm3, %v8002_v20, %v8006_v27  ;;  %v854_v7 = vrot.slane %v852_v28, 5  ;;  %v859_v54 = vrot.slane %v857_v30, 4  ;;  %v8029_v14 = vor.u32 %v8028_v48, %v8025_v23 }
  0x83   : > { %v18483_v3 = vcombine.low %v7993_v0, %v8007_v1  ;;  %v8021_v45 = vsel %vm23392_vm3, %v8016_v42, %v8020_v12  ;;  %v860_v15 = vshll.u32 %v23716_v53, 16  ;;  %v849_v25 = vor.u32 %v848_v2, %v845_v35  ;;  %v446_v0 = vld [vmem:[%s23348_s16 + $0x12c] sm:$0x1] }
  0x84   : > { %v866_v26 = vshll.u32 %v444_v34, 16  ;;  %v871_v29 = vshrl.u32 %v23730_v33, 16  ;;  %v874_v43 = vshll.u32 %v23730_v33, 16  ;;  %v8030_v27 = vrot.slane %v8029_v14, 4  ;;  %v18437_v34 = vld [vmem:[%s23348_s16 + $0xf8] sm:$0xf] }
  0x85   : > { %21141 = vmatprep.mubr.msk.bf16.mxu0 %vm979_vm0, %v18483_v3  ;;  %v862_v20 = vrot.slane %v860_v15, 5  ;;  %v880_v44 = vshll.u32 %v445_v52, 16  ;;  %v885_v12 = vshrl.u32 %v23733_v36, 16  ;;  %v850_v23 = vrot.slane %v849_v25, 4  ;;  %v23750_v3 = vld [vmem:[%s23348_s16 + $0xfc] sm:$0x1] }
  0x86   : > { %v868_v28 = vrot.slane %v866_v26, 5  ;;  %v873_v30 = vrot.slane %v871_v29, 4  ;;  %v876_v42 = vrot.slane %v874_v43, 5  ;;  %v8035_v48 = vsel %vm23392_vm3, %v8030_v27, %v8034_v49  ;;  %v18439_v14 = vld [vmem:[%s23348_s16 + $0x100] sm:$0xf] }
  0x87   : > { %v863_v35 = vor.u32 %v862_v20, %v859_v54  ;;  %v882_v1 = vrot.slane %v880_v44, 5  ;;  %v887_v2 = vrot.slane %v885_v12, 4  ;;  %v18484_v52 = vcombine.low %v8021_v45, %v8035_v48  ;;  %v23757_v29 = vld [vmem:[%s23348_s16 + $0x104] sm:$0x1]  ;;  %v18441_v54 = vld [vmem:[%s23348_s16 + $0x108] sm:$0xf] }
  0x88   : > { %v855_v15 = vsel %vm23392_vm3, %v850_v23, %v854_v7  ;;  %v877_v25 = vor.u32 %v876_v42, %v873_v30  ;;  %v888_v26 = vshll.u32 %v23733_v36, 16  ;;  %v894_v56 = vshll.u32 %v446_v0, 16  ;;  %v23761_v27 = vld [vmem:[%s23348_s16 + $0x10c] sm:$0x1] }
  0x89   : > { %v864_v43 = vrot.slane %v863_v35, 4  ;;  %v8037_v55 = vshrl.u32 %v18437_v34, 16  ;;  %v8040_v49 = vshll.u32 %v18437_v34, 16  ;;  %21142 = vmatmul.mubr.msk.bf16.gmra.mrb[12].mxu0 %vm979_vm0, %v18484_v52  ;;  %v8046_v7 = vshll.u32 %v23750_v3, 16  ;;  %v18443_v52 = vld [vmem:[%s23348_s16 + $0x110] sm:$0xf] }
  0x8a   : > { %v878_v20 = vrot.slane %v877_v25, 4  ;;  %v890_v45 = vrot.slane %v888_v26, 5  ;;  %v8051_v44 = vshrl.u32 %v18439_v14, 16  ;;  %v896_v23 = vrot.slane %v894_v56, 5 }
  0x8b   : > { %v869_v12 = vsel %vm23392_vm3, %v864_v43, %v868_v28  ;;  %v8039_v30 = vrot.slane %v8037_v55, 4  ;;  %v8042_v0 = vrot.slane %v8040_v49, 5  ;;  %v8048_v35 = vrot.slane %v8046_v7, 5 }
  0x8c   : > { %v17312_v42 = vcombine.low %v855_v15, %v869_v12  ;;  %v883_v34 = vsel %vm23392_vm3, %v878_v20, %v882_v1  ;;  %v891_v48 = vor.u32 %v890_v45, %v887_v2  ;;  %v8053_v26 = vrot.slane %v8051_v44, 4  ;;  %v18445_v1 = vld [vmem:[%s23348_s16 + $0x118] sm:$0xf]  ;;  %v23778_v45 = vld [vmem:[%s23348_s16 + $0x11c] sm:$0x1] }
  0x8d   : > { %v8043_v25 = vor.u32 %v8042_v0, %v8039_v30  ;;  %v8054_v50 = vshll.u32 %v18439_v14, 16  ;;  %v8060_v51 = vshll.u32 %v23757_v29, 16  ;;  %v8065_v56 = vshrl.u32 %v18441_v54, 16  ;;  %v18447_v30 = vld [vmem:[%s23348_s16 + $0x120] sm:$0xf] }
  0x8e   : > { %20637 = vmatprep.mubr.msk.bf16.mxu1 %vm979_vm0, %v17312_v42  ;;  %v892_v55 = vrot.slane %v891_v48, 4  ;;  %v8068_v28 = vshll.u32 %v18441_v54, 16  ;;  %v8074_v15 = vshll.u32 %v23761_v27, 16  ;;  %v8079_v20 = vshrl.u32 %v18443_v52, 16 }
  0x8f   : > { %v8044_v2 = vrot.slane %v8043_v25, 4  ;;  %v8056_v43 = vrot.slane %v8054_v50, 5  ;;  %v8062_v49 = vrot.slane %v8060_v51, 5  ;;  %v8067_v7 = vrot.slane %v8065_v56, 4 }
  0x90   : > { %v897_v14 = vsel %vm23392_vm3, %v892_v55, %v896_v23  ;;  %v8070_v44 = vrot.slane %v8068_v28, 5  ;;  %v8076_v12 = vrot.slane %v8074_v15, 5  ;;  %v8081_v48 = vrot.slane %v8079_v20, 4  ;;  %v18449_v28 = vld [vmem:[%s23348_s16 + $0x128] sm:$0xf] }
  0x91   : > { %v17313_v0 = vcombine.low %v883_v34, %v897_v14  ;;  %v8049_v54 = vsel %vm23392_vm3, %v8044_v2, %v8048_v35  ;;  %v8057_v42 = vor.u32 %v8056_v43, %v8053_v26  ;;  %v8082_v51 = vshll.u32 %v18443_v52, 16  ;;  %v23797_v43 = vld [vmem:[%s23348_s16 + $0x12c] sm:$0x1] }
  0x92   : > { %v8071_v50 = vor.u32 %v8070_v44, %v8067_v7  ;;  %v8088_v25 = vshll.u32 %v23772_v47, 16  ;;  %v8093_v58 = vshrl.u32 %v18445_v1, 16  ;;  %v8096_v55 = vshll.u32 %v18445_v1, 16  ;;  %v18451_v44 = vld [vmem:[%s23348_s16 + $0x130] sm:$0xf] }
  0x93   : > { %20638 = vmatmul.mubr.msk.bf16.gmra.mrb[28].mxu1 %vm979_vm0, %v17313_v0  ;;  %v8058_v23 = vrot.slane %v8057_v42, 4  ;;  %v8102_v34 = vshll.u32 %v23778_v45, 16  ;;  %v8107_v56 = vshrl.u32 %v18447_v30, 16  ;;  %v8084_v26 = vrot.slane %v8082_v51, 5 }
  0x94   : > { %v8072_v35 = vrot.slane %v8071_v50, 4  ;;  %v8090_v15 = vrot.slane %v8088_v25, 5  ;;  %v28389_v52 = vcombine.low %v23356_v9, %v23359_v10  ;;  %v8095_v2 = vrot.slane %v8093_v58, 4 }
  0x95   : > { %v8063_v20 = vsel %vm23392_vm3, %v8058_v23, %v8062_v49  ;;  %v8098_v14 = vrot.slane %v8096_v55, 5  ;;  %v8104_v1 = vrot.slane %v8102_v34, 5  ;;  %v8109_v7 = vrot.slane %v8107_v56, 4  ;;  %v22783_v49 = vld [vmem:[%s28369_s2 + $0x48] sm:$0xff]   ;;  %v23810_v55 = vld [vmem:[%s23348_s16 + $0x134] sm:$0x1] }
  0x96   : > { %20649 = vmatprep.mubr.msk.bf16.mxu1 %vm979_vm0, %v28389_v52  ;;  %v18485_v0 = vcombine.low %v8049_v54, %v8063_v20  ;;  %v8077_v42 = vsel %vm23392_vm3, %v8072_v35, %v8076_v12  ;;  %v8085_v50 = vor.u32 %v8084_v26, %v8081_v48  ;;  %v8110_v51 = vshll.u32 %v18447_v30, 16  ;;  %v18453_v35 = vld [vmem:[%s23348_s16 + $0x148] sm:$0xf] }
  0x97   : > { %v8099_v9 = vor.u32 %v8098_v14, %v8095_v2  ;;  %v8116_v10 = vshll.u32 %v23787_v59, 16  ;;  %v8121_v58 = vshrl.u32 %v18449_v28, 16  ;;  %v8124_v25 = vshll.u32 %v18449_v28, 16  ;;  %v23817_v14 = vld [vmem:[%s23348_s16 + $0x14c] sm:$0x1] }
  0x98   : > { %21145 = vmatprep.mubr.msk.bf16.mxu0 %vm979_vm0, %v18485_v0  ;;  %v8086_v54 = vrot.slane %v8085_v50, 4  ;;  %v8112_v23 = vrot.slane %v8110_v51, 5  ;;  %v8130_v12 = vshll.u32 %v23797_v43, 16  ;;  %v8135_v30 = vshrl.u32 %v18451_v44, 16  ;;  %28390 = vst [vmem:[#allocation3_spill] sm:$0xff] %v23817_v14 }
  0x99   : > { %v8100_v48 = vrot.slane %v8099_v9, 4  ;;  %v8118_v34 = vrot.slane %v8116_v10, 5  ;;  %v8123_v56 = vrot.slane %v8121_v58, 4  ;;  %v8126_v28 = vrot.slane %v8124_v25, 5  ;;  %v18455_v0 = vld [vmem:[%s23348_s16 + $0x150] sm:$0xf] }
  0x9a   : > { %v8091_v26 = vsel %vm23392_vm3, %v8086_v54, %v8090_v15  ;;  %v8113_v52 = vor.u32 %v8112_v23, %v8109_v7  ;;  %v8132_v2 = vrot.slane %v8130_v12, 5  ;;  %v8137_v20 = vrot.slane %v8135_v30, 4  ;;  %v23827_v15 = vld [vmem:[%s23348_s16 + $0x154] sm:$0x1]  ;;  %v23839_v23 = vld [vmem:[%s23348_s16 + $0x15c] sm:$0x1] }
  0x9b   : > { %v18486_v50 = vcombine.low %v8077_v42, %v8091_v26  ;;  %v28391_v51 = vcombine.low %v23374_v19, %v23378_v22  ;;  %v8105_v9 = vsel %vm23392_vm3, %v8100_v48, %v8104_v1  ;;  %v8127_v10 = vor.u32 %v8126_v28, %v8123_v56  ;;  %v22786_v7 = vld [vmem:[%s28369_s2 + $0x50] sm:$0xff]   ;;  %v18457_v1 = vld [vmem:[%s23348_s16 + $0x158] sm:$0xf]  ;;  %v18459_v56 = vld [vmem:[%s23348_s16 + $0x160] sm:$0xf] }
  0x9c   : > { %v8138_v58 = vshll.u32 %v18451_v44, 16  ;;  %v8114_v25 = vrot.slane %v8113_v52, 4  ;;  %v8144_v42 = vshll.u32 %v23810_v55, 16  ;;  %v28392_v19 = vcombine.low %v23414_v62, %v23417_v63 }
  0x9d   : > { %20650 = vmatmul.mubr.msk.bf16.vlgmr.msra.gmra.mrb[0].mxu1 %vm979_vm0, %v28391_v51  ;;  %v8149_v22 = vshrl.u32 %v18453_v35, 16  ;;  %v8152_v54 = vshll.u32 %v18453_v35, 16  ;;  %21146 = vmatmul.mubr.msk.bf16.gmra.mrb[16].mxu0 %vm979_vm0, %v18486_v50  ;;  %v8128_v44 = vrot.slane %v8127_v10, 4  ;;  %v8158_v30 = vshll.u32 %v23817_v14, 16  ;;  %v23851_v14 = vld [vmem:[%s23348_s16 + $0x164] sm:$0x1] }
  0x9e   : > { %20653 = vmatprep.mubr.msk.bf16.mxu1 %vm979_vm0, %v28392_v19  ;;  %20682 = vmatpush3.bf16.msra.mxu1 %v23587_v32  ;;  %v8140_v12 = vrot.slane %v8138_v58, 5  ;;  %v8163_v48 = vshrl.u32 %v18455_v0, 16  ;;  %v8119_v62 = vsel %vm23392_vm3, %v8114_v25, %v8118_v34  ;;  %v8146_v63 = vrot.slane %v8144_v42, 5  ;;  %v22787_v34 = vld [vmem:[%s28369_s2 + $0x58] sm:$0xff]  }
  0x9f   : > { %20683 = vmatprep.subr.bf16.mxu1 %v22783_v49  ;;  %v8151_v28 = vrot.slane %v8149_v22, 4  ;;  %v8154_v35 = vrot.slane %v8152_v54, 5  ;;  %v18487_v26 = vcombine.low %v8105_v9, %v8119_v62  ;;  %v8133_v32 = vsel %vm23392_vm3, %v8128_v44, %v8132_v2  ;;  %v23860_v44 = vld [vmem:[%s23348_s16 + $0x16c] sm:$0x1]  ;;  %v18463_v62 = vld [vmem:[%s23348_s16 + $0x170] sm:$0xf] }
  0xa0   : > { %v8141_v52 = vor.u32 %v8140_v12, %v8137_v20  ;;  %v8160_v50 = vrot.slane %v8158_v30, 5  ;;  %v8165_v10 = vrot.slane %v8163_v48, 4  ;;  %v8166_v58 = vshll.u32 %v18455_v0, 16 }
  0xa1   : > { %v8155_v51 = vor.u32 %v8154_v35, %v8151_v28  ;;  %v8172_v19 = vshll.u32 %v23827_v15, 16  ;;  %21149 = vmatprep.mubr.msk.bf16.mxu0 %vm979_vm0, %v18487_v26  ;;  %v8177_v20 = vshrl.u32 %v18457_v1, 16  ;;  %v8180_v9 = vshll.u32 %v18457_v1, 16 }
  0xa2   : > { %20684 = vmatpush3.bf16.msra.mxu1 %v22783_v49  ;;  %v8142_v2 = vrot.slane %v8141_v52, 4  ;;  %v8186_v25 = vshll.u32 %v23839_v23, 16  ;;  %v8168_v42 = vrot.slane %v8166_v58, 5  ;;  %v8191_v54 = vshrl.u32 %v18459_v56, 16  ;;  %v23877_v58 = vld [vmem:[%s23348_s16 + $0x174] sm:$0x1] }
  0xa3   : > { %20685 = vmatprep.subr.bf16.mxu1 %v22786_v7  ;;  %v8156_v0 = vrot.slane %v8155_v51, 4  ;;  %v8174_v22 = vrot.slane %v8172_v19, 5  ;;  %v28393_v12 = vcombine.low %v23434_v13, %v23438_v18  ;;  %v8179_v1 = vrot.slane %v8177_v20, 4  ;;  %v18465_v19 = vld [vmem:[%s23348_s16 + $0x178] sm:$0xf] }
  0xa4   : > { %v8147_v49 = vsel %vm23392_vm3, %v8142_v2, %v8146_v63  ;;  %v8182_v30 = vrot.slane %v8180_v9, 5  ;;  %v8188_v48 = vrot.slane %v8186_v25, 5  ;;  %v8169_v26 = vor.u32 %v8168_v42, %v8165_v10  ;;  %v18467_v2 = vld [vmem:[%s23348_s16 + $0x180] sm:$0xf] }
  0xa5   : > { %20654 = vmatmul.mubr.msk.bf16.gmra.mrb[4].mxu1 %vm979_vm0, %v28393_v12  ;;  %v18488_v28 = vcombine.low %v8133_v32, %v8147_v49  ;;  %v8161_v35 = vsel %vm23392_vm3, %v8156_v0, %v8160_v50  ;;  %v8193_v52 = vrot.slane %v8191_v54, 4  ;;  %v28394_v51 = vcombine.low %v23471_v57, %v23474_v60  ;;  %v23883_v50 = vld [vmem:[%s28369_s2 + $0x60] sm:$0xff]  }
  0xa6   : > { %20686 = vmatpush3.bf16.msra.mxu1 %v22786_v7  ;;  %v8183_v13 = vor.u32 %v8182_v30, %v8179_v1  ;;  %v8194_v18 = vshll.u32 %v18459_v56, 16  ;;  %v8200_v63 = vshll.u32 %v23851_v14, 16  ;;  %v8205_v32 = vshrl.u32 %v18461_v40, 16  ;;  %v23888_v56 = vld [vmem:[%s23348_s16 + $0x17c] sm:$0x1] }
  0xa7   : > { %20657 = vmatprep.mubr.msk.bf16.mxu1 %vm979_vm0, %v28394_v51  ;;  %20687 = vmatprep.subr.bf16.mxu1 %v22787_v34  ;;  %v8170_v57 = vrot.slane %v8169_v26, 4  ;;  %v8208_v60 = vshll.u32 %v18461_v40, 16  ;;  %v8214_v7 = vshll.u32 %v23860_v44, 16  ;;  %v8219_v10 = vshrl.u32 %v18463_v62, 16 }
  0xa8   : > { %21150 = vmatmul.mubr.msk.bf16.gmra.mrb[20].mxu0 %vm979_vm0, %v18488_v28  ;;  %v8184_v20 = vrot.slane %v8183_v13, 4  ;;  %v8196_v9 = vrot.slane %v8194_v18, 5  ;;  %v8202_v25 = vrot.slane %v8200_v63, 5  ;;  %v8207_v0 = vrot.slane %v8205_v32, 4 }
  0xa9   : > { %v8175_v42 = vsel %vm23392_vm3, %v8170_v57, %v8174_v22  ;;  %v8210_v54 = vrot.slane %v8208_v60, 5  ;;  %v8216_v49 = vrot.slane %v8214_v7, 5  ;;  %v8221_v12 = vrot.slane %v8219_v10, 4 }
  0xaa   : > { %20688 = vmatpush3.bf16.msra.mxu1 %v22787_v34  ;;  %v18489_v1 = vcombine.low %v8161_v35, %v8175_v42  ;;  %v8189_v40 = vsel %vm23392_vm3, %v8184_v20, %v8188_v48  ;;  %v8197_v30 = vor.u32 %v8196_v9, %v8193_v52  ;;  %v8222_v28 = vshll.u32 %v18463_v62, 16  ;;  %v23903_v48 = vld [vmem:[%s23348_s16 + $0x184] sm:$0x1]  ;;  %v18513_v42 = vld [vmem:[%s23348_s16 + $0x58] sm:$0xe] }
  0xab   : > { %20721 = vmatprep.subr.bf16.mxu1 %v23883_v50  ;;  %v8211_v26 = vor.u32 %v8210_v54, %v8207_v0  ;;  %v8228_v51 = vshll.u32 %v23877_v58, 16  ;;  %v8233_v13 = vshrl.u32 %v18465_v19, 16  ;;  %v8236_v18 = vshll.u32 %v18465_v19, 16 }
  0xac   : > { %21153 = vmatprep.mubr.msk.bf16.mxu0 %vm979_vm0, %v18489_v1  ;;  %v8198_v22 = vrot.slane %v8197_v30, 4  ;;  %v28395_v63 = vcombine.low %v23489_v8, %v23495_v17  ;;  %v8224_v34 = vrot.slane %v8222_v28, 5  ;;  %v8242_v62 = vshll.u32 %v23888_v56, 16  ;;  %v23014_v30 = vld [vmem:[%s23348_s16 + $0x70] sm:$0xf] }
  0xad   : > { %v8247_v35 = vshrl.u32 %v18467_v2, 16  ;;  %v8212_v52 = vrot.slane %v8211_v26, 4  ;;  %v8230_v32 = vrot.slane %v8228_v51, 5  ;;  %v8235_v19 = vrot.slane %v8233_v13, 4  ;;  %v23015_v28 = vld [vmem:[%s23348_s16 + $0x78] sm:$0xf] }
  0xae   : > { %20658 = vmatmul.mubr.msk.bf16.gmra.mrb[8].mxu1 %vm979_vm0, %v28395_v63  ;;  %v8238_v57 = vrot.slane %v8236_v18, 5  ;;  %v8203_v8 = vsel %vm23392_vm3, %v8198_v22, %v8202_v25  ;;  %v8225_v17 = vor.u32 %v8224_v34, %v8221_v12  ;;  %v23908_v60 = vrot.slane %v8242_v62, 5  ;;  %v23016_v25 = vld [vmem:[%s23348_s16 + $0x80] sm:$0xf]  ;;  %v23017_v12 = vld [vmem:[%s23348_s16 + $0x88] sm:$0xf] }
  0xaf   : > { %v8249_v7 = vrot.slane %v8247_v35, 4  ;;  %v18490_v10 = vcombine.low %v8189_v40, %v8203_v8  ;;  %v8217_v20 = vsel %vm23392_vm3, %v8212_v52, %v8216_v49  ;;  %v8250_v0 = vshll.u32 %v18467_v2, 16  ;;  %v18514_v13 = vld [vmem:[%s23348_s16 + $0x60] sm:$0xe]  ;;  %v18515_v2 = vld [vmem:[%s23348_s16 + $0x68] sm:$0xe] }
  0xb0   : > { %v8239_v9 = vor.u32 %v8238_v57, %v8235_v19  ;;  %v8226_v54 = vrot.slane %v8225_v17, 4  ;;  %v8256_v1 = vshll.u32 %v23903_v48, 16  ;;  %v17340_v26 = vcombine.low %v23014_v30, %v23015_v28  ;;  %v23018_v62 = vld [vmem:[%s23348_s16 + $0x5c] sm:$0x1]  ;;  %v18516_v52 = vld [vmem:[%s23348_s16 + $0x70] sm:$0xe] }
  0xb1   : > { %v17341_v51 = vcombine.low %v23016_v25, %v23017_v12  ;;  %21154 = vmatmul.mubr.msk.bf16.gmra.mrb[24].mxu0 %vm979_vm0, %v18490_v10  ;;  %v8252_v49 = vrot.slane %v8250_v0, 5  ;;  %v18545_v34 = vrot.slane %v18513_v42, 9  ;;  %v8680_v35 = vrot.slane %v23018_v62, 5  ;;  %v18517_v17 = vld [vmem:[%s23348_s16 + $0x78] sm:$0xe]  ;;  %v22990_v63 = vld [vmem:[%s28371_s4] sm:$0xff]  }
  0xb2   : > { %v8240_v40 = vrot.slane %v8239_v9, 4  ;;  %v8231_v18 = vsel %vm23392_vm3, %v8226_v54, %v8230_v32  ;;  %v8258_v22 = vrot.slane %v8256_v1, 5  ;;  %20661 = vmatprep.mubr.msk.bf16.mxu1 %vm979_vm0, %v17340_v26  ;;  %v18546_v8 = vrot.slane %v18514_v13, 9  ;;  %v23019_v9 = vld [vmem:[%s23348_s16 + $0x64] sm:$0x1] }
  0xb3   : > { %v18491_v19 = vcombine.low %v8217_v20, %v8231_v18  ;;  %v8253_v32 = vor.u32 %v8252_v49, %v8249_v7  ;;  %v8681_v10 = vsel %vm23924_vm6, %v18545_v34, %v8680_v35  ;;  %v8684_v0 = vrot.slane %v23019_v9, 5  ;;  %v23020_v20 = vld [vmem:[%s23348_s16 + $0x6c] sm:$0x1]  ;;  %v23021_v1 = vld [vmem:[%s23348_s16 + $0x74] sm:$0x1] }
  0xb4   : > { %v8245_v57 = vsel %vm23392_vm3, %v8240_v40, %v23908_v60  ;;  %v18547_v42 = vrot.slane %v18515_v2, 9  ;;  %v8688_v54 = vrot.slane %v23020_v20, 5  ;;  %v18548_v7 = vrot.slane %v18516_v52, 9  ;;  %v23022_v28 = vld [vmem:[%s23348_s16 + $0xa0] sm:$0xf] }
  0xb5   : > { %21157 = vmatprep.mubr.msk.bf16.mxu0 %vm979_vm0, %v18491_v19  ;;  %v8254_v60 = vrot.slane %v8253_v32, 4  ;;  %v8692_v30 = vrot.slane %v23021_v1, 5  ;;  %v23023_v26 = vld [vmem:[%s23348_s16 + $0xa8] sm:$0xf]  ;;  %v18518_v12 = vld [vmem:[%s23348_s16 + $0x80] sm:$0xe]  ;;  %v8685_v40 = vsel %vm23924_vm6, %v18546_v8, %v8684_v0 }
  0xb6   : > { %20662 = vmatmul.mubr.msk.bf16.gmra.mrb[12].mxu1 %vm979_vm0, %v17341_v51  ;;  %v17342_v25 = vcombine.low %v23022_v28, %v23023_v26  ;;  %v23945_v51 = vld [vmem:[%s23348_s16 + $0xc] sm:$0x1]  ;;  %v18549_v49 = vrot.slane %v18517_v17, 9  ;;  %v18519_v2 = vld [vmem:[%s23348_s16 + $0x88] sm:$0xe]  ;;  %v18585_v62 = vcombine.low %v8681_v10, %v8685_v40  ;;  %v23956_v35 = vsel %vm23924_vm6, %v18547_v42, %v8688_v54 }
  0xb7   : > { %v1607_v13 = vrot.slane %v23945_v51, 5  ;;  %v18520_v18 = vld [vmem:[%s23348_s16 + $0x90] sm:$0xe]  ;;  %v8259_v34 = vsel %vm23392_vm3, %v8254_v60, %v8258_v22  ;;  %v23025_v52 = vld [vmem:[%s23348_s16 + $0x7c] sm:$0x1]  ;;  %v18550_v20 = vrot.slane %v18518_v12, 9  ;;  %v8693_v42 = vsel %vm23924_vm6, %v18548_v7, %v8692_v30 }
  0xb8   : > { %20665 = vmatprep.mubr.msk.bf16.mxu1 %vm979_vm0, %v17342_v25  ;;  %v8696_v19 = vrot.slane %v23025_v52, 5  ;;  %v18521_v32 = vld [vmem:[%s23348_s16 + $0xa8] sm:$0xe]  ;;  %v18492_v8 = vcombine.low %v8245_v57, %v8259_v34  ;;  %v23026_v17 = vld [vmem:[%s23348_s16 + $0xb0] sm:$0xf]  ;;  %v18551_v54 = vrot.slane %v18519_v2, 9 }
  0xb9   : > { %v23027_v9 = vld [vmem:[%s23348_s16 + $0xb8] sm:$0xf]  ;;  %v23028_v22 = vld [vmem:[%s23348_s16 + $0x84] sm:$0x1]  ;;  %v18522_v60 = vld [vmem:[%s23348_s16 + $0xb0] sm:$0xe] }
  0xba   : > { %v17343_v0 = vcombine.low %v23026_v17, %v23027_v9  ;;  %v8700_v10 = vrot.slane %v23028_v22, 5  ;;  %v23029_v1 = vld [vmem:[%s23348_s16 + $0x8c] sm:$0x1]  ;;  %v18552_v57 = vrot.slane %v18520_v18, 9  ;;  %21158 = vmatmul.mubr.msk.bf16.gmra.mrb[28].mxu0 %vm979_vm0, %v18492_v8  ;;  %v8697_v26 = vsel %vm23924_vm6, %v18549_v49, %v8696_v19  ;;  %v23030_v12 = vld [vmem:[%s23348_s16 + $0x94] sm:$0x1] }
  0xbb   : > { %v8704_v28 = vrot.slane %v23029_v1, 5  ;;  %v8708_v40 = vrot.slane %v23030_v12, 5  ;;  %v23031_v7 = vld [vmem:[%s23348_s16 + $0xc0] sm:$0xf]  ;;  %v23032_v30 = vld [vmem:[%s23348_s16 + $0xc8] sm:$0xf]  ;;  %21169 = vmatprep.mubr.msk.bf16.mxu0 %vm979_vm0, %v18585_v62 }
  0xbc   : > { %v8701_v25 = vsel %vm23924_vm6, %v18550_v20, %v8700_v10  ;;  %v17344_v2 = vcombine.low %v23031_v7, %v23032_v30  ;;  %v18553_v34 = vrot.slane %v18521_v32, 9  ;;  %v8712_v18 = vrot.slane %v23623_v24, 5  ;;  %v18523_v52 = vld [vmem:[%s23348_s16 + $0xb8] sm:$0xe]  ;;  %v18524_v8 = vld [vmem:[%s23348_s16 + $0xc0] sm:$0xe] }
  0xbd   : > { %v23981_v17 = vld [vmem:[%s23348_s16 + $0x14] sm:$0x1]  ;;  %v23985_v19 = vld [vmem:[%s23348_s16 + $0x1c] sm:$0x1]  ;;  %v18554_v20 = vrot.slane %v18522_v60, 9  ;;  %v8716_v62 = vrot.slane %v23629_v31, 5  ;;  %v18586_v24 = vcombine.low %v23956_v35, %v8693_v42  ;;  %v18587_v22 = vcombine.low %v8697_v26, %v8701_v25 }
  0xbe   : > { %v1611_v49 = vrot.slane %v23981_v17, 5  ;;  %v1615_v9 = vrot.slane %v23985_v19, 5  ;;  %20666 = vmatmul.mubr.msk.bf16.gmra.mrb[16].mxu1 %vm979_vm0, %v17343_v0  ;;  %v18525_v32 = vld [vmem:[%s23348_s16 + $0xc8] sm:$0xe]  ;;  %v23994_v10 = vsel %vm23924_vm6, %v18551_v54, %v8704_v28  ;;  %v23998_v1 = vsel %vm23924_vm6, %v18552_v57, %v8708_v40  ;;  %v18526_v0 = vld [vmem:[%s23348_s16 + $0xd0] sm:$0xe] }
  0xbf   : > { %20669 = vmatprep.mubr.msk.bf16.mxu1 %vm979_vm0, %v17344_v2  ;;  %v24004_v31 = vsel %vm23924_vm6, %v18553_v34, %v8712_v18  ;;  %v18555_v35 = vrot.slane %v18523_v52, 9  ;;  %v8720_v60 = vrot.slane %v23634_v41, 5  ;;  %v18556_v42 = vrot.slane %v18524_v8, 9  ;;  %v18529_v54 = vld [vmem:[%s23348_s16 + $0xf8] sm:$0xe]  ;;  %v22779_v26 = vld [vmem:[%s28369_s2 + $0x1e8] sm:$0xff]  }
  0xc0   : > { %v24010_v28 = vsel %vm23924_vm6, %v18554_v20, %v8716_v62  ;;  %v8724_v57 = vrot.slane %v23644_v4, 5  ;;  %v18557_v25 = vrot.slane %v18525_v32, 9  ;;  %v8728_v12 = vrot.slane %v23684_v37, 5  ;;  %v18530_v40 = vld [vmem:[%s23348_s16 + $0x100] sm:$0xe] }
  0xc1   : > { %v23035_v7 = vld [vmem:[%s23348_s16 + $0xd0] sm:$0xf]  ;;  %v23036_v41 = vld [vmem:[%s23348_s16 + $0xd8] sm:$0xf]  ;;  %v18558_v2 = vrot.slane %v18526_v0, 9  ;;  %v8732_v34 = vrot.slane %v23693_v6, 5  ;;  %v18588_v4 = vcombine.low %v23994_v10, %v23998_v1  ;;  %v17346_v8 = vcombine.low %v23649_v5, %v23652_v21 }
  0xc2   : > { %v17345_v30 = vcombine.low %v23035_v7, %v23036_v41  ;;  %v18531_v18 = vld [vmem:[%s23348_s16 + $0x108] sm:$0xe]  ;;  %v18532_v52 = vld [vmem:[%s23348_s16 + $0x110] sm:$0xe]  ;;  %v1502_v20 = vld [vmem:[%s23348_s16] sm:$0xe]  ;;  %21170 = vmatmul.mubr.msk.bf16.vlgmr.msra.gmra.mrb[0].mxu0 %vm979_vm0, %v18586_v24  ;;  %v18589_v37 = vcombine.low %v24004_v31, %v24010_v28  ;;  %v24033_v62 = vsel %vm23924_vm6, %v18555_v35, %v8720_v60  ;;  %v17347_v6 = vcombine.low %v23666_v46, %v23669_v61 }
  0xc3   : > { %v17349_v32 = vcombine.low %v23730_v33, %v23733_v36  ;;  %v1503_v10 = vld [vmem:[%s23348_s16 + $0x8] sm:$0xe]  ;;  %v1504_v1 = vld [vmem:[%s23348_s16 + $0x10] sm:$0xe]  ;;  %v23037_v5 = vld [vmem:[%s28369_s2 + $0x1e0] sm:$0xff]   ;;  %21173 = vmatprep.mubr.msk.bf16.mxu0 %vm979_vm0, %v18587_v22  ;;  %v24047_v21 = vsel %vm23924_vm6, %v18556_v42, %v8724_v57  ;;  %v24051_v24 = vsel %vm23924_vm6, %v18557_v25, %v8728_v12  ;;  %v18561_v0 = vrot.slane %v18529_v54, 9 }
  0xc4   : > { %21202 = vmatpush3.bf16.msra.mxu0 %v23037_v5  ;;  %v8744_v31 = vrot.slane %v23750_v3, 5  ;;  %v1505_v35 = vld [vmem:[%s23348_s16 + $0x18] sm:$0xe]  ;;  %v24058_v22 = vsel %vm23924_vm6, %v18558_v2, %v8732_v34  ;;  %v18562_v60 = vrot.slane %v18530_v40, 9  ;;  %v8748_v42 = vrot.slane %v23757_v29, 5  ;;  %v22788_v54 = vld [vmem:[%s28369_s2 + $0x1f0] sm:$0xff]  }
  0xc5   : > { %21203 = vmatprep.subr.bf16.mxu0 %v22779_v26  ;;  %v18563_v28 = vrot.slane %v18531_v18, 9  ;;  %v17348_v3 = vcombine.low %v23711_v39, %v23716_v53  ;;  %v8752_v25 = vrot.slane %v23761_v27, 5  ;;  %v18564_v12 = vrot.slane %v18532_v52, 9  ;;  %v18533_v29 = vld [vmem:[%s23348_s16 + $0x118] sm:$0xe]  ;;  %v24156_v46 = vld [vmem:[%s28369_s2 + $0x200] sm:$0xff]  }
  0xc6   : > { %20670 = vmatmul.mubr.msk.bf16.gmra.mrb[20].mxu1 %vm979_vm0, %v17345_v30  ;;  %v24069_v57 = vsel %vm23924_vm6, %v18561_v0, %v8744_v31  ;;  %v24075_v40 = vsel %vm23924_vm6, %v18562_v60, %v8748_v42  ;;  %v8756_v7 = vrot.slane %v23772_v47, 5  ;;  %v17370_v41 = vrot.slane %v1502_v20, 9  ;;  %v18534_v39 = vld [vmem:[%s23348_s16 + $0x120] sm:$0xe]  ;;  %v24080_v53 = vld [vmem:[%s23348_s16 + $0xd8] sm:$0xe] }
  0xc7   : > { %20673 = vmatprep.mubr.msk.bf16.mxu1 %vm979_vm0, %v17346_v8  ;;  %v17371_v30 = vrot.slane %v1503_v10, 9  ;;  %v18593_v2 = vcombine.low %v24069_v57, %v24075_v40  ;;  %v24086_v27 = vsel %vm23924_vm6, %v18563_v28, %v8752_v25  ;;  %v17372_v34 = vrot.slane %v1504_v1, 9  ;;  %v18535_v52 = vld [vmem:[%s23348_s16 + $0x128] sm:$0xe]  ;;  %v18536_v8 = vld [vmem:[%s23348_s16 + $0x130] sm:$0xe] }
  0xc8   : > { %21204 = vmatpush3.bf16.msra.mxu0 %v22779_v26  ;;  %v17373_v18 = vrot.slane %v1505_v35, 9  ;;  %v24092_v47 = vsel %vm23924_vm6, %v18564_v12, %v8756_v7  ;;  %v28398_v26 = vrot.slane %v23362_v11, 5  ;;  %v18565_v1 = vrot.slane %v18533_v29, 9  ;;  %v22789_v5 = vld [vmem:[%s28369_s2 + $0x1f8] sm:$0xff]   ;;  %v18528_v0 = vld [vmem:[%s23348_s16 + $0xe0] sm:$0xe] }
  0xc9   : > { %21205 = vmatprep.subr.bf16.mxu0 %v22788_v54  ;;  %v24104_v10 = vsel %vm23924_vm6, %v17371_v30, %v1607_v13  ;;  %v18594_v31 = vcombine.low %v24086_v27, %v24092_v47  ;;  %v24118_v51 = vsel %vm23924_vm6, %v17372_v34, %v1611_v49  ;;  %v8760_v60 = vrot.slane %v23778_v45, 5  ;;  %v1506_v49 = vld [vmem:[%s23348_s16 + $0x20] sm:$0xe]  ;;  %v1507_v25 = vld [vmem:[%s23348_s16 + $0x28] sm:$0xe] }
  0xca   : > { %v24098_v20 = vsel %vm23924_vm6, %v17370_v41, %v28398_v26  ;;  %v24124_v13 = vsel %vm23924_vm6, %v17373_v18, %v1615_v9  ;;  %21174 = vmatmul.mubr.msk.bf16.gmra.mrb[4].mxu0 %vm979_vm0, %v18588_v4  ;;  %v18566_v42 = vrot.slane %v18534_v39, 9  ;;  %v8764_v17 = vrot.slane %v23787_v59, 5  ;;  %v18539_v12 = vld [vmem:[%s23348_s16 + $0x158] sm:$0xe]  ;;  %v18540_v30 = vld [vmem:[%s23348_s16 + $0x160] sm:$0xe] }
  0xcb   : > { %v17410_v11 = vcombine.low %v24098_v20, %v24104_v10  ;;  %v17411_v35 = vcombine.low %v24118_v51, %v24124_v13  ;;  %21177 = vmatprep.mubr.msk.bf16.mxu0 %vm979_vm0, %v18589_v37  ;;  %v18567_v19 = vrot.slane %v18535_v52, 9  ;;  %v8768_v9 = vrot.slane %v23797_v43, 5  ;;  %v23040_v36 = vld [vmem:[%s23348_s16 + $0x34] sm:$0x1] }
  0xcc   : > { %21206 = vmatpush3.bf16.msra.mxu0 %v22788_v54  ;;  %v18568_v28 = vrot.slane %v18536_v8, 9  ;;  %v8772_v4 = vrot.slane %v23810_v55, 5  ;;  %v18590_v45 = vcombine.low %v24033_v62, %v24047_v21  ;;  %v18559_v59 = vrot.slane %v24080_v53, 9  ;;  %v18537_v55 = vld [vmem:[%s23348_s16 + $0x148] sm:$0xe]  ;;  %v22802_v13 = vld [vmem:[%s28369_s2 + $0x70] sm:$0xff]  }
  0xcd   : > { %v24145_v37 = vsel %vm23924_vm6, %v18565_v1, %v8760_v60  ;;  %v24149_v43 = vsel %vm23924_vm6, %v18566_v42, %v8764_v17  ;;  %v18538_v54 = vld [vmem:[%s23348_s16 + $0x150] sm:$0xe]  ;;  %21207 = vmatprep.subr.bf16.mxu0 %v22789_v5  ;;  %v8736_v61 = vrot.slane %v23701_v16, 5  ;;  %v18591_v29 = vcombine.low %v24051_v24, %v24058_v22  ;;  %v28399_v16 = vld [vmem:[#allocation2_spill] sm:$0xff]  ;;  %v23039_v8 = vld [vmem:[%s23348_s16 + $0x2c] sm:$0x1] }
  0xce   : > { %20674 = vmatmul.mubr.msk.bf16.gmra.mrb[24].mxu1 %vm979_vm0, %v17347_v6  ;;  %v18595_v62 = vcombine.low %v24145_v37, %v24149_v43  ;;  %v24164_v6 = vsel %vm23924_vm6, %v18567_v19, %v8768_v9  ;;  %v24168_v21 = vsel %vm23924_vm6, %v18568_v28, %v8772_v4  ;;  %v18560_v7 = vrot.slane %v18528_v0, 9  ;;  %v23038_v53 = vld [vmem:[%s23348_s16 + $0x24] sm:$0x1]  ;;  %v28400_v1 = vld [vmem:[#allocation3_spill] sm:$0xff]  ;;  %v1508_v17 = vld [vmem:[%s23348_s16 + $0x30] sm:$0xe] }
  0xcf   : > { %20677 = vmatprep.mubr.msk.bf16.mxu1 %vm979_vm0, %v17348_v3  ;;  %v8740_v41 = vrot.slane %v28399_v16, 5  ;;  %v18596_v3 = vcombine.low %v24164_v6, %v24168_v21  ;;  %v17374_v39 = vrot.slane %v1506_v49, 9  ;;  %v1619_v34 = vrot.slane %v23038_v53, 5  ;;  %v1509_v9 = vld [vmem:[%s23348_s16 + $0x38] sm:$0xe] }
  0xd0   : > { %v17375_v18 = vrot.slane %v1507_v25, 9  ;;  %v18569_v52 = vrot.slane %v18537_v55, 9  ;;  %21208 = vmatpush3.bf16.msra.mxu0 %v22789_v5  ;;  %v1623_v26 = vrot.slane %v23039_v8, 5  ;;  %v8776_v60 = vrot.slane %v28400_v1, 5  ;;  %v1510_v55 = vld [vmem:[%s23348_s16 + $0x50] sm:$0xe] }
  0xd1   : > { %v18570_v24 = vrot.slane %v18538_v54, 9  ;;  %v8780_v22 = vrot.slane %v23827_v15, 5  ;;  %21241 = vmatprep.subr.bf16.mxu0 %v24156_v46  ;;  %v18571_v0 = vrot.slane %v18539_v12, 9  ;;  %v8737_v42 = vsel %vm23924_vm6, %v18559_v59, %v8736_v61  ;;  %v18541_v54 = vld [vmem:[%s23348_s16 + $0x168] sm:$0xe] }
  0xd2   : > { %21178 = vmatmul.mubr.msk.bf16.gmra.mrb[8].mxu0 %vm979_vm0, %v18590_v45  ;;  %v24188_v5 = vsel %vm23924_vm6, %v18569_v52, %v8776_v60  ;;  %v8784_v15 = vrot.slane %v23839_v23, 5  ;;  %v8741_v19 = vsel %vm23924_vm6, %v18560_v7, %v8740_v41  ;;  %v18572_v4 = vrot.slane %v18540_v30, 9  ;;  %v18542_v61 = vld [vmem:[%s23348_s16 + $0x170] sm:$0xe]  ;;  %v1511_v12 = vld [vmem:[%s23348_s16 + $0x58] sm:$0xe] }
  0xd3   : > { %v24192_v49 = vsel %vm23924_vm6, %v18570_v24, %v8780_v22  ;;  %21181 = vmatprep.mubr.msk.bf16.mxu0 %vm979_vm0, %v18591_v29  ;;  %v8788_v25 = vrot.slane %v23851_v14, 5  ;;  %v1620_v23 = vsel %vm23924_vm6, %v17374_v39, %v1619_v34  ;;  %v1624_v45 = vsel %vm23924_vm6, %v17375_v18, %v1623_v26  ;;  %v18543_v29 = vld [vmem:[%s23348_s16 + $0x178] sm:$0xe]  ;;  %v18544_v7 = vld [vmem:[%s23348_s16 + $0x180] sm:$0xe] }
  0xd4   : > { %v18597_v28 = vcombine.low %v24188_v5, %v24192_v49  ;;  %v24212_v59 = vsel %vm23924_vm6, %v18571_v0, %v8784_v15  ;;  %v17376_v33 = vrot.slane %v1508_v17, 9  ;;  %v1627_v14 = vrot.slane %v23040_v36, 5  ;;  %v23041_v30 = vld [vmem:[%s23348_s16 + $0x3c] sm:$0x1]  ;;  %v23042_v26 = vld [vmem:[%s23348_s16 + $0x54] sm:$0x1] }
  0xd5   : > { %v18592_v16 = vcombine.low %v8737_v42, %v8741_v19  ;;  %v17377_v41 = vrot.slane %v1509_v9, 9  ;;  %v1631_v39 = vrot.slane %v23041_v30, 5  ;;  %v17412_v10 = vcombine.low %v1620_v23, %v1624_v45  ;;  %v23043_v42 = vld [vmem:[%s23348_s16 + $0x5c] sm:$0x1]  ;;  %v22799_v15 = vld [vmem:[%s28369_s2 + $0x68] sm:$0xff]  }
  0xd6   : > { %20678 = vmatmul.mubr.msk.bf16.gmra.mrb[28].mxu1 %vm979_vm0, %v17349_v32  ;;  %v24224_v32 = vsel %vm23924_vm6, %v18572_v4, %v8788_v25  ;;  %v8792_v53 = vrot.slane %v23860_v44, 5  ;;  %v17378_v34 = vrot.slane %v1510_v55, 9  ;;  %v18574_v18 = vrot.slane %v18542_v61, 9  ;;  %v1513_v4 = vld [vmem:[%s23348_s16 + $0x68] sm:$0xe] }
  0xd7   : > { %20689 = vmatprep.mubr.msk.bf16.mxu1 %vm979_vm0, %v17410_v11  ;;  %v18598_v20 = vcombine.low %v24212_v59, %v24224_v32  ;;  %v18573_v11 = vrot.slane %v18541_v54, 9  ;;  %v8796_v52 = vrot.slane %v23877_v58, 5  ;;  %v18575_v8 = vrot.slane %v18543_v29, 9  ;;  %v1514_v25 = vld [vmem:[%s23348_s16 + $0x70] sm:$0xe] }
  0xd8   : > { %v1635_v1 = vrot.slane %v23042_v26, 5  ;;  %v8800_v24 = vrot.slane %v23888_v56, 5  ;;  %v18576_v22 = vrot.slane %v18544_v7, 9  ;;  %v17379_v0 = vrot.slane %v1511_v12, 9  ;;  %v1515_v23 = vld [vmem:[%s23348_s16 + $0x78] sm:$0xe] }
  0xd9   : > { %v24237_v60 = vsel %vm23924_vm6, %v18573_v11, %v8792_v53  ;;  %v1639_v44 = vrot.slane %v23043_v42, 5  ;;  %v24244_v17 = vsel %vm23924_vm6, %v18574_v18, %v8796_v52  ;;  %v8804_v58 = vrot.slane %v23903_v48, 5  ;;  %v23045_v36 = vld [vmem:[%s23348_s16 + $0x6c] sm:$0x1]  ;;  %v22803_v12 = vld [vmem:[%s28369_s2 + $0x78] sm:$0xff]   ;;  %v24318_v11 = vld [vmem:[%s28369_s2 + $0x80] sm:$0xff]  }
  0xda   : > { %21182 = vmatmul.mubr.msk.bf16.gmra.mrb[12].mxu0 %vm979_vm0, %v18592_v16  ;;  %v18599_v56 = vcombine.low %v24237_v60, %v24244_v17  ;;  %v24258_v19 = vsel %vm23924_vm6, %v18575_v8, %v8800_v24  ;;  %v1628_v57 = vsel %vm23924_vm6, %v17376_v33, %v1627_v14  ;;  %v1632_v40 = vsel %vm23924_vm6, %v17377_v41, %v1631_v39  ;;  %v23046_v7 = vld [vmem:[%s23348_s16 + $0x74] sm:$0x1]  ;;  %v23047_v30 = vld [vmem:[%s23348_s16 + $0x7c] sm:$0x1]  ;;  %v1519_v53 = vld [vmem:[%s23348_s16 + $0xa8] sm:$0xe] }
  0xdb   : > { %21185 = vmatprep.mubr.msk.bf16.mxu0 %vm979_vm0, %v18593_v2  ;;  %v24266_v48 = vsel %vm23924_vm6, %v18576_v22, %v8804_v58  ;;  %v1512_v2 = vld [vmem:[%s23348_s16 + $0x60] sm:$0xe]  ;;  %v1640_v9 = vsel %vm23924_vm6, %v17379_v0, %v1639_v44  ;;  %v17413_v45 = vcombine.low %v1628_v57, %v1632_v40  ;;  %v17381_v33 = vrot.slane %v1513_v4, 9  ;;  %v23048_v52 = vld [vmem:[%s23348_s16 + $0x84] sm:$0x1] }
  0xdc   : > { %v18600_v51 = vcombine.low %v24258_v19, %v24266_v48  ;;  %v17380_v55 = vrot.slane %v1512_v2, 9  ;;  %v1647_v14 = vrot.slane %v23045_v36, 5  ;;  %v17382_v29 = vrot.slane %v1514_v25, 9  ;;  %v1520_v26 = vld [vmem:[%s23348_s16 + $0xb0] sm:$0xe] }
  0xdd   : > { %v1651_v16 = vrot.slane %v23046_v7, 5  ;;  %v17383_v41 = vrot.slane %v1515_v23, 9  ;;  %v1655_v39 = vrot.slane %v23047_v30, 5  ;;  %v1659_v8 = vrot.slane %v23048_v52, 5  ;;  %v23049_v0 = vld [vmem:[%s23348_s16 + $0x8c] sm:$0x1] }
  0xde   : > { %20690 = vmatmul.mubr.msk.bf16.vlgmr.msra.gmra.mrb[0].mxu1 %vm979_vm0, %v17411_v35  ;;  %v1636_v35 = vsel %vm23924_vm6, %v17378_v34, %v1635_v1  ;;  %v1648_v47 = vsel %vm23924_vm6, %v17381_v33, %v1647_v14  ;;  %v1521_v1 = vld [vmem:[%s23348_s16 + $0xb8] sm:$0xe]  ;;  %v1663_v42 = vrot.slane %v23049_v0, 5  ;;  %v23050_v58 = vld [vmem:[%s23348_s16 + $0xa4] sm:$0x1]  ;;  %v17387_v57 = vrot.slane %v1519_v53, 9 }
  0xdf   : > { %20693 = vmatprep.mubr.msk.bf16.mxu1 %vm979_vm0, %v17412_v10  ;;  %20722 = vmatpush3.bf16.msra.mxu1 %v23883_v50  ;;  %v17414_v54 = vcombine.low %v1636_v35, %v1640_v9  ;;  %v23044_v50 = vld [vmem:[%s23348_s16 + $0x64] sm:$0x1]  ;;  %v1652_v37 = vsel %vm23924_vm6, %v17382_v29, %v1651_v16  ;;  %v1656_v43 = vsel %vm23924_vm6, %v17383_v41, %v1655_v39  ;;  %v1518_v10 = vld [vmem:[%s23348_s16 + $0xa0] sm:$0xe]  ;;  %v23051_v40 = vld [vmem:[%s23348_s16 + $0xac] sm:$0x1] }
  0xe0   : > { %20723 = vmatprep.subr.bf16.mxu1 %v22799_v15  ;;  %v1643_v61 = vrot.slane %v23044_v50, 5  ;;  %v17416_v24 = vcombine.low %v1652_v37, %v1656_v43  ;;  %v17386_v44 = vrot.slane %v1518_v10, 9  ;;  %v1671_v2 = vrot.slane %v23051_v40, 5  ;;  %v1523_v6 = vld [vmem:[%s23348_s16 + $0xc8] sm:$0xe] }
  0xe1   : > { %v17388_v21 = vrot.slane %v1520_v26, 9  ;;  %v1524_v9 = vld [vmem:[%s23348_s16 + $0xd0] sm:$0xe]  ;;  %v17389_v49 = vrot.slane %v1521_v1, 9  ;;  %v1525_v23 = vld [vmem:[%s23348_s16 + $0xd8] sm:$0xe] }
  0xe2   : > { %21186 = vmatmul.mubr.msk.bf16.gmra.mrb[16].mxu0 %vm979_vm0, %v18594_v31  ;;  %v1644_v27 = vsel %vm23924_vm6, %v17380_v55, %v1643_v61  ;;  %v1516_v31 = vld [vmem:[%s23348_s16 + $0x80] sm:$0xe]  ;;  %v1672_v55 = vsel %vm23924_vm6, %v17387_v57, %v1671_v2  ;;  %v23054_v50 = vld [vmem:[%s23348_s16 + $0xc4] sm:$0x1]  ;;  %v1526_v33 = vld [vmem:[%s23348_s16 + $0xf0] sm:$0xe] }
  0xe3   : > { %20724 = vmatpush3.bf16.msra.mxu1 %v22799_v15  ;;  %21189 = vmatprep.mubr.msk.bf16.mxu0 %vm979_vm0, %v18595_v62  ;;  %v1517_v62 = vld [vmem:[%s23348_s16 + $0x88] sm:$0xe]  ;;  %v17415_v34 = vcombine.low %v1644_v27, %v1648_v47  ;;  %v17384_v18 = vrot.slane %v1516_v31, 9  ;;  %v1667_v15 = vrot.slane %v23050_v58, 5  ;;  %v1683_v61 = vrot.slane %v23054_v50, 5 }
  0xe4   : > { %20725 = vmatprep.subr.bf16.mxu1 %v22802_v13  ;;  %v17385_v22 = vrot.slane %v1517_v62, 9  ;;  %v17391_v36 = vrot.slane %v1523_v6, 9  ;;  %v23055_v14 = vld [vmem:[%s23348_s16 + $0xcc] sm:$0x1]  ;;  %v1527_v29 = vld [vmem:[%s23348_s16 + $0xf8] sm:$0xe] }
  0xe5   : > { %v1660_v4 = vsel %vm23924_vm6, %v17384_v18, %v1659_v8  ;;  %v1528_v16 = vld [vmem:[%s23348_s16 + $0x100] sm:$0xe]  ;;  %v17392_v30 = vrot.slane %v1524_v9, 9  ;;  %v23056_v39 = vld [vmem:[%s23348_s16 + $0xd4] sm:$0x1]  ;;  %v17393_v31 = vrot.slane %v1525_v23, 9 }
  0xe6   : > { %20694 = vmatmul.mubr.msk.bf16.gmra.mrb[4].mxu1 %vm979_vm0, %v17413_v45  ;;  %v1664_v5 = vsel %vm23924_vm6, %v17385_v22, %v1663_v42  ;;  %v1668_v45 = vsel %vm23924_vm6, %v17386_v44, %v1667_v15  ;;  %v1691_v27 = vrot.slane %v23056_v39, 5  ;;  %v1529_v47 = vld [vmem:[%s23348_s16 + $0x108] sm:$0xe]  ;;  %v23057_v37 = vld [vmem:[%s23348_s16 + $0xdc] sm:$0x1]  ;;  %v17394_v59 = vrot.slane %v1526_v33, 9 }
  0xe7   : > { %20697 = vmatprep.mubr.msk.bf16.mxu1 %vm979_vm0, %v17414_v54  ;;  %20726 = vmatpush3.bf16.msra.mxu1 %v22802_v13  ;;  %v1522_v13 = vld [vmem:[%s23348_s16 + $0xc0] sm:$0xe]  ;;  %v17417_v7 = vcombine.low %v1660_v4, %v1664_v5  ;;  %v17418_v41 = vcombine.low %v1668_v45, %v1672_v55  ;;  %v1695_v43 = vrot.slane %v23057_v37, 5  ;;  %v23058_v32 = vld [vmem:[%s23348_s16 + $0xf4] sm:$0x1]  ;;  %v17395_v17 = vrot.slane %v1527_v29, 9 }
  0xe8   : > { %20727 = vmatprep.subr.bf16.mxu1 %v22803_v12  ;;  %v17390_v54 = vrot.slane %v1522_v13, 9  ;;  %v24380_v18 = vld [vmem:[%s23348_s16 + $0x110] sm:$0xe]  ;;  %v22790_v52 = vld [vmem:[%s23348_s16 + $0x60] ss:$8 sps:$4 sm:$0xff]   ;;  %v17396_v8 = vrot.slane %v1528_v16, 9  ;;  %v24389_v15 = vsel %vm23924_vm6, %v17392_v30, %v1691_v27 }
  0xe9   : > { %v23060_v26 = vld [vmem:[%s23348_s16 + $0x104] sm:$0x1]  ;;  %v23061_v22 = vld [vmem:[%s23348_s16 + $0x10c] sm:$0x1]  ;;  %v18700_v42 = vld [vmem:[%s23348_s16 + $0x60] sm:$0xf]  ;;  %v24393_v57 = vsel %vm23924_vm6, %v17393_v31, %v1695_v43 }
  0xea   : > { %21190 = vmatmul.mubr.msk.bf16.gmra.mrb[20].mxu0 %vm979_vm0, %v18596_v3  ;;  %v23052_v3 = vld [vmem:[%s23348_s16 + $0xb4] sm:$0x1]  ;;  %v1684_v53 = vsel %vm23924_vm6, %v17390_v54, %v1683_v61  ;;  %v1707_v1 = vrot.slane %v23060_v26, 5  ;;  %v1711_v0 = vrot.slane %v23061_v22, 5  ;;  %v1531_v40 = vld [vmem:[%s23348_s16 + $0x118] sm:$0xe] }
  0xeb   : > { %20728 = vmatpush3.bf16.msra.mxu1 %v22803_v12  ;;  %21193 = vmatprep.mubr.msk.bf16.mxu0 %vm979_vm0, %v18597_v28  ;;  %v1675_v35 = vrot.slane %v23052_v3, 5  ;;  %v23053_v28 = vld [vmem:[%s23348_s16 + $0xbc] sm:$0x1]  ;;  %v1687_v12 = vrot.slane %v23055_v14, 5  ;;  %v1532_v2 = vld [vmem:[%s23348_s16 + $0x120] sm:$0xe] }
  0xec   : > { %20761 = vmatprep.subr.bf16.mxu1 %v24318_v11  ;;  %v1679_v25 = vrot.slane %v23053_v28, 5  ;;  %v18702_v13 = vld [vmem:[%s23348_s16 + $0x68] sm:$0xf]  ;;  %v9582_v3 = vshrl.u32 %v18700_v42, 16  ;;  %v18704_v4 = vld [vmem:[%s23348_s16 + $0x70] sm:$0xf]  ;;  %v24417_v55 = vsel %vm23924_vm6, %v17396_v8, %v1707_v1 }
  0xed   : > { %v1676_v62 = vsel %vm23924_vm6, %v17388_v21, %v1675_v35  ;;  %v1688_v60 = vsel %vm23924_vm6, %v17391_v36, %v1687_v12  ;;  %v1533_v21 = vld [vmem:[%s23348_s16 + $0x128] sm:$0xe]  ;;  %v9585_v35 = vshll.u32 %v18700_v42, 16  ;;  %v9596_v9 = vshrl.u32 %v18702_v13, 16  ;;  %v23062_v28 = vld [vmem:[%s23348_s16 + $0x114] sm:$0x1] }
  0xee   : > { %20698 = vmatmul.mubr.msk.bf16.gmra.mrb[8].mxu1 %vm979_vm0, %v17415_v34  ;;  %v1680_v10 = vsel %vm23924_vm6, %v17389_v49, %v1679_v25  ;;  %v17420_v58 = vcombine.low %v1684_v53, %v1688_v60  ;;  %v17398_v49 = vrot.slane %v24380_v18, 9  ;;  %v1715_v25 = vrot.slane %v23062_v28, 5  ;;  %v18706_v45 = vld [vmem:[%s23348_s16 + $0x78] sm:$0xf]  ;;  %v23063_v61 = vld [vmem:[%s23348_s16 + $0x11c] sm:$0x1] }
  0xef   : > { %20701 = vmatprep.mubr.msk.bf16.mxu1 %vm979_vm0, %v17416_v24  ;;  %v17397_v24 = vrot.slane %v1529_v47, 9  ;;  %v17419_v44 = vcombine.low %v1676_v62, %v1680_v10  ;;  %v9599_v23 = vshll.u32 %v18702_v13, 16  ;;  %v17399_v50 = vrot.slane %v1531_v40, 9  ;;  %v24425_v36 = vld [vmem:[%s23348_s16 + $0x64] sm:$0x1]  ;;  %v22797_v60 = vld [vmem:[%s28369_s2 + $0x208] sm:$0xff]  }
  0xf0   : > { %v1719_v33 = vrot.slane %v23063_v61, 5  ;;  %v24428_v14 = vld [vmem:[%s23348_s16 + $0x6c] sm:$0x1]  ;;  %v17400_v19 = vrot.slane %v1532_v2, 9  ;;  %v9584_v48 = vrot.slane %v9582_v3, 4  ;;  %v9610_v12 = vshrl.u32 %v18704_v4, 16 }
  0xf1   : > { %v24421_v54 = vsel %vm23924_vm6, %v17397_v24, %v1711_v0  ;;  %v22791_v29 = vld [vmem:[%s23348_s16 + $0x70] ss:$8 sps:$4 sm:$0xff]   ;;  %v9601_v16 = vrot.slane %v9599_v23, 5  ;;  %v9624_v30 = vshrl.u32 %v18706_v45, 16  ;;  %v22793_v39 = vld [vmem:[%s23348_s16 + $0x80] ss:$8 sps:$4 sm:$0xff]   ;;  %v17421_v10 = vcombine.low %v24389_v15, %v24393_v57 }
  0xf2   : > { %21194 = vmatmul.mubr.msk.bf16.gmra.mrb[24].mxu0 %vm979_vm0, %v18598_v20  ;;  %v1699_v20 = vrot.slane %v23058_v32, 5  ;;  %v23064_v27 = vld [vmem:[%s23348_s16 + $0x124] sm:$0x1]  ;;  %v17401_v31 = vrot.slane %v1533_v21, 9  ;;  %v23065_v37 = vld [vmem:[%s23348_s16 + $0x12c] sm:$0x1] }
  0xf3   : > { %21197 = vmatprep.mubr.msk.bf16.mxu0 %vm979_vm0, %v18599_v56  ;;  %v23059_v56 = vld [vmem:[%s23348_s16 + $0xfc] sm:$0x1]  ;;  %v1723_v47 = vrot.slane %v23064_v27, 5  ;;  %v1727_v43 = vrot.slane %v23065_v37, 5  ;;  %v9627_v62 = vshll.u32 %v18706_v45, 16  ;;  %v9591_v32 = vshll.u32 %v24425_v36, 16 }
  0xf4   : > { %v1703_v34 = vrot.slane %v23059_v56, 5  ;;  %v24400_v6 = vsel %vm23924_vm6, %v17394_v59, %v1699_v20  ;;  %v9605_v20 = vshll.u32 %v24428_v14, 16  ;;  %v24444_v53 = vld [vmem:[%s23348_s16 + $0x74] sm:$0x1]  ;;  %v24453_v56 = vsel %vm23924_vm6, %v17398_v49, %v1715_v25  ;;  %v24460_v18 = vld [vmem:[%s23348_s16 + $0x7c] sm:$0x1] }
  0xf5   : > { %v9626_v24 = vrot.slane %v9624_v30, 4  ;;  %v18708_v22 = vld [vmem:[%s23348_s16 + $0x80] sm:$0xf]  ;;  %v24465_v0 = vsel %vm23924_vm6, %v17400_v19, %v1723_v47  ;;  %v24469_v42 = vsel %vm23924_vm6, %v17401_v31, %v1727_v43  ;;  %v18710_v15 = vld [vmem:[%s23348_s16 + $0x88] sm:$0xf]  ;;  %v22806_v40 = vld [vmem:[%s28369_s2 + $0x210] sm:$0xff]  }
  0xf6   : > { %20702 = vmatmul.mubr.msk.bf16.gmra.mrb[12].mxu1 %vm979_vm0, %v17417_v7  ;;  %v24406_v5 = vsel %vm23924_vm6, %v17395_v17, %v1703_v34  ;;  %v9598_v7 = vrot.slane %v9596_v9, 4  ;;  %v17423_v17 = vcombine.low %v24417_v55, %v24421_v54  ;;  %v24457_v34 = vsel %vm23924_vm6, %v17399_v50, %v1719_v33  ;;  %v18711_v21 = vld [vmem:[%s23348_s16 + $0x8c] sm:$0x1]  ;;  %v18712_v49 = vld [vmem:[%s23348_s16 + $0x90] sm:$0xf]  ;;  %v22815_v37 = vld [vmem:[%s28369_s2 + $0x218] sm:$0xff]  }
  0xf7   : > { %20705 = vmatprep.mubr.msk.bf16.mxu1 %vm979_vm0, %v17418_v41  ;;  %v9613_v41 = vshll.u32 %v18704_v4, 16  ;;  %v17422_v59 = vcombine.low %v24400_v6, %v24406_v5  ;;  %v9638_v57 = vshrl.u32 %v18708_v22, 16  ;;  %v24479_v2 = vrot.slane %v9591_v32, 5  ;;  %v22794_v28 = vld [vmem:[%s23348_s16 + $0x90] ss:$8 sps:$4 sm:$0xff]  }
  0xf8   : > { %v9602_v26 = vor.u32 %v9601_v16, %v9598_v7  ;;  %v24481_v13 = vrot.slane %v9605_v20, 5  ;;  %v9619_v6 = vshll.u32 %v24444_v53, 16  ;;  %v9641_v3 = vshll.u32 %v18708_v22, 16  ;;  %v22795_v50 = vld [vmem:[%s23348_s16 + $0xb0] ss:$8 sps:$4 sm:$0xff]  }
  0xf9   : > { %v9615_v1 = vrot.slane %v9613_v41, 5  ;;  %v9640_v9 = vrot.slane %v9638_v57, 4  ;;  %v9652_v4 = vshrl.u32 %v18710_v15, 16  ;;  %v9655_v5 = vshll.u32 %v18710_v15, 16  ;;  %v18715_v27 = vld [vmem:[%s23348_s16 + $0x9c] sm:$0x1] }
  0xfa   : > { %21198 = vmatmul.mubr.msk.bf16.gmra.mrb[28].mxu0 %vm979_vm0, %v18600_v51  ;;  %v9587_v51 = vrot.slane %v9585_v35, 5  ;;  %v9633_v35 = vshll.u32 %v24460_v18, 16  ;;  %v24493_v23 = vrot.slane %v9602_v26, 4  ;;  %v9643_v45 = vrot.slane %v9641_v3, 5  ;;  %v18716_v57 = vld [vmem:[%s23348_s16 + $0xb0] sm:$0xf] }
  0xfb   : > { %21209 = vmatprep.mubr.msk.bf16.mxu0 %vm979_vm0, %v22790_v52  ;;  %v9612_v52 = vrot.slane %v9610_v12, 4  ;;  %v9654_v19 = vrot.slane %v9652_v4, 4  ;;  %v18714_v12 = vld [vmem:[%s23348_s16 + $0x98] sm:$0xf]  ;;  %v9661_v7 = vshll.u32 %v18711_v21, 16  ;;  %v9666_v16 = vshrl.u32 %v18712_v49, 16 }
  0xfc   : > { %v9588_v8 = vor.u32 %v9587_v51, %v9584_v48  ;;  %v9657_v48 = vrot.slane %v9655_v5, 5  ;;  %v18713_v51 = vld [vmem:[%s23348_s16 + $0x94] sm:$0x1]  ;;  %v9669_v41 = vshll.u32 %v18712_v49, 16  ;;  %v17424_v30 = vcombine.low %v24453_v56, %v24457_v34  ;;  %v24520_v34 = vld [vmem:[%s28369_s2 + $0x220] sm:$0xff]  }
  0xfd   : > { %v9616_v61 = vor.u32 %v9615_v1, %v9612_v52  ;;  %v9680_v47 = vshrl.u32 %v18714_v12, 16  ;;  %v9683_v31 = vshll.u32 %v18714_v12, 16  ;;  %v24508_v43 = vrot.slane %v9619_v6, 5  ;;  %v18718_v6 = vld [vmem:[%s23348_s16 + $0xb8] sm:$0xf] }
  0xfe   : > { %20706 = vmatmul.mubr.msk.bf16.gmra.mrb[16].mxu1 %vm979_vm0, %v17419_v44  ;;  %v9629_v44 = vrot.slane %v9627_v62, 5  ;;  %v24491_v25 = vrot.slane %v9588_v8, 4  ;;  %v24510_v62 = vrot.slane %v9633_v35, 5  ;;  %v9671_v56 = vrot.slane %v9669_v41, 5  ;;  %v22796_v21 = vld [vmem:[%s23348_s16 + $0xc0] ss:$8 sps:$4 sm:$0xff]  }
  0xff   : > { %20709 = vmatprep.mubr.msk.bf16.mxu1 %vm979_vm0, %v17420_v58  ;;  %v24472_v58 = vld [vmem:[%s23348_s16 + $0x84] sm:$0x1]  ;;  %v24512_v32 = vrot.slane %v9616_v61, 4  ;;  %v24526_v26 = vrot.slane %v9661_v7, 5  ;;  %v9689_v1 = vshll.u32 %v18715_v27, 16  ;;  %v9608_v22 = vsel %vm23392_vm3, %v24493_v23, %v24481_v13 }
 0x100   : > { %v9630_v33 = vor.u32 %v9629_v44, %v9626_v24  ;;  %v9594_v24 = vsel %vm23392_vm3, %v24491_v25, %v24479_v2  ;;  %v9682_v44 = vrot.slane %v9680_v47, 4  ;;  %v9685_v15 = vrot.slane %v9683_v31, 5  ;;  %v18717_v35 = vld [vmem:[%s23348_s16 + $0xb4] sm:$0x1]  ;;  %v18719_v55 = vld [vmem:[%s23348_s16 + $0xbc] sm:$0x1] }
 0x101   : > { %v9697_v4 = vshll.u32 %v18716_v57, 16  ;;  %v9622_v5 = vsel %vm23392_vm3, %v24512_v32, %v24508_v43  ;;  %v9708_v54 = vshrl.u32 %v18718_v6, 16  ;;  %v18722_v7 = vld [vmem:[%s23348_s16 + $0xc8] sm:$0xf]  ;;  %v18721_v27 = vld [vmem:[%s23348_s16 + $0xc4] sm:$0x1] }
 0x102   : > { %21210 = vmatmul.mubr.msk.bf16.vlgmr.msra.gmra.mrb[0].mxu0 %vm979_vm0, %v22791_v29  ;;  %v9644_v29 = vor.u32 %v9643_v45, %v9640_v9  ;;  %v24514_v20 = vrot.slane %v9630_v33, 4  ;;  %v9694_v9 = vshrl.u32 %v18716_v57, 16  ;;  %v22800_v45 = vld [vmem:[%s23348_s16 + $0xd0] ss:$8 sps:$4 sm:$0xff]   ;;  %v10449_v33 = vrot.slane %v24425_v36, 5 }
 0x103   : > { %21242 = vmatpush3.bf16.msra.mxu0 %v24156_v46  ;;  %21213 = vmatprep.mubr.msk.bf16.mxu0 %vm979_vm0, %v22793_v39  ;;  %v9647_v46 = vshll.u32 %v24472_v58, 16  ;;  %v17425_v39 = vcombine.low %v24465_v0, %v24469_v42  ;;  %v9699_v61 = vrot.slane %v9697_v4, 5  ;;  %v9710_v12 = vrot.slane %v9708_v54, 4  ;;  %v18723_v43 = vld [vmem:[%s23348_s16 + $0xcc] sm:$0x1] }
 0x104   : > { %21243 = vmatprep.subr.bf16.mxu0 %v22797_v60  ;;  %v24522_v52 = vrot.slane %v9644_v29, 4  ;;  %v22808_v0 = vld [vmem:[%s23348_s16 + $0x18] ss:$8 sps:$4 sm:$0xff]   ;;  %v24606_v42 = vcombine.low %v9594_v24, %v9608_v22  ;;  %v22811_v4 = vld [vmem:[%s23348_s16 + $0x28] ss:$8 sps:$4 sm:$0xff]  }
 0x105   : > { %v24524_v8 = vrot.slane %v9647_v46, 5  ;;  %v24555_v46 = vrot.slane %v9689_v1, 5  ;;  %v18724_v54 = vld [vmem:[%s23348_s16 + $0xd0] sm:$0xf]  ;;  %v18726_v22 = vld [vmem:[%s23348_s16 + $0xd8] sm:$0xf] }
 0x106   : > { %20710 = vmatmul.mubr.msk.bf16.gmra.mrb[20].mxu1 %vm979_vm0, %v17421_v10  ;;  %v9658_v10 = vor.u32 %v9657_v48, %v9654_v19  ;;  %v22807_v19 = vld [vmem:[%s23348_s16 + $0x8] ss:$8 sps:$4 sm:$0xff]   ;;  %v9686_v48 = vor.u32 %v9685_v15, %v9682_v44 }
 0x107   : > { %20713 = vmatprep.mubr.msk.bf16.mxu1 %vm979_vm0, %v17422_v59  ;;  %21244 = vmatpush3.bf16.msra.mxu0 %v22797_v60  ;;  %v9675_v59 = vshll.u32 %v18713_v51, 16  ;;  %v9668_v60 = vrot.slane %v9666_v16, 4  ;;  %v9703_v51 = vshll.u32 %v18717_v35, 16  ;;  %v9636_v16 = vsel %vm23392_vm3, %v24514_v20, %v24510_v62  ;;  %v22801_v44 = vld [vmem:[%s23348_s16 + $0xe0] ss:$8 sps:$4 sm:$0xff]  }
 0x108   : > { %21245 = vmatprep.subr.bf16.mxu0 %v22806_v40  ;;  %v9650_v31 = vsel %vm23392_vm3, %v24522_v52, %v24524_v8  ;;  %v9731_v8 = vshll.u32 %v18721_v27, 16  ;;  %v17557_v36 = vld [vmem:[%s23348_s16 + $0xb0] sm:$0xf] }
 0x109   : > { %v24544_v3 = vrot.slane %v9675_v59, 5  ;;  %v9672_v49 = vor.u32 %v9671_v56, %v9668_v60  ;;  %v9736_v59 = vshrl.u32 %v18722_v7, 16  ;;  %v9739_v60 = vshll.u32 %v18722_v7, 16 }
 0x10a   : > { %21214 = vmatmul.mubr.msk.bf16.gmra.mrb[4].mxu0 %vm979_vm0, %v22794_v28  ;;  %v18720_v28 = vld [vmem:[%s23348_s16 + $0xc0] sm:$0xf]  ;;  %v24578_v56 = vrot.slane %v9686_v48, 4  ;;  %v24587_v15 = vrot.slane %v9703_v51, 5  ;;  %v24617_v13 = vrot.slane %v9731_v8, 5 }
 0x10b   : > { %21217 = vmatprep.mubr.msk.bf16.mxu0 %vm979_vm0, %v22795_v50  ;;  %21246 = vmatpush3.bf16.msra.mxu0 %v22806_v40  ;;  %v9659_v40 = vrot.slane %v9658_v10, 4  ;;  %v9696_v50 = vrot.slane %v9694_v9, 4  ;;  %v9722_v47 = vshrl.u32 %v18720_v28, 16  ;;  %v9725_v10 = vshll.u32 %v18720_v28, 16  ;;  %v18728_v48 = vld [vmem:[%s23348_s16 + $0xe0] sm:$0xf] }
 0x10c   : > { %21247 = vmatprep.subr.bf16.mxu0 %v22815_v37  ;;  %v24575_v32 = vrot.slane %v9672_v49, 4  ;;  %v9738_v1 = vrot.slane %v9736_v59, 4  ;;  %v9741_v57 = vrot.slane %v9739_v60, 5  ;;  %v9692_v2 = vsel %vm23392_vm3, %v24578_v56, %v24555_v46  ;;  %v22831_v46 = vld [vmem:[%s28369_s2 + $0x88] sm:$0xff]  }
 0x10d   : > { %v9700_v41 = vor.u32 %v9699_v61, %v9696_v50  ;;  %v9664_v62 = vsel %vm23392_vm3, %v9659_v40, %v24526_v26  ;;  %v9724_v20 = vrot.slane %v9722_v47, 4  ;;  %v9727_v52 = vrot.slane %v9725_v10, 5  ;;  %v18731_v59 = vld [vmem:[%s23348_s16 + $0xec] sm:$0x1]  ;;  %v22809_v60 = vld [vmem:[%s23348_s16 + $0x120] ss:$8 sps:$4 sm:$0xff]  }
 0x10e   : > { %20714 = vmatmul.mubr.msk.bf16.gmra.mrb[24].mxu1 %vm979_vm0, %v17423_v17  ;;  %v9711_v17 = vshll.u32 %v18718_v6, 16  ;;  %v9745_v6 = vshll.u32 %v18723_v43, 16  ;;  %v24611_v49 = vcombine.low %v9650_v31, %v9664_v62  ;;  %v9742_v23 = vor.u32 %v9741_v57, %v9738_v1  ;;  %v18730_v31 = vld [vmem:[%s23348_s16 + $0xe8] sm:$0xf] }
 0x10f   : > { %20717 = vmatprep.mubr.msk.bf16.mxu1 %vm979_vm0, %v17424_v30  ;;  %21248 = vmatpush3.bf16.msra.mxu0 %v22815_v37  ;;  %v9717_v30 = vshll.u32 %v18719_v55, 16  ;;  %v24585_v26 = vrot.slane %v9700_v41, 4  ;;  %v9728_v9 = vor.u32 %v9727_v52, %v9724_v20  ;;  %v9678_v55 = vsel %vm23392_vm3, %v24575_v32, %v24544_v3 }
 0x110   : > { %v9713_v29 = vrot.slane %v9711_v17, 5  ;;  %21281 = vmatprep.subr.bf16.mxu0 %v24520_v34  ;;  %v18725_v17 = vld [vmem:[%s23348_s16 + $0xd4] sm:$0x1]  ;;  %v24629_v24 = vrot.slane %v9745_v6, 5  ;;  %v9750_v28 = vshrl.u32 %v18724_v54, 16  ;;  %v9753_v50 = vshll.u32 %v18724_v54, 16 }
 0x111   : > { %v24593_v35 = vrot.slane %v9717_v30, 5  ;;  %v9706_v25 = vsel %vm23392_vm3, %v24585_v26, %v24587_v15  ;;  %v9759_v61 = vshll.u32 %v18725_v17, 16  ;;  %v9729_v51 = vrot.slane %v9728_v9, 4  ;;  %v18734_v26 = vld [vmem:[%s23348_s16 + $0x108] sm:$0xf] }
 0x112   : > { %v9714_v37 = vor.u32 %v9713_v29, %v9710_v12  ;;  %21218 = vmatmul.mubr.msk.bf16.gmra.mrb[8].mxu0 %vm979_vm0, %v22796_v21  ;;  %v22804_v21 = vld [vmem:[%s23348_s16 + $0x100] ss:$8 sps:$4 sm:$0xff]   ;;  %v9752_v12 = vrot.slane %v9750_v28, 4  ;;  %v9767_v29 = vshll.u32 %v18726_v22, 16  ;;  %v9743_v41 = vrot.slane %v9742_v23, 4  ;;  %v22835_v28 = vld [vmem:[%s28369_s2 + $0x98] sm:$0xff]  }
 0x113   : > { %21221 = vmatprep.mubr.msk.bf16.mxu0 %vm979_vm0, %v22800_v45  ;;  %v9755_v30 = vrot.slane %v9753_v50, 5  ;;  %v9761_v27 = vrot.slane %v9759_v61, 5  ;;  %v9778_v62 = vshrl.u32 %v18728_v48, 16  ;;  %v9781_v20 = vshll.u32 %v18728_v48, 16  ;;  %v18735_v15 = vld [vmem:[%s23348_s16 + $0x10c] sm:$0x1] }
 0x114   : > { %v24591_v40 = vrot.slane %v9714_v37, 4  ;;  %v22805_v37 = vld [vmem:[%s23348_s16 + $0x110] ss:$8 sps:$4 sm:$0xff]   ;;  %v9769_v43 = vrot.slane %v9767_v29, 5  ;;  %v9792_v8 = vshrl.u32 %v18730_v31, 16  ;;  %v9795_v1 = vshll.u32 %v18730_v31, 16 }
 0x115   : > { %v9756_v56 = vor.u32 %v9755_v30, %v9752_v12  ;;  %v9780_v6 = vrot.slane %v9778_v62, 4  ;;  %v9734_v9 = vsel %vm23392_vm3, %v9729_v51, %v24617_v13  ;;  %v9748_v54 = vsel %vm23392_vm3, %v9743_v41, %v24629_v24  ;;  %v18733_v12 = vld [vmem:[%s23348_s16 + $0x104] sm:$0x1]  ;;  %v22813_v30 = vld [vmem:[%s23348_s16 + $0x150] ss:$8 sps:$4 sm:$0xff]  }
 0x116   : > { %20718 = vmatmul.mubr.msk.bf16.gmra.mrb[28].mxu1 %vm979_vm0, %v17425_v39  ;;  %v24608_v39 = vcombine.low %v9622_v5, %v9636_v16  ;;  %v18727_v5 = vld [vmem:[%s23348_s16 + $0xdc] sm:$0x1]  ;;  %v9720_v45 = vsel %vm23392_vm3, %v24591_v40, %v24593_v35  ;;  %v18729_v16 = vld [vmem:[%s23348_s16 + $0xe4] sm:$0x1]  ;;  %v9801_v40 = vshll.u32 %v18731_v59, 16  ;;  %v22834_v35 = vld [vmem:[%s28369_s2 + $0x90] sm:$0xff]   ;;  %v24674_v24 = vcombine.low %v9678_v55, %v9692_v2 }
 0x117   : > { %20729 = vmatprep.mubr.msk.bf16.mxu1 %vm979_vm0, %v22807_v19  ;;  %v9764_v19 = vshrl.u32 %v18726_v22, 16  ;;  %v9773_v7 = vshll.u32 %v18727_v5, 16  ;;  %v9787_v52 = vshll.u32 %v18729_v16, 16  ;;  %v9797_v23 = vrot.slane %v9795_v1, 5  ;;  %v18732_v2 = vld [vmem:[%s23348_s16 + $0x100] sm:$0xf] }
 0x118   : > { %v9803_v61 = vrot.slane %v9801_v40, 5  ;;  %v10457_v51 = vrot.slane %v24444_v53, 5  ;;  %v24685_v3 = vcombine.low %v9706_v25, %v9720_v45  ;;  %v24687_v32 = vcombine.low %v9734_v9, %v9748_v54 }
 0x119   : > { %v9766_v47 = vrot.slane %v9764_v19, 4  ;;  %v9775_v10 = vrot.slane %v9773_v7, 5  ;;  %v9789_v5 = vrot.slane %v9787_v52, 5  ;;  %v10453_v19 = vrot.slane %v24428_v14, 5  ;;  %v22810_v7 = vld [vmem:[%s23348_s16 + $0x130] ss:$8 sps:$4 sm:$0xff]  }
 0x11a   : > { %21222 = vmatmul.mubr.msk.bf16.gmra.mrb[12].mxu0 %vm979_vm0, %v22801_v44  ;;  %v22812_v44 = vld [vmem:[%s23348_s16 + $0x38] ss:$8 sps:$4 sm:$0xff]   ;;  %v10461_v29 = vrot.slane %v24460_v18, 5  ;;  %v9806_v25 = vshrl.u32 %v18732_v2, 16  ;;  %v9809_v45 = vshll.u32 %v18732_v2, 16  ;;  %v9820_v31 = vshrl.u32 %v18734_v26, 16 }
 0x11b   : > { %21225 = vmatprep.mubr.msk.bf16.mxu0 %vm979_vm0, %v22804_v21  ;;  %v9770_v57 = vor.u32 %v9769_v43, %v9766_v47  ;;  %v9783_v21 = vrot.slane %v9781_v20, 5  ;;  %v9815_v47 = vshll.u32 %v18733_v12, 16  ;;  %v18736_v43 = vld [vmem:[%s23348_s16 + $0x110] sm:$0xf]  ;;  %v24712_v52 = vld [vmem:[%s28369_s2 + $0xa0] sm:$0xff]  }
 0x11c   : > { %v9808_v62 = vrot.slane %v9806_v25, 4  ;;  %v9811_v20 = vrot.slane %v9809_v45, 5  ;;  %v9837_v9 = vshll.u32 %v18736_v43, 16  ;;  %v22814_v2 = vld [vmem:[%s23348_s16 + $0x160] ss:$8 sps:$4 sm:$0xff]  }
 0x11d   : > { %v9771_v17 = vrot.slane %v9770_v57, 4  ;;  %v9784_v22 = vor.u32 %v9783_v21, %v9780_v6  ;;  %v9817_v1 = vrot.slane %v9815_v47, 5  ;;  %v18738_v6 = vld [vmem:[%s23348_s16 + $0x118] sm:$0xf]  ;;  %v9834_v21 = vshrl.u32 %v18736_v43, 16 }
 0x11e   : > { %20730 = vmatmul.mubr.msk.bf16.vlgmr.msra.gmra.mrb[0].mxu1 %vm979_vm0, %v22808_v0  ;;  %v22816_v0 = vld [vmem:[%s23348_s16 + $0x58] ss:$8 sps:$4 sm:$0xff]   ;;  %v9812_v40 = vor.u32 %v9811_v20, %v9808_v62  ;;  %v9848_v54 = vshrl.u32 %v18738_v6, 16  ;;  %v17526_v47 = vld [vmem:[%s23348_s16 + $0x14] sm:$0x1] }
 0x11f   : > { %20733 = vmatprep.mubr.msk.bf16.mxu1 %vm979_vm0, %v22811_v4  ;;  %20762 = vmatpush3.bf16.msra.mxu1 %v24318_v11  ;;  %v9757_v11 = vrot.slane %v9756_v56, 4  ;;  %v9794_v4 = vrot.slane %v9792_v8, 4  ;;  %v9785_v48 = vrot.slane %v9784_v22, 4  ;;  %v18737_v56 = vld [vmem:[%s23348_s16 + $0x114] sm:$0x1] }
 0x120   : > { %20763 = vmatprep.subr.bf16.mxu1 %v22831_v46  ;;  %v22820_v8 = vld [vmem:[%s23348_s16 + $0x78] ss:$8 sps:$4 sm:$0xff]   ;;  %v9813_v22 = vrot.slane %v9812_v40, 4 }
 0x121   : > { %v9762_v13 = vsel %vm23392_vm3, %v9757_v11, %v9761_v27  ;;  %v9798_v50 = vor.u32 %v9797_v23, %v9794_v4  ;;  %v9790_v41 = vsel %vm23392_vm3, %v9785_v48, %v9789_v5  ;;  %v9843_v11 = vshll.u32 %v18737_v56, 16  ;;  %v17523_v48 = vld [vmem:[%s23348_s16 + $0x8] sm:$0xf]  ;;  %v22818_v45 = vld [vmem:[%s23348_s16 + $0x170] ss:$8 sps:$4 sm:$0xff]  }
 0x122   : > { %21226 = vmatmul.mubr.msk.bf16.gmra.mrb[16].mxu0 %vm979_vm0, %v22805_v37  ;;  %v9823_v37 = vshll.u32 %v18734_v26, 16  ;;  %v9836_v23 = vrot.slane %v9834_v21, 4  ;;  %v9839_v5 = vrot.slane %v9837_v9, 5  ;;  %v9818_v12 = vsel %vm23392_vm3, %v9813_v22, %v9817_v1  ;;  %v17524_v26 = vld [vmem:[%s23348_s16 + $0xc] sm:$0x1] }
 0x123   : > { %20764 = vmatpush3.bf16.msra.mxu1 %v22831_v46  ;;  %v9776_v46 = vsel %vm23392_vm3, %v9771_v17, %v9775_v10  ;;  %21229 = vmatprep.mubr.msk.bf16.mxu0 %vm979_vm0, %v22809_v60  ;;  %v9799_v55 = vrot.slane %v9798_v50, 4  ;;  %v22817_v10 = vld [vmem:[%s23348_s16 + $0x68] ss:$8 sps:$4 sm:$0xff]   ;;  %v9829_v60 = vshll.u32 %v18735_v15, 16  ;;  %v9851_v17 = vshll.u32 %v18738_v6, 16 }
 0x124   : > { %20765 = vmatprep.subr.bf16.mxu1 %v22834_v35  ;;  %v24694_v16 = vcombine.low %v9762_v13, %v9776_v46  ;;  %v9825_v57 = vrot.slane %v9823_v37, 5  ;;  %v9845_v13 = vrot.slane %v9843_v11, 5  ;;  %v17525_v15 = vld [vmem:[%s23348_s16 + $0x10] sm:$0xf]  ;;  %v2505_v25 = vshrl.u32 %v17523_v48, 16 }
 0x125   : > { %v9804_v27 = vsel %vm23392_vm3, %v9799_v55, %v9803_v61  ;;  %v9853_v46 = vrot.slane %v9851_v17, 5  ;;  %v10465_v55 = vrot.slane %v24472_v58, 5  ;;  %v2514_v37 = vshll.u32 %v17524_v26, 16  ;;  %v17527_v43 = vld [vmem:[%s23348_s16 + $0x18] sm:$0xf] }
 0x126   : > { %20734 = vmatmul.mubr.msk.bf16.gmra.mrb[4].mxu1 %vm979_vm0, %v22812_v44  ;;  %v24706_v59 = vcombine.low %v9790_v41, %v9804_v27  ;;  %v9822_v44 = vrot.slane %v9820_v31, 4  ;;  %v2508_v31 = vshll.u32 %v17523_v48, 16  ;;  %v2519_v56 = vshrl.u32 %v17525_v15, 16  ;;  %v22823_v1 = vld [vmem:[%s23348_s16 + $0xa8] ss:$8 sps:$4 sm:$0xff]  }
 0x127   : > { %20737 = vmatprep.mubr.msk.bf16.mxu1 %vm979_vm0, %v22816_v0  ;;  %20766 = vmatpush3.bf16.msra.mxu1 %v22834_v35  ;;  %v9831_v35 = vrot.slane %v9829_v60, 5  ;;  %v18739_v0 = vld [vmem:[%s23348_s16 + $0x11c] sm:$0x1]  ;;  %v2507_v60 = vrot.slane %v2505_v25, 4  ;;  %v2522_v6 = vshll.u32 %v17525_v15, 16  ;;  %v2533_v11 = vshrl.u32 %v17527_v43, 16 }
 0x128   : > { %20767 = vmatprep.subr.bf16.mxu1 %v22835_v28  ;;  %v9826_v4 = vor.u32 %v9825_v57, %v9822_v44  ;;  %v9857_v50 = vshll.u32 %v18739_v0, 16  ;;  %v2510_v44 = vrot.slane %v2508_v31, 5  ;;  %v2516_v57 = vrot.slane %v2514_v37, 5  ;;  %v17528_v21 = vld [vmem:[%s23348_s16 + $0x1c] sm:$0x1] }
 0x129   : > { %v2528_v0 = vshll.u32 %v17526_v47, 16  ;;  %v17529_v9 = vld [vmem:[%s23348_s16 + $0x20] sm:$0xf]  ;;  %v17530_v17 = vld [vmem:[%s23348_s16 + $0x24] sm:$0x1]  ;;  %v2536_v22 = vshll.u32 %v17527_v43, 16 }
 0x12a   : > { %21230 = vmatmul.mubr.msk.bf16.gmra.mrb[20].mxu0 %vm979_vm0, %v22810_v7  ;;  %v9827_v61 = vrot.slane %v9826_v4, 4  ;;  %v9840_v7 = vor.u32 %v9839_v5, %v9836_v23  ;;  %v9859_v41 = vrot.slane %v9857_v50, 5  ;;  %v2511_v23 = vor.u32 %v2510_v44, %v2507_v60  ;;  %v18740_v5 = vld [vmem:[%s23348_s16 + $0x120] sm:$0xf]  ;;  %v18742_v25 = vld [vmem:[%s23348_s16 + $0x128] sm:$0xf] }
 0x12b   : > { %20768 = vmatpush3.bf16.msra.mxu1 %v22835_v28  ;;  %21233 = vmatprep.mubr.msk.bf16.mxu0 %vm979_vm0, %v22813_v30  ;;  %v9850_v28 = vrot.slane %v9848_v54, 4  ;;  %v2524_v54 = vrot.slane %v2522_v6, 5  ;;  %v2550_v15 = vshll.u32 %v17529_v9, 16  ;;  %v22824_v43 = vld [vmem:[%s23348_s16 + $0xb8] ss:$8 sps:$4 sm:$0xff]  }
 0x12c   : > { %20801 = vmatprep.subr.bf16.mxu1 %v24712_v52  ;;  %v9832_v30 = vsel %vm23392_vm3, %v9827_v61, %v9831_v35  ;;  %v9841_v20 = vrot.slane %v9840_v7, 4  ;;  %v2521_v35 = vrot.slane %v2519_v56, 4  ;;  %v2535_v61 = vrot.slane %v2533_v11, 4  ;;  %v18743_v60 = vld [vmem:[%s23348_s16 + $0x12c] sm:$0x1] }
 0x12d   : > { %v9854_v27 = vor.u32 %v9853_v46, %v9850_v28  ;;  %v24735_v62 = vcombine.low %v9818_v12, %v9832_v30  ;;  %v2542_v28 = vshll.u32 %v17528_v21, 16  ;;  %v2512_v46 = vrot.slane %v2511_v23, 4  ;;  %v18745_v11 = vld [vmem:[%s23348_s16 + $0x134] sm:$0x1]  ;;  %v22825_v23 = vld [vmem:[%s23348_s16 + $0xc8] ss:$8 sps:$4 sm:$0xff]  }
 0x12e   : > { %20738 = vmatmul.mubr.msk.bf16.gmra.mrb[8].mxu1 %vm979_vm0, %v22817_v10  ;;  %v22821_v10 = vld [vmem:[%s23348_s16 + $0x88] ss:$8 sps:$4 sm:$0xff]   ;;  %v9846_v40 = vsel %vm23392_vm3, %v9841_v20, %v9845_v13  ;;  %v2530_v13 = vrot.slane %v2528_v0, 5  ;;  %v2525_v48 = vor.u32 %v2524_v54, %v2521_v35  ;;  %v2538_v12 = vrot.slane %v2536_v22, 5  ;;  %v17561_v18 = vld [vmem:[%s23348_s16 + $0xc0] sm:$0xf] }
 0x12f   : > { %20741 = vmatprep.mubr.msk.bf16.mxu1 %vm979_vm0, %v22820_v8  ;;  %v9855_v8 = vrot.slane %v9854_v27, 4  ;;  %v2547_v7 = vshrl.u32 %v17529_v9, 16  ;;  %v2544_v26 = vrot.slane %v2542_v28, 5  ;;  %v9862_v30 = vshrl.u32 %v18740_v5, 16  ;;  %v22819_v27 = vld [vmem:[%s23348_s16 + $0x180] ss:$8 sps:$4 sm:$0xff]  }
 0x130   : > { %v2526_v47 = vrot.slane %v2525_v48, 4  ;;  %v2539_v31 = vor.u32 %v2538_v12, %v2535_v61  ;;  %v2552_v20 = vrot.slane %v2550_v15, 5  ;;  %v9876_v21 = vshrl.u32 %v18742_v25, 16  ;;  %v18747_v12 = vld [vmem:[%s23348_s16 + $0x13c] sm:$0x1] }
 0x131   : > { %v9860_v4 = vsel %vm23392_vm3, %v9855_v8, %v9859_v41  ;;  %v18741_v41 = vld [vmem:[%s23348_s16 + $0x124] sm:$0x1]  ;;  %v2549_v37 = vrot.slane %v2547_v7, 4  ;;  %v9864_v56 = vrot.slane %v9862_v30, 4  ;;  %v9865_v8 = vshll.u32 %v18740_v5, 16 }
 0x132   : > { %21234 = vmatmul.mubr.msk.bf16.gmra.mrb[24].mxu0 %vm979_vm0, %v22814_v2  ;;  %v24747_v50 = vcombine.low %v9846_v40, %v9860_v4  ;;  %v2556_v2 = vshll.u32 %v17530_v17, 16  ;;  %v2531_v44 = vsel %vm23392_vm3, %v2526_v47, %v2530_v13  ;;  %v2540_v6 = vrot.slane %v2539_v31, 4  ;;  %v18744_v40 = vld [vmem:[%s23348_s16 + $0x130] sm:$0xf]  ;;  %v18746_v4 = vld [vmem:[%s23348_s16 + $0x138] sm:$0xf] }
 0x133   : > { %21237 = vmatprep.mubr.msk.bf16.mxu0 %vm979_vm0, %v22818_v45  ;;  %v2517_v45 = vsel %vm23392_vm3, %v2512_v46, %v2516_v57  ;;  %v2553_v35 = vor.u32 %v2552_v20, %v2549_v37  ;;  %v9867_v0 = vrot.slane %v9865_v8, 5  ;;  %v9879_v9 = vshll.u32 %v18742_v25, 16  ;;  %v17533_v20 = vld [vmem:[%s23348_s16 + $0x30] sm:$0xf] }
 0x134   : > { %v24762_v57 = vcombine.low %v2517_v45, %v2531_v44  ;;  %v2545_v54 = vsel %vm23392_vm3, %v2540_v6, %v2544_v26  ;;  %v9878_v22 = vrot.slane %v9876_v21, 4  ;;  %v9885_v5 = vshll.u32 %v18743_v60, 16  ;;  %v17532_v45 = vld [vmem:[%s23348_s16 + $0x2c] sm:$0x1]  ;;  %v22826_v60 = vld [vmem:[%s23348_s16 + $0xd8] ss:$8 sps:$4 sm:$0xff]  }
 0x135   : > { %v2554_v13 = vrot.slane %v2553_v35, 4  ;;  %v9868_v61 = vor.u32 %v9867_v0, %v9864_v56  ;;  %v9881_v28 = vrot.slane %v9879_v9, 5  ;;  %v9890_v46 = vshrl.u32 %v18744_v40, 16  ;;  %v22828_v44 = vld [vmem:[%s23348_s16 + $0xf8] ss:$8 sps:$4 sm:$0xff]   ;;  %v22827_v0 = vld [vmem:[%s28369_s2 + $0x228] sm:$0xff]  }
 0x136   : > { %20742 = vmatmul.mubr.msk.bf16.gmra.mrb[12].mxu1 %vm979_vm0, %v22821_v10  ;;  %v2558_v10 = vrot.slane %v2556_v2, 5  ;;  %v9887_v48 = vrot.slane %v9885_v5, 5  ;;  %v9893_v7 = vshll.u32 %v18744_v40, 16  ;;  %v9904_v26 = vshrl.u32 %v18746_v4, 16 }
 0x137   : > { %20745 = vmatprep.mubr.msk.bf16.mxu1 %vm979_vm0, %v22823_v1  ;;  %v9871_v1 = vshll.u32 %v18741_v41, 16  ;;  %v9899_v41 = vshll.u32 %v18745_v11, 16  ;;  %v9869_v2 = vrot.slane %v9868_v61, 4  ;;  %v9882_v25 = vor.u32 %v9881_v28, %v9878_v22  ;;  %v17536_v61 = vld [vmem:[%s23348_s16 + $0x3c] sm:$0x1]  ;;  %v22836_v28 = vld [vmem:[%s28369_s2 + $0x230] sm:$0xff]  }
 0x138   : > { %v2559_v15 = vsel %vm23392_vm3, %v2554_v13, %v2558_v10  ;;  %v9892_v30 = vrot.slane %v9890_v46, 4  ;;  %v9895_v47 = vrot.slane %v9893_v7, 5  ;;  %v9906_v37 = vrot.slane %v9904_v26, 4 }
 0x139   : > { %v9873_v17 = vrot.slane %v9871_v1, 5  ;;  %v9901_v31 = vrot.slane %v9899_v41, 5  ;;  %v9883_v10 = vrot.slane %v9882_v25, 4  ;;  %v9907_v56 = vshll.u32 %v18746_v4, 16  ;;  %v17534_v1 = vld [vmem:[%s23348_s16 + $0x34] sm:$0x1] }
 0x13a   : > { %21238 = vmatmul.mubr.msk.bf16.gmra.mrb[28].mxu0 %vm979_vm0, %v22819_v27  ;;  %v17531_v27 = vld [vmem:[%s23348_s16 + $0x28] sm:$0xf]  ;;  %v9913_v8 = vshll.u32 %v18747_v12, 16  ;;  %v9896_v6 = vor.u32 %v9895_v47, %v9892_v30  ;;  %v2570_v35 = vshll.u32 %v17532_v45, 16  ;;  %v17535_v4 = vld [vmem:[%s23348_s16 + $0x38] sm:$0xf] }
 0x13b   : > { %21249 = vmatprep.mubr.msk.bf16.mxu0 %vm979_vm0, %v24606_v42  ;;  %v24779_v42 = vcombine.low %v2545_v54, %v2559_v15  ;;  %v2561_v21 = vshrl.u32 %v17531_v27, 16  ;;  %v2564_v40 = vshll.u32 %v17531_v27, 16  ;;  %v9888_v9 = vsel %vm23392_vm3, %v9883_v10, %v9887_v48  ;;  %v17537_v41 = vld [vmem:[%s23348_s16 + $0x40] sm:$0xf]  ;;  %v18748_v30 = vld [vmem:[%s23348_s16 + $0x150] sm:$0xf] }
 0x13c   : > { %v9909_v11 = vrot.slane %v9907_v56, 5  ;;  %v2575_v54 = vshrl.u32 %v17533_v20, 16  ;;  %v9897_v22 = vrot.slane %v9896_v6, 4  ;;  %v2572_v48 = vrot.slane %v2570_v35, 5  ;;  %v18750_v6 = vld [vmem:[%s23348_s16 + $0x158] sm:$0xf] }
 0x13d   : > { %v2563_v5 = vrot.slane %v2561_v21, 4  ;;  %v2566_v13 = vrot.slane %v2564_v40, 5  ;;  %v2578_v7 = vshll.u32 %v17533_v20, 16  ;;  %v2589_v25 = vshrl.u32 %v17535_v4, 16 }
 0x13e   : > { %20746 = vmatmul.mubr.msk.bf16.gmra.mrb[16].mxu1 %vm979_vm0, %v22824_v43  ;;  %v9874_v43 = vsel %vm23392_vm3, %v9869_v2, %v9873_v17  ;;  %v9910_v46 = vor.u32 %v9909_v11, %v9906_v37  ;;  %v2577_v12 = vrot.slane %v2575_v54, 4  ;;  %v9902_v26 = vsel %vm23392_vm3, %v9897_v22, %v9901_v31  ;;  %v22837_v22 = vld [vmem:[%s28369_s2 + $0x238] sm:$0xff]  }
 0x13f   : > { %20749 = vmatprep.mubr.msk.bf16.mxu1 %vm979_vm0, %v22825_v23  ;;  %v9915_v23 = vrot.slane %v9913_v8, 5  ;;  %v24793_v17 = vcombine.low %v9874_v43, %v9888_v9  ;;  %v2567_v15 = vor.u32 %v2566_v13, %v2563_v5  ;;  %v2584_v2 = vshll.u32 %v17534_v1, 16  ;;  %v18749_v8 = vld [vmem:[%s23348_s16 + $0x154] sm:$0x1]  ;;  %v22829_v1 = vld [vmem:[%s23348_s16 + $0x108] ss:$8 sps:$4 sm:$0xff]  }
 0x140   : > { %v9911_v27 = vrot.slane %v9910_v46, 4  ;;  %v2580_v45 = vrot.slane %v2578_v7, 5  ;;  %v2598_v47 = vshll.u32 %v17536_v61, 16  ;;  %v2591_v37 = vrot.slane %v2589_v25, 4  ;;  %v22832_v9 = vld [vmem:[%s23348_s16 + $0x118] ss:$8 sps:$4 sm:$0xff]  }
 0x141   : > { %v2586_v31 = vrot.slane %v2584_v2, 5  ;;  %v2603_v20 = vshrl.u32 %v17537_v41, 16  ;;  %v2606_v35 = vshll.u32 %v17537_v41, 16  ;;  %v18751_v5 = vld [vmem:[%s23348_s16 + $0x15c] sm:$0x1]  ;;  %v9921_v13 = vshll.u32 %v18748_v30, 16 }
 0x142   : > { %21250 = vmatmul.mubr.msk.bf16.vlgmr.msra.gmra.mrb[0].mxu0 %vm979_vm0, %v24608_v39  ;;  %v17538_v39 = vld [vmem:[%s23348_s16 + $0x44] sm:$0x1]  ;;  %v9916_v43 = vsel %vm23392_vm3, %v9911_v27, %v9915_v23  ;;  %v2581_v10 = vor.u32 %v2580_v45, %v2577_v12  ;;  %v9927_v61 = vshll.u32 %v18749_v8, 16  ;;  %v9932_v46 = vshrl.u32 %v18750_v6, 16  ;;  %v18754_v27 = vld [vmem:[%s23348_s16 + $0x168] sm:$0xf] }
 0x143   : > { %21282 = vmatpush3.bf16.msra.mxu0 %v24520_v34  ;;  %21253 = vmatprep.mubr.msk.bf16.mxu0 %vm979_vm0, %v24611_v49  ;;  %v2592_v34 = vshll.u32 %v17535_v4, 16  ;;  %v2568_v49 = vrot.slane %v2567_v15, 4  ;;  %v24816_v21 = vcombine.low %v9902_v26, %v9916_v43  ;;  %v2605_v40 = vrot.slane %v2603_v20, 4  ;;  %v18752_v26 = vld [vmem:[%s23348_s16 + $0x160] sm:$0xf] }
 0x144   : > { %21283 = vmatprep.subr.bf16.mxu0 %v22827_v0  ;;  %v2582_v11 = vrot.slane %v2581_v10, 4  ;;  %v2612_v54 = vshll.u32 %v17538_v39, 16  ;;  %v9918_v4 = vshrl.u32 %v18748_v30, 16  ;;  %v9923_v39 = vrot.slane %v9921_v13, 5  ;;  %v18753_v30 = vld [vmem:[%s23348_s16 + $0x164] sm:$0x1] }
 0x145   : > { %v2594_v56 = vrot.slane %v2592_v34, 5  ;;  %v9929_v25 = vrot.slane %v9927_v61, 5  ;;  %v9934_v45 = vrot.slane %v9932_v46, 4  ;;  %v9935_v34 = vshll.u32 %v18750_v6, 16  ;;  %v17539_v8 = vld [vmem:[%s23348_s16 + $0x58] sm:$0xf] }
 0x146   : > { %20750 = vmatmul.mubr.msk.bf16.gmra.mrb[20].mxu1 %vm979_vm0, %v22826_v60  ;;  %v2600_v60 = vrot.slane %v2598_v47, 5  ;;  %v2614_v7 = vrot.slane %v2612_v54, 5  ;;  %v9920_v41 = vrot.slane %v9918_v4, 4  ;;  %v9941_v47 = vshll.u32 %v18751_v5, 16 }
 0x147   : > { %20753 = vmatprep.mubr.msk.bf16.mxu1 %vm979_vm0, %v22828_v44  ;;  %21284 = vmatpush3.bf16.msra.mxu0 %v22827_v0  ;;  %v2573_v44 = vsel %vm23392_vm3, %v2568_v49, %v2572_v48  ;;  %v2595_v23 = vor.u32 %v2594_v56, %v2591_v37  ;;  %v2608_v0 = vrot.slane %v2606_v35, 5  ;;  %v2587_v48 = vsel %vm23392_vm3, %v2582_v11, %v2586_v31  ;;  %v18755_v31 = vld [vmem:[%s23348_s16 + $0x16c] sm:$0x1]  ;;  %v17540_v35 = vld [vmem:[%s23348_s16 + $0x5c] sm:$0x1] }
 0x148   : > { %21285 = vmatprep.subr.bf16.mxu0 %v22836_v28  ;;  %v24832_v15 = vcombine.low %v2573_v44, %v2587_v48  ;;  %v9924_v49 = vor.u32 %v9923_v39, %v9920_v41  ;;  %v9946_v37 = vshrl.u32 %v18752_v26, 16  ;;  %v9949_v20 = vshll.u32 %v18752_v26, 16  ;;  %v17542_v48 = vld [vmem:[%s23348_s16 + $0x64] sm:$0x1]  ;;  %v17543_v26 = vld [vmem:[%s23348_s16 + $0x68] sm:$0xf] }
 0x149   : > { %v2596_v12 = vrot.slane %v2595_v23, 4  ;;  %v2609_v2 = vor.u32 %v2608_v0, %v2605_v40  ;;  %v9937_v43 = vrot.slane %v9935_v34, 5  ;;  %v9943_v10 = vrot.slane %v9941_v47, 5  ;;  %v17541_v0 = vld [vmem:[%s23348_s16 + $0x60] sm:$0xf] }
 0x14a   : > { %21254 = vmatmul.mubr.msk.bf16.gmra.mrb[4].mxu0 %vm979_vm0, %v24674_v24  ;;  %v9955_v56 = vshll.u32 %v18753_v30, 16  ;;  %v9948_v44 = vrot.slane %v9946_v37, 4  ;;  %v9951_v40 = vrot.slane %v9949_v20, 5  ;;  %v9963_v61 = vshll.u32 %v18754_v27, 16  ;;  %v17545_v47 = vld [vmem:[%s23348_s16 + $0x70] sm:$0xf] }
 0x14b   : > { %21257 = vmatprep.mubr.msk.bf16.mxu0 %vm979_vm0, %v24685_v3  ;;  %21286 = vmatpush3.bf16.msra.mxu0 %v22836_v28  ;;  %v2601_v24 = vsel %vm23392_vm3, %v2596_v12, %v2600_v60  ;;  %v24842_v3 = vld [vmem:[%s28369_s2 + $0x240] sm:$0xff]   ;;  %v2610_v28 = vrot.slane %v2609_v2, 4  ;;  %v9960_v60 = vshrl.u32 %v18754_v27, 16  ;;  %v9938_v23 = vor.u32 %v9937_v43, %v9934_v45  ;;  %v17544_v27 = vld [vmem:[%s23348_s16 + $0x6c] sm:$0x1] }
 0x14c   : > { %21287 = vmatprep.subr.bf16.mxu0 %v22837_v22  ;;  %v9957_v54 = vrot.slane %v9955_v56, 5  ;;  %v9952_v13 = vor.u32 %v9951_v40, %v9948_v44  ;;  %v9969_v46 = vshll.u32 %v18755_v31, 16  ;;  %v2617_v12 = vshrl.u32 %v17539_v8, 16  ;;  %v18756_v44 = vld [vmem:[%s23348_s16 + $0x170] sm:$0xf] }
 0x14d   : > { %v2615_v6 = vsel %vm23392_vm3, %v2610_v28, %v2614_v7  ;;  %v9962_v4 = vrot.slane %v9960_v60, 4  ;;  %v2620_v7 = vshll.u32 %v17539_v8, 16  ;;  %v2626_v41 = vshll.u32 %v17540_v35, 16 }
 0x14e   : > { %20754 = vmatmul.mubr.msk.bf16.gmra.mrb[24].mxu1 %vm979_vm0, %v22829_v1  ;;  %v9925_v1 = vrot.slane %v9924_v49, 4  ;;  %v24851_v11 = vcombine.low %v2601_v24, %v2615_v6  ;;  %v9953_v2 = vrot.slane %v9952_v13, 4  ;;  %v9965_v39 = vrot.slane %v9963_v61, 5  ;;  %v18758_v13 = vld [vmem:[%s23348_s16 + $0x178] sm:$0xf] }
 0x14f   : > { %20757 = vmatprep.mubr.msk.bf16.mxu1 %vm979_vm0, %v22832_v9  ;;  %21288 = vmatpush3.bf16.msra.mxu0 %v22837_v22  ;;  %v22833_v9 = vld [vmem:[%s23348_s16 + $0x128] ss:$8 sps:$4 sm:$0xff]   ;;  %v9939_v22 = vrot.slane %v9938_v23, 4  ;;  %v2631_v30 = vshrl.u32 %v17541_v0, 16  ;;  %v2619_v24 = vrot.slane %v2617_v12, 4  ;;  %v2622_v45 = vrot.slane %v2620_v7, 5 }
 0x150   : > { %21321 = vmatprep.subr.bf16.mxu0 %v24842_v3  ;;  %v9930_v5 = vsel %vm23392_vm3, %v9925_v1, %v9929_v25  ;;  %v9971_v25 = vrot.slane %v9969_v46, 5  ;;  %v2628_v34 = vrot.slane %v2626_v41, 5  ;;  %v9958_v28 = vsel %vm23392_vm3, %v9953_v2, %v9957_v54  ;;  %v18757_v23 = vld [vmem:[%s23348_s16 + $0x174] sm:$0x1]  ;;  %v22841_v12 = vld [vmem:[%s28369_s2 + $0xa8] sm:$0xff]  }
 0x151   : > { %v9966_v49 = vor.u32 %v9965_v39, %v9962_v4  ;;  %v2633_v31 = vrot.slane %v2631_v30, 4  ;;  %v2623_v37 = vor.u32 %v2622_v45, %v2619_v24  ;;  %v2634_v20 = vshll.u32 %v17541_v0, 16 }
 0x152   : > { %21258 = vmatmul.mubr.msk.bf16.gmra.mrb[8].mxu0 %vm979_vm0, %v24687_v32  ;;  %v9944_v32 = vsel %vm23392_vm3, %v9939_v22, %v9943_v10  ;;  %v2640_v43 = vshll.u32 %v17542_v48, 16  ;;  %v17546_v10 = vld [vmem:[%s23348_s16 + $0x74] sm:$0x1]  ;;  %v2645_v56 = vshrl.u32 %v17543_v26, 16  ;;  %v2648_v8 = vshll.u32 %v17543_v26, 16 }
 0x153   : > { %21261 = vmatprep.mubr.msk.bf16.mxu0 %vm979_vm0, %v24694_v16  ;;  %v24870_v16 = vcombine.low %v9930_v5, %v9944_v32  ;;  %v9967_v60 = vrot.slane %v9966_v49, 4  ;;  %v2654_v6 = vshll.u32 %v17544_v27, 16  ;;  %v2659_v1 = vshrl.u32 %v17545_v47, 16  ;;  %v18759_v26 = vld [vmem:[%s23348_s16 + $0x17c] sm:$0x1]  ;;  %v22842_v32 = vld [vmem:[%s28369_s2 + $0xb0] sm:$0xff]  }
 0x154   : > { %v2636_v40 = vrot.slane %v2634_v20, 5  ;;  %v2642_v35 = vrot.slane %v2640_v43, 5  ;;  %v2650_v4 = vrot.slane %v2648_v8, 5  ;;  %v2662_v22 = vshll.u32 %v17545_v47, 16  ;;  %v18760_v47 = vld [vmem:[%s23348_s16 + $0x180] sm:$0xf] }
 0x155   : > { %v9972_v54 = vsel %vm23392_vm3, %v9967_v60, %v9971_v25  ;;  %v2656_v0 = vrot.slane %v2654_v6, 5  ;;  %v2661_v5 = vrot.slane %v2659_v1, 4  ;;  %v2668_v41 = vshll.u32 %v17546_v10, 16  ;;  %v18762_v20 = vld [vmem:[%s23348_s16 + $0x188] sm:$0xf] }
 0x156   : > { %20758 = vmatmul.mubr.msk.bf16.gmra.mrb[28].mxu1 %vm979_vm0, %v22833_v9  ;;  %v2647_v9 = vrot.slane %v2645_v56, 4  ;;  %v24882_v61 = vcombine.low %v9958_v28, %v9972_v54  ;;  %v2637_v48 = vor.u32 %v2636_v40, %v2633_v31  ;;  %v9974_v2 = vshrl.u32 %v18756_v44, 16 }
 0x157   : > { %20769 = vmatprep.mubr.msk.bf16.mxu1 %vm979_vm0, %v24762_v57  ;;  %v2624_v57 = vrot.slane %v2623_v37, 4  ;;  %v2664_v25 = vrot.slane %v2662_v22, 5  ;;  %v9983_v30 = vshll.u32 %v18757_v23, 16  ;;  %v9988_v27 = vshrl.u32 %v18758_v13, 16  ;;  %v18761_v37 = vld [vmem:[%s23348_s16 + $0x184] sm:$0x1] }
 0x158   : > { %v2651_v7 = vor.u32 %v2650_v4, %v2647_v9  ;;  %v2638_v39 = vrot.slane %v2637_v48, 4  ;;  %v2670_v24 = vrot.slane %v2668_v41, 5  ;;  %v9976_v45 = vrot.slane %v9974_v2, 4  ;;  %v17547_v9 = vld [vmem:[%s23348_s16 + $0x78] sm:$0xf] }
 0x159   : > { %v2629_v46 = vsel %vm23392_vm3, %v2624_v57, %v2628_v34  ;;  %v2665_v28 = vor.u32 %v2664_v25, %v2661_v5  ;;  %v9985_v49 = vrot.slane %v9983_v30, 5  ;;  %v9990_v31 = vrot.slane %v9988_v27, 4  ;;  %v17548_v5 = vld [vmem:[%s23348_s16 + $0x7c] sm:$0x1] }
 0x15a   : > { %21262 = vmatmul.mubr.msk.bf16.gmra.mrb[12].mxu0 %vm979_vm0, %v24706_v59  ;;  %v9977_v59 = vshll.u32 %v18756_v44, 16  ;;  %v9991_v56 = vshll.u32 %v18758_v13, 16  ;;  %v9997_v8 = vshll.u32 %v18759_v26, 16  ;;  %v10002_v6 = vshrl.u32 %v18760_v47, 16  ;;  %v22843_v13 = vld [vmem:[%s28369_s2 + $0xb8] sm:$0xff]  }
 0x15b   : > { %21265 = vmatprep.mubr.msk.bf16.mxu0 %vm979_vm0, %v24735_v62  ;;  %v2652_v62 = vrot.slane %v2651_v7, 4  ;;  %v2666_v60 = vrot.slane %v2665_v28, 4  ;;  %v10005_v1 = vshll.u32 %v18760_v47, 16  ;;  %v10011_v40 = vshll.u32 %v18761_v37, 16  ;;  %v24931_v47 = vld [vmem:[%s28369_s2 + $0xc0] sm:$0xff]  }
 0x15c   : > { %v9979_v34 = vrot.slane %v9977_v59, 5  ;;  %v9993_v57 = vrot.slane %v9991_v56, 5  ;;  %v9999_v54 = vrot.slane %v9997_v8, 5  ;;  %v10004_v4 = vrot.slane %v10002_v6, 4  ;;  %v17550_v59 = vld [vmem:[%s23348_s16 + $0x84] sm:$0x1] }
 0x15d   : > { %v2671_v23 = vsel %vm23392_vm3, %v2666_v60, %v2670_v24  ;;  %v10013_v22 = vrot.slane %v10011_v40, 5  ;;  %v10019_v26 = vshll.u32 %v18762_v20, 16  ;;  %v2673_v25 = vshrl.u32 %v17547_v9, 16  ;;  %v17553_v37 = vld [vmem:[%s23348_s16 + $0x90] sm:$0xf] }
 0x15e   : > { %20770 = vmatmul.mubr.msk.bf16.vlgmr.msra.gmra.mrb[0].mxu1 %vm979_vm0, %v24779_v42  ;;  %v2643_v42 = vsel %vm23392_vm3, %v2638_v39, %v2642_v35  ;;  %v9980_v10 = vor.u32 %v9979_v34, %v9976_v45  ;;  %v10016_v35 = vshrl.u32 %v18762_v20, 16  ;;  %v9994_v48 = vor.u32 %v9993_v57, %v9990_v31  ;;  %v17551_v39 = vld [vmem:[%s23348_s16 + $0x88] sm:$0xf]  ;;  %v17554_v8 = vld [vmem:[%s23348_s16 + $0x94] sm:$0x1] }
 0x15f   : > { %20773 = vmatprep.mubr.msk.bf16.mxu1 %vm979_vm0, %v24832_v15  ;;  %20802 = vmatpush3.bf16.msra.mxu1 %v24712_v52  ;;  %v17599_v43 = vcombine.low %v2629_v46, %v2643_v42  ;;  %v2657_v15 = vsel %vm23392_vm3, %v2652_v62, %v2656_v0  ;;  %v18763_v52 = vld [vmem:[%s23348_s16 + $0x18c] sm:$0x1]  ;;  %v10007_v0 = vrot.slane %v10005_v1, 5  ;;  %v2676_v30 = vshll.u32 %v17547_v9, 16  ;;  %v18808_v6 = vld [vmem:[%s23348_s16 + $0x60] sm:$0xe] }
 0x160   : > { %20803 = vmatprep.subr.bf16.mxu1 %v22841_v12  ;;  %v9981_v44 = vrot.slane %v9980_v10, 4  ;;  %v17600_v46 = vcombine.low %v2657_v15, %v2671_v23  ;;  %v10018_v41 = vrot.slane %v10016_v35, 4  ;;  %v10025_v2 = vshll.u32 %v18763_v52, 16  ;;  %v17552_v62 = vld [vmem:[%s23348_s16 + $0x8c] sm:$0x1] }
 0x161   : > { %v10008_v7 = vor.u32 %v10007_v0, %v10004_v4  ;;  %v2682_v27 = vshll.u32 %v17548_v5, 16  ;;  %v10021_v45 = vrot.slane %v10019_v26, 5  ;;  %v2675_v28 = vrot.slane %v2673_v25, 4  ;;  %v18809_v35 = vld [vmem:[%s23348_s16 + $0x68] sm:$0xe] }
 0x162   : > { %21266 = vmatmul.mubr.msk.bf16.gmra.mrb[16].mxu0 %vm979_vm0, %v24747_v50  ;;  %v9986_v50 = vsel %vm23392_vm3, %v9981_v44, %v9985_v49  ;;  %v10027_v34 = vrot.slane %v10025_v2, 5  ;;  %v2678_v49 = vrot.slane %v2676_v30, 5  ;;  %v2696_v60 = vshll.u32 %v17550_v59, 16  ;;  %v18810_v0 = vld [vmem:[%s23348_s16 + $0x70] sm:$0xe] }
 0x163   : > { %20804 = vmatpush3.bf16.msra.mxu1 %v22841_v12  ;;  %21269 = vmatprep.mubr.msk.bf16.mxu0 %vm979_vm0, %v24793_v17  ;;  %v17549_v12 = vld [vmem:[%s23348_s16 + $0x80] sm:$0xf]  ;;  %v9995_v17 = vrot.slane %v9994_v48, 4  ;;  %v10009_v24 = vrot.slane %v10008_v7, 4  ;;  %v2684_v31 = vrot.slane %v2682_v27, 5  ;;  %v2701_v52 = vshrl.u32 %v17551_v39, 16 }
 0x164   : > { %20805 = vmatprep.subr.bf16.mxu1 %v22842_v32  ;;  %v2679_v10 = vor.u32 %v2678_v49, %v2675_v28  ;;  %v2690_v56 = vshll.u32 %v17549_v12, 16  ;;  %v2704_v44 = vshll.u32 %v17551_v39, 16  ;;  %v2710_v57 = vshll.u32 %v17552_v62, 16  ;;  %v18811_v48 = vld [vmem:[%s23348_s16 + $0x78] sm:$0xe] }
 0x165   : > { %v10000_v42 = vsel %vm23392_vm3, %v9995_v17, %v9999_v54  ;;  %v10014_v20 = vsel %vm23392_vm3, %v10009_v24, %v10013_v22  ;;  %v2715_v40 = vshrl.u32 %v17553_v37, 16  ;;  %v2698_v54 = vrot.slane %v2696_v60, 5  ;;  %v17555_v59 = vld [vmem:[%s23348_s16 + $0xa8] sm:$0xf]  ;;  %v24957_v27 = vld [vmem:[%s23348_s16 + $0xac] sm:$0x1] }
 0x166   : > { %20774 = vmatmul.mubr.msk.bf16.gmra.mrb[4].mxu1 %vm979_vm0, %v24851_v11  ;;  %v2687_v11 = vshrl.u32 %v17549_v12, 16  ;;  %v2680_v9 = vrot.slane %v2679_v10, 4  ;;  %v2692_v23 = vrot.slane %v2690_v56, 5  ;;  %v2703_v4 = vrot.slane %v2701_v52, 4 }
 0x167   : > { %20777 = vmatprep.mubr.msk.bf16.mxu1 %vm979_vm0, %v17599_v43  ;;  %20806 = vmatpush3.bf16.msra.mxu1 %v22842_v32  ;;  %v18786_v32 = vcombine.low %v9986_v50, %v10000_v42  ;;  %v10022_v43 = vor.u32 %v10021_v45, %v10018_v41  ;;  %v2706_v5 = vrot.slane %v2704_v44, 5  ;;  %v2717_v50 = vrot.slane %v2715_v40, 4  ;;  %v18812_v44 = vld [vmem:[%s23348_s16 + $0x80] sm:$0xe] }
 0x168   : > { %20807 = vmatprep.subr.bf16.mxu1 %v22843_v13  ;;  %v2689_v15 = vrot.slane %v2687_v11, 4  ;;  %v2718_v7 = vshll.u32 %v17553_v37, 16  ;;  %v2724_v26 = vshll.u32 %v17554_v8, 16  ;;  %v18840_v2 = vrot.slane %v18808_v6, 9  ;;  %v24991_v37 = vld [vmem:[%s23348_s16 + $0xbc] sm:$0x1] }
 0x169   : > { %v10023_v1 = vrot.slane %v10022_v43, 4  ;;  %v2707_v41 = vor.u32 %v2706_v5, %v2703_v4  ;;  %v18842_v25 = vrot.slane %v18810_v0, 9  ;;  %v18843_v30 = vrot.slane %v18811_v48, 9  ;;  %v25001_v8 = vld [vmem:[%s23348_s16 + $0xc4] sm:$0x1] }
 0x16a   : > { %21270 = vmatmul.mubr.msk.bf16.gmra.mrb[20].mxu0 %vm979_vm0, %v24816_v21  ;;  %v2693_v12 = vor.u32 %v2692_v23, %v2689_v15  ;;  %v2720_v17 = vrot.slane %v2718_v7, 5  ;;  %v2726_v24 = vrot.slane %v2724_v26, 5  ;;  %v10450_v45 = vsel %vm23924_vm6, %v18840_v2, %v10449_v33  ;;  %v18813_v23 = vld [vmem:[%s23348_s16 + $0x88] sm:$0xe]  ;;  %v18814_v5 = vld [vmem:[%s23348_s16 + $0x90] sm:$0xe] }
 0x16b   : > { %20808 = vmatpush3.bf16.msra.mxu1 %v22843_v13  ;;  %21273 = vmatprep.mubr.msk.bf16.mxu0 %vm979_vm0, %v24870_v16  ;;  %v10028_v21 = vsel %vm23392_vm3, %v10023_v1, %v10027_v34  ;;  %v2712_v13 = vrot.slane %v2710_v57, 5  ;;  %v2685_v16 = vsel %vm23392_vm3, %v2680_v9, %v2684_v31  ;;  %v2708_v62 = vrot.slane %v2707_v41, 4  ;;  %v24977_v31 = vld [vmem:[%s23348_s16 + $0xb4] sm:$0x1] }
 0x16c   : > { %20841 = vmatprep.subr.bf16.mxu1 %v24931_v47  ;;  %v24951_v22 = vcombine.low %v10014_v20, %v10028_v21  ;;  %v2694_v39 = vrot.slane %v2693_v12, 4  ;;  %v2721_v42 = vor.u32 %v2720_v17, %v2717_v50  ;;  %v24973_v49 = vsel %vm23924_vm6, %v18842_v25, %v10457_v51  ;;  %v17559_v51 = vld [vmem:[%s23348_s16 + $0xb8] sm:$0xf] }
 0x16d   : > { %v2713_v33 = vsel %vm23392_vm3, %v2708_v62, %v2712_v13  ;;  %v24987_v53 = vsel %vm23924_vm6, %v18843_v30, %v10461_v29  ;;  %v2732_v43 = vshll.u32 %v17555_v59, 16  ;;  %v2738_v15 = vshll.u32 %v24957_v27, 16  ;;  %v18815_v17 = vld [vmem:[%s23348_s16 + $0x98] sm:$0xe] }
 0x16e   : > { %20778 = vmatmul.mubr.msk.bf16.gmra.mrb[8].mxu1 %vm979_vm0, %v17600_v46  ;;  %v18841_v46 = vrot.slane %v18809_v35, 9  ;;  %v2699_v11 = vsel %vm23392_vm3, %v2694_v39, %v2698_v54  ;;  %v2722_v20 = vrot.slane %v2721_v42, 4  ;;  %v2743_v10 = vshrl.u32 %v17557_v36, 16 }
 0x16f   : > { %v17601_v14 = vcombine.low %v2685_v16, %v2699_v11  ;;  %v2746_v56 = vshll.u32 %v17557_v36, 16  ;;  %v2752_v60 = vshll.u32 %v24977_v31, 16  ;;  %v2734_v52 = vrot.slane %v2732_v43, 5  ;;  %v23066_v11 = vld [vmem:[%s23348_s16 + $0x8c] sm:$0x1] }
 0x170   : > { %v10454_v34 = vsel %vm23924_vm6, %v18841_v46, %v10453_v19  ;;  %v2729_v19 = vshrl.u32 %v17555_v59, 16  ;;  %v2740_v6 = vrot.slane %v2738_v15, 5  ;;  %v2757_v1 = vshrl.u32 %v17559_v51, 16  ;;  %v23068_v43 = vld [vmem:[%s23348_s16 + $0x9c] sm:$0x1] }
 0x171   : > { %v18880_v28 = vcombine.low %v10450_v45, %v10454_v34  ;;  %20781 = vmatprep.mubr.msk.bf16.mxu1 %vm979_vm0, %v17601_v14  ;;  %v2745_v40 = vrot.slane %v2743_v10, 4  ;;  %v2748_v35 = vrot.slane %v2746_v56, 5  ;;  %v2754_v9 = vrot.slane %v2752_v60, 5 }
 0x172   : > { %21274 = vmatmul.mubr.msk.bf16.gmra.mrb[24].mxu0 %vm979_vm0, %v24882_v61  ;;  %v18881_v61 = vcombine.low %v24973_v49, %v24987_v53  ;;  %v2731_v29 = vrot.slane %v2729_v19, 4  ;;  %v2759_v4 = vrot.slane %v2757_v1, 4  ;;  %v2760_v0 = vshll.u32 %v17559_v51, 16  ;;  %v25027_v51 = vld [vmem:[%s23348_s16 + $0xcc] sm:$0x1]  ;;  %v22844_v49 = vld [vmem:[%s28369_s2 + $0x250] sm:$0xff]  }
 0x173   : > { %21277 = vmatprep.mubr.msk.bf16.mxu0 %vm979_vm0, %v18786_v32  ;;  %v2727_v32 = vsel %vm23392_vm3, %v2722_v20, %v2726_v24  ;;  %v2766_v21 = vshll.u32 %v24991_v37, 16  ;;  %v2749_v13 = vor.u32 %v2748_v35, %v2745_v40  ;;  %v2771_v50 = vshrl.u32 %v17561_v18, 16  ;;  %v17563_v24 = vld [vmem:[%s23348_s16 + $0xc8] sm:$0xf] }
 0x174   : > { %v17602_v57 = vcombine.low %v2713_v33, %v2727_v32  ;;  %v2735_v54 = vor.u32 %v2734_v52, %v2731_v29  ;;  %v2774_v48 = vshll.u32 %v17561_v18, 16  ;;  %v2780_v16 = vshll.u32 %v25001_v8, 16  ;;  %v23067_v33 = vld [vmem:[%s23348_s16 + $0x94] sm:$0x1]  ;;  %v17565_v18 = vld [vmem:[%s23348_s16 + $0xd0] sm:$0xf] }
 0x175   : > { %v2762_v7 = vrot.slane %v2760_v0, 5  ;;  %v2768_v41 = vrot.slane %v2766_v21, 5  ;;  %v18844_v26 = vrot.slane %v18812_v44, 9  ;;  %v2750_v2 = vrot.slane %v2749_v13, 4  ;;  %v25041_v32 = vld [vmem:[%s23348_s16 + $0xd4] sm:$0x1] }
 0x176   : > { %20782 = vmatmul.mubr.msk.bf16.gmra.mrb[12].mxu1 %vm979_vm0, %v17602_v57  ;;  %v2736_v12 = vrot.slane %v2735_v54, 4  ;;  %v2773_v46 = vrot.slane %v2771_v50, 4  ;;  %v2776_v59 = vrot.slane %v2774_v48, 5  ;;  %v2782_v39 = vrot.slane %v2780_v16, 5  ;;  %v22839_v1 = vld [vmem:[%s28369_s2 + $0x248] sm:$0xff]  }
 0x177   : > { %v2763_v30 = vor.u32 %v2762_v7, %v2759_v4  ;;  %v10466_v62 = vsel %vm23924_vm6, %v18844_v26, %v10465_v55  ;;  %v2755_v45 = vsel %vm23392_vm3, %v2750_v2, %v2754_v9  ;;  %v10469_v42 = vrot.slane %v23066_v11, 5  ;;  %v25053_v9 = vld [vmem:[%s23348_s16 + $0xdc] sm:$0x1]  ;;  %v18816_v13 = vld [vmem:[%s23348_s16 + $0xb0] sm:$0xe] }
 0x178   : > { %v2741_v25 = vsel %vm23392_vm3, %v2736_v12, %v2740_v6  ;;  %v2777_v34 = vor.u32 %v2776_v59, %v2773_v46  ;;  %v10473_v58 = vrot.slane %v23067_v33, 5  ;;  %v18847_v19 = vrot.slane %v18815_v17, 9  ;;  %v17567_v6 = vld [vmem:[%s23348_s16 + $0xd8] sm:$0xf]  ;;  %v18819_v33 = vld [vmem:[%s23348_s16 + $0xc8] sm:$0xe] }
 0x179   : > { %v17603_v36 = vcombine.low %v2741_v25, %v2755_v45  ;;  %v2764_v14 = vrot.slane %v2763_v30, 4  ;;  %v10477_v15 = vrot.slane %v23068_v43, 5  ;;  %v2785_v29 = vshrl.u32 %v17563_v24, 16  ;;  %v18817_v30 = vld [vmem:[%s23348_s16 + $0xb8] sm:$0xe] }
 0x17a   : > { %21278 = vmatmul.mubr.msk.bf16.gmra.mrb[28].mxu0 %vm979_vm0, %v24951_v22  ;;  %v18845_v22 = vrot.slane %v18813_v23, 9  ;;  %v2778_v55 = vrot.slane %v2777_v34, 4  ;;  %v2788_v52 = vshll.u32 %v17563_v24, 16  ;;  %v2794_v35 = vshll.u32 %v25027_v51, 16  ;;  %v17569_v23 = vld [vmem:[%s23348_s16 + $0xe0] sm:$0xf] }
 0x17b   : > { %21289 = vmatprep.mubr.msk.bf16.mxu0 %vm979_vm0, %v18880_v28  ;;  %v18846_v28 = vrot.slane %v18814_v5, 9  ;;  %20785 = vmatprep.mubr.msk.bf16.mxu1 %vm979_vm0, %v17603_v36  ;;  %v2769_v10 = vsel %vm23392_vm3, %v2764_v14, %v2768_v41  ;;  %v10478_v57 = vsel %vm23924_vm6, %v18847_v19, %v10477_v15  ;;  %v2787_v40 = vrot.slane %v2785_v29, 4  ;;  %v25058_v5 = vld [vmem:[%s23348_s16 + $0xe4] sm:$0x1]  ;;  %v18818_v34 = vld [vmem:[%s23348_s16 + $0xc0] sm:$0xe] }
 0x17c   : > { %v10470_v20 = vsel %vm23924_vm6, %v18845_v22, %v10469_v42  ;;  %v2783_v44 = vsel %vm23392_vm3, %v2778_v55, %v2782_v39  ;;  %v2790_v0 = vrot.slane %v2788_v52, 5  ;;  %v2799_v21 = vshrl.u32 %v17565_v18, 16  ;;  %v23069_v36 = vld [vmem:[%s23348_s16 + $0xb4] sm:$0x1]  ;;  %v23070_v43 = vld [vmem:[%s23348_s16 + $0xbc] sm:$0x1] }
 0x17d   : > { %v18882_v56 = vcombine.low %v10466_v62, %v10470_v20  ;;  %v25038_v60 = vsel %vm23924_vm6, %v18846_v28, %v10473_v58  ;;  %v17604_v54 = vcombine.low %v2769_v10, %v2783_v44  ;;  %v2796_v50 = vrot.slane %v2794_v35, 5  ;;  %v22845_v58 = vld [vmem:[%s28369_s2 + $0x258] sm:$0xff]   ;;  %v17573_v35 = vld [vmem:[%s23348_s16 + $0x100] sm:$0xf] }
 0x17e   : > { %v18883_v4 = vcombine.low %v25038_v60, %v10478_v57  ;;  %v2802_v48 = vshll.u32 %v17565_v18, 16  ;;  %v2808_v16 = vshll.u32 %v25041_v32, 16  ;;  %v2813_v12 = vshrl.u32 %v17567_v6, 16  ;;  %v17571_v60 = vld [vmem:[%s23348_s16 + $0xf8] sm:$0xf] }
 0x17f   : > { %20786 = vmatmul.mubr.msk.bf16.gmra.mrb[16].mxu1 %vm979_vm0, %v17604_v54  ;;  %v2791_v7 = vor.u32 %v2790_v0, %v2787_v40  ;;  %v2801_v41 = vrot.slane %v2799_v21, 4  ;;  %v2816_v26 = vshll.u32 %v17567_v6, 16  ;;  %v2822_v2 = vshll.u32 %v25053_v9, 16  ;;  %v25094_v40 = vld [vmem:[%s23348_s16 + $0xfc] sm:$0x1] }
 0x180   : > { %v2804_v53 = vrot.slane %v2802_v48, 5  ;;  %v2815_v46 = vrot.slane %v2813_v12, 4  ;;  %v2830_v25 = vshll.u32 %v17569_v23, 16  ;;  %v2836_v24 = vshll.u32 %v25058_v5, 16  ;;  %v25103_v48 = vld [vmem:[%s23348_s16 + $0x104] sm:$0x1] }
 0x181   : > { %v2792_v59 = vrot.slane %v2791_v7, 4  ;;  %v2818_v39 = vrot.slane %v2816_v26, 5  ;;  %v2824_v17 = vrot.slane %v2822_v2, 5  ;;  %v18848_v45 = vrot.slane %v18816_v13, 9  ;;  %v23072_v13 = vld [vmem:[%s23348_s16 + $0xcc] sm:$0x1] }
 0x182   : > { %21290 = vmatmul.mubr.msk.bf16.vlgmr.msra.gmra.mrb[0].mxu0 %vm979_vm0, %v18881_v61  ;;  %v2810_v61 = vrot.slane %v2808_v16, 5  ;;  %v2805_v62 = vor.u32 %v2804_v53, %v2801_v41  ;;  %v2832_v28 = vrot.slane %v2830_v25, 5  ;;  %v10481_v14 = vrot.slane %v23069_v36, 5  ;;  %v25108_v7 = vld [vmem:[%s28369_s2 + $0x260] sm:$0xff]   ;;  %v17575_v53 = vld [vmem:[%s23348_s16 + $0x108] sm:$0xf] }
 0x183   : > { %21322 = vmatpush3.bf16.msra.mxu0 %v24842_v3  ;;  %21293 = vmatprep.mubr.msk.bf16.mxu0 %vm979_vm0, %v18882_v56  ;;  %v2827_v3 = vshrl.u32 %v17569_v23, 16  ;;  %v2797_v11 = vsel %vm23392_vm3, %v2792_v59, %v2796_v50  ;;  %v2819_v42 = vor.u32 %v2818_v39, %v2815_v46  ;;  %v2838_v55 = vrot.slane %v2836_v24, 5  ;;  %v25119_v39 = vld [vmem:[%s23348_s16 + $0x10c] sm:$0x1] }
 0x184   : > { %21323 = vmatprep.subr.bf16.mxu0 %v22839_v1  ;;  %v2806_v19 = vrot.slane %v2805_v62, 4  ;;  %v18849_v20 = vrot.slane %v18817_v30, 9  ;;  %v10485_v15 = vrot.slane %v23070_v43, 5  ;;  %v10482_v10 = vsel %vm23924_vm6, %v18848_v45, %v10481_v14 }
 0x185   : > { %v2829_v22 = vrot.slane %v2827_v3, 4  ;;  %v2820_v18 = vrot.slane %v2819_v42, 4  ;;  %v18850_v56 = vrot.slane %v18818_v34, 9  ;;  %v18851_v57 = vrot.slane %v18819_v33, 9  ;;  %v25125_v34 = vld [vmem:[%s23348_s16 + $0x114] sm:$0x1] }
 0x186   : > { %v2811_v52 = vsel %vm23392_vm3, %v2806_v19, %v2810_v61  ;;  %v10486_v6 = vsel %vm23924_vm6, %v18849_v20, %v10485_v15  ;;  %v10493_v50 = vrot.slane %v23072_v13, 5  ;;  %v2841_v16 = vshrl.u32 %v17571_v60, 16  ;;  %v18820_v19 = vld [vmem:[%s23348_s16 + $0xd0] sm:$0xe]  ;;  %v18821_v15 = vld [vmem:[%s23348_s16 + $0xd8] sm:$0xe] }
 0x187   : > { %21324 = vmatpush3.bf16.msra.mxu0 %v22839_v1  ;;  %v2833_v29 = vor.u32 %v2832_v28, %v2829_v22  ;;  %v23071_v1 = vld [vmem:[%s23348_s16 + $0xc4] sm:$0x1]  ;;  %v17605_v23 = vcombine.low %v2797_v11, %v2811_v52  ;;  %v2825_v54 = vsel %vm23392_vm3, %v2820_v18, %v2824_v17  ;;  %v18884_v21 = vcombine.low %v10482_v10, %v10486_v6  ;;  %v17577_v17 = vld [vmem:[%s23348_s16 + $0x110] sm:$0xf] }
 0x188   : > { %21325 = vmatprep.subr.bf16.mxu0 %v22844_v49  ;;  %v10489_v44 = vrot.slane %v23071_v1, 5  ;;  %v2844_v12 = vshll.u32 %v17571_v60, 16  ;;  %v2850_v26 = vshll.u32 %v25094_v40, 16  ;;  %v2855_v2 = vshrl.u32 %v17573_v35, 16 }
 0x189   : > { %v2834_v0 = vrot.slane %v2833_v29, 4  ;;  %20789 = vmatprep.mubr.msk.bf16.mxu1 %vm979_vm0, %v17605_v23  ;;  %v10494_v46 = vsel %vm23924_vm6, %v18851_v57, %v10493_v50  ;;  %v2843_v3 = vrot.slane %v2841_v16, 4  ;;  %v2864_v45 = vshll.u32 %v25103_v48, 16  ;;  %v18823_v57 = vld [vmem:[%s23348_s16 + $0xe8] sm:$0xe] }
 0x18a   : > { %21294 = vmatmul.mubr.msk.bf16.gmra.mrb[4].mxu0 %vm979_vm0, %v18883_v4  ;;  %v10490_v4 = vsel %vm23924_vm6, %v18850_v56, %v10489_v44  ;;  %v2846_v59 = vrot.slane %v2844_v12, 5  ;;  %v2852_v30 = vrot.slane %v2850_v26, 5  ;;  %v2857_v62 = vrot.slane %v2855_v2, 4  ;;  %v18822_v44 = vld [vmem:[%s23348_s16 + $0xe0] sm:$0xe] }
 0x18b   : > { %21326 = vmatpush3.bf16.msra.mxu0 %v22844_v49  ;;  %v2839_v41 = vsel %vm23392_vm3, %v2834_v0, %v2838_v55  ;;  %21297 = vmatprep.mubr.msk.bf16.mxu0 %vm979_vm0, %v18884_v21  ;;  %v2858_v49 = vshll.u32 %v17573_v35, 16  ;;  %v18885_v25 = vcombine.low %v10490_v4, %v10494_v46  ;;  %v2869_v11 = vshrl.u32 %v17575_v53, 16  ;;  %v23074_v16 = vld [vmem:[%s23348_s16 + $0xdc] sm:$0x1] }
 0x18c   : > { %21327 = vmatprep.subr.bf16.mxu0 %v22845_v58  ;;  %v17606_v61 = vcombine.low %v2825_v54, %v2839_v41  ;;  %v2847_v24 = vor.u32 %v2846_v59, %v2843_v3  ;;  %v2872_v42 = vshll.u32 %v17575_v53, 16  ;;  %v2878_v36 = vshll.u32 %v25119_v39, 16  ;;  %v23073_v54 = vld [vmem:[%s23348_s16 + $0xd4] sm:$0x1]  ;;  %v17579_v41 = vld [vmem:[%s23348_s16 + $0x118] sm:$0xf] }
 0x18d   : > { %v2860_v22 = vrot.slane %v2858_v49, 5  ;;  %v2883_v14 = vshrl.u32 %v17577_v17, 16  ;;  %v2886_v33 = vshll.u32 %v17577_v17, 16  ;;  %v2866_v55 = vrot.slane %v2864_v45, 5  ;;  %v23075_v53 = vld [vmem:[%s23348_s16 + $0xe4] sm:$0x1] }
 0x18e   : > { %20790 = vmatmul.mubr.msk.bf16.gmra.mrb[20].mxu1 %vm979_vm0, %v17606_v61  ;;  %v2871_v20 = vrot.slane %v2869_v11, 4  ;;  %v2874_v43 = vrot.slane %v2872_v42, 5  ;;  %v2880_v29 = vrot.slane %v2878_v36, 5  ;;  %v2892_v6 = vshll.u32 %v25125_v34, 16  ;;  %v25146_v46 = vld [vmem:[%s23348_s16 + $0x11c] sm:$0x1] }
 0x18f   : > { %21328 = vmatpush3.bf16.msra.mxu0 %v22845_v58  ;;  %v2861_v28 = vor.u32 %v2860_v22, %v2857_v62  ;;  %v2848_v58 = vrot.slane %v2847_v24, 4  ;;  %v2885_v10 = vrot.slane %v2883_v14, 4  ;;  %v2888_v56 = vrot.slane %v2886_v33, 5  ;;  %v17581_v62 = vld [vmem:[%s23348_s16 + $0x120] sm:$0xf] }
 0x190   : > { %21361 = vmatprep.subr.bf16.mxu0 %v25108_v7  ;;  %v2875_v52 = vor.u32 %v2874_v43, %v2871_v20  ;;  %v18852_v1 = vrot.slane %v18820_v19, 9  ;;  %v10497_v0 = vrot.slane %v23073_v54, 5  ;;  %v18853_v21 = vrot.slane %v18821_v15, 9  ;;  %v25160_v11 = vld [vmem:[%s23348_s16 + $0x124] sm:$0x1] }
 0x191   : > { %v2862_v18 = vrot.slane %v2861_v28, 4  ;;  %v2853_v60 = vsel %vm23392_vm3, %v2848_v58, %v2852_v30  ;;  %v2889_v23 = vor.u32 %v2888_v56, %v2885_v10  ;;  %v2894_v50 = vrot.slane %v2892_v6, 5  ;;  %v17583_v28 = vld [vmem:[%s23348_s16 + $0x128] sm:$0xf]  ;;  %v25167_v58 = vld [vmem:[%s23348_s16 + $0x12c] sm:$0x1] }
 0x192   : > { %21298 = vmatmul.mubr.msk.bf16.gmra.mrb[8].mxu0 %vm979_vm0, %v18885_v25  ;;  %v2876_v13 = vrot.slane %v2875_v52, 4  ;;  %v10501_v12 = vrot.slane %v23074_v16, 5  ;;  %v10498_v2 = vsel %vm23924_vm6, %v18852_v1, %v10497_v0  ;;  %v18854_v49 = vrot.slane %v18822_v44, 9  ;;  %v23076_v25 = vld [vmem:[%s23348_s16 + $0xec] sm:$0x1] }
 0x193   : > { %v2867_v35 = vsel %vm23392_vm3, %v2862_v18, %v2866_v55  ;;  %v2890_v26 = vrot.slane %v2889_v23, 4  ;;  %v10505_v61 = vrot.slane %v23075_v53, 5  ;;  %v18855_v17 = vrot.slane %v18823_v57, 9  ;;  %v17585_v18 = vld [vmem:[%s23348_s16 + $0x130] sm:$0xf] }
 0x194   : > { %v17607_v4 = vcombine.low %v2853_v60, %v2867_v35  ;;  %v2881_v3 = vsel %vm23392_vm3, %v2876_v13, %v2880_v29  ;;  %v10502_v59 = vsel %vm23924_vm6, %v18853_v21, %v10501_v12  ;;  %v10509_v30 = vrot.slane %v23076_v25, 5  ;;  %v25174_v60 = vld [vmem:[%s23348_s16 + $0x134] sm:$0x1]  ;;  %v18824_v35 = vld [vmem:[%s23348_s16 + $0x100] sm:$0xe] }
 0x195   : > { %v2895_v22 = vsel %vm23392_vm3, %v2890_v26, %v2894_v50  ;;  %v18886_v24 = vcombine.low %v10498_v2, %v10502_v59  ;;  %v10506_v45 = vsel %vm23924_vm6, %v18854_v49, %v10505_v61  ;;  %v2897_v42 = vshrl.u32 %v17579_v41, 16  ;;  %v18827_v61 = vld [vmem:[%s23348_s16 + $0x118] sm:$0xe]  ;;  %v23077_v25 = vld [vmem:[%s23348_s16 + $0x104] sm:$0x1] }
 0x196   : > { %20793 = vmatprep.mubr.msk.bf16.mxu1 %vm979_vm0, %v17607_v4  ;;  %v17608_v36 = vcombine.low %v2881_v3, %v2895_v22  ;;  %v10510_v14 = vsel %vm23924_vm6, %v18855_v17, %v10509_v30  ;;  %v2900_v33 = vshll.u32 %v17579_v41, 16  ;;  %v2906_v19 = vshll.u32 %v25146_v46, 16  ;;  %v18825_v4 = vld [vmem:[%s23348_s16 + $0x108] sm:$0xe]  ;;  %v18826_v41 = vld [vmem:[%s23348_s16 + $0x110] sm:$0xe] }
 0x197   : > { %21301 = vmatprep.mubr.msk.bf16.mxu0 %vm979_vm0, %v18886_v24  ;;  %v18887_v55 = vcombine.low %v10506_v45, %v10510_v14  ;;  %v2899_v20 = vrot.slane %v2897_v42, 4  ;;  %v2911_v43 = vshrl.u32 %v17581_v62, 16  ;;  %v2914_v15 = vshll.u32 %v17581_v62, 16  ;;  %v17631_v62 = vld [vmem:[%s23348_s16 + $0x8] sm:$0xe] }
 0x198   : > { %20794 = vmatmul.mubr.msk.bf16.gmra.mrb[24].mxu1 %vm979_vm0, %v17608_v36  ;;  %v2902_v29 = vrot.slane %v2900_v33, 5  ;;  %v2908_v10 = vrot.slane %v2906_v19, 5  ;;  %v2920_v56 = vshll.u32 %v25160_v11, 16  ;;  %v2925_v52 = vshrl.u32 %v17583_v28, 16  ;;  %v23078_v42 = vld [vmem:[%s23348_s16 + $0x10c] sm:$0x1] }
 0x199   : > { %v2913_v6 = vrot.slane %v2911_v43, 4  ;;  %v2916_v1 = vrot.slane %v2914_v15, 5  ;;  %v2928_v44 = vshll.u32 %v17583_v28, 16  ;;  %v2934_v57 = vshll.u32 %v25167_v58, 16  ;;  %v17632_v36 = vld [vmem:[%s23348_s16 + $0x10] sm:$0xe] }
 0x19a   : > { %21302 = vmatmul.mubr.msk.bf16.gmra.mrb[12].mxu0 %vm979_vm0, %v18887_v55  ;;  %v2903_v23 = vor.u32 %v2902_v29, %v2899_v20  ;;  %v2922_v54 = vrot.slane %v2920_v56, 5  ;;  %v2927_v0 = vrot.slane %v2925_v52, 4  ;;  %v2939_v21 = vshrl.u32 %v17585_v18, 16  ;;  %v17633_v20 = vld [vmem:[%s23348_s16 + $0x18] sm:$0xe] }
 0x19b   : > { %v2917_v13 = vor.u32 %v2916_v1, %v2913_v6  ;;  %v2930_v50 = vrot.slane %v2928_v44, 5  ;;  %v2936_v16 = vrot.slane %v2934_v57, 5  ;;  %v2942_v12 = vshll.u32 %v17585_v18, 16  ;;  %v23079_v29 = vld [vmem:[%s23348_s16 + $0x114] sm:$0x1] }
 0x19c   : > { %v2904_v26 = vrot.slane %v2903_v23, 4  ;;  %v2941_v2 = vrot.slane %v2939_v21, 4  ;;  %v2948_v49 = vshll.u32 %v25174_v60, 16  ;;  %v18856_v53 = vrot.slane %v18824_v35, 9  ;;  %v17634_v44 = vld [vmem:[%s23348_s16 + $0x20] sm:$0xe] }
 0x19d   : > { %v2918_v3 = vrot.slane %v2917_v13, 4  ;;  %v2931_v59 = vor.u32 %v2930_v50, %v2927_v0  ;;  %v2944_v17 = vrot.slane %v2942_v12, 5  ;;  %v10513_v30 = vrot.slane %v23077_v25, 5  ;;  %v18828_v57 = vld [vmem:[%s23348_s16 + $0x120] sm:$0xe] }
 0x19e   : > { %v2909_v22 = vsel %vm23392_vm3, %v2904_v26, %v2908_v10  ;;  %v2950_v24 = vrot.slane %v2948_v49, 5  ;;  %v18857_v45 = vrot.slane %v18825_v4, 9  ;;  %v10517_v28 = vrot.slane %v23078_v42, 5  ;;  %v23080_v23 = vld [vmem:[%s23348_s16 + $0x11c] sm:$0x1] }
 0x19f   : > { %v2923_v14 = vsel %vm23392_vm3, %v2918_v3, %v2922_v54  ;;  %v2932_v33 = vrot.slane %v2931_v59, 4  ;;  %v2945_v19 = vor.u32 %v2944_v17, %v2941_v2  ;;  %v10514_v55 = vsel %vm23924_vm6, %v18856_v53, %v10513_v30  ;;  %v23081_v21 = vld [vmem:[%s23348_s16 + $0xc] sm:$0x1]  ;;  %v18829_v13 = vld [vmem:[%s23348_s16 + $0x128] sm:$0xe] }
 0x1a0   : > { %v17609_v43 = vcombine.low %v2909_v22, %v2923_v14  ;;  %v10518_v15 = vsel %vm23924_vm6, %v18857_v45, %v10517_v28  ;;  %v18858_v18 = vrot.slane %v18826_v41, 9  ;;  %v10521_v10 = vrot.slane %v23079_v29, 5  ;;  %v18830_v50 = vld [vmem:[%s23348_s16 + $0x130] sm:$0xe]  ;;  %v23082_v41 = vld [vmem:[%s23348_s16 + $0x14] sm:$0x1] }
 0x1a1   : > { %v2937_v56 = vsel %vm23392_vm3, %v2932_v33, %v2936_v16  ;;  %v2946_v52 = vrot.slane %v2945_v19, 4  ;;  %v18888_v6 = vcombine.low %v10514_v55, %v10518_v15  ;;  %v18859_v1 = vrot.slane %v18827_v61, 9  ;;  %v18831_v49 = vld [vmem:[%s23348_s16 + $0x138] sm:$0xe]  ;;  %v23083_v59 = vld [vmem:[%s23348_s16 + $0x1c] sm:$0x1] }
 0x1a2   : > { %20797 = vmatprep.mubr.msk.bf16.mxu1 %vm979_vm0, %v17609_v43  ;;  %v10522_v35 = vsel %vm23924_vm6, %v18858_v18, %v10521_v10  ;;  %v10525_v54 = vrot.slane %v23080_v23, 5  ;;  %v17663_v0 = vrot.slane %v17631_v62, 9  ;;  %v3372_v4 = vrot.slane %v23081_v21, 5  ;;  %v23084_v22 = vld [vmem:[%s23348_s16 + $0x24] sm:$0x1] }
 0x1a3   : > { %v2951_v16 = vsel %vm23392_vm3, %v2946_v52, %v2950_v24  ;;  %21305 = vmatprep.mubr.msk.bf16.mxu0 %vm979_vm0, %v18888_v6  ;;  %v17664_v12 = vrot.slane %v17632_v36, 9  ;;  %v3376_v26 = vrot.slane %v23082_v41, 5  ;;  %v17665_v2 = vrot.slane %v17633_v20, 9  ;;  %v17635_v45 = vld [vmem:[%s23348_s16 + $0x28] sm:$0xe] }
 0x1a4   : > { %v17610_v53 = vcombine.low %v2937_v56, %v2951_v16  ;;  %v10526_v61 = vsel %vm23924_vm6, %v18859_v1, %v10525_v54  ;;  %v3373_v3 = vsel %vm23924_vm6, %v17663_v0, %v3372_v4  ;;  %v3380_v17 = vrot.slane %v23083_v59, 5  ;;  %v23085_v14 = vld [vmem:[%s23348_s16 + $0x124] sm:$0x1]  ;;  %v17636_v19 = vld [vmem:[%s23348_s16 + $0x30] sm:$0xe] }
 0x1a5   : > { %v18889_v25 = vcombine.low %v10522_v35, %v10526_v61  ;;  %v3377_v30 = vsel %vm23924_vm6, %v17664_v12, %v3376_v26  ;;  %v17666_v62 = vrot.slane %v17634_v44, 9  ;;  %v3384_v24 = vrot.slane %v23084_v22, 5  ;;  %v23086_v43 = vld [vmem:[%s23348_s16 + $0x12c] sm:$0x1]  ;;  %v17637_v29 = vld [vmem:[%s23348_s16 + $0x38] sm:$0xe] }
 0x1a6   : > { %20798 = vmatmul.mubr.msk.bf16.gmra.mrb[28].mxu1 %vm979_vm0, %v17610_v53  ;;  %v17703_v42 = vcombine.low %v3373_v3, %v3377_v30  ;;  %v3381_v28 = vsel %vm23924_vm6, %v17665_v2, %v3380_v17  ;;  %v18860_v36 = vrot.slane %v18828_v57, 9  ;;  %v10529_v33 = vrot.slane %v23085_v14, 5  ;;  %v23087_v52 = vld [vmem:[%s23348_s16 + $0x134] sm:$0x1]  ;;  %v17638_v44 = vld [vmem:[%s23348_s16 + $0x40] sm:$0xe] }
 0x1a7   : > { %21306 = vmatmul.mubr.msk.bf16.gmra.mrb[16].mxu0 %vm979_vm0, %v18889_v25  ;;  %v3385_v55 = vsel %vm23924_vm6, %v17666_v62, %v3384_v24  ;;  %v18861_v20 = vrot.slane %v18829_v13, 9  ;;  %v10533_v15 = vrot.slane %v23086_v43, 5  ;;  %v18862_v18 = vrot.slane %v18830_v50, 9  ;;  %v18832_v57 = vld [vmem:[%s23348_s16 + $0x150] sm:$0xe]  ;;  %v22855_v30 = vld [vmem:[%s28369_s2 + $0xc8] sm:$0xff]  }
 0x1a8   : > { %20809 = vmatprep.mubr.msk.bf16.mxu1 %vm979_vm0, %v17703_v42  ;;  %v17704_v10 = vcombine.low %v3381_v28, %v3385_v55  ;;  %v10530_v56 = vsel %vm23924_vm6, %v18860_v36, %v10529_v33  ;;  %v10537_v6 = vrot.slane %v23087_v52, 5  ;;  %v18863_v1 = vrot.slane %v18831_v49, 9  ;;  %v23088_v23 = vld [vmem:[%s23348_s16 + $0x13c] sm:$0x1]  ;;  %v23089_v21 = vld [vmem:[%s23348_s16 + $0x2c] sm:$0x1] }
 0x1a9   : > { %v10534_v35 = vsel %vm23924_vm6, %v18861_v20, %v10533_v15  ;;  %v10541_v54 = vrot.slane %v23088_v23, 5  ;;  %v17667_v0 = vrot.slane %v17635_v45, 9  ;;  %v3388_v4 = vrot.slane %v23089_v21, 5  ;;  %v18833_v13 = vld [vmem:[%s23348_s16 + $0x158] sm:$0xe] }
 0x1aa   : > { %v18834_v50 = vld [vmem:[%s23348_s16 + $0x160] sm:$0xe]  ;;  %v18890_v16 = vcombine.low %v10530_v56, %v10534_v35  ;;  %v10538_v12 = vsel %vm23924_vm6, %v18862_v18, %v10537_v6  ;;  %v17668_v41 = vrot.slane %v17636_v19, 9  ;;  %v23090_v26 = vld [vmem:[%s23348_s16 + $0x34] sm:$0x1]  ;;  %v17669_v3 = vrot.slane %v17637_v29, 9 }
 0x1ab   : > { %v3392_v2 = vrot.slane %v23090_v26, 5  ;;  %v18835_v49 = vld [vmem:[%s23348_s16 + $0x168] sm:$0xe]  ;;  %v10542_v53 = vsel %vm23924_vm6, %v18863_v1, %v10541_v54  ;;  %v3389_v61 = vsel %vm23924_vm6, %v17667_v0, %v3388_v4  ;;  %v23091_v59 = vld [vmem:[%s23348_s16 + $0x3c] sm:$0x1]  ;;  %v17670_v24 = vrot.slane %v17638_v44, 9 }
 0x1ac   : > { %v3396_v17 = vrot.slane %v23091_v59, 5  ;;  %v17639_v25 = vld [vmem:[%s23348_s16 + $0x58] sm:$0xe]  ;;  %21309 = vmatprep.mubr.msk.bf16.mxu0 %vm979_vm0, %v18890_v16  ;;  %v18891_v62 = vcombine.low %v10538_v12, %v10542_v53  ;;  %v23092_v45 = vld [vmem:[%s23348_s16 + $0x44] sm:$0x1]  ;;  %v18864_v33 = vrot.slane %v18832_v57, 9 }
 0x1ad   : > { %v3393_v22 = vsel %vm23924_vm6, %v17668_v41, %v3392_v2  ;;  %v3400_v42 = vrot.slane %v23092_v45, 5  ;;  %v17640_v28 = vld [vmem:[%s23348_s16 + $0x60] sm:$0xe]  ;;  %v23093_v19 = vld [vmem:[%s23348_s16 + $0x154] sm:$0x1]  ;;  %v18865_v43 = vrot.slane %v18833_v13, 9 }
 0x1ae   : > { %v17705_v36 = vcombine.low %v3389_v61, %v3393_v22  ;;  %v25264_v14 = vsel %vm23924_vm6, %v17669_v3, %v3396_v17  ;;  %v10545_v55 = vrot.slane %v23093_v19, 5  ;;  %20810 = vmatmul.mubr.msk.bf16.vlgmr.msra.gmra.mrb[0].mxu1 %vm979_vm0, %v17704_v10  ;;  %v23094_v15 = vld [vmem:[%s23348_s16 + $0x15c] sm:$0x1]  ;;  %v18866_v29 = vrot.slane %v18834_v50, 9  ;;  %v17641_v56 = vld [vmem:[%s23348_s16 + $0x68] sm:$0xe] }
 0x1af   : > { %v3401_v20 = vsel %vm23924_vm6, %v17670_v24, %v3400_v42  ;;  %v10549_v18 = vrot.slane %v23094_v15, 5  ;;  %21310 = vmatmul.mubr.msk.bf16.gmra.mrb[20].mxu0 %vm979_vm0, %v18891_v62  ;;  %v23095_v6 = vld [vmem:[%s23348_s16 + $0x164] sm:$0x1]  ;;  %v18867_v44 = vrot.slane %v18835_v49, 9  ;;  %v17642_v57 = vld [vmem:[%s23348_s16 + $0x70] sm:$0xe]  ;;  %20842 = vmatpush3.bf16.msra.mxu1 %v24931_v47 }
 0x1b0   : > { %20813 = vmatprep.mubr.msk.bf16.mxu1 %vm979_vm0, %v17705_v36  ;;  %v17706_v52 = vcombine.low %v25264_v14, %v3401_v20  ;;  %v10546_v10 = vsel %vm23924_vm6, %v18864_v33, %v10545_v55  ;;  %v10553_v1 = vrot.slane %v23095_v6, 5  ;;  %v18836_v35 = vld [vmem:[%s23348_s16 + $0x170] sm:$0xe]  ;;  %v23096_v54 = vld [vmem:[%s23348_s16 + $0x16c] sm:$0x1]  ;;  %v17671_v21 = vrot.slane %v17639_v25, 9  ;;  %20843 = vmatprep.subr.bf16.mxu1 %v22855_v30 }
 0x1b1   : > { %v10550_v23 = vsel %vm23924_vm6, %v18865_v43, %v10549_v18  ;;  %v10557_v0 = vrot.slane %v23096_v54, 5  ;;  %v23097_v4 = vld [vmem:[%s23348_s16 + $0x5c] sm:$0x1]  ;;  %v18837_v50 = vld [vmem:[%s23348_s16 + $0x178] sm:$0xe]  ;;  %v22858_v12 = vld [vmem:[%s28369_s2 + $0xd0] sm:$0xff]  }
 0x1b2   : > { %v3404_v13 = vrot.slane %v23097_v4, 5  ;;  %v18838_v16 = vld [vmem:[%s23348_s16 + $0x180] sm:$0xe]  ;;  %v18892_v41 = vcombine.low %v10546_v10, %v10550_v23  ;;  %v10554_v26 = vsel %vm23924_vm6, %v18866_v29, %v10553_v1  ;;  %v17672_v2 = vrot.slane %v17640_v28, 9  ;;  %v23098_v49 = vld [vmem:[%s23348_s16 + $0x64] sm:$0x1] }
 0x1b3   : > { %v3408_v53 = vrot.slane %v23098_v49, 5  ;;  %v18839_v61 = vld [vmem:[%s23348_s16 + $0x188] sm:$0xe]  ;;  %v10558_v3 = vsel %vm23924_vm6, %v18867_v44, %v10557_v0  ;;  %v17673_v59 = vrot.slane %v17641_v56, 9  ;;  %v23099_v17 = vld [vmem:[%s23348_s16 + $0x6c] sm:$0x1]  ;;  %20844 = vmatpush3.bf16.msra.mxu1 %v22855_v30 }
 0x1b4   : > { %v3405_v47 = vsel %vm23924_vm6, %v17671_v21, %v3404_v13  ;;  %v3412_v25 = vrot.slane %v23099_v17, 5  ;;  %v17643_v62 = vld [vmem:[%s23348_s16 + $0x78] sm:$0xe]  ;;  %21313 = vmatprep.mubr.msk.bf16.mxu0 %vm979_vm0, %v18892_v41  ;;  %v18893_v22 = vcombine.low %v10554_v26, %v10558_v3  ;;  %v17674_v45 = vrot.slane %v17642_v57, 9  ;;  %v23100_v42 = vld [vmem:[%s23348_s16 + $0x74] sm:$0x1]  ;;  %20845 = vmatprep.subr.bf16.mxu1 %v22858_v12 }
 0x1b5   : > { %v3409_v24 = vsel %vm23924_vm6, %v17672_v2, %v3408_v53  ;;  %v3416_v28 = vrot.slane %v23100_v42, 5  ;;  %v18868_v14 = vrot.slane %v18836_v35, 9  ;;  %v23101_v33 = vld [vmem:[%s23348_s16 + $0x174] sm:$0x1]  ;;  %v17644_v55 = vld [vmem:[%s23348_s16 + $0x80] sm:$0xe] }
 0x1b6   : > { %v17707_v36 = vcombine.low %v3405_v47, %v3409_v24  ;;  %v10561_v19 = vrot.slane %v23101_v33, 5  ;;  %v3413_v20 = vsel %vm23924_vm6, %v17673_v59, %v3412_v25  ;;  %v18869_v43 = vrot.slane %v18837_v50, 9  ;;  %v23102_v15 = vld [vmem:[%s23348_s16 + $0x17c] sm:$0x1]  ;;  %20814 = vmatmul.mubr.msk.bf16.gmra.mrb[4].mxu1 %vm979_vm0, %v17706_v52  ;;  %v23103_v6 = vld [vmem:[%s23348_s16 + $0x184] sm:$0x1] }
 0x1b7   : > { %v10565_v18 = vrot.slane %v23102_v15, 5  ;;  %v18870_v29 = vrot.slane %v18838_v16, 9  ;;  %v22859_v56 = vld [vmem:[%s28369_s2 + $0xd8] sm:$0xff]   ;;  %v3417_v30 = vsel %vm23924_vm6, %v17674_v45, %v3416_v28  ;;  %v10569_v1 = vrot.slane %v23103_v6, 5  ;;  %v17645_v57 = vld [vmem:[%s23348_s16 + $0x88] sm:$0xe]  ;;  %21314 = vmatmul.mubr.msk.bf16.gmra.mrb[24].mxu0 %vm979_vm0, %v18893_v22  ;;  %20846 = vmatpush3.bf16.msra.mxu1 %v22858_v12 }
 0x1b8   : > { %v10562_v10 = vsel %vm23924_vm6, %v18868_v14, %v10561_v19  ;;  %v18871_v44 = vrot.slane %v18839_v61, 9  ;;  %20817 = vmatprep.mubr.msk.bf16.mxu1 %vm979_vm0, %v17707_v36  ;;  %v23104_v35 = vld [vmem:[%s23348_s16 + $0x18c] sm:$0x1]  ;;  %v17675_v54 = vrot.slane %v17643_v62, 9  ;;  %v23105_v0 = vld [vmem:[%s23348_s16 + $0x7c] sm:$0x1]  ;;  %20847 = vmatprep.subr.bf16.mxu1 %v22859_v56  ;;  %v17708_v25 = vcombine.low %v3413_v20, %v3417_v30 }
 0x1b9   : > { %v10566_v52 = vsel %vm23924_vm6, %v18869_v43, %v10565_v18  ;;  %v10573_v23 = vrot.slane %v23104_v35, 5  ;;  %v3420_v21 = vrot.slane %v23105_v0, 5  ;;  %v17646_v4 = vld [vmem:[%s23348_s16 + $0x90] sm:$0xe]  ;;  %v25329_v13 = vld [vmem:[%s28369_s2 + $0xe0] sm:$0xff]   ;;  %v10570_v16 = vsel %vm23924_vm6, %v18870_v29, %v10569_v1 }
 0x1ba   : > { %v18894_v50 = vcombine.low %v10562_v10, %v10566_v52  ;;  %v17676_v41 = vrot.slane %v17644_v55, 9  ;;  %v23106_v26 = vld [vmem:[%s23348_s16 + $0x84] sm:$0x1]  ;;  %v17647_v49 = vld [vmem:[%s23348_s16 + $0xa8] sm:$0xe]  ;;  %v17677_v47 = vrot.slane %v17645_v57, 9 }
 0x1bb   : > { %v3424_v2 = vrot.slane %v23106_v26, 5  ;;  %v17648_v53 = vld [vmem:[%s23348_s16 + $0xb0] sm:$0xe]  ;;  %v10574_v61 = vsel %vm23924_vm6, %v18871_v44, %v10573_v23  ;;  %v3421_v3 = vsel %vm23924_vm6, %v17675_v54, %v3420_v21  ;;  %v23107_v59 = vld [vmem:[%s23348_s16 + $0x8c] sm:$0x1]  ;;  %v17678_v12 = vrot.slane %v17646_v4, 9  ;;  %20848 = vmatpush3.bf16.msra.mxu1 %v22859_v56 }
 0x1bc   : > { %v3428_v17 = vrot.slane %v23107_v59, 5  ;;  %21317 = vmatprep.mubr.msk.bf16.mxu0 %vm979_vm0, %v18894_v50  ;;  %v23108_v22 = vld [vmem:[%s23348_s16 + $0x94] sm:$0x1]  ;;  %v22846_v45 = vld [vmem:[%s23348_s16 + $0xa0] ss:$8 sps:$4 sm:$0xff]   ;;  %v18895_v42 = vcombine.low %v10570_v16, %v10574_v61  ;;  %v17679_v36 = vrot.slane %v17647_v49, 9  ;;  %20881 = vmatprep.subr.bf16.mxu1 %v25329_v13 }
 0x1bd   : > { %v3425_v62 = vsel %vm23924_vm6, %v17676_v41, %v3424_v2  ;;  %v3432_v24 = vrot.slane %v23108_v22, 5  ;;  %v3436_v14 = vrot.slane %v24957_v27, 5  ;;  %v17680_v33 = vrot.slane %v17648_v53, 9  ;;  %v17649_v55 = vld [vmem:[%s23348_s16 + $0xb8] sm:$0xe] }
 0x1be   : > { %v17709_v28 = vcombine.low %v3421_v3, %v3425_v62  ;;  %v3440_v19 = vrot.slane %v24977_v31, 5  ;;  %v17650_v20 = vld [vmem:[%s23348_s16 + $0xc0] sm:$0xe]  ;;  %v3429_v43 = vsel %vm23924_vm6, %v17677_v47, %v3428_v17  ;;  %v17651_v18 = vld [vmem:[%s23348_s16 + $0xc8] sm:$0xe]  ;;  %20818 = vmatmul.mubr.msk.bf16.gmra.mrb[8].mxu1 %vm979_vm0, %v17708_v25  ;;  %v17681_v44 = vrot.slane %v17649_v55, 9 }
 0x1bf   : > { %v3433_v15 = vsel %vm23924_vm6, %v17678_v12, %v3432_v24  ;;  %v17652_v27 = vld [vmem:[%s23348_s16 + $0xd0] sm:$0xe]  ;;  %v17655_v29 = vld [vmem:[%s23348_s16 + $0xf8] sm:$0xe]  ;;  %v17656_v30 = vld [vmem:[%s23348_s16 + $0x100] sm:$0xe]  ;;  %21318 = vmatmul.mubr.msk.bf16.gmra.mrb[28].mxu0 %vm979_vm0, %v18895_v42  ;;  %v3437_v56 = vsel %vm23924_vm6, %v17679_v36, %v3436_v14 }
 0x1c0   : > { %v17657_v31 = vld [vmem:[%s23348_s16 + $0x108] sm:$0xe]  ;;  %20821 = vmatprep.mubr.msk.bf16.mxu1 %vm979_vm0, %v17709_v28  ;;  %v3441_v10 = vsel %vm23924_vm6, %v17680_v33, %v3440_v19  ;;  %v17658_v6 = vld [vmem:[%s23348_s16 + $0x110] sm:$0xe]  ;;  %v17710_v1 = vcombine.low %v3429_v43, %v3433_v15  ;;  %21329 = vmatprep.mubr.msk.bf16.mxu0 %vm979_vm0, %v22846_v45  ;;  %v3444_v52 = vrot.slane %v24991_v37, 5  ;;  %v17682_v35 = vrot.slane %v17650_v20, 9 }
 0x1c1   : > { %v22847_v57 = vld [vmem:[%s23348_s16 + $0xb0] ss:$8 sps:$4 sm:$0xff]   ;;  %v3448_v23 = vrot.slane %v25001_v8, 5  ;;  %v17683_v54 = vrot.slane %v17651_v18, 9  ;;  %v17711_v0 = vcombine.low %v3437_v56, %v3441_v10  ;;  %v22849_v21 = vld [vmem:[%s23348_s16 + $0xc0] ss:$8 sps:$4 sm:$0xff]  }
 0x1c2   : > { %v3452_v4 = vrot.slane %v25027_v51, 5  ;;  %v17687_v50 = vrot.slane %v17655_v29, 9  ;;  %v3468_v16 = vrot.slane %v25094_v40, 5  ;;  %v17661_v41 = vld [vmem:[%s23348_s16 + $0x128] sm:$0xe]  ;;  %v17684_v26 = vrot.slane %v17652_v27, 9 }
 0x1c3   : > { %v17688_v2 = vrot.slane %v17656_v30, 9  ;;  %v3472_v49 = vrot.slane %v25103_v48, 5  ;;  %v17689_v37 = vrot.slane %v17657_v31, 9  ;;  %v3456_v53 = vrot.slane %v25041_v32, 5  ;;  %v22853_v40 = vld [vmem:[%s28369_s2 + $0x268] sm:$0xff]   ;;  %v22862_v14 = vld [vmem:[%s28369_s2 + $0x270] sm:$0xff]  }
 0x1c4   : > { %v25380_v8 = vsel %vm23924_vm6, %v17687_v50, %v3468_v16  ;;  %v3476_v61 = vrot.slane %v25119_v39, 5  ;;  %v17690_v51 = vrot.slane %v17658_v6, 9  ;;  %v3480_v48 = vrot.slane %v25125_v34, 5  ;;  %v17662_v47 = vld [vmem:[%s23348_s16 + $0x130] sm:$0xe]  ;;  %v22871_v27 = vld [vmem:[%s28369_s2 + $0x278] sm:$0xff]  }
 0x1c5   : > { %v25388_v3 = vsel %vm23924_vm6, %v17688_v2, %v3472_v49  ;;  %v3445_v32 = vsel %vm23924_vm6, %v17681_v44, %v3444_v52  ;;  %v3449_v39 = vsel %vm23924_vm6, %v17682_v35, %v3448_v23  ;;  %v17653_v59 = vld [vmem:[%s23348_s16 + $0xd8] sm:$0xe]  ;;  %v17654_v17 = vld [vmem:[%s23348_s16 + $0xe0] sm:$0xe]  ;;  %v3453_v34 = vsel %vm23924_vm6, %v17683_v54, %v3452_v4  ;;  %v25461_v23 = vld [vmem:[%s23348_s16 + $0xa4] sm:$0x1] }
 0x1c6   : > { %20822 = vmatmul.mubr.msk.bf16.gmra.mrb[12].mxu1 %vm979_vm0, %v17710_v1  ;;  %v17715_v25 = vcombine.low %v25380_v8, %v25388_v3  ;;  %v25403_v62 = vsel %vm23924_vm6, %v17689_v37, %v3476_v61  ;;  %v25411_v12 = vsel %vm23924_vm6, %v17690_v51, %v3480_v48  ;;  %v17693_v22 = vrot.slane %v17661_v41, 9  ;;  %v22850_v33 = vld [vmem:[%s23348_s16 + $0xd0] ss:$8 sps:$4 sm:$0xff]   ;;  %v17660_v31 = vld [vmem:[%s23348_s16 + $0x120] sm:$0xe] }
 0x1c7   : > { %21330 = vmatmul.mubr.msk.bf16.vlgmr.msra.gmra.mrb[0].mxu0 %vm979_vm0, %v22847_v57  ;;  %20825 = vmatprep.mubr.msk.bf16.mxu1 %vm979_vm0, %v17711_v0  ;;  %v3492_v24 = vrot.slane %v25167_v58, 5  ;;  %v3457_v45 = vsel %vm23924_vm6, %v17684_v26, %v3456_v53  ;;  %v17716_v42 = vcombine.low %v25403_v62, %v25411_v12  ;;  %v17694_v28 = vrot.slane %v17662_v47, 9  ;;  %v22851_v18 = vld [vmem:[%s23348_s16 + $0xf0] ss:$8 sps:$4 sm:$0xff]   ;;  %v25454_v56 = vld [vmem:[%s28369_s2 + $0x280] sm:$0xff]  }
 0x1c8   : > { %21362 = vmatpush3.bf16.msra.mxu0 %v25108_v7  ;;  %21333 = vmatprep.mubr.msk.bf16.mxu0 %vm979_vm0, %v22849_v21  ;;  %v3496_v36 = vrot.slane %v25174_v60, 5  ;;  %v17685_v58 = vrot.slane %v17653_v59, 9  ;;  %v3460_v7 = vrot.slane %v25053_v9, 5  ;;  %v17712_v55 = vcombine.low %v3445_v32, %v3449_v39  ;;  %v17659_v30 = vld [vmem:[%s23348_s16 + $0x118] sm:$0xe] }
 0x1c9   : > { %21363 = vmatprep.subr.bf16.mxu0 %v22853_v40  ;;  %v25428_v19 = vsel %vm23924_vm6, %v17693_v22, %v3492_v24  ;;  %v17686_v20 = vrot.slane %v17654_v17, 9  ;;  %v3464_v43 = vrot.slane %v25058_v5, 5  ;;  %v17713_v15 = vcombine.low %v3453_v34, %v3457_v45  ;;  %v22852_v6 = vld [vmem:[%s23348_s16 + $0x100] ss:$8 sps:$4 sm:$0xff]   ;;  %v22856_v4 = vld [vmem:[%s23348_s16 + $0x110] ss:$8 sps:$4 sm:$0xff]  }
 0x1ca   : > { %v25433_v60 = vsel %vm23924_vm6, %v17694_v28, %v3496_v36  ;;  %v3461_v5 = vsel %vm23924_vm6, %v17685_v58, %v3460_v7  ;;  %v17691_v1 = vrot.slane %v17659_v30, 9  ;;  %v3484_v44 = vrot.slane %v25146_v46, 5  ;;  %v18994_v35 = vld [vmem:[%s23348_s16 + $0xa0] sm:$0xf]  ;;  %v18996_v54 = vld [vmem:[%s23348_s16 + $0xa8] sm:$0xf] }
 0x1cb   : > { %v17718_v9 = vcombine.low %v25428_v19, %v25433_v60  ;;  %v3465_v29 = vsel %vm23924_vm6, %v17686_v20, %v3464_v43  ;;  %v17692_v57 = vrot.slane %v17660_v31, 9  ;;  %v3488_v52 = vrot.slane %v25160_v11, 5  ;;  %v25466_v50 = vld [vmem:[%s23348_s16 + $0xac] sm:$0x1]  ;;  %v18998_v26 = vld [vmem:[%s23348_s16 + $0xb0] sm:$0xf] }
 0x1cc   : > { %21364 = vmatpush3.bf16.msra.mxu0 %v22853_v40  ;;  %v17714_v10 = vcombine.low %v3461_v5, %v3465_v29  ;;  %v11352_v0 = vshrl.u32 %v18994_v35, 16  ;;  %v11355_v21 = vshll.u32 %v18994_v35, 16  ;;  %v11366_v16 = vshrl.u32 %v18996_v54, 16  ;;  %v19000_v49 = vld [vmem:[%s23348_s16 + $0xb8] sm:$0xf] }
 0x1cd   : > { %21365 = vmatprep.subr.bf16.mxu0 %v22862_v14  ;;  %v11369_v41 = vshll.u32 %v18996_v54, 16  ;;  %v11361_v2 = vshll.u32 %v25461_v23, 16  ;;  %v3485_v37 = vsel %vm23924_vm6, %v17691_v1, %v3484_v44  ;;  %v3489_v53 = vsel %vm23924_vm6, %v17692_v57, %v3488_v52  ;;  %v22857_v32 = vld [vmem:[%s23348_s16 + $0x120] ss:$8 sps:$4 sm:$0xff]   ;;  %v18999_v8 = vld [vmem:[%s23348_s16 + $0xb4] sm:$0x1] }
 0x1ce   : > { %20826 = vmatmul.mubr.msk.bf16.gmra.mrb[16].mxu1 %vm979_vm0, %v17712_v55  ;;  %v11354_v46 = vrot.slane %v11352_v0, 4  ;;  %v11357_v11 = vrot.slane %v11355_v21, 5  ;;  %v11375_v61 = vshll.u32 %v25466_v50, 16  ;;  %v11368_v51 = vrot.slane %v11366_v16, 4  ;;  %v22860_v59 = vld [vmem:[%s23348_s16 + $0x140] ss:$8 sps:$4 sm:$0xff]  }
 0x1cf   : > { %21334 = vmatmul.mubr.msk.bf16.gmra.mrb[4].mxu0 %vm979_vm0, %v22850_v33  ;;  %20829 = vmatprep.mubr.msk.bf16.mxu1 %vm979_vm0, %v17713_v15  ;;  %v11371_v40 = vrot.slane %v11369_v41, 5  ;;  %v11380_v48 = vshrl.u32 %v18998_v26, 16  ;;  %v11383_v47 = vshll.u32 %v18998_v26, 16  ;;  %v11394_v3 = vshrl.u32 %v19000_v49, 16  ;;  %v19001_v22 = vld [vmem:[%s23348_s16 + $0xbc] sm:$0x1] }
 0x1d0   : > { %21337 = vmatprep.mubr.msk.bf16.mxu0 %vm979_vm0, %v22851_v18  ;;  %21366 = vmatpush3.bf16.msra.mxu0 %v22862_v14  ;;  %v11397_v39 = vshll.u32 %v19000_v49, 16  ;;  %v11358_v17 = vor.u32 %v11357_v11, %v11354_v46  ;;  %v17717_v34 = vcombine.low %v3485_v37, %v3489_v53  ;;  %v11389_v36 = vshll.u32 %v18999_v8, 16  ;;  %v19002_v14 = vld [vmem:[%s23348_s16 + $0xc0] sm:$0xf]  ;;  %v19004_v55 = vld [vmem:[%s23348_s16 + $0xc8] sm:$0xf] }
 0x1d1   : > { %21367 = vmatprep.subr.bf16.mxu0 %v22871_v27  ;;  %v11372_v24 = vor.u32 %v11371_v40, %v11368_v51  ;;  %v11382_v45 = vrot.slane %v11380_v48, 4  ;;  %v11385_v28 = vrot.slane %v11383_v47, 5  ;;  %v25491_v33 = vrot.slane %v11375_v61, 5  ;;  %v19006_v5 = vld [vmem:[%s23348_s16 + $0xd0] sm:$0xf] }
 0x1d2   : > { %v11396_v58 = vrot.slane %v11394_v3, 4  ;;  %v11399_v7 = vrot.slane %v11397_v39, 5  ;;  %v11408_v20 = vshrl.u32 %v19002_v14, 16  ;;  %v25498_v43 = vrot.slane %v11358_v17, 4  ;;  %v19003_v29 = vld [vmem:[%s23348_s16 + $0xc4] sm:$0x1] }
 0x1d3   : > { %v11403_v15 = vshll.u32 %v19001_v22, 16  ;;  %v11411_v18 = vshll.u32 %v19002_v14, 16  ;;  %v19005_v30 = vld [vmem:[%s23348_s16 + $0xcc] sm:$0x1]  ;;  %v11425_v62 = vshll.u32 %v19004_v55, 16  ;;  %v25506_v12 = vrot.slane %v11372_v24, 4 }
 0x1d4   : > { %21368 = vmatpush3.bf16.msra.mxu0 %v22871_v27  ;;  %v11422_v27 = vshrl.u32 %v19004_v55, 16  ;;  %v11410_v31 = vrot.slane %v11408_v20, 4  ;;  %v19008_v1 = vld [vmem:[%s23348_s16 + $0xd8] sm:$0xf]  ;;  %v11400_v52 = vor.u32 %v11399_v7, %v11396_v58  ;;  %v19007_v0 = vld [vmem:[%s23348_s16 + $0xd4] sm:$0x1] }
 0x1d5   : > { %21401 = vmatprep.subr.bf16.mxu0 %v25454_v56  ;;  %v22861_v44 = vld [vmem:[%s23348_s16 + $0x150] ss:$8 sps:$4 sm:$0xff]   ;;  %v11427_v54 = vrot.slane %v11425_v62, 5  ;;  %v11436_v21 = vshrl.u32 %v19006_v5, 16  ;;  %v11431_v16 = vshll.u32 %v19005_v30, 16  ;;  %v11439_v41 = vshll.u32 %v19006_v5, 16 }
 0x1d6   : > { %20830 = vmatmul.mubr.msk.bf16.gmra.mrb[20].mxu1 %vm979_vm0, %v17714_v10  ;;  %v25508_v10 = vrot.slane %v11389_v36, 5  ;;  %v22863_v57 = vld [vmem:[%s23348_s16 + $0x10] ss:$8 sps:$4 sm:$0xff]   ;;  %v11424_v35 = vrot.slane %v11422_v27, 4  ;;  %v11450_v26 = vshrl.u32 %v19008_v1, 16  ;;  %v11453_v49 = vshll.u32 %v19008_v1, 16 }
 0x1d7   : > { %21338 = vmatmul.mubr.msk.bf16.gmra.mrb[8].mxu0 %vm979_vm0, %v22852_v6  ;;  %20833 = vmatprep.mubr.msk.bf16.mxu1 %vm979_vm0, %v17715_v25  ;;  %v25487_v25 = vrot.slane %v11361_v2, 5  ;;  %v11413_v6 = vrot.slane %v11411_v18, 5  ;;  %v19009_v11 = vld [vmem:[%s23348_s16 + $0xdc] sm:$0x1]  ;;  %v11438_v2 = vrot.slane %v11436_v21, 4  ;;  %v25516_v53 = vrot.slane %v11403_v15, 5 }
 0x1d8   : > { %21341 = vmatprep.mubr.msk.bf16.mxu0 %vm979_vm0, %v22856_v4  ;;  %v11417_v4 = vshll.u32 %v19003_v29, 16  ;;  %v22865_v37 = vld [vmem:[%s23348_s16 + $0x160] ss:$8 sps:$4 sm:$0xff]   ;;  %v11441_v61 = vrot.slane %v11439_v41, 5  ;;  %v11445_v51 = vshll.u32 %v19007_v0, 16  ;;  %v11452_v40 = vrot.slane %v11450_v26, 4 }
 0x1d9   : > { %v11414_v46 = vor.u32 %v11413_v6, %v11410_v31  ;;  %v25520_v47 = vrot.slane %v11400_v52, 4  ;;  %v11455_v8 = vrot.slane %v11453_v49, 5  ;;  %v11459_v39 = vshll.u32 %v19009_v11, 16  ;;  %v19011_v19 = vld [vmem:[%s23348_s16 + $0xf4] sm:$0x1] }
 0x1da   : > { %v25526_v3 = vrot.slane %v11417_v4, 5  ;;  %v11442_v22 = vor.u32 %v11441_v61, %v11438_v2  ;;  %v19012_v60 = vld [vmem:[%s23348_s16 + $0xf8] sm:$0xf]  ;;  %v25539_v24 = vrot.slane %v11445_v51, 5  ;;  %v11473_v20 = vshll.u32 %v19011_v19, 16 }
 0x1db   : > { %v25531_v17 = vrot.slane %v11414_v46, 4  ;;  %v22866_v58 = vld [vmem:[%s23348_s16 + $0x170] ss:$8 sps:$4 sm:$0xff]   ;;  %v11478_v15 = vshrl.u32 %v19012_v60, 16  ;;  %v11481_v18 = vshll.u32 %v19012_v60, 16  ;;  %v25548_v29 = vrot.slane %v11459_v39, 5 }
 0x1dc   : > { %v22867_v7 = vld [vmem:[%s23348_s16 + $0x30] ss:$8 sps:$4 sm:$0xff]   ;;  %v19014_v27 = vld [vmem:[%s23348_s16 + $0x100] sm:$0xf]  ;;  %v19016_v62 = vld [vmem:[%s23348_s16 + $0x108] sm:$0xf] }
 0x1dd   : > { %v22869_v5 = vld [vmem:[%s23348_s16 + $0x190] ss:$8 sps:$4 sm:$0xff]   ;;  %v25552_v6 = vrot.slane %v11442_v22, 4  ;;  %v11480_v1 = vrot.slane %v11478_v15, 4  ;;  %v19015_v52 = vld [vmem:[%s23348_s16 + $0x104] sm:$0x1]  ;;  %v11406_v22 = vsel %vm23392_vm3, %v25520_v47, %v25516_v53 }
 0x1de   : > { %20834 = vmatmul.mubr.msk.bf16.gmra.mrb[24].mxu1 %vm979_vm0, %v17716_v42  ;;  %v11386_v42 = vor.u32 %v11385_v28, %v11382_v45  ;;  %v11456_v45 = vor.u32 %v11455_v8, %v11452_v40  ;;  %v19013_v28 = vld [vmem:[%s23348_s16 + $0xfc] sm:$0x1]  ;;  %v11492_v21 = vshrl.u32 %v19014_v27, 16  ;;  %v11495_v41 = vshll.u32 %v19014_v27, 16  ;;  %v22887_v46 = vld [vmem:[%s28369_s2 + $0xe8] sm:$0xff]  }
 0x1df   : > { %21342 = vmatmul.mubr.msk.bf16.gmra.mrb[12].mxu0 %vm979_vm0, %v22857_v32  ;;  %20837 = vmatprep.mubr.msk.bf16.mxu1 %vm979_vm0, %v17717_v34  ;;  %v11428_v32 = vor.u32 %v11427_v54, %v11424_v35  ;;  %v25533_v34 = vrot.slane %v11431_v16, 5  ;;  %v11364_v35 = vsel %vm23392_vm3, %v25498_v43, %v25487_v25  ;;  %v11378_v54 = vsel %vm23392_vm3, %v25506_v12, %v25491_v33  ;;  %v19017_v25 = vld [vmem:[%s23348_s16 + $0x10c] sm:$0x1]  ;;  %v22868_v61 = vld [vmem:[%s23348_s16 + $0x40] ss:$8 sps:$4 sm:$0xff]  }
 0x1e0   : > { %21345 = vmatprep.mubr.msk.bf16.mxu0 %vm979_vm0, %v22860_v59  ;;  %v25518_v48 = vrot.slane %v11386_v42, 4  ;;  %v19010_v59 = vld [vmem:[%s23348_s16 + $0xf0] sm:$0xf]  ;;  %v12219_v42 = vrot.slane %v25461_v23, 5  ;;  %v25563_v0 = vrot.slane %v11456_v45, 4  ;;  %v25565_v16 = vrot.slane %v11473_v20, 5 }
 0x1e1   : > { %v11464_v36 = vshrl.u32 %v19010_v59, 16  ;;  %v11467_v14 = vshll.u32 %v19010_v59, 16  ;;  %v25544_v55 = vrot.slane %v11428_v32, 4  ;;  %v11506_v26 = vshrl.u32 %v19016_v62, 16  ;;  %v22870_v8 = vld [vmem:[%s23348_s16 + $0x1a0] ss:$8 sps:$4 sm:$0xff]  }
 0x1e2   : > { %v11494_v43 = vrot.slane %v11492_v21, 4  ;;  %v11509_v33 = vshll.u32 %v19016_v62, 16  ;;  %v11497_v2 = vrot.slane %v11495_v41, 5  ;;  %v25581_v51 = vcombine.low %v11364_v35, %v11378_v54  ;;  %v22872_v39 = vld [vmem:[%s23348_s16 + $0x60] ss:$8 sps:$4 sm:$0xff]  }
 0x1e3   : > { %v11466_v30 = vrot.slane %v11464_v36, 4  ;;  %v11469_v31 = vrot.slane %v11467_v14, 5  ;;  %v11508_v49 = vrot.slane %v11506_v26, 4  ;;  %v11501_v40 = vshll.u32 %v19015_v52, 16  ;;  %v19018_v14 = vld [vmem:[%s23348_s16 + $0x110] sm:$0xf] }
 0x1e4   : > { %v11511_v32 = vrot.slane %v11509_v33, 5  ;;  %v11392_v59 = vsel %vm23392_vm3, %v25518_v48, %v25508_v10  ;;  %v11515_v60 = vshll.u32 %v19017_v25, 16  ;;  %v11434_v45 = vsel %vm23392_vm3, %v25544_v55, %v25533_v34  ;;  %v19019_v15 = vld [vmem:[%s23348_s16 + $0x114] sm:$0x1]  ;;  %v19022_v21 = vld [vmem:[%s23348_s16 + $0x120] sm:$0xf] }
 0x1e5   : > { %v11470_v4 = vor.u32 %v11469_v31, %v11466_v30  ;;  %v11520_v27 = vshrl.u32 %v19018_v14, 16  ;;  %v25621_v30 = vrot.slane %v11501_v40, 5  ;;  %v19021_v31 = vld [vmem:[%s23348_s16 + $0x11c] sm:$0x1]  ;;  %v11523_v62 = vshll.u32 %v19018_v14, 16 }
 0x1e6   : > { %20838 = vmatmul.mubr.msk.bf16.gmra.mrb[28].mxu1 %vm979_vm0, %v17718_v9  ;;  %v22864_v9 = vld [vmem:[%s23348_s16 + $0x20] ss:$8 sps:$4 sm:$0xff]   ;;  %v11512_v36 = vor.u32 %v11511_v32, %v11508_v49  ;;  %v11543_v54 = vshll.u32 %v19021_v31, 16  ;;  %v19023_v25 = vld [vmem:[%s23348_s16 + $0x124] sm:$0x1] }
 0x1e7   : > { %21346 = vmatmul.mubr.msk.bf16.gmra.mrb[16].mxu0 %vm979_vm0, %v22861_v44  ;;  %20849 = vmatprep.mubr.msk.bf16.mxu1 %vm979_vm0, %v22863_v57  ;;  %v11483_v44 = vrot.slane %v11481_v18, 5  ;;  %v11487_v57 = vshll.u32 %v19013_v28, 16  ;;  %v25594_v19 = vrot.slane %v11470_v4, 4  ;;  %v11498_v28 = vor.u32 %v11497_v2, %v11494_v43  ;;  %v19020_v18 = vld [vmem:[%s23348_s16 + $0x118] sm:$0xf] }
 0x1e8   : > { %21349 = vmatprep.mubr.msk.bf16.mxu0 %vm979_vm0, %v22865_v37  ;;  %v22890_v37 = vld [vmem:[%s28369_s2 + $0xf0] sm:$0xff]   ;;  %v11522_v52 = vrot.slane %v11520_v27, 4  ;;  %v11537_v35 = vshll.u32 %v19020_v18, 16  ;;  %v11513_v41 = vrot.slane %v11512_v36, 4  ;;  %v11525_v26 = vrot.slane %v11523_v62, 5 }
 0x1e9   : > { %v11484_v12 = vor.u32 %v11483_v44, %v11480_v1  ;;  %v25574_v11 = vrot.slane %v11487_v57, 5  ;;  %v11529_v1 = vshll.u32 %v19019_v15, 16  ;;  %v11534_v44 = vshrl.u32 %v19020_v18, 16  ;;  %v19024_v49 = vld [vmem:[%s23348_s16 + $0x128] sm:$0xf] }
 0x1ea   : > { %v25624_v57 = vrot.slane %v11515_v60, 5  ;;  %v11499_v4 = vrot.slane %v11498_v28, 4  ;;  %v11476_v43 = vsel %vm23392_vm3, %v25594_v19, %v25565_v16  ;;  %v11539_v2 = vrot.slane %v11537_v35, 5  ;;  %v22873_v40 = vld [vmem:[%s23348_s16 + $0x70] ss:$8 sps:$4 sm:$0xff]  }
 0x1eb   : > { %v25614_v20 = vrot.slane %v11484_v12, 4  ;;  %v11531_v12 = vrot.slane %v11529_v1, 5  ;;  %v11526_v32 = vor.u32 %v11525_v26, %v11522_v52  ;;  %v11557_v60 = vshll.u32 %v19023_v25, 16  ;;  %v22875_v28 = vld [vmem:[%s23348_s16 + $0x1c0] ss:$8 sps:$4 sm:$0xff]  }
 0x1ec   : > { %v11545_v19 = vrot.slane %v11543_v54, 5  ;;  %v11562_v36 = vshrl.u32 %v19024_v49, 16  ;;  %v11565_v14 = vshll.u32 %v19024_v49, 16  ;;  %v19026_v34 = vld [vmem:[%s23348_s16 + $0x140] sm:$0xf] }
 0x1ed   : > { %v11490_v33 = vsel %vm23392_vm3, %v25614_v20, %v25574_v11  ;;  %v25647_v11 = vld [vmem:[%s28369_s2 + $0x100] sm:$0xff]   ;;  %v11527_v15 = vrot.slane %v11526_v32, 4  ;;  %v25658_v54 = vrot.slane %v11557_v60, 5  ;;  %v19032_v49 = vld [vmem:[%s23348_s16 + $0x158] sm:$0xf] }
 0x1ee   : > { %20850 = vmatmul.mubr.msk.bf16.vlgmr.msra.gmra.mrb[0].mxu1 %vm979_vm0, %v22864_v9  ;;  %v11420_v9 = vsel %vm23392_vm3, %v25531_v17, %v25526_v3  ;;  %v22876_v20 = vld [vmem:[%s23348_s16 + $0x80] ss:$8 sps:$4 sm:$0xff]   ;;  %v11564_v62 = vrot.slane %v11562_v36, 4  ;;  %v11567_v1 = vrot.slane %v11565_v14, 5  ;;  %v25698_v48 = vcombine.low %v11476_v43, %v11490_v33  ;;  %v19027_v55 = vld [vmem:[%s23348_s16 + $0x144] sm:$0x1] }
 0x1ef   : > { %21350 = vmatmul.mubr.msk.bf16.gmra.mrb[20].mxu0 %vm979_vm0, %v22866_v58  ;;  %20853 = vmatprep.mubr.msk.bf16.mxu1 %vm979_vm0, %v22867_v7  ;;  %v11448_v58 = vsel %vm23392_vm3, %v25552_v6, %v25539_v24  ;;  %v11462_v7 = vsel %vm23392_vm3, %v25563_v0, %v25548_v29  ;;  %v11532_v52 = vsel %vm23392_vm3, %v11527_v15, %v11531_v12  ;;  %v19028_v24 = vld [vmem:[%s23348_s16 + $0x148] sm:$0xf]  ;;  %v19029_v6 = vld [vmem:[%s23348_s16 + $0x14c] sm:$0x1]  ;;  %v19031_v43 = vld [vmem:[%s23348_s16 + $0x154] sm:$0x1] }
 0x1f0   : > { %21353 = vmatprep.mubr.msk.bf16.mxu0 %vm979_vm0, %v22869_v5  ;;  %20882 = vmatpush3.bf16.msra.mxu1 %v25329_v13  ;;  %v22874_v13 = vld [vmem:[%s23348_s16 + $0x1b0] ss:$8 sps:$4 sm:$0xff]   ;;  %v11568_v47 = vor.u32 %v11567_v1, %v11564_v62  ;;  %v25696_v10 = vcombine.low %v11448_v58, %v11462_v7  ;;  %v11585_v58 = vshll.u32 %v19027_v55, 16  ;;  %v11590_v7 = vshrl.u32 %v19028_v24, 16  ;;  %v19033_v32 = vld [vmem:[%s23348_s16 + $0x15c] sm:$0x1] }
 0x1f1   : > { %20883 = vmatprep.subr.bf16.mxu1 %v22887_v46  ;;  %v22891_v5 = vld [vmem:[%s28369_s2 + $0xf8] sm:$0xff]   ;;  %v11599_v25 = vshll.u32 %v19029_v6, 16  ;;  %v22883_v36 = vld [vmem:[%s28369_s2 + $0x288] sm:$0xff]   ;;  %v17816_v62 = vld [vmem:[%s23348_s16 + $0x10] sm:$0xf] }
 0x1f2   : > { %v11587_v12 = vrot.slane %v11585_v58, 5  ;;  %v4277_v55 = vshll.u32 %v17816_v62, 16 }
 0x1f4   : > { %20884 = vmatpush3.bf16.msra.mxu1 %v22887_v46  ;;  %v11536_v46 = vrot.slane %v11534_v44, 4  ;;  %v11518_v44 = vsel %vm23392_vm3, %v11513_v41, %v25624_v57  ;;  %v19030_v57 = vld [vmem:[%s23348_s16 + $0x150] sm:$0xf] }
 0x1f5   : > { %20885 = vmatprep.subr.bf16.mxu1 %v22890_v37 }
 0x1f6   : > { %20854 = vmatmul.mubr.msk.bf16.gmra.mrb[4].mxu1 %vm979_vm0, %v22868_v61  ;;  %v19025_v61 = vld [vmem:[%s23348_s16 + $0x12c] sm:$0x1]  ;;  %v11540_v16 = vor.u32 %v11539_v2, %v11536_v46  ;;  %v11593_v46 = vshll.u32 %v19028_v24, 16  ;;  %v11592_v2 = vrot.slane %v11590_v7, 4 }
 0x1f7   : > { %21354 = vmatmul.mubr.msk.bf16.gmra.mrb[24].mxu0 %vm979_vm0, %v22870_v8  ;;  %20857 = vmatprep.mubr.msk.bf16.mxu1 %vm979_vm0, %v22872_v39  ;;  %v11548_v8 = vshrl.u32 %v19022_v21, 16  ;;  %v11551_v39 = vshll.u32 %v19022_v21, 16  ;;  %v11571_v27 = vshll.u32 %v19025_v61, 16  ;;  %v12223_v21 = vrot.slane %v25466_v50, 5 }
 0x1f8   : > { %21357 = vmatprep.mubr.msk.bf16.mxu0 %vm979_vm0, %v22874_v13  ;;  %20886 = vmatpush3.bf16.msra.mxu1 %v22890_v37  ;;  %v11504_v37 = vsel %vm23392_vm3, %v11499_v4, %v25621_v30  ;;  %v11541_v31 = vrot.slane %v11540_v16, 4  ;;  %v19067_v30 = vcombine.low %v11392_v59, %v11406_v22  ;;  %v11569_v59 = vrot.slane %v11568_v47, 4  ;;  %v22879_v4 = vld [vmem:[%s23348_s16 + $0xb0] ss:$8 sps:$4 sm:$0xff]   ;;  %v22880_v47 = vld [vmem:[%s23348_s16 + $0xc0] ss:$8 sps:$4 sm:$0xff]  }
 0x1f9   : > { %20887 = vmatprep.subr.bf16.mxu1 %v22891_v5  ;;  %v11550_v18 = vrot.slane %v11548_v8, 4  ;;  %v11553_v13 = vrot.slane %v11551_v39, 5  ;;  %v11573_v17 = vrot.slane %v11571_v27, 5  ;;  %v25704_v29 = vcombine.low %v11504_v37, %v11518_v44 }
 0x1fa   : > { %v11546_v53 = vsel %vm23392_vm3, %v11541_v31, %v11545_v19  ;;  %v11576_v22 = vshrl.u32 %v19026_v34, 16  ;;  %v11595_v61 = vrot.slane %v11593_v46, 5  ;;  %v11604_v8 = vshrl.u32 %v19030_v57, 16 }
 0x1fb   : > { %v11554_v35 = vor.u32 %v11553_v13, %v11550_v18  ;;  %v25706_v0 = vcombine.low %v11532_v52, %v11546_v53  ;;  %v11607_v39 = vshll.u32 %v19030_v57, 16  ;;  %v11618_v16 = vshrl.u32 %v19032_v49, 16  ;;  %v17818_v53 = vld [vmem:[%s23348_s16 + $0x18] sm:$0xf] }
 0x1fc   : > { %20888 = vmatpush3.bf16.msra.mxu1 %v22891_v5  ;;  %v25680_v5 = vcombine.low %v11420_v9, %v11434_v45  ;;  %v22877_v9 = vld [vmem:[%s23348_s16 + $0x90] ss:$8 sps:$4 sm:$0xff]   ;;  %v11579_v45 = vshll.u32 %v19026_v34, 16  ;;  %v11578_v26 = vrot.slane %v11576_v22, 4  ;;  %v11621_v19 = vshll.u32 %v19032_v49, 16 }
 0x1fd   : > { %20921 = vmatprep.subr.bf16.mxu1 %v25647_v11  ;;  %v11555_v3 = vrot.slane %v11554_v35, 4  ;;  %v11596_v14 = vor.u32 %v11595_v61, %v11592_v2  ;;  %v11609_v15 = vrot.slane %v11607_v39, 5  ;;  %v11627_v18 = vshll.u32 %v19033_v32, 16  ;;  %v17823_v2 = vld [vmem:[%s23348_s16 + $0x2c] sm:$0x1] }
 0x1fe   : > { %20858 = vmatmul.mubr.msk.bf16.gmra.mrb[8].mxu1 %vm979_vm0, %v22873_v40  ;;  %v11581_v33 = vrot.slane %v11579_v45, 5  ;;  %v11601_v40 = vrot.slane %v11599_v25, 5  ;;  %v11620_v37 = vrot.slane %v11618_v16, 4  ;;  %v11623_v31 = vrot.slane %v11621_v19, 5  ;;  %v19034_v39 = vld [vmem:[%s23348_s16 + $0x160] sm:$0xf] }
 0x1ff   : > { %21358 = vmatmul.mubr.msk.bf16.gmra.mrb[28].mxu0 %vm979_vm0, %v22875_v28  ;;  %20861 = vmatprep.mubr.msk.bf16.mxu1 %vm979_vm0, %v22876_v20  ;;  %v11560_v41 = vsel %vm23392_vm3, %v11555_v3, %v25658_v54  ;;  %v11613_v28 = vshll.u32 %v19031_v43, 16  ;;  %v11606_v20 = vrot.slane %v11604_v8, 4  ;;  %v11597_v44 = vrot.slane %v11596_v14, 4  ;;  %v17817_v54 = vld [vmem:[%s23348_s16 + $0x14] sm:$0x1] }
 0x200   : > { %21369 = vmatprep.mubr.msk.bf16.mxu0 %vm979_vm0, %v25581_v51  ;;  %v11574_v51 = vsel %vm23392_vm3, %v11569_v59, %v11573_v17  ;;  %v11582_v60 = vor.u32 %v11581_v33, %v11578_v26  ;;  %v11629_v35 = vrot.slane %v11627_v18, 5  ;;  %v11624_v3 = vor.u32 %v11623_v31, %v11620_v37  ;;  %v17819_v17 = vld [vmem:[%s23348_s16 + $0x1c] sm:$0x1]  ;;  %v22881_v59 = vld [vmem:[%s23348_s16 + $0xd0] ss:$8 sps:$4 sm:$0xff]  }
 0x201   : > { %v11615_v27 = vrot.slane %v11613_v28, 5  ;;  %v25731_v1 = vcombine.low %v11560_v41, %v11574_v51  ;;  %v11610_v52 = vor.u32 %v11609_v15, %v11606_v20  ;;  %v4274_v34 = vshrl.u32 %v17816_v62, 16  ;;  %v17822_v43 = vld [vmem:[%s23348_s16 + $0x28] sm:$0xf]  ;;  %v19035_v14 = vld [vmem:[%s23348_s16 + $0x164] sm:$0x1] }
 0x202   : > { %v11583_v13 = vrot.slane %v11582_v60, 4  ;;  %v11602_v24 = vsel %vm23392_vm3, %v11597_v44, %v11601_v40  ;;  %v4288_v22 = vshrl.u32 %v17818_v53, 16  ;;  %v11625_v58 = vrot.slane %v11624_v3, 4  ;;  %v22893_v60 = vld [vmem:[%s28369_s2 + $0x298] sm:$0xff]   ;;  %v22882_v37 = vld [vmem:[%s23348_s16 + $0xe0] ss:$8 sps:$4 sm:$0xff]  }
 0x203   : > { %v11611_v6 = vrot.slane %v11610_v52, 4  ;;  %v4276_v7 = vrot.slane %v4274_v34, 4  ;;  %v4279_v57 = vrot.slane %v4277_v55, 5  ;;  %v4291_v25 = vshll.u32 %v17818_v53, 16  ;;  %v19037_v3 = vld [vmem:[%s23348_s16 + $0x16c] sm:$0x1] }
 0x204   : > { %v4290_v46 = vrot.slane %v4288_v22, 4  ;;  %v11630_v51 = vsel %vm23392_vm3, %v11625_v58, %v11629_v35  ;;  %v4325_v44 = vshll.u32 %v17823_v2, 16  ;;  %v11632_v52 = vshrl.u32 %v19034_v39, 16  ;;  %v19039_v22 = vld [vmem:[%s23348_s16 + $0x174] sm:$0x1] }
 0x205   : > { %v11616_v41 = vsel %vm23392_vm3, %v11611_v6, %v11615_v27  ;;  %v4280_v33 = vor.u32 %v4279_v57, %v4276_v7  ;;  %v4293_v40 = vrot.slane %v4291_v25, 5  ;;  %v19036_v27 = vld [vmem:[%s23348_s16 + $0x168] sm:$0xf]  ;;  %v11641_v34 = vshll.u32 %v19035_v14, 16  ;;  %v22885_v14 = vld [vmem:[%s23348_s16 + $0x110] ss:$8 sps:$4 sm:$0xff]  }
 0x206   : > { %20862 = vmatmul.mubr.msk.bf16.gmra.mrb[12].mxu1 %vm979_vm0, %v22877_v9  ;;  %v17820_v9 = vld [vmem:[%s23348_s16 + $0x20] sm:$0xf]  ;;  %v25758_v61 = vcombine.low %v11616_v41, %v11630_v51  ;;  %v11646_v55 = vshrl.u32 %v19036_v27, 16  ;;  %v11649_v57 = vshll.u32 %v19036_v27, 16  ;;  %v11655_v25 = vshll.u32 %v19037_v3, 16 }
 0x207   : > { %21370 = vmatmul.mubr.msk.bf16.vlgmr.msra.gmra.mrb[0].mxu0 %vm979_vm0, %v19067_v30  ;;  %20865 = vmatprep.mubr.msk.bf16.mxu1 %vm979_vm0, %v22879_v4  ;;  %v11588_v30 = vsel %vm23392_vm3, %v11583_v13, %v11587_v12  ;;  %v17821_v4 = vld [vmem:[%s23348_s16 + $0x24] sm:$0x1]  ;;  %v4297_v12 = vshll.u32 %v17819_v17, 16  ;;  %v4302_v49 = vshrl.u32 %v17820_v9, 16  ;;  %v4305_v32 = vshll.u32 %v17820_v9, 16 }
 0x208   : > { %21402 = vmatpush3.bf16.msra.mxu0 %v25454_v56  ;;  %21373 = vmatprep.mubr.msk.bf16.mxu0 %vm979_vm0, %v25680_v5  ;;  %v22892_v56 = vld [vmem:[%s28369_s2 + $0x290] sm:$0xff]   ;;  %v4283_v5 = vshll.u32 %v17817_v54, 16  ;;  %v25749_v45 = vcombine.low %v11588_v30, %v11602_v24  ;;  %v4311_v8 = vshll.u32 %v17821_v4, 16  ;;  %v4281_v28 = vrot.slane %v4280_v33, 4  ;;  %v25779_v30 = vld [vmem:[%s28369_s2 + $0x2a0] sm:$0xff]  }
 0x209   : > { %21403 = vmatprep.subr.bf16.mxu0 %v22883_v36  ;;  %v4299_v16 = vrot.slane %v4297_v12, 5  ;;  %v4304_v19 = vrot.slane %v4302_v49, 4  ;;  %v4294_v20 = vor.u32 %v4293_v40, %v4290_v46  ;;  %v4307_v15 = vrot.slane %v4305_v32, 5  ;;  %v19040_v4 = vld [vmem:[%s23348_s16 + $0x178] sm:$0xf] }
 0x20a   : > { %v4285_v26 = vrot.slane %v4283_v5, 5  ;;  %v4313_v18 = vrot.slane %v4311_v8, 5  ;;  %v4319_v13 = vshll.u32 %v17822_v43, 16  ;;  %v11634_v17 = vrot.slane %v11632_v52, 4  ;;  %v19038_v5 = vld [vmem:[%s23348_s16 + $0x170] sm:$0xf] }
 0x20b   : > { %v4295_v35 = vrot.slane %v4294_v20, 4  ;;  %v4308_v54 = vor.u32 %v4307_v15, %v4304_v19  ;;  %v11643_v58 = vrot.slane %v11641_v34, 5  ;;  %v11648_v7 = vrot.slane %v11646_v55, 4  ;;  %v19041_v51 = vld [vmem:[%s23348_s16 + $0x17c] sm:$0x1] }
 0x20c   : > { %21404 = vmatpush3.bf16.msra.mxu0 %v22883_v36  ;;  %v4316_v36 = vshrl.u32 %v17822_v43, 16  ;;  %v4286_v31 = vsel %vm23392_vm3, %v4281_v28, %v4285_v26  ;;  %v4321_v53 = vrot.slane %v4319_v13, 5  ;;  %v11651_v43 = vrot.slane %v11649_v57, 5  ;;  %v22888_v27 = vld [vmem:[%s23348_s16 + $0x120] ss:$8 sps:$4 sm:$0xff]  }
 0x20d   : > { %21405 = vmatprep.subr.bf16.mxu0 %v22892_v56  ;;  %v4309_v24 = vrot.slane %v4308_v54, 4  ;;  %v11660_v33 = vshrl.u32 %v19038_v5, 16  ;;  %v11663_v12 = vshll.u32 %v19038_v5, 16  ;;  %v11669_v2 = vshll.u32 %v19039_v22, 16  ;;  %v17827_v52 = vld [vmem:[%s23348_s16 + $0x3c] sm:$0x1] }
 0x20e   : > { %20866 = vmatmul.mubr.msk.bf16.gmra.mrb[16].mxu1 %vm979_vm0, %v22880_v47  ;;  %v4318_v62 = vrot.slane %v4316_v36, 4  ;;  %v11635_v47 = vshll.u32 %v19034_v39, 16  ;;  %v11657_v32 = vrot.slane %v11655_v25, 5  ;;  %v11674_v8 = vshrl.u32 %v19040_v4, 16  ;;  %v17824_v39 = vld [vmem:[%s23348_s16 + $0x30] sm:$0xf] }
 0x20f   : > { %21374 = vmatmul.mubr.msk.bf16.gmra.mrb[4].mxu0 %vm979_vm0, %v25696_v10  ;;  %20869 = vmatprep.mubr.msk.bf16.mxu1 %vm979_vm0, %v22881_v59  ;;  %v22884_v10 = vld [vmem:[%s23348_s16 + $0x100] ss:$8 sps:$4 sm:$0xff]   ;;  %v4300_v59 = vsel %vm23392_vm3, %v4295_v35, %v4299_v16  ;;  %v4314_v41 = vsel %vm23392_vm3, %v4309_v24, %v4313_v18  ;;  %v11652_v28 = vor.u32 %v11651_v43, %v11648_v7  ;;  %v11662_v16 = vrot.slane %v11660_v33, 4  ;;  %v17826_v36 = vld [vmem:[%s23348_s16 + $0x38] sm:$0xf] }
 0x210   : > { %21377 = vmatprep.mubr.msk.bf16.mxu0 %vm979_vm0, %v25698_v48  ;;  %21406 = vmatpush3.bf16.msra.mxu0 %v22892_v56  ;;  %v4327_v48 = vrot.slane %v4325_v44, 5  ;;  %v4322_v6 = vor.u32 %v4321_v53, %v4318_v62  ;;  %v11637_v56 = vrot.slane %v11635_v47, 5  ;;  %v25786_v9 = vcombine.low %v4286_v31, %v4300_v59  ;;  %v17831_v57 = vld [vmem:[%s23348_s16 + $0x4c] sm:$0x1]  ;;  %v19042_v25 = vld [vmem:[%s23348_s16 + $0x190] sm:$0xf] }
 0x211   : > { %21407 = vmatprep.subr.bf16.mxu0 %v22893_v60  ;;  %v11665_v19 = vrot.slane %v11663_v12, 5  ;;  %v11671_v15 = vrot.slane %v11669_v2, 5  ;;  %v11676_v18 = vrot.slane %v11674_v8, 4  ;;  %v11677_v13 = vshll.u32 %v19040_v4, 16  ;;  %v22889_v8 = vld [vmem:[%s23348_s16 + $0x130] ss:$8 sps:$4 sm:$0xff]  }
 0x212   : > { %v4323_v26 = vrot.slane %v4322_v6, 4  ;;  %v11638_v46 = vor.u32 %v11637_v56, %v11634_v17  ;;  %v4330_v62 = vshrl.u32 %v17824_v39, 16  ;;  %v4344_v54 = vshrl.u32 %v17826_v36, 16  ;;  %v17828_v17 = vld [vmem:[%s23348_s16 + $0x40] sm:$0xf] }
 0x213   : > { %v11666_v31 = vor.u32 %v11665_v19, %v11662_v16  ;;  %v11679_v44 = vrot.slane %v11677_v13, 5  ;;  %v17829_v6 = vld [vmem:[%s23348_s16 + $0x44] sm:$0x1]  ;;  %v17830_v56 = vld [vmem:[%s23348_s16 + $0x48] sm:$0xf]  ;;  %v4353_v7 = vshll.u32 %v17827_v52, 16 }
 0x214   : > { %21408 = vmatpush3.bf16.msra.mxu0 %v22893_v60  ;;  %v4328_v49 = vsel %vm23392_vm3, %v4323_v26, %v4327_v48  ;;  %v11639_v40 = vrot.slane %v11638_v46, 4  ;;  %v4332_v3 = vrot.slane %v4330_v62, 4  ;;  %v4346_v22 = vrot.slane %v4344_v54, 4 }
 0x215   : > { %21441 = vmatprep.subr.bf16.mxu0 %v25779_v30  ;;  %v25802_v60 = vcombine.low %v4314_v41, %v4328_v49  ;;  %v11667_v47 = vrot.slane %v11666_v31, 4  ;;  %v11680_v55 = vor.u32 %v11679_v44, %v11676_v18  ;;  %v4358_v26 = vshrl.u32 %v17828_v17, 16  ;;  %v19046_v31 = vld [vmem:[%s23348_s16 + $0x1a0] sm:$0xf] }
 0x216   : > { %20870 = vmatmul.mubr.msk.bf16.gmra.mrb[20].mxu1 %vm979_vm0, %v22882_v37  ;;  %v11644_v20 = vsel %vm23392_vm3, %v11639_v40, %v11643_v58  ;;  %v11653_v37 = vrot.slane %v11652_v28, 4  ;;  %v4347_v58 = vshll.u32 %v17826_v36, 16  ;;  %v4361_v46 = vshll.u32 %v17828_v17, 16 }
 0x217   : > { %21378 = vmatmul.mubr.msk.bf16.gmra.mrb[8].mxu0 %vm979_vm0, %v25704_v29  ;;  %20873 = vmatprep.mubr.msk.bf16.mxu1 %vm979_vm0, %v22884_v10  ;;  %v17825_v29 = vld [vmem:[%s23348_s16 + $0x34] sm:$0x1]  ;;  %v4333_v10 = vshll.u32 %v17824_v39, 16  ;;  %v11672_v5 = vsel %vm23392_vm3, %v11667_v47, %v11671_v15  ;;  %v11681_v4 = vrot.slane %v11680_v55, 4  ;;  %v4367_v33 = vshll.u32 %v17829_v6, 16 }
 0x218   : > { %21381 = vmatprep.mubr.msk.bf16.mxu0 %vm979_vm0, %v25706_v0  ;;  %v11683_v0 = vshll.u32 %v19041_v51, 16  ;;  %v4339_v35 = vshll.u32 %v17825_v29, 16  ;;  %v11658_v53 = vsel %vm23392_vm3, %v11653_v37, %v11657_v32  ;;  %v4349_v43 = vrot.slane %v4347_v58, 5  ;;  %v19043_v32 = vld [vmem:[%s23348_s16 + $0x194] sm:$0x1] }
 0x219   : > { %v19076_v34 = vcombine.low %v11644_v20, %v11658_v53  ;;  %v4335_v59 = vrot.slane %v4333_v10, 5  ;;  %v4355_v51 = vrot.slane %v4353_v7, 5  ;;  %v4372_v12 = vshrl.u32 %v17830_v56, 16  ;;  %v19045_v15 = vld [vmem:[%s23348_s16 + $0x19c] sm:$0x1] }
 0x21a   : > { %v11685_v48 = vrot.slane %v11683_v0, 5  ;;  %v4341_v24 = vrot.slane %v4339_v35, 5  ;;  %v4360_v49 = vrot.slane %v4358_v26, 4  ;;  %v4363_v40 = vrot.slane %v4361_v46, 5  ;;  %v19047_v10 = vld [vmem:[%s23348_s16 + $0x1a4] sm:$0x1] }
 0x21b   : > { %v4336_v41 = vor.u32 %v4335_v59, %v4332_v3  ;;  %v4350_v28 = vor.u32 %v4349_v43, %v4346_v22  ;;  %v4369_v16 = vrot.slane %v4367_v33, 5  ;;  %v4374_v19 = vrot.slane %v4372_v12, 4  ;;  %v17834_v12 = vld [vmem:[%s23348_s16 + $0x68] sm:$0xf] }
 0x21c   : > { %v4364_v36 = vor.u32 %v4363_v40, %v4360_v49  ;;  %v4381_v20 = vshll.u32 %v17831_v57, 16  ;;  %v11688_v13 = vshrl.u32 %v19042_v25, 16  ;;  %v11697_v37 = vshll.u32 %v19043_v32, 16 }
 0x21d   : > { %v4337_v2 = vrot.slane %v4336_v41, 4  ;;  %v4351_v18 = vrot.slane %v4350_v28, 4  ;;  %v11716_v22 = vshrl.u32 %v19046_v31, 16  ;;  %v11719_v58 = vshll.u32 %v19046_v31, 16 }
 0x21e   : > { %20874 = vmatmul.mubr.msk.bf16.gmra.mrb[24].mxu1 %vm979_vm0, %v22885_v14  ;;  %v4375_v14 = vshll.u32 %v17830_v56, 16  ;;  %v4365_v0 = vrot.slane %v4364_v36, 4  ;;  %v4383_v44 = vrot.slane %v4381_v20, 5  ;;  %v11690_v54 = vrot.slane %v11688_v13, 4  ;;  %v17835_v36 = vld [vmem:[%s23348_s16 + $0x6c] sm:$0x1] }
 0x21f   : > { %21382 = vmatmul.mubr.msk.bf16.gmra.mrb[12].mxu0 %vm979_vm0, %v25731_v1  ;;  %20877 = vmatprep.mubr.msk.bf16.mxu1 %vm979_vm0, %v22888_v27  ;;  %v11686_v1 = vsel %vm23392_vm3, %v11681_v4, %v11685_v48  ;;  %v4342_v29 = vsel %vm23392_vm3, %v4337_v2, %v4341_v24  ;;  %v11691_v27 = vshll.u32 %v19042_v25, 16  ;;  %v4356_v35 = vsel %vm23392_vm3, %v4351_v18, %v4355_v51  ;;  %v19048_v48 = vld [vmem:[%s23348_s16 + $0x1a8] sm:$0xf]  ;;  %v17833_v25 = vld [vmem:[%s23348_s16 + $0x64] sm:$0x1] }
 0x220   : > { %21385 = vmatprep.mubr.msk.bf16.mxu0 %vm979_vm0, %v25749_v45  ;;  %v25830_v39 = vcombine.low %v11672_v5, %v11686_v1  ;;  %v19044_v45 = vld [vmem:[%s23348_s16 + $0x198] sm:$0xf]  ;;  %v4377_v62 = vrot.slane %v4375_v14, 5  ;;  %v11699_v47 = vrot.slane %v11697_v37, 5  ;;  %v17890_v3 = vcombine.low %v4342_v29, %v4356_v35  ;;  %v19049_v5 = vld [vmem:[%s23348_s16 + $0x1ac] sm:$0x1] }
 0x221   : > { %v11702_v52 = vshrl.u32 %v19044_v45, 16  ;;  %v11693_v53 = vrot.slane %v11691_v27, 5  ;;  %v4370_v17 = vsel %vm23392_vm3, %v4365_v0, %v4369_v16  ;;  %v11705_v6 = vshll.u32 %v19044_v45, 16  ;;  %v17836_v37 = vld [vmem:[%s23348_s16 + $0x70] sm:$0xf] }
 0x222   : > { %v4378_v55 = vor.u32 %v4377_v62, %v4374_v19  ;;  %v11711_v56 = vshll.u32 %v19045_v15, 16  ;;  %v11725_v7 = vshll.u32 %v19047_v10, 16  ;;  %v11730_v57 = vshrl.u32 %v19048_v48, 16  ;;  %v22897_v19 = vld [vmem:[%s28369_s2 + $0x108] sm:$0xff]  }
 0x223   : > { %v11704_v59 = vrot.slane %v11702_v52, 4  ;;  %v11694_v24 = vor.u32 %v11693_v53, %v11690_v54  ;;  %v11707_v41 = vrot.slane %v11705_v6, 5  ;;  %v11718_v46 = vrot.slane %v11716_v22, 4  ;;  %v17838_v52 = vld [vmem:[%s23348_s16 + $0x78] sm:$0xf]  ;;  %v22898_v53 = vld [vmem:[%s28369_s2 + $0x110] sm:$0xff]  }
 0x224   : > { %v11713_v26 = vrot.slane %v11711_v56, 5  ;;  %v11727_v51 = vrot.slane %v11725_v7, 5  ;;  %v11732_v33 = vrot.slane %v11730_v57, 4  ;;  %v11733_v40 = vshll.u32 %v19048_v48, 16  ;;  %v19050_v56 = vld [vmem:[%s23348_s16 + $0x1b0] sm:$0xf] }
 0x225   : > { %v11695_v4 = vrot.slane %v11694_v24, 4  ;;  %v11708_v49 = vor.u32 %v11707_v41, %v11704_v59  ;;  %v4395_v14 = vshll.u32 %v17833_v25, 16  ;;  %v4400_v20 = vshrl.u32 %v17834_v12, 16  ;;  %v19051_v7 = vld [vmem:[%s23348_s16 + $0x1b4] sm:$0x1] }
 0x226   : > { %20878 = vmatmul.mubr.msk.bf16.gmra.mrb[28].mxu1 %vm979_vm0, %v22889_v8  ;;  %v11739_v8 = vshll.u32 %v19049_v5, 16  ;;  %v11735_v29 = vrot.slane %v11733_v40, 5  ;;  %v4403_v54 = vshll.u32 %v17834_v12, 16  ;;  %v4409_v48 = vshll.u32 %v17835_v36, 16  ;;  %v19054_v12 = vld [vmem:[%s23348_s16 + $0x1c0] sm:$0xf] }
 0x227   : > { %21386 = vmatmul.mubr.msk.bf16.gmra.mrb[16].mxu0 %vm979_vm0, %v25758_v61  ;;  %20889 = vmatprep.mubr.msk.bf16.mxu1 %vm979_vm0, %v25786_v9  ;;  %v4379_v61 = vrot.slane %v4378_v55, 4  ;;  %v17832_v9 = vld [vmem:[%s23348_s16 + $0x60] sm:$0xf]  ;;  %v11700_v2 = vsel %vm23392_vm3, %v11695_v4, %v11699_v47  ;;  %v11709_v45 = vrot.slane %v11708_v49, 4  ;;  %v4397_v0 = vrot.slane %v4395_v14, 5 }
 0x228   : > { %21389 = vmatprep.mubr.msk.bf16.mxu0 %vm979_vm0, %v19076_v34  ;;  %v11721_v34 = vrot.slane %v11719_v58, 5  ;;  %v4386_v28 = vshrl.u32 %v17832_v9, 16  ;;  %v4389_v16 = vshll.u32 %v17832_v9, 16  ;;  %v11741_v18 = vrot.slane %v11739_v8, 5 }
 0x229   : > { %v4384_v43 = vsel %vm23392_vm3, %v4379_v61, %v4383_v44  ;;  %v11736_v31 = vor.u32 %v11735_v29, %v11732_v33  ;;  %v4402_v62 = vrot.slane %v4400_v20, 4  ;;  %v17837_v44 = vld [vmem:[%s23348_s16 + $0x74] sm:$0x1]  ;;  %v4417_v55 = vshll.u32 %v17836_v37, 16  ;;  %v19053_v33 = vld [vmem:[%s23348_s16 + $0x1bc] sm:$0x1] }
 0x22a   : > { %v17891_v1 = vcombine.low %v4370_v17, %v4384_v43  ;;  %v11722_v32 = vor.u32 %v11721_v34, %v11718_v46  ;;  %v4388_v13 = vrot.slane %v4386_v28, 4  ;;  %v4391_v27 = vrot.slane %v4389_v16, 5  ;;  %v22899_v46 = vld [vmem:[%s28369_s2 + $0x118] sm:$0xff]   ;;  %v19056_v20 = vld [vmem:[%s23348_s16 + $0x1c8] sm:$0xf] }
 0x22b   : > { %v11737_v47 = vrot.slane %v11736_v31, 4  ;;  %v4414_v17 = vshrl.u32 %v17836_v37, 16  ;;  %v4405_v59 = vrot.slane %v4403_v54, 5  ;;  %v4423_v24 = vshll.u32 %v17837_v44, 16 }
 0x22c   : > { %v11723_v15 = vrot.slane %v11722_v32, 4  ;;  %v4392_v35 = vor.u32 %v4391_v27, %v4388_v13  ;;  %v4428_v6 = vshrl.u32 %v17838_v52, 16  ;;  %v4411_v22 = vrot.slane %v4409_v48, 5 }
 0x22d   : > { %v11742_v5 = vsel %vm23392_vm3, %v11737_v47, %v11741_v18  ;;  %v4416_v61 = vrot.slane %v4414_v17, 4  ;;  %v4419_v58 = vrot.slane %v4417_v55, 5  ;;  %v4406_v4 = vor.u32 %v4405_v59, %v4402_v62 }
 0x22e   : > { %20890 = vmatmul.mubr.msk.bf16.vlgmr.msra.gmra.mrb[0].mxu1 %vm979_vm0, %v25802_v60  ;;  %v11714_v60 = vsel %vm23392_vm3, %v11709_v45, %v11713_v26  ;;  %v4425_v41 = vrot.slane %v4423_v24, 5  ;;  %v19052_v26 = vld [vmem:[%s23348_s16 + $0x1b8] sm:$0xf]  ;;  %v4430_v43 = vrot.slane %v4428_v6, 4  ;;  %v4431_v34 = vshll.u32 %v17838_v52, 16  ;;  %v25909_v6 = vld [vmem:[%s28369_s2 + $0x120] sm:$0xff]  }
 0x22f   : > { %21390 = vmatmul.mubr.msk.bf16.gmra.mrb[20].mxu0 %vm979_vm0, %v25830_v39  ;;  %20893 = vmatprep.mubr.msk.bf16.mxu1 %vm979_vm0, %v17890_v3  ;;  %v19078_v10 = vcombine.low %v11700_v2, %v11714_v60  ;;  %v11728_v39 = vsel %vm23392_vm3, %v11723_v15, %v11727_v51  ;;  %v17839_v3 = vld [vmem:[%s23348_s16 + $0x7c] sm:$0x1]  ;;  %v4420_v25 = vor.u32 %v4419_v58, %v4416_v61  ;;  %v4407_v2 = vrot.slane %v4406_v4, 4  ;;  %v17842_v24 = vld [vmem:[%s23348_s16 + $0x88] sm:$0xf] }
 0x230   : > { %20922 = vmatpush3.bf16.msra.mxu1 %v25647_v11  ;;  %v4393_v11 = vrot.slane %v4392_v35, 4  ;;  %v19079_v57 = vcombine.low %v11728_v39, %v11742_v5  ;;  %v4437_v51 = vshll.u32 %v17839_v3, 16  ;;  %v11744_v49 = vshrl.u32 %v19050_v56, 16  ;;  %v17840_v35 = vld [vmem:[%s23348_s16 + $0x80] sm:$0xf] }
 0x231   : > { %20923 = vmatprep.subr.bf16.mxu1 %v22897_v19  ;;  %21393 = vmatprep.mubr.msk.bf16.mxu0 %vm979_vm0, %v19078_v10  ;;  %v11747_v40 = vshll.u32 %v19050_v56, 16  ;;  %v11753_v32 = vshll.u32 %v19051_v7, 16  ;;  %v4421_v8 = vrot.slane %v4420_v25, 4  ;;  %v4433_v28 = vrot.slane %v4431_v34, 5  ;;  %v17841_v3 = vld [vmem:[%s23348_s16 + $0x84] sm:$0x1] }
 0x232   : > { %v4398_v9 = vsel %vm23392_vm3, %v4393_v11, %v4397_v0  ;;  %v4439_v16 = vrot.slane %v4437_v51, 5  ;;  %v4412_v45 = vsel %vm23392_vm3, %v4407_v2, %v4411_v22  ;;  %v11746_v29 = vrot.slane %v11744_v49, 4  ;;  %v19057_v0 = vld [vmem:[%s23348_s16 + $0x1cc] sm:$0x1] }
 0x233   : > { %v11749_v36 = vrot.slane %v11747_v40, 5  ;;  %v11755_v14 = vrot.slane %v11753_v32, 5  ;;  %v17892_v15 = vcombine.low %v4398_v9, %v4412_v45  ;;  %v4426_v18 = vsel %vm23392_vm3, %v4421_v8, %v4425_v41  ;;  %v17845_v8 = vld [vmem:[%s23348_s16 + $0x94] sm:$0x1] }
 0x234   : > { %20924 = vmatpush3.bf16.msra.mxu1 %v22897_v19  ;;  %v11758_v19 = vshrl.u32 %v19052_v26, 16  ;;  %v4434_v13 = vor.u32 %v4433_v28, %v4430_v43  ;;  %v11761_v60 = vshll.u32 %v19052_v26, 16  ;;  %v11767_v31 = vshll.u32 %v19053_v33, 16  ;;  %v17843_v26 = vld [vmem:[%s23348_s16 + $0x8c] sm:$0x1] }
 0x235   : > { %20925 = vmatprep.subr.bf16.mxu1 %v22898_v53  ;;  %v11750_v37 = vor.u32 %v11749_v36, %v11746_v29  ;;  %v11772_v62 = vshrl.u32 %v19054_v12, 16  ;;  %v11775_v52 = vshll.u32 %v19054_v12, 16  ;;  %v11786_v39 = vshrl.u32 %v19056_v20, 16  ;;  %v17844_v12 = vld [vmem:[%s23348_s16 + $0x90] sm:$0xf] }
 0x236   : > { %20894 = vmatmul.mubr.msk.bf16.gmra.mrb[4].mxu1 %vm979_vm0, %v17891_v1  ;;  %v19055_v1 = vld [vmem:[%s23348_s16 + $0x1c4] sm:$0x1]  ;;  %v11760_v27 = vrot.slane %v11758_v19, 4  ;;  %v4435_v44 = vrot.slane %v4434_v13, 4  ;;  %v11769_v47 = vrot.slane %v11767_v31, 5  ;;  %v11789_v61 = vshll.u32 %v19056_v20, 16 }
 0x237   : > { %21394 = vmatmul.mubr.msk.bf16.gmra.mrb[24].mxu0 %vm979_vm0, %v19079_v57  ;;  %20897 = vmatprep.mubr.msk.bf16.mxu1 %vm979_vm0, %v17892_v15  ;;  %v11781_v10 = vshll.u32 %v19055_v1, 16  ;;  %v11751_v54 = vrot.slane %v11750_v37, 4  ;;  %v11774_v48 = vrot.slane %v11772_v62, 4  ;;  %v11777_v55 = vrot.slane %v11775_v52, 5  ;;  %v17846_v28 = vld [vmem:[%s23348_s16 + $0x98] sm:$0xf] }
 0x238   : > { %20926 = vmatpush3.bf16.msra.mxu1 %v22898_v53  ;;  %v11763_v53 = vrot.slane %v11761_v60, 5  ;;  %v4440_v17 = vsel %vm23392_vm3, %v4435_v44, %v4439_v16  ;;  %v11788_v59 = vrot.slane %v11786_v39, 4  ;;  %v11795_v7 = vshll.u32 %v19057_v0, 16  ;;  %v17847_v29 = vld [vmem:[%s23348_s16 + $0x9c] sm:$0x1] }
 0x239   : > { %20927 = vmatprep.subr.bf16.mxu1 %v22899_v46  ;;  %v11783_v11 = vrot.slane %v11781_v10, 5  ;;  %v17893_v56 = vcombine.low %v4426_v18, %v4440_v17  ;;  %v11756_v5 = vsel %vm23392_vm3, %v11751_v54, %v11755_v14  ;;  %v11778_v58 = vor.u32 %v11777_v55, %v11774_v48  ;;  %v19102_v18 = vld [vmem:[%s23348_s16 + $0xa0] sm:$0xe]  ;;  %v19103_v31 = vld [vmem:[%s23348_s16 + $0xa8] sm:$0xe] }
 0x23a   : > { %v11764_v22 = vor.u32 %v11763_v53, %v11760_v27  ;;  %v4442_v57 = vshrl.u32 %v17840_v35, 16  ;;  %v4445_v9 = vshll.u32 %v17840_v35, 16  ;;  %v11791_v41 = vrot.slane %v11789_v61, 5  ;;  %v19104_v10 = vld [vmem:[%s23348_s16 + $0xb0] sm:$0xe] }
 0x23b   : > { %v4456_v25 = vshrl.u32 %v17842_v24, 16  ;;  %v11779_v43 = vrot.slane %v11778_v58, 4  ;;  %v11797_v34 = vrot.slane %v11795_v7, 5  ;;  %v4459_v45 = vshll.u32 %v17842_v24, 16 }
 0x23c   : > { %20928 = vmatpush3.bf16.msra.mxu1 %v22899_v46  ;;  %v11765_v4 = vrot.slane %v11764_v22, 4  ;;  %v4451_v46 = vshll.u32 %v17841_v3, 16  ;;  %v4444_v51 = vrot.slane %v4442_v57, 4  ;;  %v4447_v33 = vrot.slane %v4445_v9, 5  ;;  %v25936_v22 = vld [vmem:[%s23348_s16 + $0xb4] sm:$0x1] }
 0x23d   : > { %20961 = vmatprep.subr.bf16.mxu1 %v25909_v6  ;;  %v11792_v49 = vor.u32 %v11791_v41, %v11788_v59  ;;  %v4458_v32 = vrot.slane %v4456_v25, 4  ;;  %v11784_v19 = vsel %vm23392_vm3, %v11779_v43, %v11783_v11  ;;  %v4465_v14 = vshll.u32 %v17843_v26, 16  ;;  %v17848_v11 = vld [vmem:[%s23348_s16 + $0xb0] sm:$0xf]  ;;  %v23109_v57 = vld [vmem:[%s23348_s16 + $0xb4] sm:$0x1] }
 0x23e   : > { %20898 = vmatmul.mubr.msk.bf16.gmra.mrb[8].mxu1 %vm979_vm0, %v17893_v56  ;;  %v11770_v2 = vsel %vm23392_vm3, %v11765_v4, %v11769_v47  ;;  %v4453_v40 = vrot.slane %v4451_v46, 5  ;;  %v4448_v1 = vor.u32 %v4447_v33, %v4444_v51  ;;  %v4470_v20 = vshrl.u32 %v17844_v12, 16  ;;  %v19105_v47 = vld [vmem:[%s23348_s16 + $0xb8] sm:$0xe] }
 0x23f   : > { %v19080_v16 = vcombine.low %v11756_v5, %v11770_v2  ;;  %v11793_v36 = vrot.slane %v11792_v49, 4  ;;  %v4473_v15 = vshll.u32 %v17844_v12, 16  ;;  %v4461_v27 = vrot.slane %v4459_v45, 5  ;;  %v17850_v25 = vld [vmem:[%s23348_s16 + $0xb8] sm:$0xf] }
 0x240   : > { %v4449_v13 = vrot.slane %v4448_v1, 4  ;;  %v4479_v37 = vshll.u32 %v17845_v8, 16  ;;  %v4484_v60 = vshrl.u32 %v17846_v28, 16  ;;  %v4467_v62 = vrot.slane %v4465_v14, 5  ;;  %v25953_v12 = vld [vmem:[%s23348_s16 + $0xbc] sm:$0x1] }
 0x241   : > { %21397 = vmatprep.mubr.msk.bf16.mxu0 %vm979_vm0, %v19080_v16  ;;  %v11798_v0 = vsel %vm23392_vm3, %v11793_v36, %v11797_v34  ;;  %v4472_v44 = vrot.slane %v4470_v20, 4  ;;  %v4475_v52 = vrot.slane %v4473_v15, 5  ;;  %v4462_v54 = vor.u32 %v4461_v27, %v4458_v32  ;;  %v25963_v16 = vld [vmem:[%s23348_s16 + $0xc4] sm:$0x1]  ;;  %v17854_v36 = vld [vmem:[%s23348_s16 + $0xc8] sm:$0xf] }
 0x242   : > { %v19081_v39 = vcombine.low %v11784_v19, %v11798_v0  ;;  %v4454_v35 = vsel %vm23392_vm3, %v4449_v13, %v4453_v40  ;;  %v4481_v53 = vrot.slane %v4479_v37, 5  ;;  %v4486_v3 = vrot.slane %v4484_v60, 4  ;;  %v22895_v14 = vld [vmem:[%s28369_s2 + $0x2a8] sm:$0xff]  }
 0x243   : > { %v4476_v48 = vor.u32 %v4475_v52, %v4472_v44  ;;  %v4487_v17 = vshll.u32 %v17846_v28, 16  ;;  %v4493_v55 = vshll.u32 %v17847_v29, 16  ;;  %v4463_v59 = vrot.slane %v4462_v54, 4  ;;  %v25975_v27 = vld [vmem:[%s23348_s16 + $0xcc] sm:$0x1] }
 0x244   : > { %21398 = vmatmul.mubr.msk.bf16.gmra.mrb[28].mxu0 %vm979_vm0, %v19081_v39  ;;  %v19134_v24 = vrot.slane %v19102_v18, 9  ;;  %v19135_v56 = vrot.slane %v19103_v31, 9  ;;  %v19136_v5 = vrot.slane %v19104_v10, 9  ;;  %v12227_v9 = vrot.slane %v23109_v57, 5  ;;  %v23111_v57 = vld [vmem:[%s23348_s16 + $0xc4] sm:$0x1] }
 0x245   : > { %v4477_v61 = vrot.slane %v4476_v48, 4  ;;  %v4489_v58 = vrot.slane %v4487_v17, 5  ;;  %v4495_v7 = vrot.slane %v4493_v55, 5  ;;  %v4468_v4 = vsel %vm23392_vm3, %v4463_v59, %v4467_v62  ;;  %v19106_v62 = vld [vmem:[%s23348_s16 + $0xc0] sm:$0xe] }
 0x246   : > { %v12220_v41 = vsel %vm23924_vm6, %v19134_v24, %v12219_v42  ;;  %v12224_v26 = vsel %vm23924_vm6, %v19135_v56, %v12223_v21  ;;  %v19137_v46 = vrot.slane %v19105_v47, 9  ;;  %v17894_v43 = vcombine.low %v4454_v35, %v4468_v4  ;;  %v23110_v42 = vld [vmem:[%s23348_s16 + $0xbc] sm:$0x1]  ;;  %v17852_v21 = vld [vmem:[%s23348_s16 + $0xc0] sm:$0xf] }
 0x247   : > { %v4482_v34 = vsel %vm23392_vm3, %v4477_v61, %v4481_v53  ;;  %v4490_v51 = vor.u32 %v4489_v58, %v4486_v3  ;;  %v19174_v33 = vcombine.low %v12220_v41, %v12224_v26  ;;  %v12228_v23 = vsel %vm23924_vm6, %v19136_v5, %v12227_v9  ;;  %v19107_v48 = vld [vmem:[%s23348_s16 + $0xc8] sm:$0xe]  ;;  %v22900_v3 = vld [vmem:[%s28369_s2 + $0x2b0] sm:$0xff]   ;;  %v19109_v41 = vld [vmem:[%s23348_s16 + $0xd8] sm:$0xe] }
 0x248   : > { %v12231_v50 = vrot.slane %v23110_v42, 5  ;;  %v4498_v2 = vshrl.u32 %v17848_v11, 16  ;;  %v4501_v49 = vshll.u32 %v17848_v11, 16  ;;  %20901 = vmatprep.mubr.msk.bf16.mxu1 %vm979_vm0, %v17894_v43  ;;  %v4507_v32 = vshll.u32 %v25936_v22, 16  ;;  %v19108_v24 = vld [vmem:[%s23348_s16 + $0xd0] sm:$0xe] }
 0x249   : > { %v4491_v40 = vrot.slane %v4490_v51, 4  ;;  %21409 = vmatprep.mubr.msk.bf16.mxu0 %vm979_vm0, %v19174_v33  ;;  %v4512_v8 = vshrl.u32 %v17850_v25, 16  ;;  %v4515_v28 = vshll.u32 %v17850_v25, 16  ;;  %v4521_v29 = vshll.u32 %v25953_v12, 16  ;;  %v23112_v25 = vld [vmem:[%s23348_s16 + $0xcc] sm:$0x1] }
 0x24a   : > { %v12232_v19 = vsel %vm23924_vm6, %v19137_v46, %v12231_v50  ;;  %v4500_v1 = vrot.slane %v4498_v2, 4  ;;  %v4503_v45 = vrot.slane %v4501_v49, 5  ;;  %v4509_v18 = vrot.slane %v4507_v32, 5  ;;  %v17856_v51 = vld [vmem:[%s23348_s16 + $0xd0] sm:$0xf]  ;;  %v22901_v33 = vld [vmem:[%s28369_s2 + $0x2b8] sm:$0xff]  }
 0x24b   : > { %v4496_v20 = vsel %vm23392_vm3, %v4491_v40, %v4495_v7  ;;  %v19175_v15 = vcombine.low %v12228_v23, %v12232_v19  ;;  %v4514_v13 = vrot.slane %v4512_v8, 4  ;;  %v4517_v31 = vrot.slane %v4515_v28, 5  ;;  %v23113_v2 = vld [vmem:[%s23348_s16 + $0xd4] sm:$0x1]  ;;  %v17858_v40 = vld [vmem:[%s23348_s16 + $0xd8] sm:$0xf] }
 0x24c   : > { %v17895_v37 = vcombine.low %v4482_v34, %v4496_v20  ;;  %v4504_v60 = vor.u32 %v4503_v45, %v4500_v1  ;;  %v4523_v0 = vrot.slane %v4521_v29, 5  ;;  %v4526_v44 = vshrl.u32 %v17852_v21, 16  ;;  %v23114_v19 = vld [vmem:[%s23348_s16 + $0xdc] sm:$0x1] }
 0x24d   : > { %21410 = vmatmul.mubr.msk.bf16.vlgmr.msra.gmra.mrb[0].mxu0 %vm979_vm0, %v19175_v15  ;;  %v4529_v52 = vshll.u32 %v17852_v21, 16  ;;  %v4535_v10 = vshll.u32 %v25963_v16, 16  ;;  %v4540_v39 = vshrl.u32 %v17854_v36, 16  ;;  %v4518_v54 = vor.u32 %v4517_v31, %v4514_v13  ;;  %v26003_v21 = vld [vmem:[%s23348_s16 + $0xd4] sm:$0x1]  ;;  %v26024_v13 = vld [vmem:[%s28369_s2 + $0x2c0] sm:$0xff]  }
 0x24e   : > { %20902 = vmatmul.mubr.msk.bf16.gmra.mrb[12].mxu1 %vm979_vm0, %v17895_v37  ;;  %v4505_v35 = vrot.slane %v4504_v60, 4  ;;  %21442 = vmatpush3.bf16.msra.mxu0 %v25779_v30  ;;  %v4543_v53 = vshll.u32 %v17854_v36, 16  ;;  %v4549_v47 = vshll.u32 %v25975_v27, 16  ;;  %v4528_v17 = vrot.slane %v4526_v44, 4  ;;  %v26010_v45 = vld [vmem:[%s23348_s16 + $0xdc] sm:$0x1] }
 0x24f   : > { %v4531_v55 = vrot.slane %v4529_v52, 5  ;;  %v4537_v11 = vrot.slane %v4535_v10, 5  ;;  %v4542_v59 = vrot.slane %v4540_v39, 4  ;;  %21443 = vmatprep.subr.bf16.mxu0 %v22895_v14  ;;  %v4519_v56 = vrot.slane %v4518_v54, 4  ;;  %v17860_v15 = vld [vmem:[%s23348_s16 + $0xe0] sm:$0xf] }
 0x250   : > { %v4510_v30 = vsel %vm23392_vm3, %v4505_v35, %v4509_v18  ;;  %v4545_v5 = vrot.slane %v4543_v53, 5  ;;  %v4551_v61 = vrot.slane %v4549_v47, 5  ;;  %v19138_v7 = vrot.slane %v19106_v62, 9  ;;  %v26019_v18 = vld [vmem:[%s23348_s16 + $0xe4] sm:$0x1] }
 0x251   : > { %v4532_v58 = vor.u32 %v4531_v55, %v4528_v17  ;;  %v12235_v9 = vrot.slane %v23111_v57, 5  ;;  %v19139_v4 = vrot.slane %v19107_v48, 9  ;;  %v4524_v26 = vsel %vm23392_vm3, %v4519_v56, %v4523_v0  ;;  %v17862_v62 = vld [vmem:[%s23348_s16 + $0xe8] sm:$0xf]  ;;  %v26034_v35 = vld [vmem:[%s23348_s16 + $0xec] sm:$0x1] }
 0x252   : > { %v4546_v46 = vor.u32 %v4545_v5, %v4542_v59  ;;  %v12239_v43 = vrot.slane %v23112_v25, 5  ;;  %v19140_v34 = vrot.slane %v19108_v24, 9  ;;  %21444 = vmatpush3.bf16.msra.mxu0 %v22895_v14  ;;  %v17896_v23 = vcombine.low %v4510_v30, %v4524_v26  ;;  %v19110_v59 = vld [vmem:[%s23348_s16 + $0xf0] sm:$0xe] }
 0x253   : > { %v4533_v42 = vrot.slane %v4532_v58, 4  ;;  %v12236_v50 = vsel %vm23924_vm6, %v19138_v7, %v12235_v9  ;;  %v12243_v49 = vrot.slane %v23113_v2, 5  ;;  %21445 = vmatprep.subr.bf16.mxu0 %v22900_v3  ;;  %v19141_v28 = vrot.slane %v19109_v41, 9 }
 0x254   : > { %v4547_v32 = vrot.slane %v4546_v46, 4  ;;  %v12240_v8 = vsel %vm23924_vm6, %v19139_v4, %v12239_v43  ;;  %v12247_v1 = vrot.slane %v23114_v19, 5  ;;  %20905 = vmatprep.mubr.msk.bf16.mxu1 %vm979_vm0, %v17896_v23  ;;  %v4554_v20 = vshrl.u32 %v17856_v51, 16  ;;  %v19112_v4 = vld [vmem:[%s23348_s16 + $0x100] sm:$0xe] }
 0x255   : > { %v4538_v29 = vsel %vm23392_vm3, %v4533_v42, %v4537_v11  ;;  %v19176_v36 = vcombine.low %v12236_v50, %v12240_v8  ;;  %v12244_v14 = vsel %vm23924_vm6, %v19140_v34, %v12243_v49  ;;  %v4557_v31 = vshll.u32 %v17856_v51, 16  ;;  %v19113_v43 = vld [vmem:[%s23348_s16 + $0x108] sm:$0xe]  ;;  %v23116_v19 = vld [vmem:[%s23348_s16 + $0xfc] sm:$0x1] }
 0x256   : > { %v4552_v37 = vsel %vm23392_vm3, %v4547_v32, %v4551_v61  ;;  %v12248_v60 = vsel %vm23924_vm6, %v19141_v28, %v12247_v1  ;;  %v4563_v0 = vshll.u32 %v26003_v21, 16  ;;  %21446 = vmatpush3.bf16.msra.mxu0 %v22900_v3  ;;  %v4556_v10 = vrot.slane %v4554_v20, 4  ;;  %v19111_v61 = vld [vmem:[%s23348_s16 + $0xf8] sm:$0xe] }
 0x257   : > { %v17897_v44 = vcombine.low %v4538_v29, %v4552_v37  ;;  %21413 = vmatprep.mubr.msk.bf16.mxu0 %vm979_vm0, %v19176_v36  ;;  %v19177_v52 = vcombine.low %v12244_v14, %v12248_v60  ;;  %v4568_v39 = vshrl.u32 %v17858_v40, 16  ;;  %21447 = vmatprep.subr.bf16.mxu0 %v22901_v33  ;;  %v4559_v54 = vrot.slane %v4557_v31, 5  ;;  %v17864_v29 = vld [vmem:[%s23348_s16 + $0x100] sm:$0xf]  ;;  %v26054_v36 = vld [vmem:[%s23348_s16 + $0x104] sm:$0x1] }
 0x258   : > { %v4565_v53 = vrot.slane %v4563_v0, 5  ;;  %v4571_v47 = vshll.u32 %v17858_v40, 16  ;;  %v4577_v48 = vshll.u32 %v26010_v45, 16  ;;  %v4582_v17 = vshrl.u32 %v17860_v15, 16  ;;  %v17866_v31 = vld [vmem:[%s23348_s16 + $0x108] sm:$0xf] }
 0x259   : > { %20906 = vmatmul.mubr.msk.bf16.gmra.mrb[16].mxu1 %vm979_vm0, %v17897_v44  ;;  %21414 = vmatmul.mubr.msk.bf16.gmra.mrb[4].mxu0 %vm979_vm0, %v19177_v52  ;;  %v4570_v3 = vrot.slane %v4568_v39, 4  ;;  %v4585_v55 = vshll.u32 %v17860_v15, 16  ;;  %v4591_v11 = vshll.u32 %v26019_v18, 16  ;;  %v4560_v24 = vor.u32 %v4559_v54, %v4556_v10  ;;  %v23117_v15 = vld [vmem:[%s23348_s16 + $0x104] sm:$0x1] }
 0x25a   : > { %v4573_v30 = vrot.slane %v4571_v47, 5  ;;  %v4579_v56 = vrot.slane %v4577_v48, 5  ;;  %v4596_v5 = vshrl.u32 %v17862_v62, 16  ;;  %21448 = vmatpush3.bf16.msra.mxu0 %v22901_v33  ;;  %v4584_v58 = vrot.slane %v4582_v17, 4  ;;  %v23115_v33 = vld [vmem:[%s23348_s16 + $0xf4] sm:$0x1] }
 0x25b   : > { %v4587_v7 = vrot.slane %v4585_v55, 5  ;;  %v4593_v57 = vrot.slane %v4591_v11, 5  ;;  %v4599_v9 = vshll.u32 %v17862_v62, 16  ;;  %21481 = vmatprep.subr.bf16.mxu0 %v26024_v13  ;;  %v4561_v41 = vrot.slane %v4560_v24, 4  ;;  %v23118_v54 = vld [vmem:[%s23348_s16 + $0x10c] sm:$0x1] }
 0x25c   : > { %v4574_v26 = vor.u32 %v4573_v30, %v4570_v3  ;;  %v4598_v46 = vrot.slane %v4596_v5, 4  ;;  %v4605_v25 = vshll.u32 %v26034_v35, 16  ;;  %v19142_v23 = vrot.slane %v19110_v59, 9  ;;  %v26068_v47 = vld [vmem:[%s23348_s16 + $0x10c] sm:$0x1] }
 0x25d   : > { %v4588_v34 = vor.u32 %v4587_v7, %v4584_v58  ;;  %v4601_v51 = vrot.slane %v4599_v9, 5  ;;  %v12251_v42 = vrot.slane %v23115_v33, 5  ;;  %v4566_v50 = vsel %vm23392_vm3, %v4561_v41, %v4565_v53  ;;  %v17868_v59 = vld [vmem:[%s23348_s16 + $0x110] sm:$0xf]  ;;  %v17870_v58 = vld [vmem:[%s23348_s16 + $0x118] sm:$0xf] }
 0x25e   : > { %v4575_v2 = vrot.slane %v4574_v26, 4  ;;  %v4607_v49 = vrot.slane %v4605_v25, 5  ;;  %v19143_v40 = vrot.slane %v19111_v61, 9  ;;  %v12255_v1 = vrot.slane %v23116_v19, 5  ;;  %v26079_v61 = vld [vmem:[%s23348_s16 + $0x114] sm:$0x1] }
 0x25f   : > { %v4589_v32 = vrot.slane %v4588_v34, 4  ;;  %v4602_v8 = vor.u32 %v4601_v51, %v4598_v46  ;;  %v12252_v28 = vsel %vm23924_vm6, %v19142_v23, %v12251_v42  ;;  %v19144_v20 = vrot.slane %v19112_v4, 9  ;;  %v26085_v46 = vld [vmem:[%s23348_s16 + $0x11c] sm:$0x1]  ;;  %v19114_v42 = vld [vmem:[%s23348_s16 + $0x110] sm:$0xe] }
 0x260   : > { %v4580_v14 = vsel %vm23392_vm3, %v4575_v2, %v4579_v56  ;;  %v12259_v37 = vrot.slane %v23117_v15, 5  ;;  %v19145_v60 = vrot.slane %v19113_v43, 9  ;;  %v12256_v52 = vsel %vm23924_vm6, %v19143_v40, %v12255_v1 }
 0x261   : > { %v17898_v0 = vcombine.low %v4566_v50, %v4580_v14  ;;  %v4594_v62 = vsel %vm23392_vm3, %v4589_v32, %v4593_v57  ;;  %v4603_v44 = vrot.slane %v4602_v8, 4  ;;  %v19178_v10 = vcombine.low %v12252_v28, %v12256_v52  ;;  %v19115_v32 = vld [vmem:[%s23348_s16 + $0x118] sm:$0xe] }
 0x262   : > { %v12260_v39 = vsel %vm23924_vm6, %v19144_v20, %v12259_v37  ;;  %v12263_v53 = vrot.slane %v23118_v54, 5  ;;  %v4610_v48 = vshrl.u32 %v17864_v29, 16  ;;  %v4613_v17 = vshll.u32 %v17864_v29, 16  ;;  %v19116_v29 = vld [vmem:[%s23348_s16 + $0x120] sm:$0xe] }
 0x263   : > { %20909 = vmatprep.mubr.msk.bf16.mxu1 %vm979_vm0, %v17898_v0  ;;  %v4608_v3 = vsel %vm23392_vm3, %v4603_v44, %v4607_v49  ;;  %v4619_v55 = vshll.u32 %v26054_v36, 16  ;;  %v4624_v11 = vshrl.u32 %v17866_v31, 16  ;;  %21417 = vmatprep.mubr.msk.bf16.mxu0 %vm979_vm0, %v19178_v10  ;;  %v4627_v5 = vshll.u32 %v17866_v31, 16 }
 0x264   : > { %v17899_v24 = vcombine.low %v4594_v62, %v4608_v3  ;;  %v12264_v30 = vsel %vm23924_vm6, %v19145_v60, %v12263_v53  ;;  %v4612_v56 = vrot.slane %v4610_v48, 4  ;;  %v4615_v57 = vrot.slane %v4613_v17, 5  ;;  %v19117_v60 = vld [vmem:[%s23348_s16 + $0x128] sm:$0xe]  ;;  %v23119_v62 = vld [vmem:[%s23348_s16 + $0x114] sm:$0x1] }
 0x265   : > { %v19179_v7 = vcombine.low %v12260_v39, %v12264_v30  ;;  %v4621_v9 = vrot.slane %v4619_v55, 5  ;;  %v4626_v4 = vrot.slane %v4624_v11, 4  ;;  %v4629_v41 = vrot.slane %v4627_v5, 5  ;;  %v23120_v53 = vld [vmem:[%s23348_s16 + $0x11c] sm:$0x1] }
 0x266   : > { %20910 = vmatmul.mubr.msk.bf16.gmra.mrb[20].mxu1 %vm979_vm0, %v17899_v24  ;;  %v4633_v26 = vshll.u32 %v26068_v47, 16  ;;  %v4638_v25 = vshrl.u32 %v17868_v59, 16  ;;  %v4641_v43 = vshll.u32 %v17868_v59, 16  ;;  %v4616_v34 = vor.u32 %v4615_v57, %v4612_v56  ;;  %v17872_v3 = vld [vmem:[%s23348_s16 + $0x120] sm:$0xf] }
 0x267   : > { %21418 = vmatmul.mubr.msk.bf16.gmra.mrb[8].mxu0 %vm979_vm0, %v19179_v7  ;;  %v4647_v51 = vshll.u32 %v26079_v61, 16  ;;  %v4652_v23 = vshrl.u32 %v17870_v58, 16  ;;  %v4655_v33 = vshll.u32 %v17870_v58, 16  ;;  %v4630_v50 = vor.u32 %v4629_v41, %v4626_v4  ;;  %v26104_v24 = vld [vmem:[%s23348_s16 + $0x124] sm:$0x1] }
 0x268   : > { %v4635_v2 = vrot.slane %v4633_v26, 5  ;;  %v4640_v49 = vrot.slane %v4638_v25, 4  ;;  %v4643_v40 = vrot.slane %v4641_v43, 5  ;;  %v4617_v8 = vrot.slane %v4616_v34, 4  ;;  %v23121_v5 = vld [vmem:[%s23348_s16 + $0x124] sm:$0x1] }
 0x269   : > { %v4649_v28 = vrot.slane %v4647_v51, 5  ;;  %v4654_v19 = vrot.slane %v4652_v23, 4  ;;  %v4657_v1 = vrot.slane %v4655_v33, 5  ;;  %v4631_v14 = vrot.slane %v4630_v50, 4  ;;  %v17874_v57 = vld [vmem:[%s23348_s16 + $0x128] sm:$0xf] }
 0x26a   : > { %v4644_v20 = vor.u32 %v4643_v40, %v4640_v49  ;;  %v4661_v15 = vshll.u32 %v26085_v46, 16  ;;  %v19146_v37 = vrot.slane %v19114_v42, 9  ;;  %v4622_v31 = vsel %vm23392_vm3, %v4617_v8, %v4621_v9  ;;  %v23122_v41 = vld [vmem:[%s23348_s16 + $0x12c] sm:$0x1]  ;;  %v17876_v34 = vld [vmem:[%s23348_s16 + $0x130] sm:$0xf] }
 0x26b   : > { %v4658_v0 = vor.u32 %v4657_v1, %v4654_v19  ;;  %v12267_v44 = vrot.slane %v23119_v62, 5  ;;  %v19147_v52 = vrot.slane %v19115_v32, 9  ;;  %v4636_v10 = vsel %vm23392_vm3, %v4631_v14, %v4635_v2  ;;  %v26117_v25 = vld [vmem:[%s23348_s16 + $0x12c] sm:$0x1]  ;;  %v26124_v50 = vld [vmem:[%s23348_s16 + $0x134] sm:$0x1] }
 0x26c   : > { %v4645_v39 = vrot.slane %v4644_v20, 4  ;;  %v4663_v54 = vrot.slane %v4661_v15, 5  ;;  %v12271_v48 = vrot.slane %v23120_v53, 5  ;;  %v17900_v17 = vcombine.low %v4622_v31, %v4636_v10  ;;  %v17878_v2 = vld [vmem:[%s23348_s16 + $0x138] sm:$0xf] }
 0x26d   : > { %v4659_v55 = vrot.slane %v4658_v0, 4  ;;  %v12268_v11 = vsel %vm23924_vm6, %v19146_v37, %v12267_v44  ;;  %v19148_v59 = vrot.slane %v19116_v29, 9  ;;  %v12275_v58 = vrot.slane %v23121_v5, 5  ;;  %v19118_v20 = vld [vmem:[%s23348_s16 + $0x140] sm:$0xe] }
 0x26e   : > { %v4650_v30 = vsel %vm23392_vm3, %v4645_v39, %v4649_v28  ;;  %v12272_v56 = vsel %vm23924_vm6, %v19147_v52, %v12271_v48  ;;  %v19149_v7 = vrot.slane %v19117_v60, 9  ;;  %20913 = vmatprep.mubr.msk.bf16.mxu1 %vm979_vm0, %v17900_v17  ;;  %v12279_v26 = vrot.slane %v23122_v41, 5  ;;  %v26131_v28 = vld [vmem:[%s23348_s16 + $0x13c] sm:$0x1]  ;;  %v19119_v0 = vld [vmem:[%s23348_s16 + $0x148] sm:$0xe] }
 0x26f   : > { %v4664_v9 = vsel %vm23392_vm3, %v4659_v55, %v4663_v54  ;;  %v19180_v4 = vcombine.low %v12268_v11, %v12272_v56  ;;  %v4666_v43 = vshrl.u32 %v17872_v3, 16  ;;  %v12276_v23 = vsel %vm23924_vm6, %v19148_v59, %v12275_v58  ;;  %v23123_v41 = vld [vmem:[%s23348_s16 + $0x144] sm:$0x1] }
 0x270   : > { %v17901_v51 = vcombine.low %v4650_v30, %v4664_v9  ;;  %v4669_v33 = vshll.u32 %v17872_v3, 16  ;;  %v4675_v42 = vshll.u32 %v26104_v24, 16  ;;  %v12280_v49 = vsel %vm23924_vm6, %v19149_v7, %v12279_v26  ;;  %v19120_v3 = vld [vmem:[%s23348_s16 + $0x150] sm:$0xe]  ;;  %v19121_v30 = vld [vmem:[%s23348_s16 + $0x158] sm:$0xe] }
 0x271   : > { %21421 = vmatprep.mubr.msk.bf16.mxu0 %vm979_vm0, %v19180_v4  ;;  %v4668_v40 = vrot.slane %v4666_v43, 4  ;;  %v4680_v32 = vshrl.u32 %v17874_v57, 16  ;;  %v4683_v8 = vshll.u32 %v17874_v57, 16  ;;  %v19181_v19 = vcombine.low %v12276_v23, %v12280_v49  ;;  %v17924_v57 = vld [vmem:[%s23348_s16 + $0x10] sm:$0xe] }
 0x272   : > { %20914 = vmatmul.mubr.msk.bf16.gmra.mrb[24].mxu1 %vm979_vm0, %v17901_v51  ;;  %v4671_v1 = vrot.slane %v4669_v33, 5  ;;  %v4677_v29 = vrot.slane %v4675_v42, 5  ;;  %v4689_v14 = vshll.u32 %v26117_v25, 16  ;;  %v4694_v60 = vshrl.u32 %v17876_v34, 16  ;;  %v23124_v33 = vld [vmem:[%s23348_s16 + $0x14c] sm:$0x1] }
 0x273   : > { %v4682_v15 = vrot.slane %v4680_v32, 4  ;;  %v4685_v37 = vrot.slane %v4683_v8, 5  ;;  %v4697_v31 = vshll.u32 %v17876_v34, 16  ;;  %21422 = vmatmul.mubr.msk.bf16.gmra.mrb[12].mxu0 %vm979_vm0, %v19181_v19  ;;  %v4703_v52 = vshll.u32 %v26124_v50, 16  ;;  %v23125_v8 = vld [vmem:[%s23348_s16 + $0x154] sm:$0x1] }
 0x274   : > { %v4672_v62 = vor.u32 %v4671_v1, %v4668_v40  ;;  %v4691_v44 = vrot.slane %v4689_v14, 5  ;;  %v4708_v10 = vshrl.u32 %v17878_v2, 16  ;;  %v4696_v54 = vrot.slane %v4694_v60, 4  ;;  %v17926_v1 = vld [vmem:[%s23348_s16 + $0x20] sm:$0xe] }
 0x275   : > { %v4686_v39 = vor.u32 %v4685_v37, %v4682_v15  ;;  %v4699_v53 = vrot.slane %v4697_v31, 5  ;;  %v4711_v48 = vshll.u32 %v17878_v2, 16  ;;  %v4705_v55 = vrot.slane %v4703_v52, 5  ;;  %v17925_v2 = vld [vmem:[%s23348_s16 + $0x18] sm:$0xe] }
 0x276   : > { %v4673_v17 = vrot.slane %v4672_v62, 4  ;;  %v4710_v11 = vrot.slane %v4708_v10, 4  ;;  %v4717_v59 = vshll.u32 %v26131_v28, 16  ;;  %v19150_v7 = vrot.slane %v19118_v20, 9  ;;  %v17927_v37 = vld [vmem:[%s23348_s16 + $0x28] sm:$0xe] }
 0x277   : > { %v4687_v56 = vrot.slane %v4686_v39, 4  ;;  %v4700_v5 = vor.u32 %v4699_v53, %v4696_v54  ;;  %v4713_v58 = vrot.slane %v4711_v48, 5  ;;  %v12283_v26 = vrot.slane %v23123_v41, 5  ;;  %v19122_v60 = vld [vmem:[%s23348_s16 + $0x160] sm:$0xe] }
 0x278   : > { %v4678_v9 = vsel %vm23392_vm3, %v4673_v17, %v4677_v29  ;;  %v4719_v4 = vrot.slane %v4717_v59, 5  ;;  %v19151_v43 = vrot.slane %v19119_v0, 9  ;;  %v12287_v42 = vrot.slane %v23124_v33, 5  ;;  %v23126_v62 = vld [vmem:[%s23348_s16 + $0x15c] sm:$0x1] }
 0x279   : > { %v4692_v34 = vsel %vm23392_vm3, %v4687_v56, %v4691_v44  ;;  %v4701_v51 = vrot.slane %v4700_v5, 4  ;;  %v4714_v23 = vor.u32 %v4713_v58, %v4710_v11  ;;  %v12284_v40 = vsel %vm23924_vm6, %v19150_v7, %v12283_v26  ;;  %v19123_v10 = vld [vmem:[%s23348_s16 + $0x168] sm:$0xe]  ;;  %v19124_v39 = vld [vmem:[%s23348_s16 + $0x170] sm:$0xe] }
 0x27a   : > { %v17902_v49 = vcombine.low %v4678_v9, %v4692_v34  ;;  %v19152_v32 = vrot.slane %v19120_v3, 9  ;;  %v12291_v19 = vrot.slane %v23125_v8, 5  ;;  %v12288_v20 = vsel %vm23924_vm6, %v19151_v43, %v12287_v42  ;;  %v23127_v53 = vld [vmem:[%s23348_s16 + $0x14] sm:$0x1]  ;;  %v23128_v17 = vld [vmem:[%s23348_s16 + $0x1c] sm:$0x1] }
 0x27b   : > { %v4706_v29 = vsel %vm23392_vm3, %v4701_v51, %v4705_v55  ;;  %v4715_v14 = vrot.slane %v4714_v23, 4  ;;  %v19153_v15 = vrot.slane %v19121_v30, 9  ;;  %v19182_v31 = vcombine.low %v12284_v40, %v12288_v20  ;;  %v23129_v56 = vld [vmem:[%s23348_s16 + $0x24] sm:$0x1]  ;;  %v19125_v58 = vld [vmem:[%s23348_s16 + $0x178] sm:$0xe] }
 0x27c   : > { %20917 = vmatprep.mubr.msk.bf16.mxu1 %vm979_vm0, %v17902_v49  ;;  %v12292_v0 = vsel %vm23924_vm6, %v19152_v32, %v12291_v19  ;;  %v12295_v44 = vrot.slane %v23126_v62, 5  ;;  %v17956_v52 = vrot.slane %v17924_v57, 9  ;;  %v5141_v48 = vrot.slane %v23127_v53, 5  ;;  %v17928_v41 = vld [vmem:[%s23348_s16 + $0x30] sm:$0xe] }
 0x27d   : > { %v4720_v54 = vsel %vm23392_vm3, %v4715_v14, %v4719_v4  ;;  %v17957_v3 = vrot.slane %v17925_v2, 9  ;;  %v5145_v55 = vrot.slane %v23128_v17, 5  ;;  %21425 = vmatprep.mubr.msk.bf16.mxu0 %vm979_vm0, %v19182_v31  ;;  %v17958_v30 = vrot.slane %v17926_v1, 9  ;;  %v23130_v34 = vld [vmem:[%s23348_s16 + $0x2c] sm:$0x1] }
 0x27e   : > { %v17903_v11 = vcombine.low %v4706_v29, %v4720_v54  ;;  %v12296_v59 = vsel %vm23924_vm6, %v19153_v15, %v12295_v44  ;;  %v5149_v5 = vrot.slane %v23129_v56, 5  ;;  %v5142_v57 = vsel %vm23924_vm6, %v17956_v52, %v5141_v48  ;;  %v17929_v33 = vld [vmem:[%s23348_s16 + $0x38] sm:$0xe]  ;;  %v17930_v42 = vld [vmem:[%s23348_s16 + $0x40] sm:$0xe] }
 0x27f   : > { %v19183_v7 = vcombine.low %v12292_v0, %v12296_v59  ;;  %v5146_v9 = vsel %vm23924_vm6, %v17957_v3, %v5145_v55  ;;  %v17959_v4 = vrot.slane %v17927_v37, 9  ;;  %v5153_v51 = vrot.slane %v23130_v34, 5  ;;  %v23131_v2 = vld [vmem:[%s23348_s16 + $0x164] sm:$0x1]  ;;  %v23132_v32 = vld [vmem:[%s23348_s16 + $0x16c] sm:$0x1] }
 0x280   : > { %20918 = vmatmul.mubr.msk.bf16.gmra.mrb[28].mxu1 %vm979_vm0, %v17903_v11  ;;  %v17996_v26 = vcombine.low %v5142_v57, %v5146_v9  ;;  %v5150_v43 = vsel %vm23924_vm6, %v17958_v30, %v5149_v5  ;;  %v19154_v23 = vrot.slane %v19122_v60, 9  ;;  %v12299_v49 = vrot.slane %v23131_v2, 5  ;;  %v17931_v1 = vld [vmem:[%s23348_s16 + $0x48] sm:$0xe]  ;;  %v23133_v14 = vld [vmem:[%s23348_s16 + $0x174] sm:$0x1] }
 0x281   : > { %21426 = vmatmul.mubr.msk.bf16.gmra.mrb[16].mxu0 %vm979_vm0, %v19183_v7  ;;  %v19155_v40 = vrot.slane %v19123_v10, 9  ;;  %v12303_v8 = vrot.slane %v23132_v32, 5  ;;  %v19156_v19 = vrot.slane %v19124_v39, 9  ;;  %v5154_v29 = vsel %vm23924_vm6, %v17959_v4, %v5153_v51  ;;  %v23134_v37 = vld [vmem:[%s23348_s16 + $0x17c] sm:$0x1]  ;;  %v22911_v34 = vld [vmem:[%s28369_s2 + $0x128] sm:$0xff]  }
 0x282   : > { %20929 = vmatprep.mubr.msk.bf16.mxu1 %vm979_vm0, %v17996_v26  ;;  %v12307_v20 = vrot.slane %v23133_v14, 5  ;;  %v19157_v15 = vrot.slane %v19125_v58, 9  ;;  %v12311_v60 = vrot.slane %v23134_v37, 5  ;;  %v19126_v31 = vld [vmem:[%s23348_s16 + $0x190] sm:$0xe]  ;;  %v17997_v62 = vcombine.low %v5150_v43, %v5154_v29 }
 0x283   : > { %v19127_v0 = vld [vmem:[%s23348_s16 + $0x198] sm:$0xe]  ;;  %v12300_v44 = vsel %vm23924_vm6, %v19154_v23, %v12299_v49  ;;  %v12304_v52 = vsel %vm23924_vm6, %v19155_v40, %v12303_v8  ;;  %v17960_v10 = vrot.slane %v17928_v41, 9  ;;  %v23135_v48 = vld [vmem:[%s23348_s16 + $0x34] sm:$0x1]  ;;  %v17961_v11 = vrot.slane %v17929_v33, 9 }
 0x284   : > { %v19184_v39 = vcombine.low %v12300_v44, %v12304_v52  ;;  %v12308_v54 = vsel %vm23924_vm6, %v19156_v19, %v12307_v20  ;;  %v12312_v53 = vsel %vm23924_vm6, %v19157_v15, %v12311_v60  ;;  %v5157_v3 = vrot.slane %v23135_v48, 5  ;;  %v19128_v17 = vld [vmem:[%s23348_s16 + $0x1a0] sm:$0xe]  ;;  %v23136_v59 = vld [vmem:[%s23348_s16 + $0x3c] sm:$0x1] }
 0x285   : > { %v19185_v55 = vcombine.low %v12308_v54, %v12312_v53  ;;  %v5161_v30 = vrot.slane %v23136_v59, 5  ;;  %v17962_v56 = vrot.slane %v17930_v42, 9  ;;  %v19129_v5 = vld [vmem:[%s23348_s16 + $0x1a8] sm:$0xe]  ;;  %v17932_v58 = vld [vmem:[%s23348_s16 + $0x60] sm:$0xe] }
 0x286   : > { %21429 = vmatprep.mubr.msk.bf16.mxu0 %vm979_vm0, %v19184_v39  ;;  %v5158_v7 = vsel %vm23924_vm6, %v17960_v10, %v5157_v3  ;;  %v23137_v57 = vld [vmem:[%s23348_s16 + $0x44] sm:$0x1]  ;;  %v17963_v4 = vrot.slane %v17931_v1, 9  ;;  %v23138_v41 = vld [vmem:[%s23348_s16 + $0x4c] sm:$0x1]  ;;  %v19158_v23 = vrot.slane %v19126_v31, 9 }
 0x287   : > { %v5165_v9 = vrot.slane %v23137_v57, 5  ;;  %v5169_v26 = vrot.slane %v23138_v41, 5  ;;  %v17933_v43 = vld [vmem:[%s23348_s16 + $0x68] sm:$0xe]  ;;  %v5162_v51 = vsel %vm23924_vm6, %v17961_v11, %v5161_v30  ;;  %v23139_v33 = vld [vmem:[%s23348_s16 + $0x194] sm:$0x1] }
 0x288   : > { %v12315_v42 = vrot.slane %v23139_v33, 5  ;;  %v19159_v2 = vrot.slane %v19127_v0, 9  ;;  %20930 = vmatmul.mubr.msk.bf16.vlgmr.msra.gmra.mrb[0].mxu1 %vm979_vm0, %v17997_v62  ;;  %v17998_v49 = vcombine.low %v5158_v7, %v5162_v51  ;;  %v23140_v8 = vld [vmem:[%s23348_s16 + $0x19c] sm:$0x1]  ;;  %v17934_v1 = vld [vmem:[%s23348_s16 + $0x70] sm:$0xe] }
 0x289   : > { %v5166_v40 = vsel %vm23924_vm6, %v17962_v56, %v5165_v9  ;;  %v5170_v32 = vsel %vm23924_vm6, %v17963_v4, %v5169_v26  ;;  %v12319_v19 = vrot.slane %v23140_v8, 5  ;;  %21430 = vmatmul.mubr.msk.bf16.gmra.mrb[20].mxu0 %vm979_vm0, %v19185_v55  ;;  %v19160_v20 = vrot.slane %v19128_v17, 9  ;;  %v23141_v15 = vld [vmem:[%s23348_s16 + $0x1a4] sm:$0x1]  ;;  %v17935_v60 = vld [vmem:[%s23348_s16 + $0x78] sm:$0xe]  ;;  %20962 = vmatpush3.bf16.msra.mxu1 %v25909_v6 }
 0x28a   : > { %v17999_v29 = vcombine.low %v5166_v40, %v5170_v32  ;;  %v12316_v14 = vsel %vm23924_vm6, %v19158_v23, %v12315_v42  ;;  %v12323_v37 = vrot.slane %v23141_v15, 5  ;;  %v19130_v31 = vld [vmem:[%s23348_s16 + $0x1b0] sm:$0xe]  ;;  %20933 = vmatprep.mubr.msk.bf16.mxu1 %vm979_vm0, %v17998_v49  ;;  %v19161_v62 = vrot.slane %v19129_v5, 9  ;;  %v23142_v44 = vld [vmem:[%s23348_s16 + $0x1ac] sm:$0x1]  ;;  %20963 = vmatprep.subr.bf16.mxu1 %v22911_v34 }
 0x28b   : > { %v12320_v0 = vsel %vm23924_vm6, %v19159_v2, %v12319_v19  ;;  %v12327_v52 = vrot.slane %v23142_v44, 5  ;;  %v17964_v10 = vrot.slane %v17932_v58, 9  ;;  %v19131_v39 = vld [vmem:[%s23348_s16 + $0x1b8] sm:$0xe]  ;;  %v22914_v54 = vld [vmem:[%s28369_s2 + $0x130] sm:$0xff]   ;;  %v17965_v17 = vrot.slane %v17933_v43, 9 }
 0x28c   : > { %v19186_v6 = vcombine.low %v12316_v14, %v12320_v0  ;;  %v12324_v53 = vsel %vm23924_vm6, %v19160_v20, %v12323_v37  ;;  %v23143_v48 = vld [vmem:[%s23348_s16 + $0x64] sm:$0x1]  ;;  %v19132_v55 = vld [vmem:[%s23348_s16 + $0x1c0] sm:$0xe]  ;;  %v23144_v59 = vld [vmem:[%s23348_s16 + $0x6c] sm:$0x1] }
 0x28d   : > { %v5173_v3 = vrot.slane %v23143_v48, 5  ;;  %v12328_v11 = vsel %vm23924_vm6, %v19161_v62, %v12327_v52  ;;  %v5177_v30 = vrot.slane %v23144_v59, 5  ;;  %v17966_v56 = vrot.slane %v17934_v1, 9  ;;  %v23145_v5 = vld [vmem:[%s23348_s16 + $0x74] sm:$0x1]  ;;  %20964 = vmatpush3.bf16.msra.mxu1 %v22911_v34  ;;  %v22915_v51 = vld [vmem:[%s28369_s2 + $0x138] sm:$0xff]  }
 0x28e   : > { %v5181_v58 = vrot.slane %v23145_v5, 5  ;;  %v19133_v7 = vld [vmem:[%s23348_s16 + $0x1c8] sm:$0xe]  ;;  %v17936_v57 = vld [vmem:[%s23348_s16 + $0x80] sm:$0xe]  ;;  %21433 = vmatprep.mubr.msk.bf16.mxu0 %vm979_vm0, %v19186_v6  ;;  %v19187_v9 = vcombine.low %v12324_v53, %v12328_v11  ;;  %v17967_v41 = vrot.slane %v17935_v60, 9  ;;  %20965 = vmatprep.subr.bf16.mxu1 %v22914_v54 }
 0x28f   : > { %v5174_v4 = vsel %vm23924_vm6, %v17964_v10, %v5173_v3  ;;  %v23146_v26 = vld [vmem:[%s23348_s16 + $0x7c] sm:$0x1]  ;;  %v5178_v23 = vsel %vm23924_vm6, %v17965_v17, %v5177_v30  ;;  %v19162_v33 = vrot.slane %v19130_v31, 9  ;;  %v23147_v42 = vld [vmem:[%s23348_s16 + $0x1b4] sm:$0x1]  ;;  %v19163_v34 = vrot.slane %v19131_v39, 9 }
 0x290   : > { %v5185_v43 = vrot.slane %v23146_v26, 5  ;;  %v12331_v2 = vrot.slane %v23147_v42, 5  ;;  %v17937_v49 = vld [vmem:[%s23348_s16 + $0x88] sm:$0xe]  ;;  %v18000_v40 = vcombine.low %v5174_v4, %v5178_v23  ;;  %v5182_v32 = vsel %vm23924_vm6, %v17966_v56, %v5181_v58  ;;  %v23148_v8 = vld [vmem:[%s23348_s16 + $0x1bc] sm:$0x1]  ;;  %20934 = vmatmul.mubr.msk.bf16.gmra.mrb[4].mxu1 %vm979_vm0, %v17999_v29 }
 0x291   : > { %v12335_v19 = vrot.slane %v23148_v8, 5  ;;  %v19164_v20 = vrot.slane %v19132_v55, 9  ;;  %v23149_v15 = vld [vmem:[%s23348_s16 + $0x1c4] sm:$0x1]  ;;  %v17938_v60 = vld [vmem:[%s23348_s16 + $0x90] sm:$0xe]  ;;  %21434 = vmatmul.mubr.msk.bf16.gmra.mrb[24].mxu0 %vm979_vm0, %v19187_v9  ;;  %20966 = vmatpush3.bf16.msra.mxu1 %v22914_v54 }
 0x292   : > { %v5186_v1 = vsel %vm23924_vm6, %v17967_v41, %v5185_v43  ;;  %v12332_v14 = vsel %vm23924_vm6, %v19162_v33, %v12331_v2  ;;  %v12339_v37 = vrot.slane %v23149_v15, 5  ;;  %20937 = vmatprep.mubr.msk.bf16.mxu1 %vm979_vm0, %v18000_v40  ;;  %v19165_v31 = vrot.slane %v19133_v7, 9  ;;  %v23150_v0 = vld [vmem:[%s23348_s16 + $0x1cc] sm:$0x1]  ;;  %v17939_v52 = vld [vmem:[%s23348_s16 + $0x98] sm:$0xe]  ;;  %20967 = vmatprep.subr.bf16.mxu1 %v22915_v51 }
 0x293   : > { %v12336_v29 = vsel %vm23924_vm6, %v19163_v34, %v12335_v19  ;;  %v12343_v62 = vrot.slane %v23150_v0, 5  ;;  %v17968_v44 = vrot.slane %v17936_v57, 9  ;;  %v23151_v6 = vld [vmem:[%s23348_s16 + $0x84] sm:$0x1]  ;;  %v17969_v48 = vrot.slane %v17937_v49, 9 }
 0x294   : > { %v19188_v10 = vcombine.low %v12332_v14, %v12336_v29  ;;  %v12340_v39 = vsel %vm23924_vm6, %v19164_v20, %v12339_v37  ;;  %v5189_v53 = vrot.slane %v23151_v6, 5  ;;  %v17940_v3 = vld [vmem:[%s23348_s16 + $0xb0] sm:$0xe]  ;;  %v17941_v17 = vld [vmem:[%s23348_s16 + $0xb8] sm:$0xe]  ;;  %v17970_v30 = vrot.slane %v17938_v60, 9 }
 0x295   : > { %v12344_v55 = vsel %vm23924_vm6, %v19165_v31, %v12343_v62  ;;  %v23152_v11 = vld [vmem:[%s23348_s16 + $0x8c] sm:$0x1]  ;;  %v23153_v56 = vld [vmem:[%s23348_s16 + $0x94] sm:$0x1]  ;;  %v26293_v58 = vld [vmem:[%s28369_s2 + $0x140] sm:$0xff]   ;;  %v18001_v7 = vcombine.low %v5182_v32, %v5186_v1  ;;  %v17971_v57 = vrot.slane %v17939_v52, 9  ;;  %20968 = vmatpush3.bf16.msra.mxu1 %v22915_v51 }
 0x296   : > { %v5193_v59 = vrot.slane %v23152_v11, 5  ;;  %v5197_v5 = vrot.slane %v23153_v56, 5  ;;  %21437 = vmatprep.mubr.msk.bf16.mxu0 %vm979_vm0, %v19188_v10  ;;  %v5190_v54 = vsel %vm23924_vm6, %v17968_v44, %v5189_v53  ;;  %v23154_v9 = vld [vmem:[%s23348_s16 + $0x9c] sm:$0x1]  ;;  %v22902_v41 = vld [vmem:[%s23348_s16 + $0xa8] ss:$8 sps:$4 sm:$0xff]   ;;  %v19189_v26 = vcombine.low %v12340_v39, %v12344_v55  ;;  %21001 = vmatprep.subr.bf16.mxu1 %v26293_v58 }
 0x297   : > { %v5201_v4 = vrot.slane %v23154_v9, 5  ;;  %v17972_v23 = vrot.slane %v17940_v3, 9  ;;  %v5205_v33 = vrot.slane %v25936_v22, 5  ;;  %v17942_v42 = vld [vmem:[%s23348_s16 + $0xc0] sm:$0xe]  ;;  %v17973_v49 = vrot.slane %v17941_v17, 9 }
 0x298   : > { %v5194_v43 = vsel %vm23924_vm6, %v17969_v48, %v5193_v59  ;;  %v5209_v40 = vrot.slane %v25953_v12, 5  ;;  %v17943_v32 = vld [vmem:[%s23348_s16 + $0xc8] sm:$0xe]  ;;  %v17944_v34 = vld [vmem:[%s23348_s16 + $0xd0] sm:$0xe]  ;;  %20938 = vmatmul.mubr.msk.bf16.gmra.mrb[8].mxu1 %vm979_vm0, %v18001_v7  ;;  %v5198_v8 = vsel %vm23924_vm6, %v17970_v30, %v5197_v5  ;;  %v17974_v15 = vrot.slane %v17942_v42, 9 }
 0x299   : > { %v18002_v2 = vcombine.low %v5190_v54, %v5194_v43  ;;  %v17945_v19 = vld [vmem:[%s23348_s16 + $0xd8] sm:$0xe]  ;;  %v17948_v22 = vld [vmem:[%s23348_s16 + $0x100] sm:$0xe]  ;;  %v17949_v1 = vld [vmem:[%s23348_s16 + $0x108] sm:$0xe]  ;;  %21438 = vmatmul.mubr.msk.bf16.gmra.mrb[28].mxu0 %vm979_vm0, %v19189_v26  ;;  %v5202_v12 = vsel %vm23924_vm6, %v17971_v57, %v5201_v4  ;;  %v5206_v51 = vsel %vm23924_vm6, %v17972_v23, %v5205_v33 }
 0x29a   : > { %v5210_v14 = vsel %vm23924_vm6, %v17973_v49, %v5209_v40  ;;  %v17950_v20 = vld [vmem:[%s23348_s16 + $0x110] sm:$0xe]  ;;  %21449 = vmatprep.mubr.msk.bf16.mxu0 %vm979_vm0, %v22902_v41  ;;  %v17951_v37 = vld [vmem:[%s23348_s16 + $0x118] sm:$0xe]  ;;  %v5213_v29 = vrot.slane %v25963_v16, 5  ;;  %v17975_v31 = vrot.slane %v17943_v32, 9  ;;  %v18003_v44 = vcombine.low %v5198_v8, %v5202_v12 }
 0x29b   : > { %20941 = vmatprep.mubr.msk.bf16.mxu1 %vm979_vm0, %v18002_v2  ;;  %v22903_v60 = vld [vmem:[%s23348_s16 + $0xb8] ss:$8 sps:$4 sm:$0xff]   ;;  %v5217_v0 = vrot.slane %v25975_v27, 5  ;;  %v17976_v62 = vrot.slane %v17944_v34, 9  ;;  %v18004_v52 = vcombine.low %v5206_v51, %v5210_v14  ;;  %v22905_v10 = vld [vmem:[%s23348_s16 + $0xc8] ss:$8 sps:$4 sm:$0xff]  }
 0x29c   : > { %v17980_v39 = vrot.slane %v17948_v22, 9  ;;  %v5237_v6 = vrot.slane %v26054_v36, 5  ;;  %v17954_v53 = vld [vmem:[%s23348_s16 + $0x130] sm:$0xe]  ;;  %v5221_v48 = vrot.slane %v26003_v21, 5  ;;  %v17977_v3 = vrot.slane %v17945_v19, 9 }
 0x29d   : > { %v17981_v17 = vrot.slane %v17949_v1, 9  ;;  %v5241_v55 = vrot.slane %v26068_v47, 5  ;;  %v5225_v16 = vrot.slane %v26010_v45, 5  ;;  %v22909_v27 = vld [vmem:[%s28369_s2 + $0x2c8] sm:$0xff]   ;;  %v17982_v59 = vrot.slane %v17950_v20, 9  ;;  %v22918_v41 = vld [vmem:[%s28369_s2 + $0x2d0] sm:$0xff]  }
 0x29e   : > { %v26339_v11 = vsel %vm23924_vm6, %v17980_v39, %v5237_v6  ;;  %v5245_v36 = vrot.slane %v26079_v61, 5  ;;  %v17983_v30 = vrot.slane %v17951_v37, 9  ;;  %v5249_v47 = vrot.slane %v26085_v46, 5  ;;  %v17955_v45 = vld [vmem:[%s23348_s16 + $0x138] sm:$0xe]  ;;  %v26408_v51 = vld [vmem:[%s28369_s2 + $0x2e0] sm:$0xff]  }
 0x29f   : > { %v26344_v21 = vsel %vm23924_vm6, %v17981_v17, %v5241_v55  ;;  %v5214_v56 = vsel %vm23924_vm6, %v17974_v15, %v5213_v29  ;;  %v5218_v5 = vsel %vm23924_vm6, %v17975_v31, %v5217_v0  ;;  %v5222_v46 = vsel %vm23924_vm6, %v17976_v62, %v5221_v48  ;;  %v17946_v54 = vld [vmem:[%s23348_s16 + $0xe0] sm:$0xe]  ;;  %v17947_v43 = vld [vmem:[%s23348_s16 + $0xe8] sm:$0xe]  ;;  %v19293_v6 = vld [vmem:[%s23348_s16 + $0xb8] sm:$0xf] }
 0x2a0   : > { %20942 = vmatmul.mubr.msk.bf16.gmra.mrb[12].mxu1 %vm979_vm0, %v18003_v44  ;;  %v18008_v61 = vcombine.low %v26339_v11, %v26344_v21  ;;  %v26357_v7 = vsel %vm23924_vm6, %v17982_v59, %v5245_v36  ;;  %v26366_v57 = vsel %vm23924_vm6, %v17983_v30, %v5249_v47  ;;  %v17986_v9 = vrot.slane %v17954_v53, 9  ;;  %v22906_v2 = vld [vmem:[%s23348_s16 + $0xd8] ss:$8 sps:$4 sm:$0xff]   ;;  %v17953_v14 = vld [vmem:[%s23348_s16 + $0x128] sm:$0xe] }
 0x2a1   : > { %21450 = vmatmul.mubr.msk.bf16.vlgmr.msra.gmra.mrb[0].mxu0 %vm979_vm0, %v22903_v60  ;;  %20945 = vmatprep.mubr.msk.bf16.mxu1 %vm979_vm0, %v18004_v52  ;;  %v5261_v4 = vrot.slane %v26124_v50, 5  ;;  %v5226_v26 = vsel %vm23924_vm6, %v17977_v3, %v5225_v16  ;;  %v18009_v23 = vcombine.low %v26357_v7, %v26366_v57  ;;  %v17987_v33 = vrot.slane %v17955_v45, 9  ;;  %v22907_v32 = vld [vmem:[%s23348_s16 + $0xf8] ss:$8 sps:$4 sm:$0xff]   ;;  %v22908_v20 = vld [vmem:[%s23348_s16 + $0x108] ss:$8 sps:$4 sm:$0xff]  }
 0x2a2   : > { %21482 = vmatpush3.bf16.msra.mxu0 %v26024_v13  ;;  %21453 = vmatprep.mubr.msk.bf16.mxu0 %vm979_vm0, %v22905_v10  ;;  %v5265_v42 = vrot.slane %v26131_v28, 5  ;;  %v18005_v49 = vcombine.low %v5214_v56, %v5218_v5  ;;  %v17978_v13 = vrot.slane %v17946_v54, 9  ;;  %v5229_v40 = vrot.slane %v26019_v18, 5  ;;  %v22927_v18 = vld [vmem:[%s28369_s2 + $0x2d8] sm:$0xff]   ;;  %v17952_v12 = vld [vmem:[%s23348_s16 + $0x120] sm:$0xe] }
 0x2a3   : > { %21483 = vmatprep.subr.bf16.mxu0 %v22909_v27  ;;  %v26383_v50 = vsel %vm23924_vm6, %v17986_v9, %v5261_v4  ;;  %v18006_v8 = vcombine.low %v5222_v46, %v5226_v26  ;;  %v17979_v19 = vrot.slane %v17947_v43, 9  ;;  %v5233_v28 = vrot.slane %v26034_v35, 5  ;;  %v19289_v29 = vld [vmem:[%s23348_s16 + $0xa8] sm:$0xf]  ;;  %v22912_v31 = vld [vmem:[%s23348_s16 + $0x118] ss:$8 sps:$4 sm:$0xff]  }
 0x2a4   : > { %v26389_v34 = vsel %vm23924_vm6, %v17987_v33, %v5265_v42  ;;  %v5230_v35 = vsel %vm23924_vm6, %v17978_v13, %v5229_v40  ;;  %v17984_v37 = vrot.slane %v17952_v12, 9  ;;  %v5253_v60 = vrot.slane %v26104_v24, 5  ;;  %v19291_v44 = vld [vmem:[%s23348_s16 + $0xb0] sm:$0xf]  ;;  %v19295_v48 = vld [vmem:[%s23348_s16 + $0xc0] sm:$0xf] }
 0x2a5   : > { %v18011_v22 = vcombine.low %v26383_v50, %v26389_v34  ;;  %v5234_v1 = vsel %vm23924_vm6, %v17979_v19, %v5233_v28  ;;  %v17985_v0 = vrot.slane %v17953_v14, 9  ;;  %v5257_v62 = vrot.slane %v26117_v25, 5  ;;  %v26425_v3 = vld [vmem:[%s23348_s16 + $0xac] sm:$0x1]  ;;  %v26428_v25 = vld [vmem:[%s23348_s16 + $0xb4] sm:$0x1] }
 0x2a6   : > { %21484 = vmatpush3.bf16.msra.mxu0 %v22909_v27  ;;  %v18007_v15 = vcombine.low %v5230_v35, %v5234_v1  ;;  %v13121_v52 = vshrl.u32 %v19289_v29, 16  ;;  %v13124_v10 = vshll.u32 %v19289_v29, 16  ;;  %v13135_v39 = vshrl.u32 %v19291_v44, 16  ;;  %v22913_v45 = vld [vmem:[%s23348_s16 + $0x128] ss:$8 sps:$4 sm:$0xff]  }
 0x2a7   : > { %21485 = vmatprep.subr.bf16.mxu0 %v22918_v41  ;;  %v13138_v53 = vshll.u32 %v19291_v44, 16  ;;  %v5254_v24 = vsel %vm23924_vm6, %v17984_v37, %v5253_v60  ;;  %v5258_v17 = vsel %vm23924_vm6, %v17985_v0, %v5257_v62  ;;  %v13149_v27 = vshrl.u32 %v19293_v6, 16  ;;  %v22916_v21 = vld [vmem:[%s23348_s16 + $0x148] ss:$8 sps:$4 sm:$0xff]   ;;  %v26446_v54 = vld [vmem:[%s23348_s16 + $0xc4] sm:$0x1] }
 0x2a8   : > { %20946 = vmatmul.mubr.msk.bf16.gmra.mrb[16].mxu1 %vm979_vm0, %v18005_v49  ;;  %v13123_v55 = vrot.slane %v13121_v52, 4  ;;  %v13126_v16 = vrot.slane %v13124_v10, 5  ;;  %v13137_v59 = vrot.slane %v13135_v39, 4  ;;  %v13152_v30 = vshll.u32 %v19293_v6, 16  ;;  %v19297_v33 = vld [vmem:[%s23348_s16 + $0xc8] sm:$0xf] }
 0x2a9   : > { %21454 = vmatmul.mubr.msk.bf16.gmra.mrb[4].mxu0 %vm979_vm0, %v22906_v2  ;;  %20949 = vmatprep.mubr.msk.bf16.mxu1 %vm979_vm0, %v18006_v8  ;;  %v13140_v36 = vrot.slane %v13138_v53, 5  ;;  %v13163_v47 = vshrl.u32 %v19295_v48, 16  ;;  %v13166_v11 = vshll.u32 %v19295_v48, 16  ;;  %v13130_v56 = vshll.u32 %v26425_v3, 16  ;;  %v26450_v2 = vld [vmem:[%s23348_s16 + $0xcc] sm:$0x1] }
 0x2aa   : > { %21457 = vmatprep.mubr.msk.bf16.mxu0 %vm979_vm0, %v22907_v32  ;;  %21486 = vmatpush3.bf16.msra.mxu0 %v22918_v41  ;;  %v13144_v5 = vshll.u32 %v26428_v25, 16  ;;  %v18010_v46 = vcombine.low %v5254_v24, %v5258_v17  ;;  %v13151_v9 = vrot.slane %v13149_v27, 4  ;;  %v13127_v4 = vor.u32 %v13126_v16, %v13123_v55  ;;  %v19299_v49 = vld [vmem:[%s23348_s16 + $0xd0] sm:$0xf]  ;;  %v19300_v19 = vld [vmem:[%s23348_s16 + $0xd4] sm:$0x1] }
 0x2ab   : > { %21487 = vmatprep.subr.bf16.mxu0 %v22927_v18  ;;  %v13141_v41 = vor.u32 %v13140_v36, %v13137_v59  ;;  %v13154_v26 = vrot.slane %v13152_v30, 5  ;;  %v13165_v43 = vrot.slane %v13163_v47, 4  ;;  %v13168_v42 = vrot.slane %v13166_v11, 5  ;;  %v19301_v35 = vld [vmem:[%s23348_s16 + $0xd8] sm:$0xf] }
 0x2ac   : > { %v13177_v13 = vshrl.u32 %v19297_v33, 16  ;;  %v26457_v40 = vrot.slane %v13130_v56, 5  ;;  %v26459_v32 = vrot.slane %v13144_v5, 5  ;;  %v13180_v28 = vshll.u32 %v19297_v33, 16  ;;  %v22919_v37 = vld [vmem:[%s23348_s16 + $0x50] ss:$8 sps:$4 sm:$0xff]  }
 0x2ad   : > { %v13191_v57 = vshrl.u32 %v19299_v49, 16  ;;  %v26468_v1 = vrot.slane %v13127_v4, 4  ;;  %v26470_v12 = vrot.slane %v13141_v41, 4  ;;  %v13155_v60 = vor.u32 %v13154_v26, %v13151_v9  ;;  %v19302_v62 = vld [vmem:[%s23348_s16 + $0xdc] sm:$0x1] }
 0x2ae   : > { %21488 = vmatpush3.bf16.msra.mxu0 %v22927_v18  ;;  %v13172_v18 = vshll.u32 %v26446_v54, 16  ;;  %v13179_v7 = vrot.slane %v13177_v13, 4  ;;  %v13182_v14 = vrot.slane %v13180_v28, 5  ;;  %v13169_v29 = vor.u32 %v13168_v42, %v13165_v43  ;;  %v19303_v44 = vld [vmem:[%s23348_s16 + $0xe0] sm:$0xf] }
 0x2af   : > { %21521 = vmatprep.subr.bf16.mxu0 %v26408_v51  ;;  %v13200_v10 = vshll.u32 %v19300_v19, 16  ;;  %v13205_v39 = vshrl.u32 %v19301_v35, 16  ;;  %v13208_v6 = vshll.u32 %v19301_v35, 16  ;;  %v19304_v53 = vld [vmem:[%s23348_s16 + $0xe4] sm:$0x1]  ;;  %v13219_v48 = vshrl.u32 %v19303_v44, 16 }
 0x2b0   : > { %20950 = vmatmul.mubr.msk.bf16.gmra.mrb[20].mxu1 %vm979_vm0, %v18007_v15  ;;  %v22917_v15 = vld [vmem:[%s23348_s16 + $0x158] ss:$8 sps:$4 sm:$0xff]   ;;  %v13183_v52 = vor.u32 %v13182_v14, %v13179_v7  ;;  %v13222_v24 = vshll.u32 %v19303_v44, 16  ;;  %v22921_v17 = vld [vmem:[%s23348_s16 + $0x168] ss:$8 sps:$4 sm:$0xff]   ;;  %v26481_v16 = vrot.slane %v13172_v18, 5  ;;  %v13133_v50 = vsel %vm23392_vm3, %v26468_v1, %v26457_v40 }
 0x2b1   : > { %21458 = vmatmul.mubr.msk.bf16.gmra.mrb[8].mxu0 %vm979_vm0, %v22908_v20  ;;  %20953 = vmatprep.mubr.msk.bf16.mxu1 %vm979_vm0, %v18008_v61  ;;  %v26443_v61 = vld [vmem:[%s23348_s16 + $0xbc] sm:$0x1]  ;;  %v13186_v20 = vshll.u32 %v26450_v2, 16  ;;  %v13214_v59 = vshll.u32 %v19302_v62, 16  ;;  %v26483_v36 = vrot.slane %v13155_v60, 4  ;;  %v26485_v30 = vrot.slane %v13169_v29, 4 }
 0x2b2   : > { %21461 = vmatprep.mubr.msk.bf16.mxu0 %vm979_vm0, %v22912_v31  ;;  %v13158_v8 = vshll.u32 %v26443_v61, 16  ;;  %v13193_v31 = vrot.slane %v13191_v57, 4  ;;  %v13207_v47 = vrot.slane %v13205_v39, 4  ;;  %v26491_v11 = vrot.slane %v13183_v52, 4  ;;  %v19305_v9 = vld [vmem:[%s23348_s16 + $0xf8] sm:$0xf] }
 0x2b3   : > { %v26495_v56 = vrot.slane %v13200_v10, 5  ;;  %v13228_v5 = vshll.u32 %v19304_v53, 16  ;;  %v13147_v34 = vsel %vm23392_vm3, %v26470_v12, %v26459_v32  ;;  %v19307_v4 = vld [vmem:[%s23348_s16 + $0x100] sm:$0xf]  ;;  %v26513_v43 = vrot.slane %v13214_v59, 5  ;;  %v22943_v44 = vld [vmem:[%s28369_s2 + $0x148] sm:$0xff]  }
 0x2b4   : > { %v26479_v55 = vrot.slane %v13158_v8, 5  ;;  %v22920_v41 = vld [vmem:[%s23348_s16 + $0x60] ss:$8 sps:$4 sm:$0xff]   ;;  %v19306_v33 = vld [vmem:[%s23348_s16 + $0xfc] sm:$0x1]  ;;  %v13233_v42 = vshrl.u32 %v19305_v9, 16  ;;  %v13175_v52 = vsel %vm23392_vm3, %v26485_v30, %v26481_v16 }
 0x2b5   : > { %v22922_v13 = vld [vmem:[%s23348_s16 + $0x178] ss:$8 sps:$4 sm:$0xff]   ;;  %v19308_v18 = vld [vmem:[%s23348_s16 + $0x104] sm:$0x1]  ;;  %v13247_v7 = vshrl.u32 %v19307_v4, 16  ;;  %v13250_v57 = vshll.u32 %v19307_v4, 16 }
 0x2b6   : > { %v22923_v8 = vld [vmem:[%s23348_s16 + $0x70] ss:$8 sps:$4 sm:$0xff]   ;;  %v13161_v19 = vsel %vm23392_vm3, %v26483_v36, %v26479_v55  ;;  %v26525_v14 = vrot.slane %v13228_v5, 5  ;;  %v13242_v29 = vshll.u32 %v19306_v33, 16  ;;  %v13256_v39 = vshll.u32 %v19308_v18, 16 }
 0x2b7   : > { %v22925_v35 = vld [vmem:[%s23348_s16 + $0x198] ss:$8 sps:$4 sm:$0xff]   ;;  %v19311_v62 = vld [vmem:[%s23348_s16 + $0x110] sm:$0xf] }
 0x2b8   : > { %20954 = vmatmul.mubr.msk.bf16.gmra.mrb[24].mxu1 %vm979_vm0, %v18009_v23  ;;  %v13194_v23 = vshll.u32 %v19299_v49, 16  ;;  %v13236_v49 = vshll.u32 %v19305_v9, 16  ;;  %v13278_v30 = vshll.u32 %v19311_v62, 16  ;;  %v22924_v5 = vld [vmem:[%s23348_s16 + $0x80] ss:$8 sps:$4 sm:$0xff]  }
 0x2b9   : > { %21462 = vmatmul.mubr.msk.bf16.gmra.mrb[12].mxu0 %vm979_vm0, %v22913_v45  ;;  %20957 = vmatprep.mubr.msk.bf16.mxu1 %vm979_vm0, %v18010_v46  ;;  %v13210_v45 = vrot.slane %v13208_v6, 5  ;;  %v13224_v46 = vrot.slane %v13222_v24, 5  ;;  %v19310_v6 = vld [vmem:[%s23348_s16 + $0x10c] sm:$0x1]  ;;  %v19313_v12 = vld [vmem:[%s23348_s16 + $0x118] sm:$0xf] }
 0x2ba   : > { %21465 = vmatprep.mubr.msk.bf16.mxu0 %vm979_vm0, %v22916_v21  ;;  %v13196_v0 = vrot.slane %v13194_v23, 5  ;;  %v26493_v21 = vrot.slane %v13186_v20, 5  ;;  %v19309_v23 = vld [vmem:[%s23348_s16 + $0x108] sm:$0xf]  ;;  %v13235_v20 = vrot.slane %v13233_v42, 4  ;;  %v13280_v9 = vrot.slane %v13278_v30, 5 }
 0x2bb   : > { %v13211_v28 = vor.u32 %v13210_v45, %v13207_v47  ;;  %v13261_v53 = vshrl.u32 %v19309_v23, 16  ;;  %v13264_v55 = vshll.u32 %v19309_v23, 16  ;;  %v26567_v42 = vrot.slane %v13256_v39, 5  ;;  %v22931_v30 = vld [vmem:[%s23348_s16 + $0x1c8] ss:$8 sps:$4 sm:$0xff]  }
 0x2bc   : > { %v13197_v27 = vor.u32 %v13196_v0, %v13193_v31  ;;  %v13249_v31 = vrot.slane %v13247_v7, 4  ;;  %v13252_v0 = vrot.slane %v13250_v57, 5  ;;  %v19314_v57 = vld [vmem:[%s23348_s16 + $0x11c] sm:$0x1]  ;;  %v13289_v23 = vshrl.u32 %v19313_v12, 16 }
 0x2bd   : > { %v26547_v59 = vrot.slane %v13211_v28, 4  ;;  %v13263_v36 = vrot.slane %v13261_v53, 4  ;;  %v13266_v45 = vrot.slane %v13264_v55, 5 }
 0x2be   : > { %v26511_v26 = vrot.slane %v13197_v27, 4  ;;  %v13253_v24 = vor.u32 %v13252_v0, %v13249_v31  ;;  %v13275_v27 = vshrl.u32 %v19311_v62, 16  ;;  %v13291_v0 = vrot.slane %v13289_v23, 4 }
 0x2bf   : > { %v13217_v18 = vsel %vm23392_vm3, %v26547_v59, %v26513_v43 }
 0x2c0   : > { %20958 = vmatmul.mubr.msk.bf16.gmra.mrb[28].mxu1 %vm979_vm0, %v18011_v22  ;;  %v13221_v22 = vrot.slane %v13219_v48, 4  ;;  %v13189_v48 = vsel %vm23392_vm3, %v26491_v11, %v26493_v21  ;;  %v13203_v16 = vsel %vm23392_vm3, %v26511_v26, %v26495_v56  ;;  %v13270_v11 = vshll.u32 %v19310_v6, 16  ;;  %v22946_v56 = vld [vmem:[%s28369_s2 + $0x150] sm:$0xff]   ;;  %v22928_v26 = vld [vmem:[%s23348_s16 + $0xa0] ss:$8 sps:$4 sm:$0xff]  }
 0x2c1   : > { %21466 = vmatmul.mubr.msk.bf16.gmra.mrb[16].mxu0 %vm979_vm0, %v22917_v15  ;;  %20969 = vmatprep.mubr.msk.bf16.mxu1 %vm979_vm0, %v22919_v37  ;;  %v13238_v15 = vrot.slane %v13236_v49, 5  ;;  %v13988_v37 = vrot.slane %v26425_v3, 5  ;;  %v13277_v21 = vrot.slane %v13275_v27, 4  ;;  %v26565_v33 = vrot.slane %v13253_v24, 4  ;;  %v22930_v49 = vld [vmem:[%s23348_s16 + $0x1b8] ss:$8 sps:$4 sm:$0xff]  }
 0x2c2   : > { %21469 = vmatprep.mubr.msk.bf16.mxu0 %vm979_vm0, %v22921_v17  ;;  %v13225_v60 = vor.u32 %v13224_v46, %v13221_v22  ;;  %v19312_v17 = vld [vmem:[%s23348_s16 + $0x114] sm:$0x1]  ;;  %v26560_v46 = vrot.slane %v13242_v29, 5  ;;  %v26584_v28 = vcombine.low %v13189_v48, %v13203_v16  ;;  %v26590_v7 = vrot.slane %v13270_v11, 5  ;;  %v22947_v29 = vld [vmem:[%s28369_s2 + $0x158] sm:$0xff]  }
 0x2c3   : > { %v13239_v10 = vor.u32 %v13238_v15, %v13235_v20  ;;  %v13284_v4 = vshll.u32 %v19312_v17, 16  ;;  %v13281_v32 = vor.u32 %v13280_v9, %v13277_v21  ;;  %v13292_v20 = vshll.u32 %v19313_v12, 16  ;;  %v19319_v48 = vld [vmem:[%s23348_s16 + $0x130] sm:$0xf]  ;;  %v19320_v27 = vld [vmem:[%s23348_s16 + $0x134] sm:$0x1] }
 0x2c4   : > { %v26551_v47 = vrot.slane %v13225_v60, 4  ;;  %v13298_v15 = vshll.u32 %v19314_v57, 16  ;;  %v19317_v60 = vld [vmem:[%s23348_s16 + $0x128] sm:$0xf]  ;;  %v22929_v24 = vld [vmem:[%s23348_s16 + $0xb0] ss:$8 sps:$4 sm:$0xff]  }
 0x2c5   : > { %v26558_v22 = vrot.slane %v13239_v10, 4  ;;  %v13282_v10 = vrot.slane %v13281_v32, 4  ;;  %v13294_v39 = vrot.slane %v13292_v20, 5  ;;  %v13317_v16 = vshrl.u32 %v19317_v60, 16  ;;  %v18144_v3 = vld [vmem:[%s23348_s16 + $0xf8] sm:$0xf] }
 0x2c6   : > { %v13231_v40 = vsel %vm23392_vm3, %v26551_v47, %v26525_v14  ;;  %v13300_v6 = vrot.slane %v13298_v15, 5  ;;  %v13331_v11 = vshrl.u32 %v19319_v48, 16  ;;  %v13334_v21 = vshll.u32 %v19319_v48, 16 }
 0x2c7   : > { %v13245_v1 = vsel %vm23392_vm3, %v26558_v22, %v26560_v46  ;;  %v13295_v47 = vor.u32 %v13294_v39, %v13291_v0  ;;  %v22933_v0 = vld [vmem:[%s23348_s16 + $0xd0] ss:$8 sps:$4 sm:$0xff]  }
 0x2c8   : > { %20970 = vmatmul.mubr.msk.bf16.vlgmr.msra.gmra.mrb[0].mxu1 %vm979_vm0, %v22920_v41  ;;  %v22926_v41 = vld [vmem:[%s23348_s16 + $0x1a8] ss:$8 sps:$4 sm:$0xff]  }
 0x2c9   : > { %21470 = vmatmul.mubr.msk.bf16.gmra.mrb[20].mxu0 %vm979_vm0, %v22922_v13  ;;  %20973 = vmatprep.mubr.msk.bf16.mxu1 %vm979_vm0, %v22923_v8  ;;  %v26582_v13 = vcombine.low %v13161_v19, %v13175_v52  ;;  %v13267_v8 = vor.u32 %v13266_v45, %v13263_v36  ;;  %v19316_v19 = vld [vmem:[%s23348_s16 + $0x124] sm:$0x1]  ;;  %v19318_v52 = vld [vmem:[%s23348_s16 + $0x12c] sm:$0x1]  ;;  %v13320_v36 = vshll.u32 %v19317_v60, 16  ;;  %v13996_v60 = vrot.slane %v26443_v61, 5 }
 0x2ca   : > { %21473 = vmatprep.mubr.msk.bf16.mxu0 %vm979_vm0, %v22925_v35  ;;  %21002 = vmatpush3.bf16.msra.mxu1 %v26293_v58  ;;  %v26580_v58 = vcombine.low %v13133_v50, %v13147_v34  ;;  %v26602_v50 = vrot.slane %v13284_v4, 5  ;;  %v19315_v34 = vld [vmem:[%s23348_s16 + $0x120] sm:$0xf]  ;;  %v13259_v35 = vsel %vm23392_vm3, %v26565_v33, %v26567_v42  ;;  %v13326_v45 = vshll.u32 %v19318_v52, 16  ;;  %v19323_v46 = vld [vmem:[%s23348_s16 + $0x150] sm:$0xf] }
 0x2cb   : > { %21003 = vmatprep.subr.bf16.mxu1 %v22943_v44  ;;  %v13303_v14 = vshrl.u32 %v19315_v34, 16  ;;  %v13268_v31 = vrot.slane %v13267_v8, 4  ;;  %v13306_v62 = vshll.u32 %v19315_v34, 16  ;;  %v13319_v4 = vrot.slane %v13317_v16, 4  ;;  %v22932_v33 = vld [vmem:[%s23348_s16 + $0xc0] ss:$8 sps:$4 sm:$0xff]  }
 0x2cc   : > { %v13296_v42 = vrot.slane %v13295_v47, 4  ;;  %v13336_v8 = vrot.slane %v13334_v21, 5  ;;  %v13287_v32 = vsel %vm23392_vm3, %v13282_v10, %v26602_v50  ;;  %v13328_v34 = vrot.slane %v13326_v45, 5  ;;  %v22935_v52 = vld [vmem:[%s23348_s16 + $0xf0] ss:$8 sps:$4 sm:$0xff]  }
 0x2cd   : > { %v13305_v53 = vrot.slane %v13303_v14, 4  ;;  %v13308_v17 = vrot.slane %v13306_v62, 5  ;;  %v26645_v50 = vcombine.low %v13217_v18, %v13231_v40  ;;  %v26657_v43 = vcombine.low %v13245_v1, %v13259_v35  ;;  %v19321_v40 = vld [vmem:[%s23348_s16 + $0x148] sm:$0xf]  ;;  %v19324_v1 = vld [vmem:[%s23348_s16 + $0x154] sm:$0x1] }
 0x2ce   : > { %21004 = vmatpush3.bf16.msra.mxu1 %v22943_v44  ;;  %v13312_v44 = vshll.u32 %v19316_v19, 16  ;;  %v13301_v19 = vsel %vm23392_vm3, %v13296_v42, %v13300_v6  ;;  %v13345_v35 = vshrl.u32 %v19321_v40, 16  ;;  %v13359_v6 = vshrl.u32 %v19323_v46, 16  ;;  %v19327_v47 = vld [vmem:[%s23348_s16 + $0x160] sm:$0xf] }
 0x2cf   : > { %21005 = vmatprep.subr.bf16.mxu1 %v22946_v56  ;;  %v13309_v9 = vor.u32 %v13308_v17, %v13305_v53  ;;  %v13362_v53 = vshll.u32 %v19323_v46, 16  ;;  %v13387_v42 = vshrl.u32 %v19327_v47, 16 }
 0x2d0   : > { %20974 = vmatmul.mubr.msk.bf16.gmra.mrb[4].mxu1 %vm979_vm0, %v22924_v5  ;;  %v13314_v55 = vrot.slane %v13312_v44, 5  ;;  %v26626_v5 = vld [vmem:[%s28369_s2 + $0x160] sm:$0xff]   ;;  %v13348_v44 = vshll.u32 %v19321_v40, 16 }
 0x2d1   : > { %21474 = vmatmul.mubr.msk.bf16.gmra.mrb[24].mxu0 %vm979_vm0, %v22926_v41  ;;  %20977 = vmatprep.mubr.msk.bf16.mxu1 %vm979_vm0, %v22928_v26  ;;  %v13322_v41 = vrot.slane %v13320_v36, 5  ;;  %v13340_v26 = vshll.u32 %v19320_v27, 16  ;;  %v13310_v12 = vrot.slane %v13309_v9, 4  ;;  %v19326_v27 = vld [vmem:[%s23348_s16 + $0x15c] sm:$0x1]  ;;  %v13361_v36 = vrot.slane %v13359_v6, 4 }
 0x2d2   : > { %21477 = vmatprep.mubr.msk.bf16.mxu0 %vm979_vm0, %v22930_v49  ;;  %21006 = vmatpush3.bf16.msra.mxu1 %v22946_v56  ;;  %v13273_v56 = vsel %vm23392_vm3, %v13268_v31, %v26590_v7  ;;  %v13333_v49 = vrot.slane %v13331_v11, 4  ;;  %v13992_v7 = vrot.slane %v26428_v25, 5  ;;  %v14000_v31 = vrot.slane %v26446_v54, 5  ;;  %v19328_v9 = vld [vmem:[%s23348_s16 + $0x164] sm:$0x1] }
 0x2d3   : > { %21007 = vmatprep.subr.bf16.mxu1 %v22947_v29  ;;  %v13323_v57 = vor.u32 %v13322_v41, %v13319_v4  ;;  %v13342_v20 = vrot.slane %v13340_v26, 5  ;;  %v13315_v15 = vsel %vm23392_vm3, %v13310_v12, %v13314_v55  ;;  %v26659_v59 = vcombine.low %v13273_v56, %v13287_v32  ;;  %v22939_v26 = vld [vmem:[%s28369_s2 + $0x2e8] sm:$0xff]  }
 0x2d4   : > { %v13337_v23 = vor.u32 %v13336_v8, %v13333_v49  ;;  %v26667_v62 = vcombine.low %v13301_v19, %v13315_v15  ;;  %v13350_v17 = vrot.slane %v13348_v44, 5  ;;  %v13368_v55 = vshll.u32 %v19324_v1, 16  ;;  %v18110_v15 = vld [vmem:[%s23348_s16 + $0x50] sm:$0xf] }
 0x2d5   : > { %v13324_v14 = vrot.slane %v13323_v57, 4  ;;  %v13382_v41 = vshll.u32 %v19326_v27, 16  ;;  %v13390_v49 = vshll.u32 %v19327_v47, 16  ;;  %v13396_v57 = vshll.u32 %v19328_v9, 16 }
 0x2d6   : > { %21008 = vmatpush3.bf16.msra.mxu1 %v22947_v29  ;;  %v13338_v18 = vrot.slane %v13337_v23, 4  ;;  %v19322_v29 = vld [vmem:[%s23348_s16 + $0x14c] sm:$0x1]  ;;  %v13370_v21 = vrot.slane %v13368_v55, 5  ;;  %v13389_v19 = vrot.slane %v13387_v42, 4  ;;  %v6044_v46 = vshrl.u32 %v18110_v15, 16 }
 0x2d7   : > { %21041 = vmatprep.subr.bf16.mxu1 %v26626_v5  ;;  %v13329_v22 = vsel %vm23392_vm3, %v13324_v14, %v13328_v34  ;;  %v13354_v39 = vshll.u32 %v19322_v29, 16  ;;  %v13384_v12 = vrot.slane %v13382_v41, 5  ;;  %v13392_v23 = vrot.slane %v13390_v49, 5 }
 0x2d8   : > { %20978 = vmatmul.mubr.msk.bf16.gmra.mrb[8].mxu1 %vm979_vm0, %v22929_v24  ;;  %v13343_v10 = vsel %vm23392_vm3, %v13338_v18, %v13342_v20  ;;  %v13347_v24 = vrot.slane %v13345_v35, 4  ;;  %v22948_v20 = vld [vmem:[%s28369_s2 + $0x2f0] sm:$0xff]   ;;  %v14004_v14 = vrot.slane %v26450_v2, 5  ;;  %v22936_v18 = vld [vmem:[%s23348_s16 + $0x100] ss:$8 sps:$4 sm:$0xff]   ;;  %v13398_v29 = vrot.slane %v13396_v57, 5 }
 0x2d9   : > { %21478 = vmatmul.mubr.msk.bf16.gmra.mrb[28].mxu0 %vm979_vm0, %v22931_v30  ;;  %20981 = vmatprep.mubr.msk.bf16.mxu1 %vm979_vm0, %v22932_v33  ;;  %v26677_v48 = vcombine.low %v13329_v22, %v13343_v10  ;;  %v13356_v16 = vrot.slane %v13354_v39, 5  ;;  %v13364_v30 = vrot.slane %v13362_v53, 5  ;;  %v18112_v22 = vld [vmem:[%s23348_s16 + $0x58] sm:$0xf]  ;;  %v13393_v35 = vor.u32 %v13392_v23, %v13389_v19  ;;  %v18114_v10 = vld [vmem:[%s23348_s16 + $0x60] sm:$0xf] }
 0x2da   : > { %21489 = vmatprep.mubr.msk.bf16.mxu0 %vm979_vm0, %v26580_v58  ;;  %v19325_v58 = vld [vmem:[%s23348_s16 + $0x158] sm:$0xf]  ;;  %v13351_v11 = vor.u32 %v13350_v17, %v13347_v24  ;;  %v6047_v44 = vshll.u32 %v18110_v15, 16  ;;  %v6046_v53 = vrot.slane %v6044_v46, 4  ;;  %v6061_v27 = vshll.u32 %v18112_v22, 16  ;;  %v26730_v15 = vld [vmem:[%s28369_s2 + $0x300] sm:$0xff]  }
 0x2db   : > { %v13373_v45 = vshrl.u32 %v19325_v58, 16  ;;  %v13376_v4 = vshll.u32 %v19325_v58, 16  ;;  %v13365_v33 = vor.u32 %v13364_v30, %v13361_v36  ;;  %v6058_v58 = vshrl.u32 %v18112_v22, 16  ;;  %v19330_v23 = vld [vmem:[%s23348_s16 + $0x16c] sm:$0x1] }
 0x2dc   : > { %v13352_v8 = vrot.slane %v13351_v11, 4  ;;  %v13394_v24 = vrot.slane %v13393_v35, 4  ;;  %v6049_v17 = vrot.slane %v6047_v44, 5  ;;  %v6072_v11 = vshrl.u32 %v18114_v10, 16  ;;  %v22940_v22 = vld [vmem:[%s23348_s16 + $0x140] ss:$8 sps:$4 sm:$0xff]  }
 0x2dd   : > { %v13375_v56 = vrot.slane %v13373_v45, 4  ;;  %v13378_v32 = vrot.slane %v13376_v4, 5  ;;  %v13366_v34 = vrot.slane %v13365_v33, 4  ;;  %v6060_v30 = vrot.slane %v6058_v58, 4  ;;  %v18116_v45 = vld [vmem:[%s23348_s16 + $0x68] sm:$0xf] }
 0x2de   : > { %v13399_v9 = vsel %vm23392_vm3, %v13394_v24, %v13398_v29  ;;  %v6050_v4 = vor.u32 %v6049_v17, %v6046_v53  ;;  %v6063_v41 = vrot.slane %v6061_v27, 5  ;;  %v18117_v33 = vld [vmem:[%s23348_s16 + $0x6c] sm:$0x1]  ;;  %v6086_v19 = vshrl.u32 %v18116_v45, 16  ;;  %v19333_v24 = vld [vmem:[%s23348_s16 + $0x178] sm:$0xf] }
 0x2df   : > { %v13379_v40 = vor.u32 %v13378_v32, %v13375_v56  ;;  %v13371_v1 = vsel %vm23392_vm3, %v13366_v34, %v13370_v21  ;;  %v22949_v21 = vld [vmem:[%s28369_s2 + $0x2f8] sm:$0xff]   ;;  %v19329_v56 = vld [vmem:[%s23348_s16 + $0x168] sm:$0xf]  ;;  %v13410_v53 = vshll.u32 %v19330_v23, 16  ;;  %v18118_v23 = vld [vmem:[%s23348_s16 + $0x70] sm:$0xf] }
 0x2e0   : > { %20982 = vmatmul.mubr.msk.bf16.gmra.mrb[12].mxu1 %vm979_vm0, %v22933_v0  ;;  %v18111_v0 = vld [vmem:[%s23348_s16 + $0x54] sm:$0x1]  ;;  %v6064_v57 = vor.u32 %v6063_v41, %v6060_v30  ;;  %v13401_v29 = vshrl.u32 %v19329_v56, 16  ;;  %v19335_v30 = vld [vmem:[%s23348_s16 + $0x180] sm:$0xf] }
 0x2e1   : > { %21490 = vmatmul.mubr.msk.bf16.vlgmr.msra.gmra.mrb[0].mxu0 %vm979_vm0, %v26582_v13  ;;  %20985 = vmatprep.mubr.msk.bf16.mxu1 %vm979_vm0, %v22935_v52  ;;  %v13357_v13 = vsel %vm23392_vm3, %v13352_v8, %v13356_v16  ;;  %v6053_v52 = vshll.u32 %v18111_v0, 16  ;;  %v13380_v6 = vrot.slane %v13379_v40, 4  ;;  %v18115_v16 = vld [vmem:[%s23348_s16 + $0x64] sm:$0x1]  ;;  %v6074_v8 = vrot.slane %v6072_v11, 4 }
 0x2e2   : > { %21522 = vmatpush3.bf16.msra.mxu0 %v26408_v51  ;;  %21493 = vmatprep.mubr.msk.bf16.mxu0 %vm979_vm0, %v26584_v28  ;;  %v18113_v51 = vld [vmem:[%s23348_s16 + $0x5c] sm:$0x1]  ;;  %v22937_v28 = vld [vmem:[%s23348_s16 + $0x110] ss:$8 sps:$4 sm:$0xff]   ;;  %v26707_v39 = vcombine.low %v13357_v13, %v13371_v1  ;;  %v6081_v32 = vshll.u32 %v18115_v16, 16  ;;  %v6095_v13 = vshll.u32 %v18117_v33, 16 }
 0x2e3   : > { %21523 = vmatprep.subr.bf16.mxu0 %v22939_v26  ;;  %v6055_v55 = vrot.slane %v6053_v52, 5  ;;  %v13385_v36 = vsel %vm23392_vm3, %v13380_v6, %v13384_v12  ;;  %v6067_v47 = vshll.u32 %v18113_v51, 16  ;;  %v6051_v12 = vrot.slane %v6050_v4, 4  ;;  %v19331_v40 = vld [vmem:[%s23348_s16 + $0x170] sm:$0xf] }
 0x2e4   : > { %v26721_v42 = vcombine.low %v13385_v36, %v13399_v9  ;;  %v22938_v0 = vld [vmem:[%s23348_s16 + $0x120] ss:$8 sps:$4 sm:$0xff]   ;;  %v6065_v1 = vrot.slane %v6064_v57, 4  ;;  %v6088_v51 = vrot.slane %v6086_v19, 4  ;;  %v6097_v44 = vrot.slane %v6095_v13, 5 }
 0x2e5   : > { %v6069_v49 = vrot.slane %v6067_v47, 5  ;;  %v6056_v46 = vsel %vm23392_vm3, %v6051_v12, %v6055_v55  ;;  %v13403_v52 = vrot.slane %v13401_v29, 4  ;;  %v13415_v58 = vshrl.u32 %v19331_v40, 16  ;;  %v19334_v36 = vld [vmem:[%s23348_s16 + $0x17c] sm:$0x1] }
 0x2e6   : > { %21524 = vmatpush3.bf16.msra.mxu0 %v22939_v26  ;;  %v6075_v26 = vshll.u32 %v18114_v10, 16  ;;  %v13404_v10 = vshll.u32 %v19329_v56, 16  ;;  %v13418_v16 = vshll.u32 %v19331_v40, 16  ;;  %v19336_v56 = vld [vmem:[%s23348_s16 + $0x184] sm:$0x1] }
 0x2e7   : > { %21525 = vmatprep.subr.bf16.mxu0 %v22948_v20  ;;  %v13417_v11 = vrot.slane %v13415_v58, 4  ;;  %v22941_v12 = vld [vmem:[%s23348_s16 + $0x150] ss:$8 sps:$4 sm:$0xff]   ;;  %v18122_v58 = vld [vmem:[%s23348_s16 + $0x80] sm:$0xf] }
 0x2e8   : > { %20986 = vmatmul.mubr.msk.bf16.gmra.mrb[16].mxu1 %vm979_vm0, %v22936_v18  ;;  %v6077_v34 = vrot.slane %v6075_v26, 5  ;;  %v6083_v18 = vrot.slane %v6081_v32, 5  ;;  %v13406_v27 = vrot.slane %v13404_v10, 5  ;;  %v13420_v33 = vrot.slane %v13418_v16, 5 }
 0x2e9   : > { %21494 = vmatmul.mubr.msk.bf16.gmra.mrb[4].mxu0 %vm979_vm0, %v26645_v50  ;;  %20989 = vmatprep.mubr.msk.bf16.mxu1 %vm979_vm0, %v22937_v28  ;;  %v6089_v50 = vshll.u32 %v18116_v45, 16  ;;  %v6070_v28 = vsel %vm23392_vm3, %v6065_v1, %v6069_v49  ;;  %v13412_v45 = vrot.slane %v13410_v53, 5  ;;  %v13429_v26 = vshrl.u32 %v19333_v24, 16 }
 0x2ea   : > { %21497 = vmatprep.mubr.msk.bf16.mxu0 %vm979_vm0, %v26657_v43  ;;  %21526 = vmatpush3.bf16.msra.mxu0 %v22948_v20  ;;  %v6078_v35 = vor.u32 %v6077_v34, %v6074_v8  ;;  %v19332_v20 = vld [vmem:[%s23348_s16 + $0x174] sm:$0x1]  ;;  %v26743_v17 = vcombine.low %v6056_v46, %v6070_v28  ;;  %v13407_v41 = vor.u32 %v13406_v27, %v13403_v52  ;;  %v13432_v49 = vshll.u32 %v19333_v24, 16 }
 0x2eb   : > { %21527 = vmatprep.subr.bf16.mxu0 %v22949_v21  ;;  %v6091_v43 = vrot.slane %v6089_v50, 5  ;;  %v13424_v9 = vshll.u32 %v19332_v20, 16  ;;  %v13438_v8 = vshll.u32 %v19334_v36, 16  ;;  %v13443_v32 = vshrl.u32 %v19335_v30, 16  ;;  %v18123_v36 = vld [vmem:[%s23348_s16 + $0x84] sm:$0x1] }
 0x2ec   : > { %v6079_v6 = vrot.slane %v6078_v35, 4  ;;  %v13408_v34 = vrot.slane %v13407_v41, 4  ;;  %v13421_v19 = vor.u32 %v13420_v33, %v13417_v11  ;;  %v13434_v13 = vrot.slane %v13432_v49, 5  ;;  %v22945_v49 = vld [vmem:[%s23348_s16 + $0x170] ss:$8 sps:$4 sm:$0xff]  }
 0x2ed   : > { %v6092_v55 = vor.u32 %v6091_v43, %v6088_v51  ;;  %v13440_v40 = vrot.slane %v13438_v8, 5  ;;  %v13445_v29 = vrot.slane %v13443_v32, 4  ;;  %v13446_v1 = vshll.u32 %v19335_v30, 16  ;;  %v18121_v43 = vld [vmem:[%s23348_s16 + $0x7c] sm:$0x1] }
 0x2ee   : > { %21528 = vmatpush3.bf16.msra.mxu0 %v22949_v21  ;;  %v6084_v47 = vsel %vm23392_vm3, %v6079_v6, %v6083_v18  ;;  %v13426_v21 = vrot.slane %v13424_v9, 5  ;;  %v18119_v18 = vld [vmem:[%s23348_s16 + $0x74] sm:$0x1]  ;;  %v13422_v46 = vrot.slane %v13421_v19, 4  ;;  %v13452_v35 = vshll.u32 %v19336_v56, 16 }
 0x2ef   : > { %21561 = vmatprep.subr.bf16.mxu0 %v26730_v15  ;;  %v6093_v4 = vrot.slane %v6092_v55, 4  ;;  %v6103_v20 = vshll.u32 %v18118_v23, 16  ;;  %v6109_v52 = vshll.u32 %v18119_v18, 16  ;;  %v13448_v28 = vrot.slane %v13446_v1, 5  ;;  %v18124_v9 = vld [vmem:[%s23348_s16 + $0x88] sm:$0xf] }
 0x2f0   : > { %20990 = vmatmul.mubr.msk.bf16.gmra.mrb[20].mxu1 %vm979_vm0, %v22938_v0  ;;  %v18120_v0 = vld [vmem:[%s23348_s16 + $0x78] sm:$0xf]  ;;  %v13427_v10 = vsel %vm23392_vm3, %v13422_v46, %v13426_v21  ;;  %v13454_v6 = vrot.slane %v13452_v35, 5  ;;  %v6123_v33 = vshll.u32 %v18121_v43, 16  ;;  %v6128_v21 = vshrl.u32 %v18122_v58, 16 }
 0x2f1   : > { %21498 = vmatmul.mubr.msk.bf16.gmra.mrb[8].mxu0 %vm979_vm0, %v26659_v59  ;;  %20993 = vmatprep.mubr.msk.bf16.mxu1 %vm979_vm0, %v22940_v22  ;;  %v6098_v57 = vsel %vm23392_vm3, %v6093_v4, %v6097_v44  ;;  %v13431_v59 = vrot.slane %v13429_v26, 4  ;;  %v22944_v22 = vld [vmem:[%s23348_s16 + $0x160] ss:$8 sps:$4 sm:$0xff]   ;;  %v6100_v44 = vshrl.u32 %v18118_v23, 16  ;;  %v6114_v53 = vshrl.u32 %v18120_v0, 16 }
 0x2f2   : > { %21501 = vmatprep.mubr.msk.bf16.mxu0 %vm979_vm0, %v26667_v62  ;;  %v26762_v50 = vcombine.low %v6084_v47, %v6098_v57  ;;  %v13413_v62 = vsel %vm23392_vm3, %v13408_v34, %v13412_v45  ;;  %v6105_v16 = vrot.slane %v6103_v20, 5  ;;  %v13449_v30 = vor.u32 %v13448_v28, %v13445_v29  ;;  %v18125_v26 = vld [vmem:[%s23348_s16 + $0x8c] sm:$0x1]  ;;  %v19337_v56 = vld [vmem:[%s23348_s16 + $0x198] sm:$0xf] }
 0x2f3   : > { %v13435_v51 = vor.u32 %v13434_v13, %v13431_v59  ;;  %v19371_v24 = vcombine.low %v13413_v62, %v13427_v10  ;;  %v6102_v27 = vrot.slane %v6100_v44, 4  ;;  %v6111_v47 = vrot.slane %v6109_v52, 5  ;;  %v19338_v29 = vld [vmem:[%s23348_s16 + $0x19c] sm:$0x1]  ;;  %v19340_v20 = vld [vmem:[%s23348_s16 + $0x1a4] sm:$0x1] }
 0x2f4   : > { %v6116_v45 = vrot.slane %v6114_v53, 4  ;;  %v6117_v11 = vshll.u32 %v18120_v0, 16  ;;  %v13450_v8 = vrot.slane %v13449_v30, 4  ;;  %v6125_v34 = vrot.slane %v6123_v33, 5  ;;  %v19339_v0 = vld [vmem:[%s23348_s16 + $0x1a0] sm:$0xf] }
 0x2f5   : > { %v13436_v55 = vrot.slane %v13435_v51, 4  ;;  %v6106_v41 = vor.u32 %v6105_v16, %v6102_v27  ;;  %v6130_v19 = vrot.slane %v6128_v21, 4  ;;  %v6142_v59 = vshrl.u32 %v18124_v9, 16  ;;  %v19341_v27 = vld [vmem:[%s23348_s16 + $0x1a8] sm:$0xf] }
 0x2f6   : > { %v6119_v32 = vrot.slane %v6117_v11, 5  ;;  %v13455_v23 = vsel %vm23392_vm3, %v13450_v8, %v13454_v6  ;;  %v6145_v46 = vshll.u32 %v18124_v9, 16  ;;  %v6151_v51 = vshll.u32 %v18125_v26, 16  ;;  %v19343_v11 = vld [vmem:[%s23348_s16 + $0x1b0] sm:$0xf] }
 0x2f7   : > { %v13441_v4 = vsel %vm23392_vm3, %v13436_v55, %v13440_v40  ;;  %v6107_v57 = vrot.slane %v6106_v41, 4  ;;  %v6144_v62 = vrot.slane %v6142_v59, 4  ;;  %v13457_v43 = vshrl.u32 %v19337_v56, 16  ;;  %v19344_v21 = vld [vmem:[%s23348_s16 + $0x1b4] sm:$0x1] }
 0x2f8   : > { %20994 = vmatmul.mubr.msk.bf16.gmra.mrb[24].mxu1 %vm979_vm0, %v22941_v12  ;;  %v6131_v12 = vshll.u32 %v18122_v58, 16  ;;  %v6120_v18 = vor.u32 %v6119_v32, %v6116_v45  ;;  %v6147_v44 = vrot.slane %v6145_v46, 5  ;;  %v13460_v52 = vshll.u32 %v19337_v56, 16  ;;  %v19342_v45 = vld [vmem:[%s23348_s16 + $0x1ac] sm:$0x1] }
 0x2f9   : > { %21502 = vmatmul.mubr.msk.bf16.gmra.mrb[12].mxu0 %vm979_vm0, %v26677_v48  ;;  %20997 = vmatprep.mubr.msk.bf16.mxu1 %vm979_vm0, %v22944_v22  ;;  %v6137_v48 = vshll.u32 %v18123_v36, 16  ;;  %v26789_v22 = vcombine.low %v13441_v4, %v13455_v23  ;;  %v13466_v10 = vshll.u32 %v19338_v29, 16  ;;  %v13471_v28 = vshrl.u32 %v19339_v0, 16  ;;  %v18127_v59 = vld [vmem:[%s23348_s16 + $0xa4] sm:$0x1] }
 0x2fa   : > { %21505 = vmatprep.mubr.msk.bf16.mxu0 %vm979_vm0, %v26707_v39  ;;  %v6133_v13 = vrot.slane %v6131_v12, 5  ;;  %v6112_v39 = vsel %vm23392_vm3, %v6107_v57, %v6111_v47  ;;  %v6121_v1 = vrot.slane %v6120_v18, 4  ;;  %v6153_v58 = vrot.slane %v6151_v51, 5  ;;  %v18128_v29 = vld [vmem:[%s23348_s16 + $0xa8] sm:$0xf] }
 0x2fb   : > { %v6139_v40 = vrot.slane %v6137_v48, 5  ;;  %v13459_v55 = vrot.slane %v13457_v43, 4  ;;  %v6148_v36 = vor.u32 %v6147_v44, %v6144_v62  ;;  %v13462_v30 = vrot.slane %v13460_v52, 5  ;;  %v18126_v48 = vld [vmem:[%s23348_s16 + $0xa0] sm:$0xf] }
 0x2fc   : > { %v6134_v35 = vor.u32 %v6133_v13, %v6130_v19  ;;  %v6126_v6 = vsel %vm23392_vm3, %v6121_v1, %v6125_v34  ;;  %v13468_v47 = vrot.slane %v13466_v10, 5  ;;  %v13473_v4 = vrot.slane %v13471_v28, 4  ;;  %v18129_v1 = vld [vmem:[%s23348_s16 + $0xac] sm:$0x1]  ;;  %v18130_v52 = vld [vmem:[%s23348_s16 + $0xb0] sm:$0xf] }
 0x2fd   : > { %v18184_v16 = vcombine.low %v6112_v39, %v6126_v6  ;;  %v13474_v41 = vshll.u32 %v19339_v0, 16  ;;  %v13480_v33 = vshll.u32 %v19340_v20, 16  ;;  %v13463_v26 = vor.u32 %v13462_v30, %v13459_v55  ;;  %v18132_v30 = vld [vmem:[%s23348_s16 + $0xb8] sm:$0xf] }
 0x2fe   : > { %v6135_v53 = vrot.slane %v6134_v35, 4  ;;  %v13488_v56 = vshll.u32 %v19341_v27, 16  ;;  %v13494_v32 = vshll.u32 %v19342_v45, 16  ;;  %v13499_v12 = vshrl.u32 %v19343_v11, 16  ;;  %v22953_v35 = vld [vmem:[%s28369_s2 + $0x168] sm:$0xff]  }
 0x2ff   : > { %v13482_v8 = vrot.slane %v13480_v33, 5  ;;  %v13464_v57 = vrot.slane %v13463_v26, 4  ;;  %v13502_v62 = vshll.u32 %v19343_v11, 16  ;;  %v13508_v46 = vshll.u32 %v19344_v21, 16  ;;  %v22954_v11 = vld [vmem:[%s28369_s2 + $0x170] sm:$0xff]  }
 0x300   : > { %20998 = vmatmul.mubr.msk.bf16.gmra.mrb[28].mxu1 %vm979_vm0, %v22945_v49  ;;  %v6140_v9 = vsel %vm23392_vm3, %v6135_v53, %v6139_v40  ;;  %v13476_v49 = vrot.slane %v13474_v41, 5  ;;  %v13490_v19 = vrot.slane %v13488_v56, 5  ;;  %v13496_v13 = vrot.slane %v13494_v32, 5  ;;  %v18133_v33 = vld [vmem:[%s23348_s16 + $0xbc] sm:$0x1] }
 0x301   : > { %21506 = vmatmul.mubr.msk.bf16.gmra.mrb[16].mxu0 %vm979_vm0, %v26721_v42  ;;  %21009 = vmatprep.mubr.msk.bf16.mxu1 %vm979_vm0, %v26743_v17  ;;  %v6149_v42 = vrot.slane %v6148_v36, 4  ;;  %v13485_v17 = vshrl.u32 %v19341_v27, 16  ;;  %v13501_v40 = vrot.slane %v13499_v12, 4  ;;  %v13469_v0 = vsel %vm23392_vm3, %v13464_v57, %v13468_v47  ;;  %v19345_v56 = vld [vmem:[%s23348_s16 + $0x1b8] sm:$0xf] }
 0x302   : > { %21509 = vmatprep.mubr.msk.bf16.mxu0 %vm979_vm0, %v19371_v24  ;;  %v13477_v18 = vor.u32 %v13476_v49, %v13473_v4  ;;  %v6156_v43 = vshrl.u32 %v18126_v48, 16  ;;  %v6159_v44 = vshll.u32 %v18126_v48, 16  ;;  %v6165_v20 = vshll.u32 %v18127_v59, 16  ;;  %v19346_v48 = vld [vmem:[%s23348_s16 + $0x1bc] sm:$0x1] }
 0x303   : > { %v6154_v24 = vsel %vm23392_vm3, %v6149_v42, %v6153_v58  ;;  %v13487_v34 = vrot.slane %v13485_v17, 4  ;;  %v13504_v28 = vrot.slane %v13502_v62, 5  ;;  %v13510_v6 = vrot.slane %v13508_v46, 5  ;;  %v18131_v58 = vld [vmem:[%s23348_s16 + $0xb4] sm:$0x1] }
 0x304   : > { %v18185_v23 = vcombine.low %v6140_v9, %v6154_v24  ;;  %v13478_v51 = vrot.slane %v13477_v18, 4  ;;  %v6170_v53 = vshrl.u32 %v18128_v29, 16  ;;  %v6158_v55 = vrot.slane %v6156_v43, 4  ;;  %v19347_v59 = vld [vmem:[%s23348_s16 + $0x1c0] sm:$0xf]  ;;  %v22955_v18 = vld [vmem:[%s28369_s2 + $0x178] sm:$0xff]  }
 0x305   : > { %v13491_v39 = vor.u32 %v13490_v19, %v13487_v34  ;;  %v6161_v27 = vrot.slane %v6159_v44, 5  ;;  %v6167_v36 = vrot.slane %v6165_v20, 5  ;;  %v6173_v4 = vshll.u32 %v18128_v29, 16  ;;  %v19348_v46 = vld [vmem:[%s23348_s16 + $0x1c4] sm:$0x1] }
 0x306   : > { %v6172_v45 = vrot.slane %v6170_v53, 4  ;;  %v6179_v41 = vshll.u32 %v18129_v1, 16  ;;  %v6184_v42 = vshrl.u32 %v18130_v52, 16  ;;  %v6187_v26 = vshll.u32 %v18130_v52, 16 }
 0x307   : > { %v13492_v10 = vrot.slane %v13491_v39, 4  ;;  %v6162_v9 = vor.u32 %v6161_v27, %v6158_v55  ;;  %v6193_v21 = vshll.u32 %v18131_v58, 16  ;;  %v6198_v17 = vshrl.u32 %v18132_v30, 16  ;;  %v19350_v27 = vld [vmem:[%s23348_s16 + $0x1cc] sm:$0x1] }
 0x308   : > { %21010 = vmatmul.mubr.msk.bf16.vlgmr.msra.gmra.mrb[0].mxu1 %vm979_vm0, %v26762_v50  ;;  %v13483_v50 = vsel %vm23392_vm3, %v13478_v51, %v13482_v8  ;;  %v6175_v8 = vrot.slane %v6173_v4, 5  ;;  %v6181_v32 = vrot.slane %v6179_v41, 5  ;;  %v6186_v12 = vrot.slane %v6184_v42, 4 }
 0x309   : > { %21510 = vmatmul.mubr.msk.bf16.gmra.mrb[20].mxu0 %vm979_vm0, %v26789_v22  ;;  %21013 = vmatprep.mubr.msk.bf16.mxu1 %vm979_vm0, %v18184_v16  ;;  %v19373_v47 = vcombine.low %v13469_v0, %v13483_v50  ;;  %v13497_v22 = vsel %vm23392_vm3, %v13492_v10, %v13496_v13  ;;  %v13505_v16 = vor.u32 %v13504_v28, %v13501_v40  ;;  %v6163_v49 = vrot.slane %v6162_v9, 4  ;;  %v19352_v9 = vld [vmem:[%s23348_s16 + $0x1d4] sm:$0x1] }
 0x30a   : > { %21042 = vmatpush3.bf16.msra.mxu1 %v26626_v5  ;;  %v6189_v57 = vrot.slane %v6187_v26, 5  ;;  %v6195_v34 = vrot.slane %v6193_v21, 5  ;;  %v6200_v19 = vrot.slane %v6198_v17, 4  ;;  %v6176_v29 = vor.u32 %v6175_v8, %v6172_v45  ;;  %v18134_v21 = vld [vmem:[%s23348_s16 + $0xc0] sm:$0xf] }
 0x30b   : > { %21043 = vmatprep.subr.bf16.mxu1 %v22953_v35  ;;  %21513 = vmatprep.mubr.msk.bf16.mxu0 %vm979_vm0, %v19373_v47  ;;  %v13506_v5 = vrot.slane %v13505_v16, 4  ;;  %v6168_v40 = vsel %vm23392_vm3, %v6163_v49, %v6167_v36  ;;  %v6201_v0 = vshll.u32 %v18132_v30, 16  ;;  %v6207_v62 = vshll.u32 %v18133_v33, 16  ;;  %v19351_v36 = vld [vmem:[%s23348_s16 + $0x1d0] sm:$0xf]  ;;  %v26863_v17 = vld [vmem:[%s28369_s2 + $0x180] sm:$0xff]  }
 0x30c   : > { %v6190_v39 = vor.u32 %v6189_v57, %v6186_v12  ;;  %v13513_v1 = vshrl.u32 %v19345_v56, 16  ;;  %v6177_v51 = vrot.slane %v6176_v29, 4  ;;  %v13522_v44 = vshll.u32 %v19346_v48, 16  ;;  %v18135_v12 = vld [vmem:[%s23348_s16 + $0xc4] sm:$0x1] }
 0x30d   : > { %v13511_v24 = vsel %vm23392_vm3, %v13506_v5, %v13510_v6  ;;  %v6203_v43 = vrot.slane %v6201_v0, 5  ;;  %v6209_v52 = vrot.slane %v6207_v62, 5  ;;  %v19349_v6 = vld [vmem:[%s23348_s16 + $0x1c8] sm:$0xf]  ;;  %v13530_v16 = vshll.u32 %v19347_v59, 16 }
 0x30e   : > { %21044 = vmatpush3.bf16.msra.mxu1 %v22953_v35  ;;  %v19374_v13 = vcombine.low %v13497_v22, %v13511_v24  ;;  %v13516_v35 = vshll.u32 %v19345_v56, 16  ;;  %v6191_v20 = vrot.slane %v6190_v39, 4  ;;  %v13515_v10 = vrot.slane %v13513_v1, 4  ;;  %v18137_v29 = vld [vmem:[%s23348_s16 + $0xcc] sm:$0x1] }
 0x30f   : > { %21045 = vmatprep.subr.bf16.mxu1 %v22954_v11  ;;  %v6182_v53 = vsel %vm23392_vm3, %v6177_v51, %v6181_v32  ;;  %v6204_v58 = vor.u32 %v6203_v43, %v6200_v19  ;;  %v13524_v50 = vrot.slane %v13522_v44, 5  ;;  %v13541_v4 = vshrl.u32 %v19349_v6, 16  ;;  %v18136_v19 = vld [vmem:[%s23348_s16 + $0xc8] sm:$0xf]  ;;  %v18138_v1 = vld [vmem:[%s23348_s16 + $0xd0] sm:$0xf] }
 0x310   : > { %21014 = vmatmul.mubr.msk.bf16.gmra.mrb[4].mxu1 %vm979_vm0, %v18185_v23  ;;  %v13527_v23 = vshrl.u32 %v19347_v59, 16  ;;  %v13518_v28 = vrot.slane %v13516_v35, 5  ;;  %v18186_v30 = vcombine.low %v6168_v40, %v6182_v53  ;;  %v6196_v47 = vsel %vm23392_vm3, %v6191_v20, %v6195_v34 }
 0x311   : > { %21514 = vmatmul.mubr.msk.bf16.gmra.mrb[24].mxu0 %vm979_vm0, %v19374_v13  ;;  %v6205_v45 = vrot.slane %v6204_v58, 4  ;;  %v13544_v41 = vshll.u32 %v19349_v6, 16  ;;  %v13532_v42 = vrot.slane %v13530_v16, 5  ;;  %v13550_v5 = vshll.u32 %v19350_v27, 16  ;;  %v18140_v6 = vld [vmem:[%s23348_s16 + $0xd8] sm:$0xf] }
 0x312   : > { %21046 = vmatpush3.bf16.msra.mxu1 %v22954_v11  ;;  %v13529_v55 = vrot.slane %v13527_v23, 4  ;;  %v13519_v22 = vor.u32 %v13518_v28, %v13515_v10  ;;  %v13536_v11 = vshll.u32 %v19348_v46, 16  ;;  %21017 = vmatprep.mubr.msk.bf16.mxu1 %vm979_vm0, %v18186_v30  ;;  %v13555_v26 = vshrl.u32 %v19351_v36, 16  ;;  %v18139_v23 = vld [vmem:[%s23348_s16 + $0xd4] sm:$0x1] }
 0x313   : > { %21047 = vmatprep.subr.bf16.mxu1 %v22955_v18  ;;  %v6210_v56 = vsel %vm23392_vm3, %v6205_v45, %v6209_v52  ;;  %v13543_v8 = vrot.slane %v13541_v4, 4  ;;  %v13546_v32 = vrot.slane %v13544_v41, 5  ;;  %v13552_v34 = vrot.slane %v13550_v5, 5  ;;  %v19397_v16 = vld [vmem:[%s23348_s16 + $0xa8] sm:$0xe] }
 0x314   : > { %v13520_v33 = vrot.slane %v13519_v22, 4  ;;  %v13538_v49 = vrot.slane %v13536_v11, 5  ;;  %v18187_v48 = vcombine.low %v6196_v47, %v6210_v56  ;;  %v13533_v57 = vor.u32 %v13532_v42, %v13529_v55  ;;  %v26882_v47 = vld [vmem:[%s23348_s16 + $0xdc] sm:$0x1]  ;;  %v19398_v41 = vld [vmem:[%s23348_s16 + $0xb0] sm:$0xe] }
 0x315   : > { %v13547_v59 = vor.u32 %v13546_v32, %v13543_v8  ;;  %v13558_v13 = vshll.u32 %v19351_v36, 16  ;;  %v13564_v40 = vshll.u32 %v19352_v9, 16  ;;  %v6212_v39 = vshrl.u32 %v18134_v21, 16 }
 0x316   : > { %21048 = vmatpush3.bf16.msra.mxu1 %v22955_v18  ;;  %v13525_v24 = vsel %vm23392_vm3, %v13520_v33, %v13524_v50  ;;  %v13557_v18 = vrot.slane %v13555_v26, 4  ;;  %v13534_v0 = vrot.slane %v13533_v57, 4  ;;  %v6215_v62 = vshll.u32 %v18134_v21, 16  ;;  %v19399_v21 = vld [vmem:[%s23348_s16 + $0xb8] sm:$0xe] }
 0x317   : > { %21761 = vmatprep.subr.bf16.mxu1 %v26863_v17  ;;  %v6221_v46 = vshll.u32 %v18135_v12, 16  ;;  %v13548_v35 = vrot.slane %v13547_v59, 4  ;;  %v13560_v51 = vrot.slane %v13558_v13, 5  ;;  %v13566_v43 = vrot.slane %v13564_v40, 5  ;;  %v19400_v12 = vld [vmem:[%s23348_s16 + $0xc0] sm:$0xe] }
 0x318   : > { %21018 = vmatmul.mubr.msk.bf16.gmra.mrb[8].mxu1 %vm979_vm0, %v18187_v48  ;;  %v6226_v44 = vshrl.u32 %v18136_v19, 16  ;;  %v13539_v20 = vsel %vm23392_vm3, %v13534_v0, %v13538_v49  ;;  %v6214_v52 = vrot.slane %v6212_v39, 4  ;;  %v6217_v10 = vrot.slane %v6215_v62, 5  ;;  %v18142_v40 = vld [vmem:[%s23348_s16 + $0xf0] sm:$0xf] }
 0x319   : > { %v6223_v28 = vrot.slane %v6221_v46, 5  ;;  %v19375_v53 = vcombine.low %v13525_v24, %v13539_v20  ;;  %v13553_v58 = vsel %vm23392_vm3, %v13548_v35, %v13552_v34  ;;  %v13561_v50 = vor.u32 %v13560_v51, %v13557_v18  ;;  %v26897_v46 = vld [vmem:[%s23348_s16 + $0xf4] sm:$0x1] }
 0x31a   : > { %v6228_v55 = vrot.slane %v6226_v44, 4  ;;  %v6218_v27 = vor.u32 %v6217_v10, %v6214_v52  ;;  %v6229_v36 = vshll.u32 %v18136_v19, 16  ;;  %v6235_v30 = vshll.u32 %v18137_v29, 16  ;;  %v26915_v10 = vld [vmem:[%s23348_s16 + $0xfc] sm:$0x1] }
 0x31b   : > { %v6240_v22 = vshrl.u32 %v18138_v1, 16  ;;  %21517 = vmatprep.mubr.msk.bf16.mxu0 %vm979_vm0, %v19375_v53  ;;  %v13562_v45 = vrot.slane %v13561_v50, 4  ;;  %v6243_v11 = vshll.u32 %v18138_v1, 16  ;;  %v6249_v9 = vshll.u32 %v18139_v23, 16  ;;  %v26925_v53 = vld [vmem:[%s23348_s16 + $0x104] sm:$0x1] }
 0x31c   : > { %v6254_v4 = vshrl.u32 %v18140_v6, 16  ;;  %v6219_v33 = vrot.slane %v6218_v27, 4  ;;  %v6231_v42 = vrot.slane %v6229_v36, 5  ;;  %v6237_v5 = vrot.slane %v6235_v30, 5  ;;  %v26933_v30 = vld [vmem:[%s23348_s16 + $0x10c] sm:$0x1] }
 0x31d   : > { %v6242_v26 = vrot.slane %v6240_v22, 4  ;;  %v13567_v56 = vsel %vm23392_vm3, %v13562_v45, %v13566_v43  ;;  %v6245_v49 = vrot.slane %v6243_v11, 5  ;;  %v6251_v8 = vrot.slane %v6249_v9, 5  ;;  %v19401_v9 = vld [vmem:[%s23348_s16 + $0xc8] sm:$0xe] }
 0x31e   : > { %v6256_v32 = vrot.slane %v6254_v4, 4  ;;  %v19376_v48 = vcombine.low %v13553_v58, %v13567_v56  ;;  %v6224_v24 = vsel %vm23392_vm3, %v6219_v33, %v6223_v28  ;;  %v6232_v57 = vor.u32 %v6231_v42, %v6228_v55  ;;  %v18148_v55 = vld [vmem:[%s23348_s16 + $0x108] sm:$0xf] }
 0x31f   : > { %v6257_v34 = vshll.u32 %v18140_v6, 16  ;;  %v6246_v19 = vor.u32 %v6245_v49, %v6242_v26  ;;  %v6263_v59 = vshll.u32 %v26882_v47, 16  ;;  %v19429_v18 = vrot.slane %v19397_v16, 9  ;;  %v18146_v6 = vld [vmem:[%s23348_s16 + $0x100] sm:$0xf]  ;;  %v22951_v4 = vld [vmem:[%s28369_s2 + $0x308] sm:$0xff]  }
 0x320   : > { %v19430_v13 = vrot.slane %v19398_v41, 9  ;;  %21518 = vmatmul.mubr.msk.bf16.gmra.mrb[28].mxu0 %vm979_vm0, %v19376_v48  ;;  %v6233_v29 = vrot.slane %v6232_v57, 4  ;;  %v19431_v39 = vrot.slane %v19399_v21, 9  ;;  %v19432_v62 = vrot.slane %v19400_v12, 9  ;;  %v19402_v26 = vld [vmem:[%s23348_s16 + $0xd0] sm:$0xe] }
 0x321   : > { %v6259_v0 = vrot.slane %v6257_v34, 5  ;;  %v6247_v1 = vrot.slane %v6246_v19, 4  ;;  %v6265_v35 = vrot.slane %v6263_v59, 5  ;;  %v13989_v51 = vsel %vm23924_vm6, %v19429_v18, %v13988_v37  ;;  %v22956_v34 = vld [vmem:[%s28369_s2 + $0x310] sm:$0xff]  }
 0x322   : > { %v13993_v43 = vsel %vm23924_vm6, %v19430_v13, %v13992_v7  ;;  %v6238_v44 = vsel %vm23392_vm3, %v6233_v29, %v6237_v5  ;;  %v13997_v52 = vsel %vm23924_vm6, %v19431_v39, %v13996_v60  ;;  %v14001_v7 = vsel %vm23924_vm6, %v19432_v62, %v14000_v31  ;;  %v19404_v39 = vld [vmem:[%s23348_s16 + $0xe0] sm:$0xe] }
 0x323   : > { %v6260_v23 = vor.u32 %v6259_v0, %v6256_v32  ;;  %v19469_v20 = vcombine.low %v13989_v51, %v13993_v43  ;;  %v18188_v37 = vcombine.low %v6224_v24, %v6238_v44  ;;  %v6252_v25 = vsel %vm23392_vm3, %v6247_v1, %v6251_v8  ;;  %v19403_v32 = vld [vmem:[%s23348_s16 + $0xd8] sm:$0xe]  ;;  %v18150_v43 = vld [vmem:[%s23348_s16 + $0x110] sm:$0xf] }
 0x324   : > { %v6268_v28 = vshrl.u32 %v18142_v40, 16  ;;  %v19470_v60 = vcombine.low %v13997_v52, %v14001_v7  ;;  %v6271_v58 = vshll.u32 %v18142_v40, 16  ;;  %v6277_v50 = vshll.u32 %v26897_v46, 16  ;;  %v23157_v7 = vld [vmem:[%s23348_s16 + $0xdc] sm:$0x1] }
 0x325   : > { %v6261_v61 = vrot.slane %v6260_v23, 4  ;;  %21529 = vmatprep.mubr.msk.bf16.mxu0 %vm979_vm0, %v19469_v20  ;;  %21021 = vmatprep.mubr.msk.bf16.mxu1 %vm979_vm0, %v18188_v37  ;;  %v6282_v27 = vshrl.u32 %v18144_v3, 16  ;;  %v6285_v36 = vshll.u32 %v18144_v3, 16  ;;  %v6291_v31 = vshll.u32 %v26915_v10, 16  ;;  %v23156_v20 = vld [vmem:[%s23348_s16 + $0xd4] sm:$0x1] }
 0x326   : > { %v6270_v54 = vrot.slane %v6268_v28, 4  ;;  %v6273_v16 = vrot.slane %v6271_v58, 5  ;;  %v6279_v45 = vrot.slane %v6277_v50, 5  ;;  %v6296_v11 = vshrl.u32 %v18146_v6, 16  ;;  %v23158_v58 = vld [vmem:[%s23348_s16 + $0xe4] sm:$0x1] }
 0x327   : > { %v6266_v22 = vsel %vm23392_vm3, %v6261_v61, %v6265_v35  ;;  %v6284_v33 = vrot.slane %v6282_v27, 4  ;;  %v6287_v42 = vrot.slane %v6285_v36, 5  ;;  %v6293_v5 = vrot.slane %v6291_v31, 5 }
 0x328   : > { %v18189_v41 = vcombine.low %v6252_v25, %v6266_v22  ;;  %21530 = vmatmul.mubr.msk.bf16.vlgmr.msra.gmra.mrb[0].mxu0 %vm979_vm0, %v19470_v60  ;;  %v6274_v21 = vor.u32 %v6273_v16, %v6270_v54  ;;  %v6298_v56 = vrot.slane %v6296_v11, 4  ;;  %v6299_v49 = vshll.u32 %v18146_v6, 16  ;;  %v22957_v6 = vld [vmem:[%s28369_s2 + $0x318] sm:$0xff]   ;;  %v26985_v11 = vld [vmem:[%s28369_s2 + $0x320] sm:$0xff]  }
 0x329   : > { %v6305_v8 = vshll.u32 %v26925_v53, 16  ;;  %v6288_v12 = vor.u32 %v6287_v42, %v6284_v33  ;;  %21562 = vmatpush3.bf16.msra.mxu0 %v26730_v15  ;;  %v6310_v48 = vshrl.u32 %v18148_v55, 16  ;;  %v6313_v24 = vshll.u32 %v18148_v55, 16  ;;  %v18152_v55 = vld [vmem:[%s23348_s16 + $0x118] sm:$0xf] }
 0x32a   : > { %21022 = vmatmul.mubr.msk.bf16.gmra.mrb[12].mxu1 %vm979_vm0, %v18189_v41  ;;  %v6319_v57 = vshll.u32 %v26933_v30, 16  ;;  %v6275_v19 = vrot.slane %v6274_v21, 4  ;;  %v6301_v59 = vrot.slane %v6299_v49, 5  ;;  %v19433_v13 = vrot.slane %v19401_v9, 9  ;;  %21563 = vmatprep.subr.bf16.mxu0 %v22951_v4  ;;  %v26979_v22 = vld [vmem:[%s23348_s16 + $0x11c] sm:$0x1] }
 0x32b   : > { %v6307_v18 = vrot.slane %v6305_v8, 5  ;;  %v6289_v40 = vrot.slane %v6288_v12, 4  ;;  %v6312_v29 = vrot.slane %v6310_v48, 4  ;;  %v6315_v0 = vrot.slane %v6313_v24, 5  ;;  %v26993_v42 = vld [vmem:[%s23348_s16 + $0x124] sm:$0x1] }
 0x32c   : > { %v6321_v15 = vrot.slane %v6319_v57, 5  ;;  %v6280_v62 = vsel %vm23392_vm3, %v6275_v19, %v6279_v45  ;;  %v6302_v1 = vor.u32 %v6301_v59, %v6298_v56  ;;  %v14005_v35 = vsel %vm23924_vm6, %v19433_v13, %v14004_v14  ;;  %v26964_v14 = vld [vmem:[%s23348_s16 + $0x114] sm:$0x1]  ;;  %v18154_v45 = vld [vmem:[%s23348_s16 + $0x120] sm:$0xf] }
 0x32d   : > { %v19434_v51 = vrot.slane %v19402_v26, 9  ;;  %v6294_v44 = vsel %vm23392_vm3, %v6289_v40, %v6293_v5  ;;  %v6316_v23 = vor.u32 %v6315_v0, %v6312_v29  ;;  %v14008_v52 = vrot.slane %v23156_v20, 5  ;;  %21564 = vmatpush3.bf16.msra.mxu0 %v22951_v4  ;;  %v18156_v5 = vld [vmem:[%s23348_s16 + $0x128] sm:$0xf]  ;;  %v26998_v8 = vld [vmem:[%s23348_s16 + $0x12c] sm:$0x1] }
 0x32e   : > { %v19435_v3 = vrot.slane %v19403_v32, 9  ;;  %v18190_v37 = vcombine.low %v6280_v62, %v6294_v44  ;;  %v6303_v25 = vrot.slane %v6302_v1, 4  ;;  %v14012_v2 = vrot.slane %v23157_v7, 5  ;;  %21565 = vmatprep.subr.bf16.mxu0 %v22956_v34  ;;  %v19405_v32 = vld [vmem:[%s23348_s16 + $0xf8] sm:$0xe] }
 0x32f   : > { %v19436_v28 = vrot.slane %v19404_v39, 9  ;;  %v6317_v61 = vrot.slane %v6316_v23, 4  ;;  %v14009_v60 = vsel %vm23924_vm6, %v19434_v51, %v14008_v52  ;;  %v14016_v50 = vrot.slane %v23158_v58, 5  ;;  %v19407_v20 = vld [vmem:[%s23348_s16 + $0x108] sm:$0xe] }
 0x330   : > { %v6324_v54 = vshrl.u32 %v18150_v43, 16  ;;  %21025 = vmatprep.mubr.msk.bf16.mxu1 %vm979_vm0, %v18190_v37  ;;  %v6308_v27 = vsel %vm23392_vm3, %v6303_v25, %v6307_v18  ;;  %v19471_v36 = vcombine.low %v14005_v35, %v14009_v60  ;;  %v14013_v31 = vsel %vm23924_vm6, %v19435_v3, %v14012_v2  ;;  %v19406_v35 = vld [vmem:[%s23348_s16 + $0x100] sm:$0xe]  ;;  %v23159_v25 = vld [vmem:[%s23348_s16 + $0xfc] sm:$0x1] }
 0x331   : > { %v6327_v16 = vshll.u32 %v18150_v43, 16  ;;  %v6322_v9 = vsel %vm23392_vm3, %v6317_v61, %v6321_v15  ;;  %v14017_v4 = vsel %vm23924_vm6, %v19436_v28, %v14016_v50  ;;  %v6333_v33 = vshll.u32 %v26964_v14, 16  ;;  %21566 = vmatpush3.bf16.msra.mxu0 %v22956_v34  ;;  %v19408_v2 = vld [vmem:[%s23348_s16 + $0x110] sm:$0xe]  ;;  %v23160_v60 = vld [vmem:[%s23348_s16 + $0x104] sm:$0x1] }
 0x332   : > { %v6326_v41 = vrot.slane %v6324_v54, 4  ;;  %v18191_v26 = vcombine.low %v6308_v27, %v6322_v9  ;;  %21533 = vmatprep.mubr.msk.bf16.mxu0 %vm979_vm0, %v19471_v36  ;;  %v19472_v21 = vcombine.low %v14013_v31, %v14017_v4  ;;  %v6338_v49 = vshrl.u32 %v18152_v55, 16  ;;  %21567 = vmatprep.subr.bf16.mxu0 %v22957_v6  ;;  %v18158_v36 = vld [vmem:[%s23348_s16 + $0x140] sm:$0xf] }
 0x333   : > { %v6329_v56 = vrot.slane %v6327_v16, 5  ;;  %v6335_v12 = vrot.slane %v6333_v33, 5  ;;  %v6341_v48 = vshll.u32 %v18152_v55, 16  ;;  %v6347_v24 = vshll.u32 %v26979_v22, 16  ;;  %v18160_v33 = vld [vmem:[%s23348_s16 + $0x148] sm:$0xf] }
 0x334   : > { %v6352_v57 = vshrl.u32 %v18154_v45, 16  ;;  %21026 = vmatmul.mubr.msk.bf16.gmra.mrb[16].mxu1 %vm979_vm0, %v18191_v26  ;;  %21534 = vmatmul.mubr.msk.bf16.gmra.mrb[4].mxu0 %vm979_vm0, %v19472_v21  ;;  %v6340_v19 = vrot.slane %v6338_v49, 4  ;;  %v6355_v59 = vshll.u32 %v18154_v45, 16  ;;  %v6361_v18 = vshll.u32 %v26993_v42, 16  ;;  %v23161_v45 = vld [vmem:[%s23348_s16 + $0x10c] sm:$0x1] }
 0x335   : > { %v6330_v34 = vor.u32 %v6329_v56, %v6326_v41  ;;  %v6343_v13 = vrot.slane %v6341_v48, 5  ;;  %v6349_v40 = vrot.slane %v6347_v24, 5  ;;  %v6366_v0 = vshrl.u32 %v18156_v5, 16  ;;  %21568 = vmatpush3.bf16.msra.mxu0 %v22957_v6  ;;  %v27023_v41 = vld [vmem:[%s23348_s16 + $0x144] sm:$0x1] }
 0x336   : > { %v6354_v29 = vrot.slane %v6352_v57, 4  ;;  %v6357_v39 = vrot.slane %v6355_v59, 5  ;;  %v6363_v62 = vrot.slane %v6361_v18, 5  ;;  %v6369_v1 = vshll.u32 %v18156_v5, 16  ;;  %21601 = vmatprep.subr.bf16.mxu0 %v26985_v11  ;;  %v27032_v48 = vld [vmem:[%s23348_s16 + $0x14c] sm:$0x1] }
 0x337   : > { %v6331_v15 = vrot.slane %v6330_v34, 4  ;;  %v6344_v51 = vor.u32 %v6343_v13, %v6340_v19  ;;  %v6368_v43 = vrot.slane %v6366_v0, 4  ;;  %v6375_v44 = vshll.u32 %v26998_v8, 16  ;;  %v18162_v13 = vld [vmem:[%s23348_s16 + $0x150] sm:$0xf] }
 0x338   : > { %v19437_v23 = vrot.slane %v19405_v32, 9  ;;  %v6358_v3 = vor.u32 %v6357_v39, %v6354_v29  ;;  %v6371_v37 = vrot.slane %v6369_v1, 5  ;;  %v14020_v7 = vrot.slane %v23159_v25, 5  ;;  %v23162_v32 = vld [vmem:[%s23348_s16 + $0x114] sm:$0x1] }
 0x339   : > { %v6336_v52 = vsel %vm23392_vm3, %v6331_v15, %v6335_v12  ;;  %v6345_v28 = vrot.slane %v6344_v51, 4  ;;  %v6377_v6 = vrot.slane %v6375_v44, 5  ;;  %v19438_v61 = vrot.slane %v19406_v35, 9  ;;  %v27043_v39 = vld [vmem:[%s23348_s16 + $0x154] sm:$0x1] }
 0x33a   : > { %v14024_v58 = vrot.slane %v23160_v60, 5  ;;  %v6359_v50 = vrot.slane %v6358_v3, 4  ;;  %v6372_v55 = vor.u32 %v6371_v37, %v6368_v43  ;;  %v14021_v54 = vsel %vm23924_vm6, %v19437_v23, %v14020_v7 }
 0x33b   : > { %v19439_v27 = vrot.slane %v19407_v20, 9  ;;  %v6350_v31 = vsel %vm23392_vm3, %v6345_v28, %v6349_v40  ;;  %v14028_v9 = vrot.slane %v23161_v45, 5  ;;  %v19440_v4 = vrot.slane %v19408_v2, 9  ;;  %v27049_v20 = vld [vmem:[%s23348_s16 + $0x15c] sm:$0x1] }
 0x33c   : > { %v14025_v16 = vsel %vm23924_vm6, %v19438_v61, %v14024_v58  ;;  %v18192_v5 = vcombine.low %v6336_v52, %v6350_v31  ;;  %v6364_v26 = vsel %vm23392_vm3, %v6359_v50, %v6363_v62  ;;  %v6373_v21 = vrot.slane %v6372_v55, 4  ;;  %v18164_v62 = vld [vmem:[%s23348_s16 + $0x158] sm:$0xf]  ;;  %v19410_v50 = vld [vmem:[%s23348_s16 + $0x120] sm:$0xe] }
 0x33d   : > { %v19473_v56 = vcombine.low %v14021_v54, %v14025_v16  ;;  %v14029_v49 = vsel %vm23924_vm6, %v19439_v27, %v14028_v9  ;;  %v14032_v12 = vrot.slane %v23162_v32, 5  ;;  %v6380_v24 = vshrl.u32 %v18158_v36, 16  ;;  %v19409_v28 = vld [vmem:[%s23348_s16 + $0x118] sm:$0xe] }
 0x33e   : > { %v6383_v57 = vshll.u32 %v18158_v36, 16  ;;  %21029 = vmatprep.mubr.msk.bf16.mxu1 %vm979_vm0, %v18192_v5  ;;  %v6378_v34 = vsel %vm23392_vm3, %v6373_v21, %v6377_v6  ;;  %v6389_v19 = vshll.u32 %v27023_v41, 16  ;;  %v6394_v59 = vshrl.u32 %v18160_v33, 16  ;;  %v23163_v21 = vld [vmem:[%s23348_s16 + $0x11c] sm:$0x1] }
 0x33f   : > { %21537 = vmatprep.mubr.msk.bf16.mxu0 %vm979_vm0, %v19473_v56  ;;  %v6397_v18 = vshll.u32 %v18160_v33, 16  ;;  %v18193_v40 = vcombine.low %v6364_v26, %v6378_v34  ;;  %v14033_v29 = vsel %vm23924_vm6, %v19440_v4, %v14032_v12  ;;  %v6382_v0 = vrot.slane %v6380_v24, 4  ;;  %v19411_v4 = vld [vmem:[%s23348_s16 + $0x128] sm:$0xe]  ;;  %v19412_v33 = vld [vmem:[%s23348_s16 + $0x130] sm:$0xe] }
 0x340   : > { %v6385_v15 = vrot.slane %v6383_v57, 5  ;;  %v19474_v1 = vcombine.low %v14029_v49, %v14033_v29  ;;  %v6391_v35 = vrot.slane %v6389_v19, 5  ;;  %v6396_v51 = vrot.slane %v6394_v59, 4  ;;  %v23164_v57 = vld [vmem:[%s23348_s16 + $0x124] sm:$0x1] }
 0x341   : > { %v6399_v43 = vrot.slane %v6397_v18, 5  ;;  %21030 = vmatmul.mubr.msk.bf16.gmra.mrb[20].mxu1 %vm979_vm0, %v18193_v40  ;;  %v6403_v23 = vshll.u32 %v27032_v48, 16  ;;  %v6408_v52 = vshrl.u32 %v18162_v13, 16  ;;  %v6411_v3 = vshll.u32 %v18162_v13, 16  ;;  %v18166_v19 = vld [vmem:[%s23348_s16 + $0x160] sm:$0xf] }
 0x342   : > { %v6386_v44 = vor.u32 %v6385_v15, %v6382_v0  ;;  %21538 = vmatmul.mubr.msk.bf16.gmra.mrb[8].mxu0 %vm979_vm0, %v19474_v1  ;;  %v6417_v25 = vshll.u32 %v27043_v39, 16  ;;  %v6422_v7 = vshrl.u32 %v18164_v62, 16  ;;  %v6425_v2 = vshll.u32 %v18164_v62, 16  ;;  %v23165_v40 = vld [vmem:[%s23348_s16 + $0x12c] sm:$0x1] }
 0x343   : > { %v6400_v37 = vor.u32 %v6399_v43, %v6396_v51  ;;  %v6405_v61 = vrot.slane %v6403_v23, 5  ;;  %v6410_v60 = vrot.slane %v6408_v52, 4  ;;  %v6413_v58 = vrot.slane %v6411_v3, 5  ;;  %v27069_v0 = vld [vmem:[%s23348_s16 + $0x164] sm:$0x1] }
 0x344   : > { %v6387_v6 = vrot.slane %v6386_v44, 4  ;;  %v6419_v54 = vrot.slane %v6417_v25, 5  ;;  %v6424_v27 = vrot.slane %v6422_v7, 4  ;;  %v6427_v36 = vrot.slane %v6425_v2, 5  ;;  %v18168_v43 = vld [vmem:[%s23348_s16 + $0x168] sm:$0xf] }
 0x345   : > { %v6401_v55 = vrot.slane %v6400_v37, 4  ;;  %v6414_v16 = vor.u32 %v6413_v58, %v6410_v60  ;;  %v6431_v45 = vshll.u32 %v27049_v20, 16  ;;  %v19441_v9 = vrot.slane %v19409_v28, 9  ;;  %v27083_v3 = vld [vmem:[%s23348_s16 + $0x16c] sm:$0x1] }
 0x346   : > { %v6392_v31 = vsel %vm23392_vm3, %v6387_v6, %v6391_v35  ;;  %v6428_v26 = vor.u32 %v6427_v36, %v6424_v27  ;;  %v14036_v56 = vrot.slane %v23163_v21, 5  ;;  %v19442_v49 = vrot.slane %v19410_v50, 9  ;;  %v23166_v35 = vld [vmem:[%s23348_s16 + $0x134] sm:$0x1]  ;;  %v18170_v25 = vld [vmem:[%s23348_s16 + $0x170] sm:$0xf] }
 0x347   : > { %v6406_v5 = vsel %vm23392_vm3, %v6401_v55, %v6405_v61  ;;  %v6415_v12 = vrot.slane %v6414_v16, 4  ;;  %v6433_v24 = vrot.slane %v6431_v45, 5  ;;  %v14040_v34 = vrot.slane %v23164_v57, 5  ;;  %v27090_v61 = vld [vmem:[%s23348_s16 + $0x174] sm:$0x1] }
 0x348   : > { %v18194_v32 = vcombine.low %v6392_v31, %v6406_v5  ;;  %v6429_v59 = vrot.slane %v6428_v26, 4  ;;  %v14037_v18 = vsel %vm23924_vm6, %v19441_v9, %v14036_v56  ;;  %v19443_v13 = vrot.slane %v19411_v4, 9  ;;  %v27097_v16 = vld [vmem:[%s23348_s16 + $0x17c] sm:$0x1]  ;;  %v19413_v26 = vld [vmem:[%s23348_s16 + $0x148] sm:$0xe] }
 0x349   : > { %v14044_v29 = vrot.slane %v23165_v40, 5  ;;  %v6420_v15 = vsel %vm23392_vm3, %v6415_v12, %v6419_v54  ;;  %v14041_v62 = vsel %vm23924_vm6, %v19442_v49, %v14040_v34  ;;  %v19444_v1 = vrot.slane %v19412_v33, 9  ;;  %v18172_v54 = vld [vmem:[%s23348_s16 + $0x178] sm:$0xf]  ;;  %v19414_v12 = vld [vmem:[%s23348_s16 + $0x150] sm:$0xe] }
 0x34a   : > { %21033 = vmatprep.mubr.msk.bf16.mxu1 %vm979_vm0, %v18194_v32  ;;  %v14048_v51 = vrot.slane %v23166_v35, 5  ;;  %v6434_v44 = vsel %vm23392_vm3, %v6429_v59, %v6433_v24  ;;  %v19475_v23 = vcombine.low %v14037_v18, %v14041_v62  ;;  %v6436_v37 = vshrl.u32 %v18166_v19, 16  ;;  %v19415_v59 = vld [vmem:[%s23348_s16 + $0x158] sm:$0xe] }
 0x34b   : > { %v14045_v52 = vsel %vm23924_vm6, %v19443_v13, %v14044_v29  ;;  %v18195_v7 = vcombine.low %v6420_v15, %v6434_v44  ;;  %v6439_v28 = vshll.u32 %v18166_v19, 16  ;;  %v6445_v6 = vshll.u32 %v27069_v0, 16  ;;  %v19416_v15 = vld [vmem:[%s23348_s16 + $0x160] sm:$0xe]  ;;  %v18218_v44 = vld [vmem:[%s23348_s16 + $0x50] sm:$0xe] }
 0x34c   : > { %v14049_v2 = vsel %vm23924_vm6, %v19444_v1, %v14048_v51  ;;  %21541 = vmatprep.mubr.msk.bf16.mxu0 %vm979_vm0, %v19475_v23  ;;  %v6438_v58 = vrot.slane %v6436_v37, 4  ;;  %v6450_v50 = vshrl.u32 %v18168_v43, 16  ;;  %v6453_v55 = vshll.u32 %v18168_v43, 16  ;;  %v23167_v51 = vld [vmem:[%s23348_s16 + $0x14c] sm:$0x1] }
 0x34d   : > { %v19476_v60 = vcombine.low %v14045_v52, %v14049_v2  ;;  %21034 = vmatmul.mubr.msk.bf16.gmra.mrb[24].mxu1 %vm979_vm0, %v18195_v7  ;;  %v6441_v27 = vrot.slane %v6439_v28, 5  ;;  %v6447_v36 = vrot.slane %v6445_v6, 5  ;;  %v6459_v31 = vshll.u32 %v27083_v3, 16  ;;  %v18219_v2 = vld [vmem:[%s23348_s16 + $0x58] sm:$0xe] }
 0x34e   : > { %v6464_v45 = vshrl.u32 %v18170_v25, 16  ;;  %v6452_v9 = vrot.slane %v6450_v50, 4  ;;  %v6455_v4 = vrot.slane %v6453_v55, 5  ;;  %v6467_v33 = vshll.u32 %v18170_v25, 16  ;;  %v23168_v25 = vld [vmem:[%s23348_s16 + $0x154] sm:$0x1] }
 0x34f   : > { %21542 = vmatmul.mubr.msk.bf16.gmra.mrb[12].mxu0 %vm979_vm0, %v19476_v60  ;;  %v6473_v5 = vshll.u32 %v27090_v61, 16  ;;  %v6442_v21 = vor.u32 %v6441_v27, %v6438_v58  ;;  %v6461_v56 = vrot.slane %v6459_v31, 5  ;;  %v6478_v32 = vshrl.u32 %v18172_v54, 16  ;;  %v18220_v50 = vld [vmem:[%s23348_s16 + $0x60] sm:$0xe] }
 0x350   : > { %v6466_v49 = vrot.slane %v6464_v45, 4  ;;  %v6456_v24 = vor.u32 %v6455_v4, %v6452_v9  ;;  %v6469_v57 = vrot.slane %v6467_v33, 5  ;;  %v6481_v19 = vshll.u32 %v18172_v54, 16 }
 0x351   : > { %v6475_v34 = vrot.slane %v6473_v5, 5  ;;  %v6443_v18 = vrot.slane %v6442_v21, 4  ;;  %v6480_v13 = vrot.slane %v6478_v32, 4  ;;  %v6487_v40 = vshll.u32 %v27097_v16, 16  ;;  %v18221_v5 = vld [vmem:[%s23348_s16 + $0x68] sm:$0xe] }
 0x352   : > { %v19445_v29 = vrot.slane %v19413_v26, 9  ;;  %v6457_v62 = vrot.slane %v6456_v24, 4  ;;  %v6470_v1 = vor.u32 %v6469_v57, %v6466_v49  ;;  %v6483_v35 = vrot.slane %v6481_v19, 5  ;;  %v19417_v26 = vld [vmem:[%s23348_s16 + $0x168] sm:$0xe] }
 0x353   : > { %v14052_v43 = vrot.slane %v23167_v51, 5  ;;  %v6448_v23 = vsel %vm23392_vm3, %v6443_v18, %v6447_v36  ;;  %v6489_v52 = vrot.slane %v6487_v40, 5  ;;  %v19446_v37 = vrot.slane %v19414_v12, 9  ;;  %v23169_v36 = vld [vmem:[%s23348_s16 + $0x15c] sm:$0x1] }
 0x354   : > { %v14056_v7 = vrot.slane %v23168_v25, 5  ;;  %v6462_v28 = vsel %vm23392_vm3, %v6457_v62, %v6461_v56  ;;  %v6471_v6 = vrot.slane %v6470_v1, 4  ;;  %v6484_v60 = vor.u32 %v6483_v35, %v6480_v13  ;;  %v23170_v56 = vld [vmem:[%s23348_s16 + $0x164] sm:$0x1]  ;;  %v23171_v12 = vld [vmem:[%s23348_s16 + $0x54] sm:$0x1] }
 0x355   : > { %v14053_v58 = vsel %vm23924_vm6, %v19445_v29, %v14052_v43  ;;  %v18196_v55 = vcombine.low %v6448_v23, %v6462_v28  ;;  %v19447_v27 = vrot.slane %v19415_v59, 9  ;;  %v14060_v31 = vrot.slane %v23169_v36, 5  ;;  %v19418_v57 = vld [vmem:[%s23348_s16 + $0x170] sm:$0xe]  ;;  %v23172_v18 = vld [vmem:[%s23348_s16 + $0x5c] sm:$0x1] }
 0x356   : > { %v14057_v54 = vsel %vm23924_vm6, %v19446_v37, %v14056_v7  ;;  %v6476_v45 = vsel %vm23392_vm3, %v6471_v6, %v6475_v34  ;;  %v6485_v9 = vrot.slane %v6484_v60, 4  ;;  %v19448_v33 = vrot.slane %v19416_v15, 9  ;;  %v19419_v34 = vld [vmem:[%s23348_s16 + $0x178] sm:$0xe]  ;;  %v19420_v29 = vld [vmem:[%s23348_s16 + $0x180] sm:$0xe] }
 0x357   : > { %v19477_v4 = vcombine.low %v14053_v58, %v14057_v54  ;;  %21037 = vmatprep.mubr.msk.bf16.mxu1 %vm979_vm0, %v18196_v55  ;;  %v14061_v21 = vsel %vm23924_vm6, %v19447_v27, %v14060_v31  ;;  %v14064_v49 = vrot.slane %v23170_v56, 5  ;;  %v18250_v32 = vrot.slane %v18218_v44, 9  ;;  %v23173_v35 = vld [vmem:[%s23348_s16 + $0x64] sm:$0x1]  ;;  %v18222_v25 = vld [vmem:[%s23348_s16 + $0x70] sm:$0xe] }
 0x358   : > { %v6911_v24 = vrot.slane %v23171_v12, 5  ;;  %v6490_v19 = vsel %vm23392_vm3, %v6485_v9, %v6489_v52  ;;  %v18251_v59 = vrot.slane %v18219_v2, 9  ;;  %v6915_v13 = vrot.slane %v23172_v18, 5  ;;  %v23174_v52 = vld [vmem:[%s23348_s16 + $0x6c] sm:$0x1] }
 0x359   : > { %21545 = vmatprep.mubr.msk.bf16.mxu0 %vm979_vm0, %v19477_v4  ;;  %v18252_v40 = vrot.slane %v18220_v50, 9  ;;  %v18197_v15 = vcombine.low %v6476_v45, %v6490_v19  ;;  %v14065_v62 = vsel %vm23924_vm6, %v19448_v33, %v14064_v49  ;;  %v6919_v51 = vrot.slane %v23173_v35, 5  ;;  %v23175_v6 = vld [vmem:[%s23348_s16 + $0x16c] sm:$0x1]  ;;  %v18223_v58 = vld [vmem:[%s23348_s16 + $0x78] sm:$0xe] }
 0x35a   : > { %v6912_v1 = vsel %vm23924_vm6, %v18250_v32, %v6911_v24  ;;  %v19478_v43 = vcombine.low %v14061_v21, %v14065_v62  ;;  %v6916_v44 = vsel %vm23924_vm6, %v18251_v59, %v6915_v13  ;;  %v18253_v23 = vrot.slane %v18221_v5, 9  ;;  %v23176_v54 = vld [vmem:[%s23348_s16 + $0x174] sm:$0x1]  ;;  %v18224_v31 = vld [vmem:[%s23348_s16 + $0x80] sm:$0xe] }
 0x35b   : > { %v6923_v37 = vrot.slane %v23174_v52, 5  ;;  %21038 = vmatmul.mubr.msk.bf16.gmra.mrb[28].mxu1 %vm979_vm0, %v18197_v15  ;;  %v18290_v7 = vcombine.low %v6912_v1, %v6916_v44  ;;  %v6920_v2 = vsel %vm23924_vm6, %v18252_v40, %v6919_v51  ;;  %v19449_v28 = vrot.slane %v19417_v26, 9  ;;  %v23177_v4 = vld [vmem:[%s23348_s16 + $0x17c] sm:$0x1]  ;;  %v18225_v26 = vld [vmem:[%s23348_s16 + $0x88] sm:$0xe] }
 0x35c   : > { %v14068_v60 = vrot.slane %v23175_v6, 5  ;;  %21546 = vmatmul.mubr.msk.bf16.gmra.mrb[16].mxu0 %vm979_vm0, %v19478_v43  ;;  %v19450_v55 = vrot.slane %v19418_v57, 9  ;;  %v14072_v27 = vrot.slane %v23176_v54, 5  ;;  %v19451_v36 = vrot.slane %v19419_v34, 9  ;;  %v19421_v21 = vld [vmem:[%s23348_s16 + $0x198] sm:$0xe] }
 0x35d   : > { %v6924_v50 = vsel %vm23924_vm6, %v18253_v23, %v6923_v37  ;;  %21049 = vmatprep.mubr.msk.bf16.mxu1 %vm979_vm0, %v18290_v7  ;;  %v14076_v33 = vrot.slane %v23177_v4, 5  ;;  %v19452_v5 = vrot.slane %v19420_v29, 9  ;;  %v23178_v49 = vld [vmem:[%s23348_s16 + $0x184] sm:$0x1]  ;;  %v18254_v12 = vrot.slane %v18222_v25, 9 }
 0x35e   : > { %v18291_v45 = vcombine.low %v6920_v2, %v6924_v50  ;;  %v14069_v9 = vsel %vm23924_vm6, %v19449_v28, %v14068_v60  ;;  %v14073_v56 = vsel %vm23924_vm6, %v19450_v55, %v14072_v27  ;;  %v14080_v32 = vrot.slane %v23178_v49, 5  ;;  %v23179_v24 = vld [vmem:[%s23348_s16 + $0x74] sm:$0x1]  ;;  %v19422_v34 = vld [vmem:[%s23348_s16 + $0x1a0] sm:$0xe] }
 0x35f   : > { %v6927_v57 = vrot.slane %v23179_v24, 5  ;;  %v19423_v19 = vld [vmem:[%s23348_s16 + $0x1a8] sm:$0xe]  ;;  %v19479_v59 = vcombine.low %v14069_v9, %v14073_v56  ;;  %v14077_v18 = vsel %vm23924_vm6, %v19451_v36, %v14076_v33  ;;  %v18255_v13 = vrot.slane %v18223_v58, 9  ;;  %v23180_v40 = vld [vmem:[%s23348_s16 + $0x7c] sm:$0x1] }
 0x360   : > { %v6931_v29 = vrot.slane %v23180_v40, 5  ;;  %v19424_v15 = vld [vmem:[%s23348_s16 + $0x1b0] sm:$0xe]  ;;  %v14081_v62 = vsel %vm23924_vm6, %v19452_v5, %v14080_v32  ;;  %v18256_v35 = vrot.slane %v18224_v31, 9  ;;  %v23181_v51 = vld [vmem:[%s23348_s16 + $0x84] sm:$0x1] }
 0x361   : > { %v6928_v1 = vsel %vm23924_vm6, %v18254_v12, %v6927_v57  ;;  %v6935_v43 = vrot.slane %v23181_v51, 5  ;;  %v18226_v44 = vld [vmem:[%s23348_s16 + $0xa0] sm:$0xe]  ;;  %21549 = vmatprep.mubr.msk.bf16.mxu0 %vm979_vm0, %v19479_v59  ;;  %v19480_v23 = vcombine.low %v14077_v18, %v14081_v62  ;;  %v18257_v37 = vrot.slane %v18225_v26, 9  ;;  %v23182_v25 = vld [vmem:[%s23348_s16 + $0x8c] sm:$0x1] }
 0x362   : > { %v6932_v52 = vsel %vm23924_vm6, %v18255_v13, %v6931_v29  ;;  %v6939_v7 = vrot.slane %v23182_v25, 5  ;;  %v18227_v2 = vld [vmem:[%s23348_s16 + $0xa8] sm:$0xe]  ;;  %v19453_v60 = vrot.slane %v19421_v21, 9  ;;  %v23183_v58 = vld [vmem:[%s23348_s16 + $0x19c] sm:$0x1] }
 0x363   : > { %v18292_v28 = vcombine.low %v6928_v1, %v6932_v52  ;;  %v27184_v6 = vsel %vm23924_vm6, %v18256_v35, %v6935_v43  ;;  %v14084_v50 = vrot.slane %v23183_v58, 5  ;;  %21050 = vmatmul.mubr.msk.bf16.vlgmr.msra.gmra.mrb[0].mxu1 %vm979_vm0, %v18291_v45  ;;  %v19454_v54 = vrot.slane %v19422_v34, 9  ;;  %v23184_v27 = vld [vmem:[%s23348_s16 + $0x1a4] sm:$0x1]  ;;  %v18228_v9 = vld [vmem:[%s23348_s16 + $0xb0] sm:$0xe] }
 0x364   : > { %v6940_v55 = vsel %vm23924_vm6, %v18257_v37, %v6939_v7  ;;  %v14088_v36 = vrot.slane %v23184_v27, 5  ;;  %v19455_v31 = vrot.slane %v19423_v19, 9  ;;  %21550 = vmatmul.mubr.msk.bf16.gmra.mrb[20].mxu0 %vm979_vm0, %v19480_v23  ;;  %v23185_v33 = vld [vmem:[%s23348_s16 + $0x1ac] sm:$0x1]  ;;  %v19456_v26 = vrot.slane %v19424_v15, 9  ;;  %21765 = vmatpush3.bf16.msra.mxu1 %v26863_v17 }
 0x365   : > { %21053 = vmatprep.mubr.msk.bf16.mxu1 %vm979_vm0, %v18292_v28  ;;  %v18293_v4 = vcombine.low %v27184_v6, %v6940_v55  ;;  %v14085_v45 = vsel %vm23924_vm6, %v19453_v60, %v14084_v50  ;;  %v14092_v5 = vrot.slane %v23185_v33, 5  ;;  %v18229_v21 = vld [vmem:[%s23348_s16 + $0xb8] sm:$0xe]  ;;  %v23186_v32 = vld [vmem:[%s23348_s16 + $0x1b4] sm:$0x1]  ;;  %v18258_v24 = vrot.slane %v18226_v44, 9 }
 0x366   : > { %v19425_v56 = vld [vmem:[%s23348_s16 + $0x1b8] sm:$0xe]  ;;  %v14089_v49 = vsel %vm23924_vm6, %v19454_v54, %v14088_v36  ;;  %v14096_v12 = vrot.slane %v23186_v32, 5  ;;  %v23187_v57 = vld [vmem:[%s23348_s16 + $0xa4] sm:$0x1]  ;;  %v18259_v13 = vrot.slane %v18227_v2, 9 }
 0x367   : > { %v6943_v34 = vrot.slane %v23187_v57, 5  ;;  %v19426_v19 = vld [vmem:[%s23348_s16 + $0x1c0] sm:$0xe]  ;;  %v19481_v59 = vcombine.low %v14085_v45, %v14089_v49  ;;  %v14093_v18 = vsel %vm23924_vm6, %v19455_v31, %v14092_v5  ;;  %v23188_v40 = vld [vmem:[%s23348_s16 + $0xac] sm:$0x1]  ;;  %v18260_v1 = vrot.slane %v18228_v9, 9 }
 0x368   : > { %v6947_v29 = vrot.slane %v23188_v40, 5  ;;  %v23189_v15 = vld [vmem:[%s28369_s2 + $0x188] sm:$0xff]   ;;  %v14097_v62 = vsel %vm23924_vm6, %v19456_v26, %v14096_v12  ;;  %v23190_v35 = vld [vmem:[%s23348_s16 + $0xb4] sm:$0x1]  ;;  %v18261_v52 = vrot.slane %v18229_v21, 9  ;;  %v19457_v28 = vrot.slane %v19425_v56, 9 }
 0x369   : > { %21762 = vmatprep.subr.bf16.mxu1 %v23189_v15  ;;  %v6944_v17 = vsel %vm23924_vm6, %v18258_v24, %v6943_v34  ;;  %v6951_v51 = vrot.slane %v23190_v35, 5  ;;  %v19427_v43 = vld [vmem:[%s23348_s16 + $0x1c8] sm:$0xe]  ;;  %21553 = vmatprep.mubr.msk.bf16.mxu0 %vm979_vm0, %v19481_v59  ;;  %v19482_v44 = vcombine.low %v14093_v18, %v14097_v62  ;;  %v23191_v37 = vld [vmem:[%s23348_s16 + $0xbc] sm:$0x1]  ;;  %v19458_v54 = vrot.slane %v19426_v19, 9 }
 0x36a   : > { %v6948_v23 = vsel %vm23924_vm6, %v18259_v13, %v6947_v29  ;;  %v6955_v25 = vrot.slane %v23191_v37, 5  ;;  %v19428_v7 = vld [vmem:[%s23348_s16 + $0x1d0] sm:$0xe]  ;;  %v23192_v6 = vld [vmem:[%s23348_s16 + $0x1bc] sm:$0x1]  ;;  %21766 = vmatpush3.bf16.msra.mxu1 %v23189_v15  ;;  %v19459_v31 = vrot.slane %v19427_v43, 9 }
 0x36b   : > { %v18294_v2 = vcombine.low %v6944_v17, %v6948_v23  ;;  %v14100_v60 = vrot.slane %v23192_v6, 5  ;;  %v18230_v58 = vld [vmem:[%s23348_s16 + $0xc0] sm:$0xe]  ;;  %v18231_v50 = vld [vmem:[%s23348_s16 + $0xc8] sm:$0xe]  ;;  %v6952_v55 = vsel %vm23924_vm6, %v18260_v1, %v6951_v51  ;;  %v23194_v45 = vld [vmem:[%s28369_s2 + $0x190] sm:$0xff]   ;;  %21054 = vmatmul.mubr.msk.bf16.gmra.mrb[4].mxu1 %vm979_vm0, %v18293_v4 }
 0x36c   : > { %v23193_v27 = vld [vmem:[%s23348_s16 + $0x1c4] sm:$0x1]  ;;  %v18232_v9 = vld [vmem:[%s23348_s16 + $0xd0] sm:$0xe]  ;;  %21763 = vmatprep.subr.bf16.mxu1 %v23194_v45  ;;  %v6956_v33 = vsel %vm23924_vm6, %v18261_v52, %v6955_v25  ;;  %v23195_v26 = vld [vmem:[%s23348_s16 + $0x1cc] sm:$0x1]  ;;  %21554 = vmatmul.mubr.msk.bf16.gmra.mrb[24].mxu0 %vm979_vm0, %v19482_v44 }
 0x36d   : > { %v14104_v36 = vrot.slane %v23193_v27, 5  ;;  %v14101_v5 = vsel %vm23924_vm6, %v19457_v28, %v14100_v60  ;;  %v14108_v21 = vrot.slane %v23195_v26, 5  ;;  %v19460_v56 = vrot.slane %v19428_v7, 9  ;;  %v18233_v49 = vld [vmem:[%s23348_s16 + $0xd8] sm:$0xe]  ;;  %21057 = vmatprep.mubr.msk.bf16.mxu1 %vm979_vm0, %v18294_v2 }
 0x36e   : > { %v23196_v4 = vld [vmem:[%s23348_s16 + $0x1d4] sm:$0x1]  ;;  %v18262_v24 = vrot.slane %v18230_v58, 9  ;;  %v23197_v57 = vld [vmem:[%s23348_s16 + $0xc4] sm:$0x1]  ;;  %v18263_v18 = vrot.slane %v18231_v50, 9  ;;  %21767 = vmatpush3.bf16.msra.mxu1 %v23194_v45  ;;  %v18295_v44 = vcombine.low %v6952_v55, %v6956_v33 }
 0x36f   : > { %v14105_v32 = vsel %vm23924_vm6, %v19458_v54, %v14104_v36  ;;  %v14112_v12 = vrot.slane %v23196_v4, 5  ;;  %v6959_v34 = vrot.slane %v23197_v57, 5  ;;  %v14109_v59 = vsel %vm23924_vm6, %v19459_v31, %v14108_v21  ;;  %v23198_v13 = vld [vmem:[%s23348_s16 + $0xcc] sm:$0x1]  ;;  %v18234_v29 = vld [vmem:[%s23348_s16 + $0xf0] sm:$0xe] }
 0x370   : > { %v19483_v19 = vcombine.low %v14101_v5, %v14105_v32  ;;  %v6963_v40 = vrot.slane %v23198_v13, 5  ;;  %v18264_v17 = vrot.slane %v18232_v9, 9  ;;  %v23199_v1 = vld [vmem:[%s23348_s16 + $0xd4] sm:$0x1]  ;;  %v18235_v51 = vld [vmem:[%s23348_s16 + $0xf8] sm:$0xe] }
 0x371   : > { %v14113_v15 = vsel %vm23924_vm6, %v19460_v56, %v14112_v12  ;;  %v6960_v62 = vsel %vm23924_vm6, %v18262_v24, %v6959_v34  ;;  %v6967_v35 = vrot.slane %v23199_v1, 5  ;;  %v23200_v43 = vld [vmem:[%s28369_s2 + $0x198] sm:$0xff]   ;;  %v18265_v52 = vrot.slane %v18233_v49, 9  ;;  %v18236_v60 = vld [vmem:[%s23348_s16 + $0x100] sm:$0xe] }
 0x372   : > { %21764 = vmatprep.subr.bf16.mxu1 %v23200_v43  ;;  %21557 = vmatprep.mubr.msk.bf16.mxu0 %vm979_vm0, %v19483_v19  ;;  %v6964_v23 = vsel %vm23924_vm6, %v18263_v18, %v6963_v40  ;;  %v6971_v37 = vrot.slane %v26882_v47, 5  ;;  %v22958_v25 = vld [vmem:[%s23348_s16 + $0xb0] ss:$8 sps:$4 sm:$0xff]   ;;  %v19484_v7 = vcombine.low %v14109_v59, %v14113_v15  ;;  %v18266_v28 = vrot.slane %v18234_v29, 9  ;;  %v18237_v55 = vld [vmem:[%s23348_s16 + $0x108] sm:$0xe] }
 0x373   : > { %v18296_v2 = vcombine.low %v6960_v62, %v6964_v23  ;;  %v6975_v6 = vrot.slane %v26897_v46, 5  ;;  %v18267_v58 = vrot.slane %v18235_v51, 9  ;;  %v6979_v50 = vrot.slane %v26915_v10, 5  ;;  %v18238_v54 = vld [vmem:[%s23348_s16 + $0x110] sm:$0xe]  ;;  %21768 = vmatpush3.bf16.msra.mxu1 %v23200_v43  ;;  %v22965_v62 = vld [vmem:[%s28369_s2 + $0x328] sm:$0xff]  }
 0x374   : > { %v18239_v27 = vld [vmem:[%s23348_s16 + $0x118] sm:$0xe]  ;;  %21058 = vmatmul.mubr.msk.bf16.gmra.mrb[8].mxu1 %vm979_vm0, %v18295_v44  ;;  %v6968_v47 = vsel %vm23924_vm6, %v18264_v17, %v6967_v35  ;;  %v18242_v36 = vld [vmem:[%s23348_s16 + $0x140] sm:$0xe]  ;;  %v18243_v31 = vld [vmem:[%s23348_s16 + $0x148] sm:$0xe]  ;;  %21558 = vmatmul.mubr.msk.bf16.gmra.mrb[28].mxu0 %vm979_vm0, %v19484_v7  ;;  %v6972_v46 = vsel %vm23924_vm6, %v18265_v52, %v6971_v37 }
 0x375   : > { %v18244_v9 = vld [vmem:[%s23348_s16 + $0x150] sm:$0xe]  ;;  %21061 = vmatprep.mubr.msk.bf16.mxu1 %vm979_vm0, %v18296_v2  ;;  %v6976_v10 = vsel %vm23924_vm6, %v18266_v28, %v6975_v6  ;;  %v6980_v45 = vsel %vm23924_vm6, %v18267_v58, %v6979_v50  ;;  %v18245_v33 = vld [vmem:[%s23348_s16 + $0x158] sm:$0xe]  ;;  %21569 = vmatprep.mubr.msk.bf16.mxu0 %vm979_vm0, %v22958_v25  ;;  %v18268_v5 = vrot.slane %v18236_v60, 9  ;;  %v6983_v26 = vrot.slane %v26925_v53, 5 }
 0x376   : > { %v18269_v21 = vrot.slane %v18237_v55, 9  ;;  %v22959_v56 = vld [vmem:[%s23348_s16 + $0xc0] ss:$8 sps:$4 sm:$0xff]   ;;  %v6987_v49 = vrot.slane %v26933_v30, 5  ;;  %v18270_v32 = vrot.slane %v18238_v54, 9  ;;  %v6991_v4 = vrot.slane %v26964_v14, 5  ;;  %21681 = vmatprep.subr.bf16.mxu1 %v22990_v63 }
 0x377   : > { %v18271_v12 = vrot.slane %v18239_v27, 9  ;;  %v18297_v24 = vcombine.low %v6968_v47, %v6972_v46  ;;  %v18298_v57 = vcombine.low %v6976_v10, %v6980_v45  ;;  %v22961_v34 = vld [vmem:[%s23348_s16 + $0xd0] ss:$8 sps:$4 sm:$0xff]   ;;  %v18274_v19 = vrot.slane %v18242_v36, 9  ;;  %v18240_v51 = vld [vmem:[%s23348_s16 + $0x120] sm:$0xe] }
 0x378   : > { %v7007_v59 = vrot.slane %v27023_v41, 5  ;;  %v6995_v18 = vrot.slane %v26979_v22, 5  ;;  %v18275_v13 = vrot.slane %v18243_v31, 9  ;;  %v7011_v53 = vrot.slane %v27032_v48, 5  ;;  %v18248_v29 = vld [vmem:[%s23348_s16 + $0x170] sm:$0xe] }
 0x379   : > { %v18276_v40 = vrot.slane %v18244_v9, 9  ;;  %v7015_v14 = vrot.slane %v27043_v39, 5  ;;  %v18277_v15 = vrot.slane %v18245_v33, 9  ;;  %v7019_v41 = vrot.slane %v27049_v20, 5  ;;  %v18249_v48 = vld [vmem:[%s23348_s16 + $0x178] sm:$0xe] }
 0x37a   : > { %v27297_v30 = vsel %vm23924_vm6, %v18274_v19, %v7007_v59  ;;  %v27305_v22 = vsel %vm23924_vm6, %v18275_v13, %v7011_v53  ;;  %v6984_v17 = vsel %vm23924_vm6, %v18268_v5, %v6983_v26  ;;  %v6988_v39 = vsel %vm23924_vm6, %v18269_v21, %v6987_v49  ;;  %v22970_v52 = vld [vmem:[%s28369_s2 + $0x330] sm:$0xff]   ;;  %v18241_v25 = vld [vmem:[%s23348_s16 + $0x128] sm:$0xe]  ;;  %v18246_v31 = vld [vmem:[%s23348_s16 + $0x160] sm:$0xe] }
 0x37b   : > { %v18302_v1 = vcombine.low %v27297_v30, %v27305_v22  ;;  %v27318_v35 = vsel %vm23924_vm6, %v18276_v40, %v7015_v14  ;;  %v6992_v20 = vsel %vm23924_vm6, %v18270_v32, %v6991_v4  ;;  %v27327_v43 = vsel %vm23924_vm6, %v18277_v15, %v7019_v41  ;;  %v22963_v47 = vld [vmem:[%s23348_s16 + $0x100] ss:$8 sps:$4 sm:$0xff]   ;;  %v19584_v9 = vld [vmem:[%s23348_s16 + $0xb0] sm:$0xf]  ;;  %v19586_v5 = vld [vmem:[%s23348_s16 + $0xb8] sm:$0xf] }
 0x37c   : > { %21062 = vmatmul.mubr.msk.bf16.gmra.mrb[12].mxu1 %vm979_vm0, %v18297_v24  ;;  %21570 = vmatmul.mubr.msk.bf16.vlgmr.msra.gmra.mrb[0].mxu0 %vm979_vm0, %v22959_v56  ;;  %v18280_v44 = vrot.slane %v18248_v29, 9  ;;  %v7031_v23 = vrot.slane %v27090_v61, 5  ;;  %v6996_v37 = vsel %vm23924_vm6, %v18271_v12, %v6995_v18  ;;  %v18303_v7 = vcombine.low %v27318_v35, %v27327_v43  ;;  %v22962_v61 = vld [vmem:[%s23348_s16 + $0xe0] ss:$8 sps:$4 sm:$0xff]   ;;  %v22964_v33 = vld [vmem:[%s23348_s16 + $0x110] ss:$8 sps:$4 sm:$0xff]  }
 0x37d   : > { %21065 = vmatprep.mubr.msk.bf16.mxu1 %vm979_vm0, %v18298_v57  ;;  %21602 = vmatpush3.bf16.msra.mxu0 %v26985_v11  ;;  %v18281_v2 = vrot.slane %v18249_v48, 9  ;;  %v7035_v28 = vrot.slane %v27097_v16, 5  ;;  %v18299_v11 = vcombine.low %v6984_v17, %v6988_v39  ;;  %v18272_v60 = vrot.slane %v18240_v51, 9  ;;  %v18247_v46 = vld [vmem:[%s23348_s16 + $0x168] sm:$0xe]  ;;  %v27372_v10 = vld [vmem:[%s28369_s2 + $0x340] sm:$0xff]  }
 0x37e   : > { %21573 = vmatprep.mubr.msk.bf16.mxu0 %vm979_vm0, %v22961_v34  ;;  %21603 = vmatprep.subr.bf16.mxu0 %v22965_v62  ;;  %v27344_v6 = vsel %vm23924_vm6, %v18280_v44, %v7031_v23  ;;  %v6999_v58 = vrot.slane %v26993_v42, 5  ;;  %v18300_v55 = vcombine.low %v6992_v20, %v6996_v37  ;;  %v18273_v54 = vrot.slane %v18241_v25, 9  ;;  %v22979_v42 = vld [vmem:[%s28369_s2 + $0x338] sm:$0xff]   ;;  %v22966_v26 = vld [vmem:[%s23348_s16 + $0x120] ss:$8 sps:$4 sm:$0xff]  }
 0x37f   : > { %v27349_v50 = vsel %vm23924_vm6, %v18281_v2, %v7035_v28  ;;  %v7003_v16 = vrot.slane %v26998_v8, 5  ;;  %v18278_v21 = vrot.slane %v18246_v31, 9  ;;  %v7023_v56 = vrot.slane %v27069_v0, 5  ;;  %v27380_v24 = vld [vmem:[%s23348_s16 + $0xb4] sm:$0x1] }
 0x380   : > { %v18305_v27 = vcombine.low %v27344_v6, %v27349_v50  ;;  %v7000_v8 = vsel %vm23924_vm6, %v18272_v60, %v6999_v58  ;;  %v14890_v49 = vshrl.u32 %v19584_v9, 16  ;;  %v14893_v32 = vshll.u32 %v19584_v9, 16  ;;  %v27383_v57 = vld [vmem:[%s23348_s16 + $0xbc] sm:$0x1]  ;;  %v19588_v59 = vld [vmem:[%s23348_s16 + $0xc0] sm:$0xf] }
 0x381   : > { %21604 = vmatpush3.bf16.msra.mxu0 %v22965_v62  ;;  %v7004_v36 = vsel %vm23924_vm6, %v18273_v54, %v7003_v16  ;;  %v18279_v4 = vrot.slane %v18247_v46, 9  ;;  %v7027_v12 = vrot.slane %v27083_v3, 5  ;;  %v14904_v34 = vshrl.u32 %v19586_v5, 16  ;;  %v19590_v18 = vld [vmem:[%s23348_s16 + $0xc8] sm:$0xf] }
 0x382   : > { %21605 = vmatprep.subr.bf16.mxu0 %v22970_v52  ;;  %v18301_v45 = vcombine.low %v7000_v8, %v7004_v36  ;;  %v14907_v19 = vshll.u32 %v19586_v5, 16  ;;  %v14892_v0 = vrot.slane %v14890_v49, 4  ;;  %v14895_v3 = vrot.slane %v14893_v32, 5  ;;  %v19589_v30 = vld [vmem:[%s23348_s16 + $0xc4] sm:$0x1] }
 0x383   : > { %v7024_v13 = vsel %vm23924_vm6, %v18278_v21, %v7023_v56  ;;  %v7028_v53 = vsel %vm23924_vm6, %v18279_v4, %v7027_v12  ;;  %v14899_v40 = vshll.u32 %v27380_v24, 16  ;;  %v14913_v29 = vshll.u32 %v27383_v57, 16  ;;  %v19591_v41 = vld [vmem:[%s23348_s16 + $0xcc] sm:$0x1]  ;;  %v22967_v39 = vld [vmem:[%s23348_s16 + $0x130] ss:$8 sps:$4 sm:$0xff]  }
 0x384   : > { %21066 = vmatmul.mubr.msk.bf16.gmra.mrb[16].mxu1 %vm979_vm0, %v18299_v11  ;;  %21574 = vmatmul.mubr.msk.bf16.gmra.mrb[4].mxu0 %vm979_vm0, %v22962_v61  ;;  %v14906_v14 = vrot.slane %v14904_v34, 4  ;;  %v14909_v15 = vrot.slane %v14907_v19, 5  ;;  %v14918_v62 = vshrl.u32 %v19588_v59, 16  ;;  %v14921_v22 = vshll.u32 %v19588_v59, 16  ;;  %v19592_v44 = vld [vmem:[%s23348_s16 + $0xd0] sm:$0xf] }
 0x385   : > { %21069 = vmatprep.mubr.msk.bf16.mxu1 %vm979_vm0, %v18300_v55  ;;  %21577 = vmatprep.mubr.msk.bf16.mxu0 %vm979_vm0, %v22963_v47  ;;  %v14932_v48 = vshrl.u32 %v19590_v18, 16  ;;  %v14935_v17 = vshll.u32 %v19590_v18, 16  ;;  %v14896_v20 = vor.u32 %v14895_v3, %v14892_v0  ;;  %v14927_v51 = vshll.u32 %v19589_v30, 16  ;;  %v22968_v23 = vld [vmem:[%s23348_s16 + $0x150] ss:$8 sps:$4 sm:$0xff]  }
 0x386   : > { %21606 = vmatpush3.bf16.msra.mxu0 %v22970_v52  ;;  %v27406_v52 = vrot.slane %v14899_v40, 5  ;;  %v27408_v37 = vrot.slane %v14913_v29, 5  ;;  %v19594_v25 = vld [vmem:[%s23348_s16 + $0xd8] sm:$0xf]  ;;  %v14910_v2 = vor.u32 %v14909_v15, %v14906_v14  ;;  %v14920_v28 = vrot.slane %v14918_v62, 4 }
 0x387   : > { %21607 = vmatprep.subr.bf16.mxu0 %v22979_v42  ;;  %v14923_v61 = vrot.slane %v14921_v22, 5  ;;  %v14941_v11 = vshll.u32 %v19591_v41, 16  ;;  %v19596_v60 = vld [vmem:[%s23348_s16 + $0xe0] sm:$0xf]  ;;  %v14934_v58 = vrot.slane %v14932_v48, 4  ;;  %v14937_v55 = vrot.slane %v14935_v17, 5 }
 0x388   : > { %v14946_v54 = vshrl.u32 %v19592_v44, 16  ;;  %v14949_v16 = vshll.u32 %v19592_v44, 16  ;;  %v19598_v47 = vld [vmem:[%s23348_s16 + $0xe8] sm:$0xf]  ;;  %v27421_v8 = vrot.slane %v14927_v51, 5  ;;  %v14960_v35 = vshrl.u32 %v19594_v25, 16 }
 0x389   : > { %v14963_v43 = vshll.u32 %v19594_v25, 16  ;;  %v14977_v36 = vshll.u32 %v19596_v60, 16  ;;  %v19600_v31 = vld [vmem:[%s23348_s16 + $0x100] sm:$0xf]  ;;  %v19602_v9 = vld [vmem:[%s23348_s16 + $0x108] sm:$0xf]  ;;  %v14924_v5 = vor.u32 %v14923_v61, %v14920_v28  ;;  %v14938_v49 = vor.u32 %v14937_v55, %v14934_v58 }
 0x38a   : > { %21608 = vmatpush3.bf16.msra.mxu0 %v22979_v42  ;;  %v27419_v42 = vrot.slane %v14896_v20, 4  ;;  %v22969_v46 = vld [vmem:[%s23348_s16 + $0x160] ss:$8 sps:$4 sm:$0xff]   ;;  %v14991_v21 = vshll.u32 %v19598_v47, 16  ;;  %v22973_v56 = vld [vmem:[%s23348_s16 + $0x170] ss:$8 sps:$4 sm:$0xff]  }
 0x38b   : > { %21641 = vmatprep.subr.bf16.mxu0 %v27372_v10  ;;  %v27431_v32 = vrot.slane %v14941_v11, 5  ;;  %v27434_v4 = vld [vmem:[%s23348_s16 + $0xd4] sm:$0x1]  ;;  %v14948_v12 = vrot.slane %v14946_v54, 4  ;;  %v14951_v34 = vrot.slane %v14949_v16, 5  ;;  %v15002_v0 = vshrl.u32 %v19600_v31, 16 }
 0x38c   : > { %21070 = vmatmul.mubr.msk.bf16.gmra.mrb[20].mxu1 %vm979_vm0, %v18301_v45  ;;  %21578 = vmatmul.mubr.msk.bf16.gmra.mrb[8].mxu0 %vm979_vm0, %v22964_v33  ;;  %v22971_v45 = vld [vmem:[%s23348_s16 + $0xf8] ss:$8 sps:$4 sm:$0xff]   ;;  %v27428_v33 = vrot.slane %v14910_v2, 4  ;;  %28401 = vst [vmem:[#allocation2_spill] sm:$0xff] %v27434_v4  ;;  %v14902_v19 = vsel %vm23392_vm3, %v27419_v42, %v27406_v52  ;;  %v27441_v59 = vld [vmem:[%s23348_s16 + $0xdc] sm:$0x1] }
 0x38d   : > { %21073 = vmatprep.mubr.msk.bf16.mxu1 %vm979_vm0, %v18302_v1  ;;  %21581 = vmatprep.mubr.msk.bf16.mxu0 %vm979_vm0, %v22966_v26  ;;  %v18304_v1 = vcombine.low %v7024_v13, %v7028_v53  ;;  %v14988_v26 = vshrl.u32 %v19598_v47, 16  ;;  %28402 = vst [vmem:[#allocation3_spill] sm:$0xff] %v27441_v59  ;;  %v15005_v3 = vshll.u32 %v19600_v31, 16  ;;  %v15016_v18 = vshrl.u32 %v19602_v9, 16  ;;  %v27446_v14 = vld [vmem:[%s23348_s16 + $0xe4] sm:$0x1] }
 0x38e   : > { %v14962_v13 = vrot.slane %v14960_v35, 4  ;;  %v14965_v53 = vrot.slane %v14963_v43, 5  ;;  %v14979_v29 = vrot.slane %v14977_v36, 5  ;;  %v27443_v30 = vrot.slane %v14924_v5, 4  ;;  %28403 = vst [vmem:[#allocation4_spill] sm:$0xff] %v27446_v14 }
 0x38f   : > { %v14990_v15 = vrot.slane %v14988_v26, 4  ;;  %v14993_v62 = vrot.slane %v14991_v21, 5  ;;  %v15019_v22 = vshll.u32 %v19602_v9, 16  ;;  %v14916_v41 = vsel %vm23392_vm3, %v27428_v33, %v27408_v37  ;;  %v19604_v20 = vld [vmem:[%s23348_s16 + $0x110] sm:$0xf] }
 0x390   : > { %v27456_v48 = vrot.slane %v14938_v49, 4  ;;  %v14952_v17 = vor.u32 %v14951_v34, %v14948_v12  ;;  %v15004_v6 = vrot.slane %v15002_v0, 4  ;;  %v15007_v50 = vrot.slane %v15005_v3, 5  ;;  %v19606_v44 = vld [vmem:[%s23348_s16 + $0x118] sm:$0xf] }
 0x391   : > { %v15021_v51 = vrot.slane %v15019_v22, 5  ;;  %v14969_v25 = vshll.u32 %v27441_v59, 16  ;;  %v14983_v28 = vshll.u32 %v27446_v14, 16  ;;  %v27470_v61 = vld [vmem:[%s23348_s16 + $0x104] sm:$0x1]  ;;  %v15030_v55 = vshrl.u32 %v19604_v20, 16 }
 0x392   : > { %28405 = vst [vmem:[#allocation6_spill] sm:$0xff] %v27470_v61  ;;  %v27473_v11 = vld [vmem:[%s23348_s16 + $0x10c] sm:$0x1]  ;;  %v15033_v54 = vshll.u32 %v19604_v20, 16  ;;  %v22972_v16 = vld [vmem:[%s23348_s16 + $0x108] ss:$8 sps:$4 sm:$0xff]   ;;  %v15008_v9 = vor.u32 %v15007_v50, %v15004_v6 }
 0x393   : > { %28406 = vst [vmem:[#allocation7_spill] sm:$0xff] %v27473_v11  ;;  %v14953_v47 = vrot.slane %v14952_v17, 4  ;;  %v15044_v43 = vshrl.u32 %v19606_v44, 16  ;;  %v22974_v36 = vld [vmem:[%s23348_s16 + $0x180] ss:$8 sps:$4 sm:$0xff]   ;;  %v15025_v5 = vshll.u32 %v27473_v11, 16 }
 0x394   : > { %21074 = vmatmul.mubr.msk.bf16.gmra.mrb[24].mxu1 %vm979_vm0, %v18303_v7  ;;  %21582 = vmatmul.mubr.msk.bf16.gmra.mrb[12].mxu0 %vm979_vm0, %v22967_v39  ;;  %v14974_v7 = vshrl.u32 %v19596_v60, 16  ;;  %v14955_v39 = vshll.u32 %v27434_v4, 16  ;;  %v14994_v60 = vor.u32 %v14993_v62, %v14990_v15  ;;  %v22975_v31 = vld [vmem:[%s23348_s16 + $0x118] ss:$8 sps:$4 sm:$0xff]   ;;  %v14985_v12 = vrot.slane %v14983_v28, 5 }
 0x395   : > { %21077 = vmatprep.mubr.msk.bf16.mxu1 %vm979_vm0, %v18304_v1  ;;  %21585 = vmatprep.mubr.msk.bf16.mxu0 %vm979_vm0, %v22968_v23  ;;  %v27460_v1 = vld [vmem:[%s23348_s16 + $0xec] sm:$0x1]  ;;  %v14966_v23 = vor.u32 %v14965_v53, %v14962_v13  ;;  %v22977_v26 = vld [vmem:[%s23348_s16 + $0x1a0] ss:$8 sps:$4 sm:$0xff]   ;;  %v27483_v3 = vld [vmem:[%s23348_s16 + $0x114] sm:$0x1]  ;;  %v14930_v53 = vsel %vm23392_vm3, %v27443_v30, %v27421_v8 }
 0x396   : > { %v14976_v40 = vrot.slane %v14974_v7, 4  ;;  %28404 = vst [vmem:[#allocation5_spill] sm:$0xff] %v27460_v1  ;;  %v14997_v58 = vshll.u32 %v27460_v1, 16  ;;  %v14957_v35 = vrot.slane %v14955_v39, 5  ;;  %v15047_v7 = vshll.u32 %v19606_v44, 16  ;;  %v28414_v38 = vld [vmem:[#allocation2_spill] sm:$0xff] }
 0x397   : > { %v14967_v21 = vrot.slane %v14966_v23, 4  ;;  %v14995_v34 = vrot.slane %v14994_v60, 4  ;;  %v15035_v13 = vrot.slane %v15033_v54, 5  ;;  %v19608_v62 = vld [vmem:[%s23348_s16 + $0x120] sm:$0xf]  ;;  %v15009_v22 = vrot.slane %v15008_v9, 4 }
 0x398   : > { %v14980_v2 = vor.u32 %v14979_v29, %v14976_v40  ;;  %v14999_v0 = vrot.slane %v14997_v58, 5  ;;  %v14944_v40 = vsel %vm23392_vm3, %v27456_v48, %v27431_v32  ;;  %v15046_v29 = vrot.slane %v15044_v43, 4  ;;  %v27498_v30 = vld [vmem:[%s23348_s16 + $0x11c] sm:$0x1]  ;;  %v22976_v20 = vld [vmem:[%s23348_s16 + $0x128] ss:$8 sps:$4 sm:$0xff]  }
 0x399   : > { %v15049_v15 = vrot.slane %v15047_v7, 5  ;;  %v15027_v8 = vrot.slane %v15025_v5, 5  ;;  %v14958_v32 = vsel %vm23392_vm3, %v14953_v47, %v14957_v35  ;;  %v15039_v50 = vshll.u32 %v27483_v3, 16  ;;  %v22980_v60 = vld [vmem:[%s23348_s16 + $0x148] ss:$8 sps:$4 sm:$0xff]  }
 0x39a   : > { %v14981_v49 = vrot.slane %v14980_v2, 4  ;;  %v15000_v44 = vsel %vm23392_vm3, %v14995_v34, %v14999_v0  ;;  %v15058_v2 = vshrl.u32 %v19608_v62, 16  ;;  %v15061_v28 = vshll.u32 %v19608_v62, 16  ;;  %v27540_v33 = vld [vmem:[%s23348_s16 + $0x12c] sm:$0x1] }
 0x39b   : > { %v27527_v58 = vcombine.low %v14902_v19, %v14916_v41  ;;  %v15053_v54 = vshll.u32 %v27498_v30, 16  ;;  %v27531_v47 = vcombine.low %v14930_v53, %v14944_v40  ;;  %v19612_v52 = vld [vmem:[%s23348_s16 + $0x130] sm:$0xf]  ;;  %v27545_v19 = vrot.slane %v15039_v50, 5  ;;  %v27564_v34 = vld [vmem:[%s23348_s16 + $0x134] sm:$0x1] }
 0x39c   : > { %21078 = vmatmul.mubr.msk.bf16.gmra.mrb[28].mxu1 %vm979_vm0, %v18305_v27  ;;  %21586 = vmatmul.mubr.msk.bf16.gmra.mrb[16].mxu0 %vm979_vm0, %v22969_v46  ;;  %v15018_v27 = vrot.slane %v15016_v18, 4  ;;  %v15011_v46 = vshll.u32 %v27470_v61, 16  ;;  %v15032_v18 = vrot.slane %v15030_v55, 4  ;;  %v14986_v6 = vsel %vm23392_vm3, %v14981_v49, %v14985_v12  ;;  %v19616_v5 = vld [vmem:[%s23348_s16 + $0x150] sm:$0xf] }
 0x39d   : > { %21105 = vmatprep.mubr.msk.bf16.mxu1 %vm979_vm0, %v22971_v45  ;;  %21589 = vmatprep.mubr.msk.bf16.mxu0 %vm979_vm0, %v22973_v56  ;;  %v14971_v56 = vrot.slane %v14969_v25, 5  ;;  %v19610_v25 = vld [vmem:[%s23348_s16 + $0x128] sm:$0xf]  ;;  %v15050_v55 = vor.u32 %v15049_v15, %v15046_v29  ;;  %v27543_v42 = vcombine.low %v14986_v6, %v15000_v44  ;;  %v15060_v9 = vrot.slane %v15058_v2, 4  ;;  %v19618_v12 = vld [vmem:[%s23348_s16 + $0x158] sm:$0xf] }
 0x39e   : > { %v15022_v45 = vor.u32 %v15021_v51, %v15018_v27  ;;  %v15013_v17 = vrot.slane %v15011_v46, 5  ;;  %v27510_v27 = vld [vmem:[%s23348_s16 + $0x124] sm:$0x1]  ;;  %v22978_v51 = vld [vmem:[%s23348_s16 + $0x1b0] ss:$8 sps:$4 sm:$0xff]   ;;  %v15036_v23 = vor.u32 %v15035_v13, %v15032_v18  ;;  %v15072_v7 = vshrl.u32 %v19610_v25, 16 }
 0x39f   : > { %v14972_v48 = vsel %vm23392_vm3, %v14967_v21, %v14971_v56  ;;  %v15067_v41 = vshll.u32 %v27510_v27, 16  ;;  %v15063_v46 = vrot.slane %v15061_v28, 5  ;;  %v27555_v21 = vrot.slane %v15050_v55, 4  ;;  %v22981_v40 = vld [vmem:[%s23348_s16 + $0x158] ss:$8 sps:$4 sm:$0xff]  }
 0x3a0   : > { %v15023_v39 = vrot.slane %v15022_v45, 4  ;;  %v27533_v35 = vcombine.low %v14958_v32, %v14972_v48  ;;  %v15014_v43 = vsel %vm23392_vm3, %v15009_v22, %v15013_v17  ;;  %v15075_v45 = vshll.u32 %v19610_v25, 16  ;;  %v22983_v17 = vld [vmem:[%s23348_s16 + $0x1d0] ss:$8 sps:$4 sm:$0xff]   ;;  %v19620_v6 = vld [vmem:[%s23348_s16 + $0x160] sm:$0xf] }
 0x3a1   : > { %v27557_v56 = vrot.slane %v15053_v54, 5  ;;  %v15081_v49 = vshll.u32 %v27540_v33, 16  ;;  %v15086_v0 = vshrl.u32 %v19612_v52, 16  ;;  %v15089_v18 = vshll.u32 %v19612_v52, 16  ;;  %v19622_v2 = vld [vmem:[%s23348_s16 + $0x168] sm:$0xf] }
 0x3a2   : > { %v15028_v37 = vsel %vm23392_vm3, %v15023_v39, %v15027_v8  ;;  %v27568_v29 = vrot.slane %v15067_v41, 5  ;;  %v15074_v15 = vrot.slane %v15072_v7, 4  ;;  %v15114_v62 = vshrl.u32 %v19616_v5, 16  ;;  %v22984_v39 = vld [vmem:[%s23348_s16 + $0x168] ss:$8 sps:$4 sm:$0xff]  }
 0x3a3   : > { %v15117_v22 = vshll.u32 %v19616_v5, 16  ;;  %v15064_v8 = vor.u32 %v15063_v46, %v15060_v9  ;;  %v15128_v32 = vshrl.u32 %v19618_v12, 16  ;;  %v15131_v48 = vshll.u32 %v19618_v12, 16  ;;  %v27731_v59 = vld [vmem:[%s23348_s16 + $0x1bc] sm:$0x1] }
 0x3a4   : > { %21106 = vmatmul.mubr.msk.bf16.vlgmr.msra.gmra.mrb[16].mxu1 %vm979_vm0, %v22972_v16  ;;  %21590 = vmatmul.mubr.msk.bf16.gmra.mrb[20].mxu0 %vm979_vm0, %v22974_v36  ;;  %v22982_v16 = vld [vmem:[%s23348_s16 + $0x1c0] ss:$8 sps:$4 sm:$0xff]   ;;  %v19614_v36 = vld [vmem:[%s23348_s16 + $0x138] sm:$0xf]  ;;  %v27581_v44 = vrot.slane %v15081_v49, 5  ;;  %v15095_v25 = vshll.u32 %v27564_v34, 16 }
 0x3a5   : > { %21109 = vmatprep.mubr.msk.bf16.mxu1 %vm979_vm0, %v22975_v31  ;;  %21593 = vmatprep.mubr.msk.bf16.mxu0 %vm979_vm0, %v22977_v26  ;;  %v27549_v31 = vrot.slane %v15036_v23, 4  ;;  %v27553_v26 = vcombine.low %v15014_v43, %v15028_v37  ;;  %v15100_v13 = vshrl.u32 %v19614_v36, 16  ;;  %v15103_v53 = vshll.u32 %v19614_v36, 16  ;;  %v27584_v23 = vld [vmem:[%s23348_s16 + $0x13c] sm:$0x1] }
 0x3a6   : > { %v15088_v28 = vrot.slane %v15086_v0, 4  ;;  %v27590_v43 = vld [vmem:[%s23348_s16 + $0x154] sm:$0x1]  ;;  %v15116_v37 = vrot.slane %v15114_v62, 4  ;;  %v15119_v52 = vrot.slane %v15117_v22, 5  ;;  %v15145_v41 = vshll.u32 %v19620_v6, 16  ;;  %21682 = vmatpush3.bf16.msra.mxu1 %v22990_v63 }
 0x3a7   : > { %v15042_v50 = vsel %vm23392_vm3, %v27549_v31, %v27545_v19  ;;  %v15102_v55 = vrot.slane %v15100_v13, 4  ;;  %v15105_v54 = vrot.slane %v15103_v53, 5  ;;  %v15142_v19 = vshrl.u32 %v19620_v6, 16  ;;  %v27595_v31 = vld [vmem:[%s23348_s16 + $0x15c] sm:$0x1]  ;;  %v22995_v63 = vld [vmem:[%s28373_s6 + $0x8] sm:$0xff]  }
 0x3a8   : > { %v27592_v7 = vrot.slane %v15064_v8, 4  ;;  %v15130_v9 = vrot.slane %v15128_v32, 4  ;;  %v15133_v46 = vrot.slane %v15131_v48, 5  ;;  %v15159_v5 = vshll.u32 %v19622_v2, 16  ;;  %v27603_v13 = vld [vmem:[%s23348_s16 + $0x164] sm:$0x1] }
 0x3a9   : > { %v15106_v12 = vor.u32 %v15105_v54, %v15102_v55  ;;  %v15109_v0 = vshll.u32 %v27584_v23, 16  ;;  %v22985_v53 = vld [vmem:[%s23348_s16 + $0x178] ss:$8 sps:$4 sm:$0xff]   ;;  %v15144_v62 = vrot.slane %v15142_v19, 4  ;;  %v15147_v22 = vrot.slane %v15145_v41, 5  ;;  %v22987_v41 = vld [vmem:[%s28369_s2 + $0x348] sm:$0xff]  }
 0x3aa   : > { %v27611_v8 = vrot.slane %v15095_v25, 5  ;;  %v27614_v32 = vld [vmem:[%s23348_s16 + $0x16c] sm:$0x1]  ;;  %v27617_v48 = vld [vmem:[%s23348_s16 + $0x174] sm:$0x1]  ;;  %v15151_v25 = vshll.u32 %v27603_v13, 16 }
 0x3ab   : > { %v15107_v54 = vrot.slane %v15106_v12, 4  ;;  %v19628_v19 = vld [vmem:[%s23348_s16 + $0x180] sm:$0xf] }
 0x3ac   : > { %21110 = vmatmul.mubr.msk.bf16.gmra.mrb[20].mxu1 %vm979_vm0, %v22976_v20  ;;  %21594 = vmatmul.mubr.msk.bf16.gmra.mrb[24].mxu0 %vm979_vm0, %v22978_v51  ;;  %v15077_v20 = vrot.slane %v15075_v45, 5  ;;  %v15056_v51 = vsel %vm23392_vm3, %v27555_v21, %v27557_v56  ;;  %v15156_v45 = vshrl.u32 %v19622_v2, 16  ;;  %v15161_v2 = vrot.slane %v15159_v5, 5 }
 0x3ad   : > { %21113 = vmatprep.mubr.msk.bf16.mxu1 %vm979_vm0, %v22980_v60  ;;  %21597 = vmatprep.mubr.msk.bf16.mxu0 %vm979_vm0, %v22982_v16  ;;  %v15091_v60 = vrot.slane %v15089_v18, 5  ;;  %v19624_v16 = vld [vmem:[%s23348_s16 + $0x170] sm:$0xf]  ;;  %v15123_v18 = vshll.u32 %v27590_v43, 16  ;;  %v15070_v5 = vsel %vm23392_vm3, %v27592_v7, %v27568_v29  ;;  %v15201_v29 = vshll.u32 %v19628_v19, 16 }
 0x3ae   : > { %v15078_v36 = vor.u32 %v15077_v20, %v15074_v15  ;;  %v15170_v21 = vshrl.u32 %v19624_v16, 16  ;;  %v15173_v56 = vshll.u32 %v19624_v16, 16  ;;  %v15137_v15 = vshll.u32 %v27595_v31, 16 }
 0x3af   : > { %v15092_v49 = vor.u32 %v15091_v60, %v15088_v28  ;;  %v15134_v20 = vor.u32 %v15133_v46, %v15130_v9  ;;  %v15158_v6 = vrot.slane %v15156_v45, 4  ;;  %v19626_v28 = vld [vmem:[%s23348_s16 + $0x178] sm:$0xf]  ;;  %v15111_v16 = vrot.slane %v15109_v0, 5 }
 0x3b0   : > { %v15175_v60 = vrot.slane %v15173_v56, 5  ;;  %v15165_v9 = vshll.u32 %v27614_v32, 16  ;;  %v15179_v46 = vshll.u32 %v27617_v48, 16  ;;  %v15184_v45 = vshrl.u32 %v19626_v28, 16 }
 0x3b1   : > { %v15093_v55 = vrot.slane %v15092_v49, 4  ;;  %v15187_v49 = vshll.u32 %v19626_v28, 16 }
 0x3b3   : > { %v15098_v0 = vsel %vm23392_vm3, %v15093_v55, %v27611_v8  ;;  %v15186_v8 = vrot.slane %v15184_v45, 4  ;;  %v15189_v28 = vrot.slane %v15187_v49, 5  ;;  %v22989_v45 = vld [vmem:[%s28369_s2 + $0x358] sm:$0xff]  }
 0x3b4   : > { %21114 = vmatmul.mubr.msk.bf16.gmra.mrb[24].mxu1 %vm979_vm0, %v22981_v40  ;;  %21598 = vmatmul.mubr.msk.bf16.gmra.mrb[28].mxu0 %vm979_vm0, %v22983_v17  ;;  %v15120_v40 = vor.u32 %v15119_v52, %v15116_v37  ;;  %v27609_v17 = vcombine.low %v15042_v50, %v15056_v51  ;;  %v15125_v37 = vrot.slane %v15123_v18, 5  ;;  %v15139_v51 = vrot.slane %v15137_v15, 5  ;;  %v27641_v18 = vld [vmem:[%s23348_s16 + $0x17c] sm:$0x1]  ;;  %v27655_v15 = vld [vmem:[%s23348_s16 + $0x184] sm:$0x1] }
 0x3b5   : > { %21117 = vmatprep.mubr.msk.bf16.mxu1 %vm979_vm0, %v22984_v39  ;;  %21609 = vmatprep.mubr.msk.bf16.mxu0 %vm979_vm0, %v27527_v58  ;;  %v15079_v39 = vrot.slane %v15078_v36, 4  ;;  %v15172_v58 = vrot.slane %v15170_v21, 4  ;;  %v15148_v52 = vor.u32 %v15147_v22, %v15144_v62  ;;  %v15135_v36 = vrot.slane %v15134_v20, 4  ;;  %v19630_v62 = vld [vmem:[%s23348_s16 + $0x188] sm:$0xf] }
 0x3b6   : > { %v15121_v50 = vrot.slane %v15120_v40, 4  ;;  %v15162_v21 = vor.u32 %v15161_v2, %v15158_v6  ;;  %v27652_v40 = vrot.slane %v15151_v25, 5  ;;  %v27660_v22 = vrot.slane %v15165_v9, 5  ;;  %v19632_v20 = vld [vmem:[%s23348_s16 + $0x1a0] sm:$0xf] }
 0x3b7   : > { %v15176_v56 = vor.u32 %v15175_v60, %v15172_v58  ;;  %v15084_v12 = vsel %vm23392_vm3, %v15079_v39, %v27581_v44  ;;  %v27650_v7 = vrot.slane %v15148_v52, 4  ;;  %v27665_v39 = vrot.slane %v15179_v46, 5  ;;  %v19634_v60 = vld [vmem:[%s23348_s16 + $0x1a8] sm:$0xf] }
 0x3b8   : > { %v15126_v44 = vsel %vm23392_vm3, %v15121_v50, %v15125_v37  ;;  %v27668_v6 = vrot.slane %v15162_v21, 4  ;;  %v15193_v58 = vshll.u32 %v27641_v18, 16  ;;  %v15212_v37 = vshrl.u32 %v19630_v62, 16  ;;  %v19642_v9 = vld [vmem:[%s23348_s16 + $0x1c8] sm:$0xf] }
 0x3b9   : > { %v27670_v2 = vrot.slane %v15176_v56, 4  ;;  %v27675_v50 = vcombine.low %v15070_v5, %v15084_v12  ;;  %v15226_v52 = vshrl.u32 %v19632_v20, 16  ;;  %v15229_v25 = vshll.u32 %v19632_v20, 16  ;;  %v19636_v12 = vld [vmem:[%s23348_s16 + $0x1b0] sm:$0xf] }
 0x3ba   : > { %v15240_v46 = vshrl.u32 %v19634_v60, 16  ;;  %v27699_v56 = vrot.slane %v15193_v58, 5  ;;  %v15243_v49 = vshll.u32 %v19634_v60, 16  ;;  %v27716_v5 = vld [vmem:[%s23348_s16 + $0x1ac] sm:$0x1]  ;;  %v15299_v14 = vshll.u32 %v19642_v9, 16 }
 0x3bb   : > { %v15228_v60 = vrot.slane %v15226_v52, 4  ;;  %v15231_v21 = vrot.slane %v15229_v25, 5  ;;  %28407 = vst [vmem:[#allocation8_spill] sm:$0xff] %v27716_v5  ;;  %v15296_v25 = vshrl.u32 %v19642_v9, 16  ;;  %v15249_v61 = vshll.u32 %v27716_v5, 16 }
 0x3bc   : > { %21118 = vmatmul.mubr.msk.bf16.gmra.mrb[28].mxu1 %vm979_vm0, %v22985_v53  ;;  %21610 = vmatmul.mubr.msk.bf16.vlgmr.msra.gmra.mrb[0].mxu0 %vm979_vm0, %v27531_v47  ;;  %v15198_v53 = vshrl.u32 %v19628_v19, 16  ;;  %v15112_v47 = vsel %vm23392_vm3, %v15107_v54, %v15111_v16  ;;  %v15203_v54 = vrot.slane %v15201_v29, 5  ;;  %v15207_v16 = vshll.u32 %v27655_v15, 16 }
 0x3bd   : > { %21642 = vmatpush3.bf16.msra.mxu0 %v27372_v10  ;;  %21613 = vmatprep.mubr.msk.bf16.mxu0 %vm979_vm0, %v27533_v35  ;;  %v15140_v10 = vsel %vm23392_vm3, %v15135_v36, %v15139_v51  ;;  %v22988_v35 = vld [vmem:[%s28369_s2 + $0x350] sm:$0xff]   ;;  %v15215_v51 = vshll.u32 %v19630_v62, 16  ;;  %v27677_v19 = vcombine.low %v15098_v0, %v15112_v47  ;;  %v19638_v0 = vld [vmem:[%s23348_s16 + $0x1b8] sm:$0xf]  ;;  %v27708_v62 = vld [vmem:[%s23348_s16 + $0x1a4] sm:$0x1] }
 0x3be   : > { %21643 = vmatprep.subr.bf16.mxu0 %v22987_v41  ;;  %v15200_v55 = vrot.slane %v15198_v53, 4  ;;  %v27679_v36 = vcombine.low %v15126_v44, %v15140_v10  ;;  %v15190_v53 = vor.u32 %v15189_v28, %v15186_v8  ;;  %v27705_v47 = vrot.slane %v15207_v16, 5  ;;  %v19640_v10 = vld [vmem:[%s23348_s16 + $0x1c0] sm:$0xf] }
 0x3bf   : > { %v15214_v44 = vrot.slane %v15212_v37, 4  ;;  %v15217_v20 = vrot.slane %v15215_v51, 5  ;;  %v15254_v8 = vshrl.u32 %v19636_v12, 16  ;;  %v15257_v28 = vshll.u32 %v19636_v12, 16 }
 0x3c0   : > { %v15204_v29 = vor.u32 %v15203_v54, %v15200_v55  ;;  %v15268_v55 = vshrl.u32 %v19638_v0, 16  ;;  %v15245_v54 = vrot.slane %v15243_v49, 5  ;;  %v15271_v16 = vshll.u32 %v19638_v0, 16  ;;  %v19644_v49 = vld [vmem:[%s23348_s16 + $0x1d0] sm:$0xf] }
 0x3c1   : > { %21644 = vmatpush3.bf16.msra.mxu0 %v22987_v41  ;;  %v27686_v41 = vld [vmem:[%s23348_s16 + $0x18c] sm:$0x1]  ;;  %v15282_v37 = vshrl.u32 %v19640_v10, 16  ;;  %v15235_v52 = vshll.u32 %v27708_v62, 16  ;;  %v15218_v11 = vor.u32 %v15217_v20, %v15214_v44  ;;  %v15232_v12 = vor.u32 %v15231_v21, %v15228_v60  ;;  %v27728_v0 = vld [vmem:[%s23348_s16 + $0x1b4] sm:$0x1] }
 0x3c2   : > { %21645 = vmatprep.subr.bf16.mxu0 %v22988_v35  ;;  %v15221_v58 = vshll.u32 %v27686_v41, 16  ;;  %v27720_v51 = vrot.slane %v15204_v29, 4  ;;  %28408 = vst [vmem:[#allocation9_spill] sm:$0xff] %v27728_v0  ;;  %v15270_v1 = vrot.slane %v15268_v55, 4  ;;  %v15273_v4 = vrot.slane %v15271_v16, 5 }
 0x3c3   : > { %v15284_v44 = vrot.slane %v15282_v37, 4  ;;  %v27736_v21 = vld [vmem:[%s23348_s16 + $0x1c4] sm:$0x1]  ;;  %v15310_v60 = vshrl.u32 %v19644_v49, 16  ;;  %v27746_v55 = vld [vmem:[%s23348_s16 + $0x1cc] sm:$0x1] }
 0x3c4   : > { %21614 = vmatmul.mubr.msk.bf16.gmra.mrb[4].mxu0 %vm979_vm0, %v27543_v42  ;;  %v15242_v42 = vrot.slane %v15240_v46, 4  ;;  %v27723_v46 = vrot.slane %v15221_v58, 5  ;;  %v15301_v58 = vrot.slane %v15299_v14, 5  ;;  %v15251_v16 = vrot.slane %v15249_v61, 5 }
 0x3c5   : > { %21617 = vmatprep.mubr.msk.bf16.mxu0 %vm979_vm0, %v27553_v26  ;;  %21646 = vmatpush3.bf16.msra.mxu0 %v22988_v35  ;;  %v15285_v26 = vshll.u32 %v19640_v10, 16  ;;  %v27718_v35 = vrot.slane %v15190_v53, 4  ;;  %v15256_v10 = vrot.slane %v15254_v8, 4  ;;  %v15259_v53 = vrot.slane %v15257_v28, 5 }
 0x3c6   : > { %21647 = vmatprep.subr.bf16.mxu0 %v22989_v45  ;;  %v15246_v29 = vor.u32 %v15245_v54, %v15242_v42  ;;  %v15313_v8 = vshll.u32 %v19644_v49, 16  ;;  %v15219_v42 = vrot.slane %v15218_v11, 4  ;;  %v15237_v28 = vrot.slane %v15235_v52, 5 }
 0x3c7   : > { %v15287_v20 = vrot.slane %v15285_v26, 5  ;;  %v15196_v9 = vsel %vm23392_vm3, %v27718_v35, %v27699_v56  ;;  %v15233_v54 = vrot.slane %v15232_v12, 4  ;;  %v15260_v14 = vor.u32 %v15259_v53, %v15256_v10  ;;  %v19646_v26 = vld [vmem:[%s23348_s16 + $0x1d8] sm:$0xf]  ;;  %v27753_v35 = vld [vmem:[%s23348_s16 + $0x1d4] sm:$0x1] }
 0x3c8   : > { %v15277_v37 = vshll.u32 %v27731_v59, 16  ;;  %v15291_v5 = vshll.u32 %v27736_v21, 16  ;;  %v15305_v11 = vshll.u32 %v27746_v55, 16  ;;  %v15312_v52 = vrot.slane %v15310_v60, 4 }
 0x3c9   : > { %21648 = vmatpush3.bf16.msra.mxu0 %v22989_v45  ;;  %v15298_v45 = vrot.slane %v15296_v25, 4  ;;  %v15247_v25 = vrot.slane %v15246_v29, 4  ;;  %v15288_v49 = vor.u32 %v15287_v20, %v15284_v44  ;;  %v15210_v61 = vsel %vm23392_vm3, %v27720_v51, %v27705_v47  ;;  %v27765_v20 = vld [vmem:[%s23348_s16 + $0x1dc] sm:$0x1] }
 0x3ca   : > { %v15327_v12 = vshll.u32 %v19646_v26, 16  ;;  %v15238_v10 = vsel %vm23392_vm3, %v15233_v54, %v15237_v28  ;;  %v15261_v53 = vrot.slane %v15260_v14, 4  ;;  %v15279_v44 = vrot.slane %v15277_v37, 5  ;;  %v27773_v28 = vld [vmem:[%s23348_s16 + $0xb0] sm:$0xe] }
 0x3cb   : > { %v15302_v56 = vor.u32 %v15301_v58, %v15298_v45  ;;  %v15289_v58 = vrot.slane %v15288_v49, 4  ;;  %v15293_v47 = vrot.slane %v15291_v5, 5  ;;  %v15319_v51 = vshll.u32 %v27753_v35, 16  ;;  %v19702_v14 = vld [vmem:[%s23348_s16 + $0x110] sm:$0xe] }
 0x3cc   : > { %21618 = vmatmul.mubr.msk.bf16.gmra.mrb[8].mxu0 %vm979_vm0, %v27609_v17  ;;  %v15263_v17 = vshll.u32 %v27728_v0, 16  ;;  %v15315_v0 = vrot.slane %v15313_v8, 5  ;;  %v15307_v8 = vrot.slane %v15305_v11, 5  ;;  %v15329_v54 = vrot.slane %v15327_v12, 5 }
 0x3cd   : > { %21621 = vmatprep.mubr.msk.bf16.mxu0 %vm979_vm0, %v27675_v50  ;;  %v15274_v50 = vor.u32 %v15273_v4, %v15270_v1  ;;  %v15224_v4 = vsel %vm23392_vm3, %v15219_v42, %v27723_v46  ;;  %v15324_v1 = vshrl.u32 %v19646_v26, 16  ;;  %v15252_v46 = vsel %vm23392_vm3, %v15247_v25, %v15251_v16  ;;  %v19703_v25 = vld [vmem:[%s23348_s16 + $0x118] sm:$0xe] }
 0x3ce   : > { %v15265_v29 = vrot.slane %v15263_v17, 5  ;;  %v15303_v60 = vrot.slane %v15302_v56, 4  ;;  %v15316_v42 = vor.u32 %v15315_v0, %v15312_v52  ;;  %v27776_v17 = vld [vmem:[%s23348_s16 + $0xb8] sm:$0xe]  ;;  %v28410_v0 = vsel %vm23392_vm3, %v27650_v7, %v27652_v40  ;;  %v19704_v40 = vld [vmem:[%s23348_s16 + $0x120] sm:$0xe] }
 0x3cf   : > { %v15275_v45 = vrot.slane %v15274_v50, 4  ;;  %v15326_v5 = vrot.slane %v15324_v1, 4  ;;  %v15333_v26 = vshll.u32 %v27765_v20, 16  ;;  %v27798_v50 = vcombine.low %v15210_v61, %v15224_v4  ;;  %v19705_v56 = vld [vmem:[%s23348_s16 + $0x128] sm:$0xe] }
 0x3d0   : > { %v27800_v49 = vcombine.low %v15238_v10, %v15252_v46  ;;  %v19724_v52 = vrot.slane %v27773_v28, 9  ;;  %v15757_v61 = vrot.slane %v27380_v24, 5  ;;  %v19725_v4 = vrot.slane %v27776_v17, 9  ;;  %v19706_v1 = vld [vmem:[%s23348_s16 + $0x130] sm:$0xe] }
 0x3d1   : > { %v15280_v7 = vsel %vm23392_vm3, %v15275_v45, %v15279_v44  ;;  %v15330_v11 = vor.u32 %v15329_v54, %v15326_v5  ;;  %v27820_v12 = vrot.slane %v15333_v26, 5  ;;  %v15761_v10 = vrot.slane %v27383_v57, 5  ;;  %v19707_v44 = vld [vmem:[%s23348_s16 + $0x138] sm:$0xe]  ;;  %v19708_v45 = vld [vmem:[%s23348_s16 + $0x150] sm:$0xe] }
 0x3d2   : > { %v15801_v46 = vrot.slane %v27498_v30, 5  ;;  %v15805_v5 = vrot.slane %v27510_v27, 5  ;;  %v19738_v27 = vrot.slane %v19706_v1, 9  ;;  %v19697_v28 = vld [vmem:[%s23348_s16 + $0xd8] sm:$0xe] }
 0x3d3   : > { %v27843_v30 = vrot.slane %v15330_v11, 4 }
 0x3d4   : > { %21622 = vmatmul.mubr.msk.bf16.gmra.mrb[12].mxu0 %vm979_vm0, %v27677_v19  ;;  %v28409_v19 = vsel %vm23392_vm3, %v27668_v6, %v27660_v22  ;;  %v15266_v22 = vsel %vm23392_vm3, %v15261_v53, %v15265_v29  ;;  %v15308_v6 = vsel %vm23392_vm3, %v15303_v60, %v15307_v8  ;;  %v19734_v53 = vrot.slane %v19702_v14, 9  ;;  %v19709_v60 = vld [vmem:[%s23348_s16 + $0x158] sm:$0xe] }
 0x3d5   : > { %21625 = vmatprep.mubr.msk.bf16.mxu0 %vm979_vm0, %v27679_v36  ;;  %v19665_v16 = vcombine.low %v28410_v0, %v28409_v19  ;;  %v28411_v36 = vsel %vm23392_vm3, %v27670_v2, %v27665_v39  ;;  %v15294_v39 = vsel %vm23392_vm3, %v15289_v58, %v15293_v47  ;;  %v27811_v2 = vrot.slane %v15316_v42, 4 }
 0x3d6   : > { %v19666_v37 = vcombine.low %v28411_v36, %v15196_v9  ;;  %v27813_v9 = vrot.slane %v15319_v51, 5  ;;  %v15797_v29 = vrot.slane %v27483_v3, 5  ;;  %v27826_v58 = vcombine.low %v15266_v22, %v15280_v7  ;;  %v19711_v7 = vld [vmem:[%s23348_s16 + $0x168] sm:$0xe] }
 0x3d7   : > { %v27828_v47 = vcombine.low %v15294_v39, %v15308_v6  ;;  %v19735_v51 = vrot.slane %v19703_v25, 9  ;;  %v19736_v42 = vrot.slane %v19704_v40, 9  ;;  %v19737_v14 = vrot.slane %v19705_v56, 9  ;;  %v19712_v56 = vld [vmem:[%s23348_s16 + $0x170] sm:$0xe] }
 0x3d8   : > { %v15322_v8 = vsel %vm23392_vm3, %v27811_v2, %v27813_v9  ;;  %v27839_v3 = vsel %vm23924_vm6, %v19734_v53, %v15797_v29  ;;  %v15809_v19 = vrot.slane %v27540_v33, 5  ;;  %v15813_v36 = vrot.slane %v27564_v34, 5  ;;  %v19713_v29 = vld [vmem:[%s23348_s16 + $0x178] sm:$0xe]  ;;  %v28415_v2 = vld [vmem:[#allocation3_spill] sm:$0xff] }
 0x3d9   : > { %v27847_v54 = vsel %vm23924_vm6, %v19735_v51, %v15801_v46  ;;  %v19739_v25 = vrot.slane %v19707_v44, 9  ;;  %v15817_v22 = vrot.slane %v27584_v23, 5  ;;  %v19740_v33 = vrot.slane %v19708_v45, 9  ;;  %v19714_v46 = vld [vmem:[%s23348_s16 + $0x180] sm:$0xe] }
 0x3da   : > { %v19769_v0 = vcombine.low %v27839_v3, %v27847_v54  ;;  %v27860_v26 = vsel %vm23924_vm6, %v19737_v14, %v15809_v19  ;;  %v27868_v39 = vsel %vm23924_vm6, %v19738_v27, %v15813_v36  ;;  %v15821_v34 = vrot.slane %v27590_v43, 5  ;;  %v19716_v14 = vld [vmem:[%s23348_s16 + $0x1a0] sm:$0xe]  ;;  %v22992_v3 = vld [vmem:[%s28371_s4 + $0x10] sm:$0xff]  }
 0x3db   : > { %v19741_v6 = vrot.slane %v19709_v60, 9  ;;  %v27874_v11 = vsel %vm23924_vm6, %v19739_v25, %v15817_v22  ;;  %v15825_v23 = vrot.slane %v27595_v31, 5  ;;  %v15829_v53 = vrot.slane %v27603_v13, 5 }
 0x3dc   : > { %21626 = vmatmul.mubr.msk.bf16.gmra.mrb[16].mxu0 %vm979_vm0, %v19665_v16  ;;  %v27854_v16 = vsel %vm23924_vm6, %v19736_v42, %v15805_v5  ;;  %v19771_v44 = vcombine.low %v27868_v39, %v27874_v11  ;;  %v27883_v43 = vsel %vm23924_vm6, %v19740_v33, %v15821_v34  ;;  %v19743_v45 = vrot.slane %v19711_v7, 9  ;;  %v19715_v5 = vld [vmem:[%s23348_s16 + $0x188] sm:$0xe]  ;;  %v19718_v33 = vld [vmem:[%s23348_s16 + $0x1b0] sm:$0xe] }
 0x3dd   : > { %21629 = vmatprep.mubr.msk.bf16.mxu0 %vm979_vm0, %v19666_v37  ;;  %v19710_v37 = vld [vmem:[%s23348_s16 + $0x160] sm:$0xe]  ;;  %v19770_v40 = vcombine.low %v27854_v16, %v27860_v26  ;;  %v15833_v51 = vrot.slane %v27614_v32, 5  ;;  %v27889_v60 = vsel %vm23924_vm6, %v19741_v6, %v15825_v23  ;;  %v19744_v13 = vrot.slane %v19712_v56, 9  ;;  %v19719_v6 = vld [vmem:[%s23348_s16 + $0x1b8] sm:$0xe] }
 0x3de   : > { %v19742_v1 = vrot.slane %v19710_v37, 9  ;;  %v15837_v42 = vrot.slane %v27617_v48, 5  ;;  %v19772_v32 = vcombine.low %v27883_v43, %v27889_v60  ;;  %v19745_v27 = vrot.slane %v19713_v29, 9  ;;  %v19717_v37 = vld [vmem:[%s23348_s16 + $0x1a8] sm:$0xe] }
 0x3df   : > { %v27904_v19 = vsel %vm23924_vm6, %v19743_v45, %v15833_v51  ;;  %v15841_v36 = vrot.slane %v27641_v18, 5  ;;  %v19746_v25 = vrot.slane %v19714_v46, 9  ;;  %v15845_v22 = vrot.slane %v27655_v15, 5  ;;  %v28413_v46 = vld [vmem:[#allocation9_spill] sm:$0xff] }
 0x3e0   : > { %v27893_v31 = vsel %vm23924_vm6, %v19742_v1, %v15829_v53  ;;  %v19747_v7 = vrot.slane %v19715_v5, 9  ;;  %v15849_v34 = vrot.slane %v27686_v41, 5  ;;  %v15853_v15 = vrot.slane %v27708_v62, 5  ;;  %v19720_v53 = vld [vmem:[%s23348_s16 + $0x1c0] sm:$0xe]  ;;  %v28412_v41 = vld [vmem:[#allocation8_spill] sm:$0xff] }
 0x3e1   : > { %v19773_v48 = vcombine.low %v27893_v31, %v27904_v19  ;;  %v27920_v18 = vsel %vm23924_vm6, %v19745_v27, %v15841_v36  ;;  %v27928_v23 = vsel %vm23924_vm6, %v19746_v25, %v15845_v22  ;;  %v19749_v1 = vrot.slane %v19717_v37, 9  ;;  %v19722_v36 = vld [vmem:[%s23348_s16 + $0x1d0] sm:$0xe] }
 0x3e2   : > { %v27934_v29 = vsel %vm23924_vm6, %v19747_v7, %v15849_v34  ;;  %v15857_v45 = vrot.slane %v28412_v41, 5  ;;  %v19750_v51 = vrot.slane %v19718_v33, 9  ;;  %v19751_v62 = vrot.slane %v19719_v6, 9  ;;  %v19723_v7 = vld [vmem:[%s23348_s16 + $0x1d8] sm:$0xe] }
 0x3e3   : > { %v19775_v5 = vcombine.low %v27928_v23, %v27934_v29  ;;  %v15865_v27 = vrot.slane %v27731_v59, 5  ;;  %v19752_v22 = vrot.slane %v19720_v53, 9  ;;  %v15869_v33 = vrot.slane %v27736_v21, 5  ;;  %v22994_v23 = vld [vmem:[%s28373_s6] sm:$0xff]  }
 0x3e4   : > { %21630 = vmatmul.mubr.msk.bf16.gmra.mrb[20].mxu0 %vm979_vm0, %v27798_v50  ;;  %v27914_v50 = vsel %vm23924_vm6, %v19744_v13, %v15837_v42  ;;  %v15861_v13 = vrot.slane %v28413_v46, 5  ;;  %v19721_v42 = vld [vmem:[%s23348_s16 + $0x1c8] sm:$0xe]  ;;  %v27949_v37 = vsel %vm23924_vm6, %v19749_v1, %v15857_v45  ;;  %v15873_v6 = vrot.slane %v27746_v55, 5 }
 0x3e5   : > { %21633 = vmatprep.mubr.msk.bf16.mxu0 %vm979_vm0, %v27800_v49  ;;  %v19748_v49 = vrot.slane %v19716_v14, 9  ;;  %v19774_v56 = vcombine.low %v27914_v50, %v27920_v18  ;;  %v27961_v59 = vsel %vm23924_vm6, %v19751_v62, %v15865_v27  ;;  %v27970_v21 = vsel %vm23924_vm6, %v19752_v22, %v15869_v33 }
 0x3e6   : > { %v27953_v25 = vsel %vm23924_vm6, %v19750_v51, %v15861_v13  ;;  %v19754_v1 = vrot.slane %v19722_v36, 9  ;;  %v15877_v53 = vrot.slane %v27753_v35, 5  ;;  %v15336_v55 = vsel %vm23392_vm3, %v27843_v30, %v27820_v12 }
 0x3e7   : > { %v27943_v14 = vsel %vm23924_vm6, %v19748_v49, %v15853_v15  ;;  %v19753_v49 = vrot.slane %v19721_v42, 9  ;;  %v19777_v15 = vcombine.low %v27953_v25, %v27961_v59  ;;  %v19755_v45 = vrot.slane %v19723_v7, 9  ;;  %v23202_v42 = vld [vmem:[%s23348_s16 + $0xcc] sm:$0x1]  ;;  %v19698_v7 = vld [vmem:[%s23348_s16 + $0xe0] sm:$0xe] }
 0x3e8   : > { %v19776_v34 = vcombine.low %v27943_v14, %v27949_v37  ;;  %v15881_v51 = vrot.slane %v27765_v20, 5  ;;  %v15758_v35 = vsel %vm23924_vm6, %v19724_v52, %v15757_v61  ;;  %v15762_v12 = vsel %vm23924_vm6, %v19725_v4, %v15761_v10  ;;  %v19696_v20 = vld [vmem:[%s23348_s16 + $0xd0] sm:$0xe]  ;;  %v23201_v10 = vld [vmem:[%s23348_s16 + $0xc4] sm:$0x1] }
 0x3e9   : > { %v27982_v41 = vsel %vm23924_vm6, %v19753_v49, %v15873_v6  ;;  %v28002_v24 = vsel %vm23924_vm6, %v19754_v1, %v15877_v53  ;;  %v19671_v57 = vcombine.low %v15322_v8, %v15336_v55  ;;  %v19764_v4 = vcombine.low %v15758_v35, %v15762_v12  ;;  %v19699_v1 = vld [vmem:[%s23348_s16 + $0xe8] sm:$0xe]  ;;  %v19700_v53 = vld [vmem:[%s23348_s16 + $0x100] sm:$0xe]  ;;  %v28416_v35 = vld [vmem:[#allocation4_spill] sm:$0xff] }
 0x3ea   : > { %v19778_v30 = vcombine.low %v27970_v21, %v27982_v41  ;;  %v28008_v52 = vsel %vm23924_vm6, %v19755_v45, %v15881_v51  ;;  %v15765_v46 = vrot.slane %v23201_v10, 5  ;;  %v15769_v62 = vrot.slane %v23202_v42, 5  ;;  %v19701_v55 = vld [vmem:[%s23348_s16 + $0x108] sm:$0xe] }
 0x3eb   : > { %v19779_v61 = vcombine.low %v28002_v24, %v28008_v52  ;;  %v19728_v27 = vrot.slane %v19696_v20, 9  ;;  %v15773_v36 = vrot.slane %v28414_v38, 5  ;;  %v19729_v22 = vrot.slane %v19697_v28, 9  ;;  %v28417_v24 = vld [vmem:[#allocation5_spill] sm:$0xff]  ;;  %v28418_v52 = vld [vmem:[#allocation6_spill] sm:$0xff] }
 0x3ec   : > { %21634 = vmatmul.mubr.msk.bf16.gmra.mrb[24].mxu0 %vm979_vm0, %v27826_v58  ;;  %v19694_v58 = vld [vmem:[%s23348_s16 + $0xc0] sm:$0xe]  ;;  %v15777_v9 = vrot.slane %v28415_v2, 5  ;;  %v19730_v45 = vrot.slane %v19698_v7, 9  ;;  %v15781_v12 = vrot.slane %v28416_v35, 5  ;;  %v15785_v20 = vrot.slane %v28417_v24, 5 }
 0x3ed   : > { %21637 = vmatprep.mubr.msk.bf16.mxu0 %vm979_vm0, %v27828_v47  ;;  %v19695_v47 = vld [vmem:[%s23348_s16 + $0xc8] sm:$0xe]  ;;  %v19726_v17 = vrot.slane %v19694_v58, 9  ;;  %v15774_v49 = vsel %vm23924_vm6, %v19728_v27, %v15773_v36  ;;  %v19732_v28 = vrot.slane %v19700_v53, 9  ;;  %v28174_v7 = vld [vmem:[%s28370_s3] ss:$0 sm:$0xff] }
 0x3ee   : > { %v19727_v13 = vrot.slane %v19695_v47, 9  ;;  %v15778_v6 = vsel %vm23924_vm6, %v19729_v22, %v15777_v9  ;;  %v19731_v47 = vrot.slane %v19699_v1, 9  ;;  %v22991_v36 = vld [vmem:[%s28371_s4 + $0x8] sm:$0xff]  }
 0x3ef   : > { %v15766_v8 = vsel %vm23924_vm6, %v19726_v17, %v15765_v46  ;;  %v19766_v51 = vcombine.low %v15774_v49, %v15778_v6  ;;  %v19733_v17 = vrot.slane %v19701_v55, 9  ;;  %v15782_v46 = vsel %vm23924_vm6, %v19730_v45, %v15781_v12  ;;  %21683 = vmatprep.subr.bf16.mxu1 %v22991_v36 }
 0x3f0   : > { %v15770_v33 = vsel %vm23924_vm6, %v19727_v13, %v15769_v62  ;;  %v15786_v13 = vsel %vm23924_vm6, %v19731_v47, %v15785_v20  ;;  %21684 = vmatpush3.bf16.msra.mxu1 %v22991_v36 }
 0x3f1   : > { %v19765_v58 = vcombine.low %v15766_v8, %v15770_v33  ;;  %v19767_v27 = vcombine.low %v15782_v46, %v15786_v13  ;;  %21685 = vmatprep.subr.bf16.mxu1 %v22992_v3 }
 0x3f4   : > { %21638 = vmatmul.mubr.msk.bf16.gmra.mrb[28].mxu0 %vm979_vm0, %v19671_v57  ;;  %v15789_v57 = vrot.slane %v28418_v52, 5  ;;  %21686 = vmatpush3.bf16.msra.mxu1 %v22992_v3 }
 0x3f5   : > { %21649 = vmatprep.mubr.msk.bf16.mxu0 %vm979_vm0, %v19764_v4  ;;  %v28419_v4 = vld [vmem:[#allocation7_spill] sm:$0xff] }
 0x3f6   : > { %v15793_v10 = vrot.slane %v28419_v4, 5  ;;  %v15790_v42 = vsel %vm23924_vm6, %v19732_v28, %v15789_v57 }
 0x3f8   : > { %v15794_v62 = vsel %vm23924_vm6, %v19733_v17, %v15793_v10 }
 0x3f9   : > { %v19768_v38 = vcombine.low %v15790_v42, %v15794_v62 }
 0x3fc   : > { %21650 = vmatmul.mubr.msk.bf16.vlgmr.msra.gmra.mrb[0].mxu0 %vm979_vm0, %v19765_v58 }
 0x3fd   : > { %21653 = vmatprep.mubr.msk.bf16.mxu0 %vm979_vm0, %v19766_v51 }
 0x404   : > { %21654 = vmatmul.mubr.msk.bf16.gmra.mrb[4].mxu0 %vm979_vm0, %v19767_v27 }
 0x405   : > { %21657 = vmatprep.mubr.msk.bf16.mxu0 %vm979_vm0, %v19768_v38 }
 0x40c   : > { %21658 = vmatmul.mubr.msk.bf16.gmra.mrb[8].mxu0 %vm979_vm0, %v19769_v0 }
 0x40d   : > { %21661 = vmatprep.mubr.msk.bf16.mxu0 %vm979_vm0, %v19770_v40 }
 0x414   : > { %21662 = vmatmul.mubr.msk.bf16.gmra.mrb[12].mxu0 %vm979_vm0, %v19771_v44 }
 0x415   : > { %21665 = vmatprep.mubr.msk.bf16.mxu0 %vm979_vm0, %v19772_v32 }
 0x41c   : > { %21666 = vmatmul.mubr.msk.bf16.gmra.mrb[16].mxu0 %vm979_vm0, %v19773_v48 }
 0x41d   : > { %21669 = vmatprep.mubr.msk.bf16.mxu0 %vm979_vm0, %v19774_v56  ;;  %v22993_v56 = vld [vmem:[%s28371_s4 + $0x18] sm:$0xff]  }
 0x41e   : > { %21687 = vmatprep.subr.bf16.mxu1 %v22993_v56 }
 0x41f   : > { %21688 = vmatpush3.bf16.msra.mxu1 %v22993_v56 }
 0x420   : > { %21721 = vmatprep.subr.bf16.mxu1 %v22994_v23 }
 0x424   : > { %21670 = vmatmul.mubr.msk.bf16.gmra.mrb[20].mxu0 %vm979_vm0, %v19775_v5 }
 0x425   : > { %21673 = vmatprep.mubr.msk.bf16.mxu0 %vm979_vm0, %v19776_v34 }
 0x42c   : > { %21674 = vmatmul.mubr.msk.bf16.gmra.mrb[24].mxu0 %vm979_vm0, %v19777_v15 }
 0x42d   : > { %21677 = vmatprep.mubr.msk.bf16.mxu0 %vm979_vm0, %v19778_v30 }
 0x434   : > { %21678 = vmatmul.mubr.msk.bf16.gmra.mrb[28].mxu0 %vm979_vm0, %v19779_v61 }
 0x436   : > { %v21051_v54 = vpop.f32.mrb[0].mxu1 }
 0x437   : > { %v7200_v0 = vpop.f32.mrb[1].mxu1 }
 0x438   : > { %v21052_v16 = vpop.f32.mrb[2].mxu1 }
 0x439   : > { %v7203_v26 = vpop.f32.mrb[3].mxu1 }
 0x43e   : > { %v21055_v40 = vpop.f32.mrb[4].mxu1 }
 0x43f   : > { %v7216_v39 = vpop.f32.mrb[5].mxu1 }
 0x440   : > { %v28101_v11 = vpop.f32.mrb[6].mxu1 }
 0x441   : > { %v28103_v44 = vpop.f32.mrb[7].mxu1 }
 0x447   : > { %v28105_v43 = vpop.f32.mrb[8].mxu1 }
 0x448   : > { %v28107_v60 = vpop.f32.mrb[9].mxu1 }
 0x449   : > { %v28109_v31 = vpop.f32.mrb[10].mxu1 }
 0x44a   : > { %v28111_v32 = vpop.f32.mrb[11].mxu1 }
 0x44f   : > { %v28113_v19 = vpop.f32.mrb[12].mxu1 }
 0x450   : > { %v28115_v48 = vpop.f32.mrb[13].mxu1 }
 0x451   : > { %v28117_v50 = vpop.f32.mrb[14].mxu1 }
 0x452   : > { %v28119_v18 = vpop.f32.mrb[15].mxu1 }
 0x477   : > { %v28127_v29 = vpop.f32.mrb[16].mxu1 }
 0x478   : > { %v28129_v5 = vpop.f32.mrb[17].mxu1 }
 0x479   : > { %v28131_v14 = vpop.f32.mrb[18].mxu1 }
 0x47a   : > { %v28133_v37 = vpop.f32.mrb[19].mxu1 }
 0x47f   : > { %v28135_v25 = vpop.f32.mrb[20].mxu1 }
 0x480   : > { %v28137_v34 = vpop.f32.mrb[21].mxu1 }
 0x481   : > { %v28139_v59 = vpop.f32.mrb[22].mxu1 }
 0x482   : > { %v28141_v15 = vpop.f32.mrb[23].mxu1 }
 0x487   : > { %v28143_v21 = vpop.f32.mrb[24].mxu1 }
 0x488   : > { %v28145_v41 = vpop.f32.mrb[25].mxu1 }
 0x489   : > { %v28147_v30 = vpop.f32.mrb[26].mxu1 }
 0x48a   : > { %v28149_v61 = vpop.f32.mrb[27].mxu1 }
 0x48f   : > { %v28151_v22 = vpop.f32.mrb[28].mxu1 }
 0x490   : > { %v28153_v2 = vpop.f32.mrb[29].mxu1 }
 0x491   : > { %v28155_v9 = vpop.f32.mrb[30].mxu1 }
 0x492   : > { %v28157_v8 = vpop.f32.mrb[31].mxu1 }
 0x4cf   : > { %v21651_v33 = vpop.f32.mrb[0].mxu0 }
 0x4d0   : > { %v21769_v49 = vadd.f32 %v21651_v33, %v21051_v54  ;;  %v16046_v6 = vpop.f32.mrb[1].mxu0 }
 0x4d1   : > { %v21770_v1 = vadd.f32 %v16046_v6, %v7200_v0  ;;  %v21652_v53 = vpop.f32.mrb[2].mxu0 }
 0x4d2   : > { %v16214_v55 = vadd.f32 %v21769_v49, %v28174_v7  ;;  %v21771_v58 = vadd.f32 %v21652_v53, %v21052_v16  ;;  %v16049_v45 = vpop.f32.mrb[3].mxu0 }
 0x4d3   : > { %v16212_v51 = vadd.f32 %v21770_v1, %v28174_v7  ;;  %v21772_v35 = vadd.f32 %v16049_v45, %v7203_v26  ;;  %v22997_v45 = vld [vmem:[%s28373_s6 + $0x18] sm:$0xff]  }
 0x4d4   : > { %v16215_v12 = vadd.f32 %v21771_v58, %v28174_v7  ;;  %v16246_v24 = vmax.f32 %v16214_v55, 0.0 }
 0x4d5   : > { %v16213_v47 = vadd.f32 %v21772_v35, %v28174_v7  ;;  %v16244_v28 = vmax.f32 %v16212_v51, 0.0 }
 0x4d6   : > { %v16247_v20 = vmax.f32 %v16215_v12, 0.0 }
 0x4d7   : > { %v16245_v52 = vmax.f32 %v16213_v47, 0.0  ;;  %v21655_v57 = vpop.f32.mrb[4].mxu0 }
 0x4d8   : > { %v16277_v17 = vpack.c.bf16 %v16247_v20, %v16246_v24  ;;  %v21773_v4 = vadd.f32 %v21655_v57, %v21055_v40  ;;  %v16062_v10 = vpop.f32.mrb[5].mxu0  ;;  %v22996_v40 = vld [vmem:[%s28373_s6 + $0x10] sm:$0xff]  }
 0x4d9   : > { %v16276_v46 = vpack.c.bf16 %v16245_v52, %v16244_v28  ;;  %v21774_v13 = vadd.f32 %v16062_v10, %v7216_v39  ;;  %v21656_v42 = vpop.f32.mrb[6].mxu0 }
 0x4da   : > { %v16218_v62 = vadd.f32 %v21773_v4, %v28174_v7  ;;  %v21775_v27 = vadd.f32 %v21656_v42, %v28101_v11  ;;  %v16065_v38 = vpop.f32.mrb[7].mxu0 }
 0x4db   : > { %v16216_v36 = vadd.f32 %v21774_v13, %v28174_v7  ;;  %v21776_v3 = vadd.f32 %v16065_v38, %v28103_v44  ;;  %21689 = vmatprep.mubr.msk.bf16.mxu1 %vm979_vm0, %v16276_v46 }
 0x4dc   : > { %v16219_v54 = vadd.f32 %v21775_v27, %v28174_v7  ;;  %21690 = vmatmul.mubr.msk.bf16.vlgmr.msra.gmra.mrb[32].mxu1 %vm979_vm0, %v16277_v17  ;;  %v16250_v16 = vmax.f32 %v16218_v62, 0.0 }
 0x4dd   : > { %v16217_v0 = vadd.f32 %v21776_v3, %v28174_v7  ;;  %21722 = vmatpush3.bf16.msra.mxu1 %v22994_v23  ;;  %v16248_v39 = vmax.f32 %v16216_v36, 0.0 }
 0x4de   : > { %v16251_v26 = vmax.f32 %v16219_v54, 0.0  ;;  %21723 = vmatprep.subr.bf16.mxu1 %v22995_v63 }
 0x4df   : > { %v16249_v11 = vmax.f32 %v16217_v0, 0.0  ;;  %v21659_v56 = vpop.f32.mrb[8].mxu0 }
 0x4e0   : > { %v16279_v44 = vpack.c.bf16 %v16251_v26, %v16250_v16  ;;  %v21777_v33 = vadd.f32 %v21659_v56, %v28105_v43  ;;  %v16078_v49 = vpop.f32.mrb[9].mxu0 }
 0x4e1   : > { %v16278_v6 = vpack.c.bf16 %v16249_v11, %v16248_v39  ;;  %v21778_v1 = vadd.f32 %v16078_v49, %v28107_v60  ;;  %v21660_v53 = vpop.f32.mrb[10].mxu0  ;;  %21724 = vmatpush3.bf16.msra.mxu1 %v22995_v63 }
 0x4e2   : > { %v16222_v23 = vadd.f32 %v21777_v33, %v28174_v7  ;;  %v21779_v55 = vadd.f32 %v21660_v53, %v28109_v31  ;;  %v16081_v58 = vpop.f32.mrb[11].mxu0  ;;  %21725 = vmatprep.subr.bf16.mxu1 %v22996_v40 }
 0x4e3   : > { %v16220_v51 = vadd.f32 %v21778_v1, %v28174_v7  ;;  %v21780_v43 = vadd.f32 %v16081_v58, %v28111_v32  ;;  %21693 = vmatprep.mubr.msk.bf16.mxu1 %vm979_vm0, %v16278_v6 }
 0x4e4   : > { %v16223_v60 = vadd.f32 %v21779_v55, %v28174_v7  ;;  %21694 = vmatmul.mubr.msk.bf16.gmra.mrb[36].mxu1 %vm979_vm0, %v16279_v44  ;;  %v16254_v31 = vmax.f32 %v16222_v23, 0.0 }
 0x4e5   : > { %v16221_v35 = vadd.f32 %v21780_v43, %v28174_v7  ;;  %21726 = vmatpush3.bf16.msra.mxu1 %v22996_v40  ;;  %v16252_v47 = vmax.f32 %v16220_v51, 0.0 }
 0x4e6   : > { %v16255_v12 = vmax.f32 %v16223_v60, 0.0  ;;  %21727 = vmatprep.subr.bf16.mxu1 %v22997_v45 }
 0x4e7   : > { %v16253_v24 = vmax.f32 %v16221_v35, 0.0  ;;  %v21663_v20 = vpop.f32.mrb[12].mxu0 }
 0x4e8   : > { %v16281_v28 = vpack.c.bf16 %v16255_v12, %v16254_v31  ;;  %v21781_v52 = vadd.f32 %v21663_v20, %v28113_v19  ;;  %v16094_v57 = vpop.f32.mrb[13].mxu0 }
 0x4e9   : > { %v16280_v32 = vpack.c.bf16 %v16253_v24, %v16252_v47  ;;  %v21782_v17 = vadd.f32 %v16094_v57, %v28115_v48  ;;  %v21664_v4 = vpop.f32.mrb[14].mxu0  ;;  %21728 = vmatpush3.bf16.msra.mxu1 %v22997_v45 }
 0x4ea   : > { %v16226_v10 = vadd.f32 %v21781_v52, %v28174_v7  ;;  %v21783_v46 = vadd.f32 %v21664_v4, %v28117_v50  ;;  %v16097_v13 = vpop.f32.mrb[15].mxu0 }
 0x4eb   : > { %v16224_v42 = vadd.f32 %v21782_v17, %v28174_v7  ;;  %v21784_v62 = vadd.f32 %v16097_v13, %v28119_v18  ;;  %21697 = vmatprep.mubr.msk.bf16.mxu1 %vm979_vm0, %v16280_v32 }
 0x4ec   : > { %v16227_v27 = vadd.f32 %v21783_v46, %v28174_v7  ;;  %21698 = vmatmul.mubr.msk.bf16.gmra.mrb[40].mxu1 %vm979_vm0, %v16281_v28  ;;  %v16258_v48 = vmax.f32 %v16226_v10, 0.0 }
 0x4ed   : > { %v16225_v19 = vadd.f32 %v21784_v62, %v28174_v7  ;;  %v16256_v63 = vmax.f32 %v16224_v42, 0.0 }
 0x4ee   : > { %v16259_v38 = vmax.f32 %v16227_v27, 0.0 }
 0x4ef   : > { %v16257_v36 = vmax.f32 %v16225_v19, 0.0  ;;  %v21667_v3 = vpop.f32.mrb[16].mxu0 }
 0x4f0   : > { %v16283_v54 = vpack.c.bf16 %v16259_v38, %v16258_v48  ;;  %v21785_v50 = vadd.f32 %v21667_v3, %v28127_v29  ;;  %v16110_v0 = vpop.f32.mrb[17].mxu0 }
 0x4f1   : > { %v16282_v16 = vpack.c.bf16 %v16257_v36, %v16256_v63  ;;  %v21786_v18 = vadd.f32 %v16110_v0, %v28129_v5  ;;  %v21668_v26 = vpop.f32.mrb[18].mxu0 }
 0x4f2   : > { %v16230_v40 = vadd.f32 %v21785_v50, %v28174_v7  ;;  %v21787_v39 = vadd.f32 %v21668_v26, %v28131_v14  ;;  %v16113_v11 = vpop.f32.mrb[19].mxu0 }
 0x4f3   : > { %v16228_v56 = vadd.f32 %v21786_v18, %v28174_v7  ;;  %v21788_v44 = vadd.f32 %v16113_v11, %v28133_v37  ;;  %21701 = vmatprep.mubr.msk.bf16.mxu1 %vm979_vm0, %v16282_v16 }
 0x4f4   : > { %v16231_v33 = vadd.f32 %v21787_v39, %v28174_v7  ;;  %21702 = vmatmul.mubr.msk.bf16.gmra.mrb[44].mxu1 %vm979_vm0, %v16283_v54  ;;  %v16262_v49 = vmax.f32 %v16230_v40, 0.0 }
 0x4f5   : > { %v16229_v29 = vadd.f32 %v21788_v44, %v28174_v7  ;;  %v16260_v6 = vmax.f32 %v16228_v56, 0.0 }
 0x4f6   : > { %v16263_v5 = vmax.f32 %v16231_v33, 0.0  ;;  %v22999_v33 = vld [vmem:[%s28169_s20 + $0x8] sm:$0xff]  }
 0x4f7   : > { %v16261_v1 = vmax.f32 %v16229_v29, 0.0  ;;  %v21671_v53 = vpop.f32.mrb[20].mxu0  ;;  %v23001_v29 = vld [vmem:[%s28169_s20 + $0x18] sm:$0xff]  }
 0x4f8   : > { %v16285_v23 = vpack.c.bf16 %v16263_v5, %v16262_v49  ;;  %v21789_v14 = vadd.f32 %v21671_v53, %v28135_v25  ;;  %v16126_v55 = vpop.f32.mrb[21].mxu0  ;;  %v23002_v49 = vld [vmem:[%s28169_s20 + $0x20] sm:$0xff]   ;;  %v23003_v5 = vld [vmem:[%s28169_s20 + $0x28] sm:$0xff]  }
 0x4f9   : > { %v16284_v58 = vpack.c.bf16 %v16261_v1, %v16260_v6  ;;  %v21790_v37 = vadd.f32 %v16126_v55, %v28137_v34  ;;  %v21672_v45 = vpop.f32.mrb[22].mxu0  ;;  %v23004_v6 = vld [vmem:[%s28169_s20 + $0x30] sm:$0xff]   ;;  %v23005_v1 = vld [vmem:[%s28169_s20 + $0x38] sm:$0xff]   ;;  %v23006_v53 = vld [vmem:[%s28169_s20 + $0x40] sm:$0xff]  }
 0x4fa   : > { %v16234_v51 = vadd.f32 %v21789_v14, %v28174_v7  ;;  %v21791_v43 = vadd.f32 %v21672_v45, %v28139_v59  ;;  %v16129_v60 = vpop.f32.mrb[23].mxu0  ;;  %v23008_v14 = vld [vmem:[%s28169_s20 + $0x50] sm:$0xff]   ;;  %v23009_v55 = vld [vmem:[%s28169_s20 + $0x58] sm:$0xff]  }
 0x4fb   : > { %v16232_v35 = vadd.f32 %v21790_v37, %v28174_v7  ;;  %v21792_v31 = vadd.f32 %v16129_v60, %v28141_v15  ;;  %21705 = vmatprep.mubr.msk.bf16.mxu1 %vm979_vm0, %v16284_v58  ;;  %v23010_v58 = vld [vmem:[%s28169_s20 + $0x60] sm:$0xff]   ;;  %v23011_v37 = vld [vmem:[%s28169_s20 + $0x68] sm:$0xff]   ;;  %v23012_v45 = vld [vmem:[%s28169_s20 + $0x70] sm:$0xff]  }
 0x4fc   : > { %v16235_v12 = vadd.f32 %v21791_v43, %v28174_v7  ;;  %21706 = vmatmul.mubr.msk.bf16.gmra.mrb[48].mxu1 %vm979_vm0, %v16285_v23  ;;  %v16266_v47 = vmax.f32 %v16234_v51, 0.0  ;;  %v23007_v23 = vld [vmem:[%s28169_s20 + $0x48] sm:$0xff]   ;;  %v23013_v51 = vld [vmem:[%s28169_s20 + $0x78] sm:$0xff]   ;;  %v19801_v43 = vld [vmem:[%s28372_s5] ss:$0 sm:$0xff] }
 0x4fd   : > { %v16233_v25 = vadd.f32 %v21792_v31, %v28174_v7  ;;  %v16264_v24 = vmax.f32 %v16232_v35, 0.0  ;;  %v19822_v60 = vld [vmem:[%s28374_s7] ss:$0 sm:$0xff] }
 0x4fe   : > { %v16267_v34 = vmax.f32 %v16235_v12, 0.0  ;;  %v28297_v35 = vadd.f32 %v19822_v60, %v19801_v43 }
 0x4ff   : > { %v16265_v20 = vmax.f32 %v16233_v25, 0.0  ;;  %v21675_v28 = vpop.f32.mrb[24].mxu0 }
 0x500   : > { %v16287_v52 = vpack.c.bf16 %v16267_v34, %v16266_v47  ;;  %v21793_v59 = vadd.f32 %v21675_v28, %v28143_v21  ;;  %v16142_v57 = vpop.f32.mrb[25].mxu0 }
 0x501   : > { %v16286_v32 = vpack.c.bf16 %v16265_v20, %v16264_v24  ;;  %v21794_v15 = vadd.f32 %v16142_v57, %v28145_v41  ;;  %v21676_v17 = vpop.f32.mrb[26].mxu0 }
 0x502   : > { %v16238_v4 = vadd.f32 %v21793_v59, %v28174_v7  ;;  %v21795_v10 = vadd.f32 %v21676_v17, %v28147_v30  ;;  %v16145_v46 = vpop.f32.mrb[27].mxu0 }
 0x503   : > { %v16236_v13 = vadd.f32 %v21794_v15, %v28174_v7  ;;  %v21796_v42 = vadd.f32 %v16145_v46, %v28149_v61  ;;  %21709 = vmatprep.mubr.msk.bf16.mxu1 %vm979_vm0, %v16286_v32 }
 0x504   : > { %v16239_v62 = vadd.f32 %v21795_v10, %v28174_v7  ;;  %21710 = vmatmul.mubr.msk.bf16.gmra.mrb[52].mxu1 %vm979_vm0, %v16287_v52  ;;  %v16270_v27 = vmax.f32 %v16238_v4, 0.0 }
 0x505   : > { %v16237_v21 = vadd.f32 %v21796_v42, %v28174_v7  ;;  %v16268_v19 = vmax.f32 %v16236_v13, 0.0 }
 0x506   : > { %v16271_v41 = vmax.f32 %v16239_v62, 0.0 }
 0x507   : > { %v16269_v48 = vmax.f32 %v16237_v21, 0.0  ;;  %v21679_v38 = vpop.f32.mrb[28].mxu0 }
 0x508   : > { %v16289_v63 = vpack.c.bf16 %v16271_v41, %v16270_v27  ;;  %v21797_v30 = vadd.f32 %v21679_v38, %v28151_v22  ;;  %v16158_v36 = vpop.f32.mrb[29].mxu0 }
 0x509   : > { %v16288_v3 = vpack.c.bf16 %v16269_v48, %v16268_v19  ;;  %v21798_v61 = vadd.f32 %v16158_v36, %v28153_v2  ;;  %v21680_v54 = vpop.f32.mrb[30].mxu0 }
 0x50a   : > { %v16242_v50 = vadd.f32 %v21797_v30, %v28174_v7  ;;  %v21799_v0 = vadd.f32 %v21680_v54, %v28155_v9  ;;  %v16161_v16 = vpop.f32.mrb[31].mxu0 }
 0x50b   : > { %v16240_v18 = vadd.f32 %v21798_v61, %v28174_v7  ;;  %v21800_v26 = vadd.f32 %v16161_v16, %v28157_v8  ;;  %21713 = vmatprep.mubr.msk.bf16.mxu1 %vm979_vm0, %v16288_v3  ;;  %v22998_v8 = vld [vmem:[%s28169_s20] sm:$0xff]  }
 0x50c   : > { %v16243_v22 = vadd.f32 %v21799_v0, %v28174_v7  ;;  %21714 = vmatmul.mubr.msk.bf16.gmra.mrb[56].mxu1 %vm979_vm0, %v16289_v63  ;;  %v16274_v40 = vmax.f32 %v16242_v50, 0.0 }
 0x50d   : > { %v16241_v2 = vadd.f32 %v21800_v26, %v28174_v7  ;;  %v16272_v9 = vmax.f32 %v16240_v18, 0.0  ;;  %v23000_v7 = vld [vmem:[%s28169_s20 + $0x10] sm:$0xff]   ;;  %s28306_s20 = scalar_lea.vmem %s28375_s8, %s17282_s18 }
 0x50e   : > { %v16275_v39 = vmax.f32 %v16243_v22, 0.0 }
 0x50f   : > { %v16273_v11 = vmax.f32 %v16241_v2, 0.0 }
 0x510   : > { %v16291_v56 = vpack.c.bf16 %v16275_v39, %v16274_v40 }
 0x511   : > { %v16290_v44 = vpack.c.bf16 %v16273_v11, %v16272_v9 }
 0x513   : > { %21717 = vmatprep.mubr.msk.bf16.mxu1 %vm979_vm0, %v16290_v44 }
 0x514   : > { %21718 = vmatmul.mubr.msk.bf16.gmra.mrb[60].mxu1 %vm979_vm0, %v16291_v56 }
 0x515   : > { %21729 = vmatprep.mubr.msk.bf16.mxu1 %vm979_vm0, %v22998_v8 }
 0x51c   : > { %21730 = vmatmul.mubr.msk.bf16.vlgmr.msra.gmra.mrb[32].mxu1 %vm979_vm0, %v22999_v33 }
 0x51d   : > { %21733 = vmatprep.mubr.msk.bf16.mxu1 %vm979_vm0, %v23000_v7 }
 0x524   : > { %21734 = vmatmul.mubr.msk.bf16.gmra.mrb[36].mxu1 %vm979_vm0, %v23001_v29 }
 0x525   : > { %21737 = vmatprep.mubr.msk.bf16.mxu1 %vm979_vm0, %v23002_v49 }
 0x52c   : > { %21738 = vmatmul.mubr.msk.bf16.gmra.mrb[40].mxu1 %vm979_vm0, %v23003_v5 }
 0x52d   : > { %21741 = vmatprep.mubr.msk.bf16.mxu1 %vm979_vm0, %v23004_v6 }
 0x534   : > { %21742 = vmatmul.mubr.msk.bf16.gmra.mrb[44].mxu1 %vm979_vm0, %v23005_v1 }
 0x535   : > { %21745 = vmatprep.mubr.msk.bf16.mxu1 %vm979_vm0, %v23006_v53 }
 0x53c   : > { %21746 = vmatmul.mubr.msk.bf16.gmra.mrb[48].mxu1 %vm979_vm0, %v23007_v23 }
 0x53d   : > { %21749 = vmatprep.mubr.msk.bf16.mxu1 %vm979_vm0, %v23008_v14 }
 0x544   : > { %21750 = vmatmul.mubr.msk.bf16.gmra.mrb[52].mxu1 %vm979_vm0, %v23009_v55 }
 0x545   : > { %21753 = vmatprep.mubr.msk.bf16.mxu1 %vm979_vm0, %v23010_v58 }
 0x54c   : > { %21754 = vmatmul.mubr.msk.bf16.gmra.mrb[56].mxu1 %vm979_vm0, %v23011_v37 }
 0x54d   : > { %21757 = vmatprep.mubr.msk.bf16.mxu1 %vm979_vm0, %v23012_v45 }
 0x554   : > { %21758 = vmatmul.mubr.msk.bf16.gmra.mrb[60].mxu1 %vm979_vm0, %v23013_v51 }
 0x5ef   : > { %v21731_v31 = vpop.f32.mrb[32].mxu1 }
 0x5f0   : > { %v21801_v12 = vadd.f32 %v21731_v31, %v19801_v43  ;;  %v16773_v25 = vpop.f32.mrb[33].mxu1 }
 0x5f1   : > { %v21803_v47 = vadd.f32 %v19801_v43, %v16773_v25  ;;  %v21732_v34 = vpop.f32.mrb[34].mxu1 }
 0x5f2   : > { %v21802_v24 = vadd.f32 %v21801_v12, %v19822_v60  ;;  %v21806_v20 = vadd.f32 %v28297_v35, %v21732_v34  ;;  %v16776_v28 = vpop.f32.mrb[35].mxu1 }
 0x5f3   : > { %v21804_v52 = vadd.f32 %v21803_v47, %v19822_v60  ;;  %v21808_v59 = vadd.f32 %v28297_v35, %v16776_v28 }
 0x5f4   : > { %v16934_v57 = vmax.f32 %v21802_v24, 0.0  ;;  %v16935_v32 = vmax.f32 %v21806_v20, 0.0 }
 0x5f5   : > { %v16932_v15 = vmax.f32 %v21804_v52, 0.0  ;;  %v16933_v17 = vmax.f32 %v21808_v59, 0.0 }
 0x5f6   : > { %v19934_v4 = vpack.c.bf16 %v16935_v32, %v16934_v57 }
 0x5f7   : > { %v19929_v10 = vpack.c.bf16 %v16933_v17, %v16932_v15  ;;  %v21735_v46 = vpop.f32.mrb[36].mxu1 }
 0x5f8   : > { %20006 = vst [vmem:[%s28306_s20 + $0x8] sm:$0xff] %v19934_v4   ;;  %v21810_v13 = vadd.f32 %v28297_v35, %v21735_v46  ;;  %v16789_v42 = vpop.f32.mrb[37].mxu1 }
 0x5f9   : > { %19930 = vst [vmem:[%s28306_s20] sm:$0xff] %v19929_v10   ;;  %v21812_v62 = vadd.f32 %v28297_v35, %v16789_v42  ;;  %v21736_v21 = vpop.f32.mrb[38].mxu1 }
 0x5fa   : > { %v21814_v27 = vadd.f32 %v28297_v35, %v21736_v21  ;;  %v16792_v41 = vpop.f32.mrb[39].mxu1  ;;  %v16938_v48 = vmax.f32 %v21810_v13, 0.0 }
 0x5fb   : > { %v21816_v19 = vadd.f32 %v28297_v35, %v16792_v41  ;;  %v16936_v63 = vmax.f32 %v21812_v62, 0.0 }
 0x5fc   : > { %v16939_v38 = vmax.f32 %v21814_v27, 0.0 }
 0x5fd   : > { %v16937_v30 = vmax.f32 %v21816_v19, 0.0 }
 0x5fe   : > { %v19944_v36 = vpack.c.bf16 %v16939_v38, %v16938_v48 }
 0x5ff   : > { %v19939_v3 = vpack.c.bf16 %v16937_v30, %v16936_v63  ;;  %v21739_v61 = vpop.f32.mrb[40].mxu1 }
 0x600   : > { %20008 = vst [vmem:[%s28306_s20 + $0x18] sm:$0xff] %v19944_v36   ;;  %v21818_v54 = vadd.f32 %v28297_v35, %v21739_v61  ;;  %v16805_v50 = vpop.f32.mrb[41].mxu1 }
 0x601   : > { %20007 = vst [vmem:[%s28306_s20 + $0x10] sm:$0xff] %v19939_v3   ;;  %v21820_v0 = vadd.f32 %v28297_v35, %v16805_v50  ;;  %v21740_v16 = vpop.f32.mrb[42].mxu1 }
 0x602   : > { %v21822_v18 = vadd.f32 %v28297_v35, %v21740_v16  ;;  %v16808_v26 = vpop.f32.mrb[43].mxu1  ;;  %v16942_v2 = vmax.f32 %v21818_v54, 0.0 }
 0x603   : > { %v21824_v22 = vadd.f32 %v28297_v35, %v16808_v26  ;;  %v16940_v39 = vmax.f32 %v21820_v0, 0.0 }
 0x604   : > { %v16943_v40 = vmax.f32 %v21822_v18, 0.0 }
 0x605   : > { %v16941_v9 = vmax.f32 %v21824_v22, 0.0 }
 0x606   : > { %v19954_v11 = vpack.c.bf16 %v16943_v40, %v16942_v2 }
 0x607   : > { %v19949_v56 = vpack.c.bf16 %v16941_v9, %v16940_v39  ;;  %v21743_v44 = vpop.f32.mrb[44].mxu1 }
 0x608   : > { %20010 = vst [vmem:[%s28306_s20 + $0x28] sm:$0xff] %v19954_v11   ;;  %v21826_v8 = vadd.f32 %v28297_v35, %v21743_v44  ;;  %v16821_v33 = vpop.f32.mrb[45].mxu1 }
 0x609   : > { %20009 = vst [vmem:[%s28306_s20 + $0x20] sm:$0xff] %v19949_v56   ;;  %v21828_v7 = vadd.f32 %v28297_v35, %v16821_v33  ;;  %v21744_v29 = vpop.f32.mrb[46].mxu1 }
 0x60a   : > { %v21830_v49 = vadd.f32 %v28297_v35, %v21744_v29  ;;  %v16824_v5 = vpop.f32.mrb[47].mxu1  ;;  %v16946_v1 = vmax.f32 %v21826_v8, 0.0 }
 0x60b   : > { %v21832_v6 = vadd.f32 %v28297_v35, %v16824_v5  ;;  %v16944_v23 = vmax.f32 %v21828_v7, 0.0 }
 0x60c   : > { %v16947_v53 = vmax.f32 %v21830_v49, 0.0 }
 0x60d   : > { %v16945_v14 = vmax.f32 %v21832_v6, 0.0 }
 0x60e   : > { %v19964_v55 = vpack.c.bf16 %v16947_v53, %v16946_v1 }
 0x60f   : > { %v19959_v58 = vpack.c.bf16 %v16945_v14, %v16944_v23  ;;  %v21747_v37 = vpop.f32.mrb[48].mxu1 }
 0x610   : > { %20012 = vst [vmem:[%s28306_s20 + $0x38] sm:$0xff] %v19964_v55   ;;  %v21834_v45 = vadd.f32 %v28297_v35, %v21747_v37  ;;  %v16837_v51 = vpop.f32.mrb[49].mxu1 }
 0x611   : > { %20011 = vst [vmem:[%s28306_s20 + $0x30] sm:$0xff] %v19959_v58   ;;  %v21836_v43 = vadd.f32 %v28297_v35, %v16837_v51  ;;  %v21748_v60 = vpop.f32.mrb[50].mxu1 }
 0x612   : > { %v21838_v31 = vadd.f32 %v28297_v35, %v21748_v60  ;;  %v16840_v12 = vpop.f32.mrb[51].mxu1  ;;  %v16950_v47 = vmax.f32 %v21834_v45, 0.0 }
 0x613   : > { %v21840_v25 = vadd.f32 %v28297_v35, %v16840_v12  ;;  %v16948_v24 = vmax.f32 %v21836_v43, 0.0 }
 0x614   : > { %v16951_v34 = vmax.f32 %v21838_v31, 0.0 }
 0x615   : > { %v16949_v20 = vmax.f32 %v21840_v25, 0.0 }
 0x616   : > { %v19974_v28 = vpack.c.bf16 %v16951_v34, %v16950_v47 }
 0x617   : > { %v19969_v52 = vpack.c.bf16 %v16949_v20, %v16948_v24  ;;  %v21751_v59 = vpop.f32.mrb[52].mxu1 }
 0x618   : > { %20014 = vst [vmem:[%s28306_s20 + $0x48] sm:$0xff] %v19974_v28   ;;  %v21842_v57 = vadd.f32 %v28297_v35, %v21751_v59  ;;  %v16853_v32 = vpop.f32.mrb[53].mxu1 }
 0x619   : > { %20013 = vst [vmem:[%s28306_s20 + $0x40] sm:$0xff] %v19969_v52   ;;  %v21844_v15 = vadd.f32 %v28297_v35, %v16853_v32  ;;  %v21752_v17 = vpop.f32.mrb[54].mxu1 }
 0x61a   : > { %v21846_v4 = vadd.f32 %v28297_v35, %v21752_v17  ;;  %v16856_v10 = vpop.f32.mrb[55].mxu1  ;;  %v16954_v13 = vmax.f32 %v21842_v57, 0.0 }
 0x61b   : > { %v21848_v46 = vadd.f32 %v28297_v35, %v16856_v10  ;;  %v16952_v62 = vmax.f32 %v21844_v15, 0.0 }
 0x61c   : > { %v16955_v42 = vmax.f32 %v21846_v4, 0.0 }
 0x61d   : > { %v16953_v21 = vmax.f32 %v21848_v46, 0.0 }
 0x61e   : > { %v19984_v27 = vpack.c.bf16 %v16955_v42, %v16954_v13 }
 0x61f   : > { %v19979_v41 = vpack.c.bf16 %v16953_v21, %v16952_v62  ;;  %v21755_v19 = vpop.f32.mrb[56].mxu1 }
 0x620   : > { %20016 = vst [vmem:[%s28306_s20 + $0x58] sm:$0xff] %v19984_v27   ;;  %v21850_v48 = vadd.f32 %v28297_v35, %v21755_v19  ;;  %v16869_v38 = vpop.f32.mrb[57].mxu1 }
 0x621   : > { %20015 = vst [vmem:[%s28306_s20 + $0x50] sm:$0xff] %v19979_v41   ;;  %v21852_v63 = vadd.f32 %v28297_v35, %v16869_v38  ;;  %v21756_v30 = vpop.f32.mrb[58].mxu1 }
 0x622   : > { %v21854_v36 = vadd.f32 %v28297_v35, %v21756_v30  ;;  %v16872_v3 = vpop.f32.mrb[59].mxu1  ;;  %v16958_v54 = vmax.f32 %v21850_v48, 0.0 }
 0x623   : > { %v21856_v61 = vadd.f32 %v28297_v35, %v16872_v3  ;;  %v16956_v0 = vmax.f32 %v21852_v63, 0.0 }
 0x624   : > { %v16959_v50 = vmax.f32 %v21854_v36, 0.0 }
 0x625   : > { %v16957_v16 = vmax.f32 %v21856_v61, 0.0 }
 0x626   : > { %v19994_v18 = vpack.c.bf16 %v16959_v50, %v16958_v54 }
 0x627   : > { %v19989_v26 = vpack.c.bf16 %v16957_v16, %v16956_v0  ;;  %v21759_v22 = vpop.f32.mrb[60].mxu1 }
 0x628   : > { %20018 = vst [vmem:[%s28306_s20 + $0x68] sm:$0xff] %v19994_v18   ;;  %v21858_v2 = vadd.f32 %v28297_v35, %v21759_v22  ;;  %v16885_v40 = vpop.f32.mrb[61].mxu1 }
 0x629   : > { %20017 = vst [vmem:[%s28306_s20 + $0x60] sm:$0xff] %v19989_v26   ;;  %v21860_v39 = vadd.f32 %v28297_v35, %v16885_v40  ;;  %v21760_v9 = vpop.f32.mrb[62].mxu1 }
 0x62a   : > { %v21862_v11 = vadd.f32 %v28297_v35, %v21760_v9  ;;  %v16888_v56 = vpop.f32.mrb[63].mxu1  ;;  %v16962_v8 = vmax.f32 %v21858_v2, 0.0 }
 0x62b   : > { %v21864_v44 = vadd.f32 %v28297_v35, %v16888_v56  ;;  %v16960_v7 = vmax.f32 %v21860_v39, 0.0 }
 0x62c   : > { %v16963_v33 = vmax.f32 %v21862_v11, 0.0 }
 0x62d   : > { %v16961_v29 = vmax.f32 %v21864_v44, 0.0 }
 0x62e   : > { %v20004_v49 = vpack.c.bf16 %v16963_v33, %v16962_v8 }
 0x62f   : > { %v19999_v5 = vpack.c.bf16 %v16961_v29, %v16960_v7 }
 0x630   : > { %20020 = vst [vmem:[%s28306_s20 + $0x78] sm:$0xff] %v20004_v49  }
 0x631   : > { %20019 = vst [vmem:[%s28306_s20 + $0x70] sm:$0xff] %v19999_v5  }
 0x632 PF: > { %s18_s9 = sadd.s32 1, %s23241_s9   ;;  %s28420_s27 = smov %s23233_s29 }
 0x633   : > { %p15_p7 = scmp.ge.s32.totalorder %s18_s9, 6   ;;  %s28421_s28 = smov %s23237_s30 }
 0x634   : > { %s28422_s29 = smov %s28425_s10  ;;  %s28423_s30 = smov %s28429_s11 }
 0x635   :  { %17 = sbr.rel (!%p15_p7) target bundleno = 3 (0x3), region = 120 }

</bundles_post_ra>
